<compile_context>
chip_gen: v7x
topology: tpu7x:2x2x1
jax: 0.10.0
libtpu: 0.0.40
codegen_flags: <defaults>
</compile_context>

<pallas_src>
import functools
import math

import jax
import jax.numpy as jnp
from jax import lax
from jax.experimental import pallas as pl
from jax.experimental.pallas import tpu as pltpu


# ----------------------------------------------------------------------------
# Generation-aware VMEM budget + tiling helpers
# ----------------------------------------------------------------------------
def _vmem_limit_bytes():
    cap = 64 * 1024 * 1024                  # conservative default (v7x per-TC)
    try:
        cap = int(pltpu.get_tpu_info().vmem_capacity_bytes)
    except Exception:
        pass
    return max(32 * 1024 * 1024, min((cap * 3) // 4, 96 * 1024 * 1024))


VMEM_LIMIT_BYTES = _vmem_limit_bytes()


def _mosaic_params(*sem):
    return pltpu.CompilerParams(dimension_semantics=sem,
                                vmem_limit_bytes=VMEM_LIMIT_BYTES)


def _round_up(x, m):
    return ((x + m - 1) // m) * m


def _row_tiling(M, target=256):
    """(padded_rows, row_tile): tile is a multiple of 8; >=2 'parallel' steps
    where possible so both v7x TensorCores get work."""
    Mp = _round_up(M, 8)
    if Mp < 2 * target:
        if Mp >= 16 and Mp % 16 == 0:
            return Mp, Mp // 2
        return Mp, Mp
    for t in (256, 192, 128):
        if Mp % t == 0:
            return Mp, t
    return _round_up(M, target), target


def _col_tile(N, target=256):
    """Lane-dim tile: a multiple of 128 (256 preferred for v6e/v7x MXU) or the
    full dim."""
    for t in (target, 128):
        if N > t and N % t == 0:
            return t
    return N


def _k_tile(K):
    for t in (512, 256, 128):
        if K > t and K % t == 0:
            return t
    return K


def _pad_rows(x, Mp):
    M = x.shape[0]
    return x if M == Mp else jnp.pad(x, ((0, Mp - M), (0, 0)))


# ----------------------------------------------------------------------------
# Pallas kernel 1: real matmul (STFT analysis), tiled M/N/K, f32 accumulator
# ----------------------------------------------------------------------------
def _rmm_kernel(a_ref, b_ref, o_ref, acc_ref):
    @pl.when(pl.program_id(2) == 0)
    def _():
        acc_ref[...] = jnp.zeros_like(acc_ref)

    acc_ref[...] += jnp.dot(a_ref[...].astype(jnp.bfloat16), b_ref[...],
                            preferred_element_type=jnp.float32)

    @pl.when(pl.program_id(2) == pl.num_programs(2) - 1)
    def _():
        o_ref[...] = acc_ref[...].astype(o_ref.dtype)


def real_matmul(a, b, out_dtype=jnp.float32):
    M, K = a.shape
    N = b.shape[1]
    Mp, tm = _row_tiling(M)
    tn = _col_tile(N)
    tk = _k_tile(K)
    ap = _pad_rows(a, Mp)
    bb = b.astype(jnp.bfloat16)
    out = pl.pallas_call(
        _rmm_kernel,
        out_shape=jax.ShapeDtypeStruct((Mp, N), out_dtype),
        grid=(Mp // tm, N // tn, K // tk),
        in_specs=[pl.BlockSpec((tm, tk), lambda i, j, k: (i, k)),
                  pl.BlockSpec((tk, tn), lambda i, j, k: (k, j))],
        out_specs=pl.BlockSpec((tm, tn), lambda i, j, k: (i, j)),
        scratch_shapes=[pltpu.VMEM((tm, tn), jnp.float32)],
        compiler_params=_mosaic_params("parallel", "parallel", "arbitrary"),
    )(ap, bb)
    return out[:M] if Mp != M else out


# ----------------------------------------------------------------------------
# Pallas kernel 2: complex matmul (two codegen paths), tiled, f32 accumulators
# ----------------------------------------------------------------------------
def _cmm_wide_kernel(ar_ref, ai_ref, bt_ref, bb_ref, bias_ref, o_ref, acc_ref):
    # Real-embedding path: [real|imag] output folded along lanes.
    #   out = ar @ [br|bi] + ai @ [-bi|br]
    @pl.when(pl.program_id(1) == 0)
    def _():
        acc_ref[...] = jnp.zeros_like(acc_ref)

    ar = ar_ref[...].astype(jnp.bfloat16)
    ai = ai_ref[...].astype(jnp.bfloat16)
    acc_ref[...] += (jnp.dot(ar, bt_ref[...], preferred_element_type=jnp.float32)
                     + jnp.dot(ai, bb_ref[...], preferred_element_type=jnp.float32))

    @pl.when(pl.program_id(1) == pl.num_programs(1) - 1)
    def _():
        o_ref[...] = (acc_ref[...] + bias_ref[...]).astype(o_ref.dtype)


def _cmm_gauss_kernel(ar_ref, ai_ref, br_ref, bi_ref, bias_r_ref, bias_i_ref,
                      or_ref, oi_ref, accr_ref, acci_ref):
    # Gauss/Karatsuba: 3 MXU dots; br+bi / ar+ai formed in-kernel (VPU slot).
    k = pl.program_id(2)

    @pl.when(k == 0)
    def _():
        accr_ref[...] = jnp.zeros_like(accr_ref)
        acci_ref[...] = jnp.zeros_like(acci_ref)

    ar = ar_ref[...].astype(jnp.bfloat16)
    ai = ai_ref[...].astype(jnp.bfloat16)
    br = br_ref[...]
    bi = bi_ref[...]
    t1 = jnp.dot(ar, br, preferred_element_type=jnp.float32)
    t2 = jnp.dot(ai, bi, preferred_element_type=jnp.float32)
    t3 = jnp.dot(ar + ai, br + bi, preferred_element_type=jnp.float32)
    accr_ref[...] += t1 - t2
    acci_ref[...] += t3 - t1 - t2

    @pl.when(k == pl.num_programs(2) - 1)
    def _():
        or_ref[...] = (accr_ref[...] + bias_r_ref[...]).astype(or_ref.dtype)
        oi_ref[...] = (acci_ref[...] + bias_i_ref[...]).astype(oi_ref.dtype)


def complex_matmul(ar, ai, br, bi, bias_r=None, bias_i=None,
                   out_dtype=jnp.float32):
    """(M,K)x(K,N) complex matmul on the MXU, tiled over M (and N, K)."""
    M, K = ar.shape
    N = br.shape[1]
    if bias_r is None:
        bias_r = jnp.zeros((N,), jnp.float32)
        bias_i = jnp.zeros((N,), jnp.float32)
    Mp, tm = _row_tiling(M)
    tk = _k_tile(K)
    arp = _pad_rows(ar, Mp)
    aip = _pad_rows(ai, Mp)
    br32 = br.astype(jnp.float32)
    bi32 = bi.astype(jnp.float32)

    if 2 * N < 256:
        # Small-N path: single lane-dense (tm, 2N) output.
        # NOTE: we deliberately do not pad 2N up to 128 lanes — the extra HBM
        # writeback bytes outweigh the masked-store penalty for mem-bound tiles.
        bt = jnp.concatenate([br32, bi32], axis=1).astype(jnp.bfloat16)   # (K, 2N)
        bb = jnp.concatenate([-bi32, br32], axis=1).astype(jnp.bfloat16)  # (K, 2N)
        bias = jnp.concatenate([bias_r, bias_i]).reshape(1, 2 * N).astype(jnp.float32)
        out = pl.pallas_call(
            _cmm_wide_kernel,
            out_shape=jax.ShapeDtypeStruct((Mp, 2 * N), out_dtype),
            grid=(Mp // tm, K // tk),
            in_specs=[pl.BlockSpec((tm, tk), lambda i, k: (i, k)),
                      pl.BlockSpec((tm, tk), lambda i, k: (i, k)),
                      pl.BlockSpec((tk, 2 * N), lambda i, k: (k, 0)),
                      pl.BlockSpec((tk, 2 * N), lambda i, k: (k, 0)),
                      pl.BlockSpec((1, 2 * N), lambda i, k: (0, 0))],
            out_specs=pl.BlockSpec((tm, 2 * N), lambda i, k: (i, 0)),
            scratch_shapes=[pltpu.VMEM((tm, 2 * N), jnp.float32)],
            compiler_params=_mosaic_params("parallel", "arbitrary"),
        )(arp, aip, bt, bb, bias)
        out = out[:M] if Mp != M else out
        return out[:, :N], out[:, N:]

    # Large-N path: Gauss 3-dot; both outputs are >=128 lanes (lane-dense).
    tn = _col_tile(N)
    brb = br32.astype(jnp.bfloat16)
    bib = bi32.astype(jnp.bfloat16)
    bbr = bias_r.reshape(1, N).astype(jnp.float32)
    bbi = bias_i.reshape(1, N).astype(jnp.float32)
    a_spec = pl.BlockSpec((tm, tk), lambda i, j, k: (i, k))
    b_spec = pl.BlockSpec((tk, tn), lambda i, j, k: (k, j))
    bias_spec = pl.BlockSpec((1, tn), lambda i, j, k: (0, j))
    o_spec = pl.BlockSpec((tm, tn), lambda i, j, k: (i, j))
    out_r, out_i = pl.pallas_call(
        _cmm_gauss_kernel,
        out_shape=(jax.ShapeDtypeStruct((Mp, N), out_dtype),
                   jax.ShapeDtypeStruct((Mp, N), out_dtype)),
        grid=(Mp // tm, N // tn, K // tk),
        in_specs=[a_spec, a_spec, b_spec, b_spec, bias_spec, bias_spec],
        out_specs=(o_spec, o_spec),
        scratch_shapes=[pltpu.VMEM((tm, tn), jnp.float32),
                        pltpu.VMEM((tm, tn), jnp.float32)],
        compiler_params=_mosaic_params("parallel", "parallel", "arbitrary"),
    )(arp, aip, brb, bib, bbr, bbi)
    if Mp != M:
        out_r, out_i = out_r[:M], out_i[:M]
    return out_r, out_i


# ----------------------------------------------------------------------------
# Pallas kernel 3: complex attention, one batch element per grid step,
# per-head lane slices, lane-dense (T, E) output stores.
# ----------------------------------------------------------------------------
# TODO(synk): torch_complex.ComplexMultiheadAttention's internal convention is
# not documented; we use complex Q/K/V projections, real(Q K^H) scores with a
# real softmax, applied to complex V.
# TODO(synk): for realistic T add flash-style KV tiling (m/l/acc scratch)
# instead of materializing the full (T, T) score block.
def _cattn_kernel(qr_ref, qi_ref, kr_ref, ki_ref, vr_ref, vi_ref,
                  or_ref, oi_ref, *, num_heads, head_dim, scale):
    dn = (((1,), (1,)), ((), ()))
    qr_all = qr_ref[0]
    qi_all = qi_ref[0]
    kr_all = kr_ref[0]
    ki_all = ki_ref[0]
    vr_all = vr_ref[0]
    vi_all = vi_ref[0]
    outs_r, outs_i = [], []
    for h in range(num_heads):             # static, few heads
        lo = h * head_dim
        hi = lo + head_dim
        qr = qr_all[:, lo:hi]
        qi = qi_all[:, lo:hi]
        kr = kr_all[:, lo:hi]
        ki = ki_all[:, lo:hi]
        vr = vr_all[:, lo:hi]
        vi = vi_all[:, lo:hi]
        # Re(Q K^H) = qr kr^T + qi ki^T
        s = (lax.dot_general(qr, kr, dn, preferred_element_type=jnp.float32)
             + lax.dot_general(qi, ki, dn, preferred_element_type=jnp.float32))
        s = s * scale
        m = jnp.max(s, axis=-1, keepdims=True)
        p = jnp.exp(s - m)
        p = p * pl.reciprocal(jnp.sum(p, axis=-1, keepdims=True), approx=True)
        pb = p.astype(vr.dtype)
        outs_r.append(jnp.dot(pb, vr, preferred_element_type=jnp.float32))
        outs_i.append(jnp.dot(pb, vi, preferred_element_type=jnp.float32))
    or_ref[0] = jnp.concatenate(outs_r, axis=-1).astype(or_ref.dtype)
    oi_ref[0] = jnp.concatenate(outs_i, axis=-1).astype(oi_ref.dtype)


def complex_attention(qr, qi, kr, ki, vr, vi, num_heads,
                      out_dtype=jnp.bfloat16):
    B, T, E = qr.shape
    head_dim = E // num_heads
    scale = 1.0 / math.sqrt(head_dim)
    spec = pl.BlockSpec((1, T, E), lambda b: (b, 0, 0))
    kernel = functools.partial(_cattn_kernel, num_heads=num_heads,
                               head_dim=head_dim, scale=scale)
    out_r, out_i = pl.pallas_call(
        kernel,
        out_shape=(jax.ShapeDtypeStruct((B, T, E), out_dtype),
                   jax.ShapeDtypeStruct((B, T, E), out_dtype)),
        grid=(B,),
        in_specs=[spec] * 6,
        out_specs=(spec, spec),
        compiler_params=_mosaic_params("parallel"),
    )(qr, qi, kr, ki, vr, vi)
    return out_r, out_i


# ----------------------------------------------------------------------------
# Pallas kernel 4: masking mode 'E' fused with the iSTFT synthesis matmul.
# Rows = B*T frames, lanes = F bins in, win_len samples out (lane-dense).
# ----------------------------------------------------------------------------
def _mask_istft_kernel(mr_ref, mi_ref, sr_ref, si_ref, br_ref, bi_ref, o_ref):
    m_r = mr_ref[...]
    m_i = mi_ref[...]
    s_r = sr_ref[...]
    s_i = si_ref[...]
    mag2 = m_r * m_r + m_i * m_i
    inv = lax.rsqrt(mag2 + 1e-12)          # EUP rsqrt
    t = jnp.tanh(mag2 * inv) * inv         # tanh(|m|) / |m|
    out_r = (t * (s_r * m_r - s_i * m_i)).astype(jnp.bfloat16)
    out_i = (t * (s_r * m_i + s_i * m_r)).astype(jnp.bfloat16)
    o_ref[...] = (jnp.dot(out_r, br_ref[...], preferred_element_type=jnp.float32)
                  + jnp.dot(out_i, bi_ref[...], preferred_element_type=jnp.float32))


def masked_istft(mask_r_rows, mask_i_rows, spec_r_rows, spec_i_rows,
                 basis_r, basis_i, B, T, win_len, hop, window):
    R, F = mask_r_rows.shape
    Rp, tr = _row_tiling(R)
    mr = _pad_rows(mask_r_rows, Rp)
    mi = _pad_rows(mask_i_rows, Rp)
    sr = _pad_rows(spec_r_rows, Rp)
    si = _pad_rows(spec_i_rows, Rp)
    row_spec = pl.BlockSpec((tr, F), lambda i: (i, 0))
    basis_spec = pl.BlockSpec((F, win_len), lambda i: (0, 0))
    frames = pl.pallas_call(
        _mask_istft_kernel,
        out_shape=jax.ShapeDtypeStruct((Rp, win_len), jnp.float32),
        grid=(Rp // tr,),
        in_specs=[row_spec, row_spec, row_spec, row_spec, basis_spec, basis_spec],
        out_specs=pl.BlockSpec((tr, win_len), lambda i: (i, 0)),
        compiler_params=_mosaic_params("parallel"),
    )(mr, mi, sr, si, basis_r, basis_i)
    frames = frames[:R].reshape(B, T, win_len)
    out = overlap_add(frames, win_len, hop)
    wsq = jnp.broadcast_to((window ** 2)[None, None, :], (1, T, win_len))
    norm = overlap_add(wsq, win_len, hop)[0]
    return out / (norm[None, :] + 1e-8)


# ----------------------------------------------------------------------------
# Complex conv / conv-transpose (im2col glue in JAX, matmul in Pallas)
# ----------------------------------------------------------------------------
def complex_conv2d(xr, xi, wr, wi, br, bi, stride, padding):
    # x: [B, Cin, H, W], w: [Cout, Cin, kH, kW]
    # TODO(synk): im2col is still materialized in HBM; fusing the kH*kW taps as
    # an 'arbitrary' reduction grid axis needs strided tap windows that
    # BlockSpec cannot express for the stride-2 frequency axis (manual DMA).
    B, Cin, H, W = xr.shape
    Cout, _, kH, kW = wr.shape
    sH, sW = stride
    pH, pW = padding
    Ho = (H + 2 * pH - kH) // sH + 1
    Wo = (W + 2 * pW - kW) // sW + 1

    def im2col(x):
        xp = jnp.pad(x, ((0, 0), (0, 0), (pH, pH), (pW, pW)))
        cols = []
        for dh in range(kH):
            for dw in range(kW):
                cols.append(xp[:, :, dh:dh + sH * Ho:sH, dw:dw + sW * Wo:sW])
        p = jnp.stack(cols, axis=2)          # [B, Cin, kH*kW, Ho, Wo]
        p = p.transpose(0, 3, 4, 1, 2)       # [B, Ho, Wo, Cin, kH*kW]
        return p.reshape(B * Ho * Wo, Cin * kH * kW)

    ar = im2col(xr)
    ai = im2col(xi)
    wr2 = wr.reshape(Cout, Cin * kH * kW).T
    wi2 = wi.reshape(Cout, Cin * kH * kW).T
    or_, oi_ = complex_matmul(ar, ai, wr2, wi2, br, bi)
    or_ = or_.reshape(B, Ho, Wo, Cout).transpose(0, 3, 1, 2)
    oi_ = oi_.reshape(B, Ho, Wo, Cout).transpose(0, 3, 1, 2)
    return or_, oi_


def complex_conv_transpose2d(xr, xi, wr, wi, br, bi, stride, padding, output_padding):
    # x: [B, Cin, H, W], w: [Cin, Cout, kH, kW]  (PyTorch ConvTranspose2d layout)
    # TODO(synk): the dilated input has ~50% structural zeros (stride 2 in F);
    # a per-phase (sub-pixel) decomposition would halve the MXU work here.
    B, Cin, H, W = xr.shape
    _, Cout, kH, kW = wr.shape
    sH, sW = stride
    pH, pW = padding
    opH, opW = output_padding

    def dilate_pad(x):
        Hd = (H - 1) * sH + 1
        Wd = (W - 1) * sW + 1
        xd = jnp.zeros((B, Cin, Hd, Wd), x.dtype)
        xd = xd.at[:, :, ::sH, ::sW].set(x)
        return jnp.pad(xd, ((0, 0), (0, 0),
                            (kH - 1 - pH, kH - 1 - pH + opH),
                            (kW - 1 - pW, kW - 1 - pW + opW)))

    xdr = dilate_pad(xr)
    xdi = dilate_pad(xi)
    wcr = jnp.flip(wr, axis=(2, 3)).transpose(1, 0, 2, 3)
    wci = jnp.flip(wi, axis=(2, 3)).transpose(1, 0, 2, 3)
    return complex_conv2d(xdr, xdi, wcr, wci, br, bi, stride=(1, 1), padding=(0, 0))


# ----------------------------------------------------------------------------
# Small elementwise blocks kept in JAX (XLA fuses these), f32 throughout
# ----------------------------------------------------------------------------
# TODO(synk): BN normalize + PReLU could be fused into the conv-matmul epilogue
# given a preceding stats-reduction kernel; left to XLA elementwise fusion here.
def naive_complex_bn(xr, xi, eps=1e-5):
    def bn(x):
        mean = x.mean(axis=(0, 2, 3), keepdims=True)
        var = ((x - mean) ** 2).mean(axis=(0, 2, 3), keepdims=True)
        return (x - mean) * lax.rsqrt(var + eps)
    return bn(xr), bn(xi)


def complex_prelu(xr, xi, a_r=0.25, a_i=0.25):
    return jnp.where(xr >= 0, xr, a_r * xr), jnp.where(xi >= 0, xi, a_i * xi)


# ----------------------------------------------------------------------------
# STFT / iSTFT bases (analysis/synthesis windows folded into the DFT bases)
# ----------------------------------------------------------------------------
def make_stft_basis(fft_len, win_len, window):
    # TODO(synk): bins 1..N/2 (DC dropped) to mirror the reference ConvSTFT
    # basis; torch.stft would use N/2+1 bins.
    N = fft_len
    F = N // 2
    n = jnp.arange(N, dtype=jnp.float32)[:, None]
    k = jnp.arange(1, F + 1, dtype=jnp.float32)[None, :]
    theta = 2.0 * math.pi * n * k / N
    Cr = jnp.cos(theta)                                    # [N, F]
    Ci = -jnp.sin(theta)
    C_cat = jnp.concatenate([Cr, Ci], axis=1)              # [N, 2F]
    C_win = C_cat[:win_len] * window[:, None]              # analysis window baked in

    wk = jnp.where(jnp.arange(1, F + 1) == N // 2,
                   1.0 / N, 2.0 / N).astype(jnp.float32)[:, None]
    theta_s = (2.0 * math.pi
               * jnp.arange(1, F + 1, dtype=jnp.float32)[:, None]
               * jnp.arange(N, dtype=jnp.float32)[None, :] / N)
    Sr = wk * jnp.cos(theta_s)                             # [F, N]
    Si = wk * jnp.sin(theta_s)
    basis_r = (Sr[:, :win_len] * window[None, :]).astype(jnp.bfloat16)
    basis_i = (-Si[:, :win_len] * window[None, :]).astype(jnp.bfloat16)
    return C_win, basis_r, basis_i


def stft_rows(x, win_len, hop, C_win):
    B, L = x.shape
    T = 1 + (L - win_len) // hop
    idx = jnp.arange(T)[:, None] * hop + jnp.arange(win_len)[None, :]
    frames = x[:, idx].reshape(B * T, win_len)             # window is in C_win
    spec_rows = real_matmul(frames, C_win)                 # [B*T, 2F]
    return spec_rows, T


def overlap_add(frames, win_len, hop):
    # frames: [B, T, win_len]; vectorised over T with win_len//hop shifted adds
    B, T, _ = frames.shape
    K = win_len // hop
    fr = frames.reshape(B, T, K, hop)
    out = jnp.zeros((B, T + K - 1, hop), jnp.float32)
    for k in range(K):                                     # K (=4) static adds
        out = out.at[:, k:k + T].add(fr[:, :, k])
    return out.reshape(B, (T + K - 1) * hop)


# ----------------------------------------------------------------------------
# MultiAttnBlock
# ----------------------------------------------------------------------------
def multi_attn_block(xr, xi, p, embed_dim, num_heads):
    B, C, F, T = xr.shape
    E = embed_dim
    in_feat = C * F

    def flat(x):   # permute(0,3,1,2).reshape(B*T, C*F)
        return x.transpose(0, 3, 1, 2).reshape(B * T, in_feat)

    fr, fi = flat(xr), flat(xi)
    er, ei = complex_matmul(fr, fi, p['in_wr'], p['in_wi'],
                            p['in_br'], p['in_bi'], out_dtype=jnp.bfloat16)

    qr, qi = complex_matmul(er, ei, p['q_wr'], p['q_wi'],
                            p['q_br'], p['q_bi'], out_dtype=jnp.bfloat16)
    kr, ki = complex_matmul(er, ei, p['k_wr'], p['k_wi'],
                            p['k_br'], p['k_bi'], out_dtype=jnp.bfloat16)
    vr, vi = complex_matmul(er, ei, p['v_wr'], p['v_wi'],
                            p['v_br'], p['v_bi'], out_dtype=jnp.bfloat16)

    def tok(x):    # (B*T, E) -> (B, T, E), free reshape
        return x.reshape(B, T, E)

    ar, ai = complex_attention(tok(qr), tok(qi), tok(kr), tok(ki),
                               tok(vr), tok(vi), num_heads)
    ar = ar.reshape(B * T, E)
    ai = ai.reshape(B * T, E)

    pr, pi = complex_matmul(ar, ai, p['ao_wr'], p['ao_wi'],
                            p['ao_br'], p['ao_bi'], out_dtype=jnp.bfloat16)
    or_, oi_ = complex_matmul(pr, pi, p['out_wr'], p['out_wi'],
                              p['out_br'], p['out_bi'])

    def unflat(x):
        return x.reshape(B, T, C, F).transpose(0, 2, 3, 1)

    return unflat(or_), unflat(oi_)


# ----------------------------------------------------------------------------
# Parameters & full forward
# ----------------------------------------------------------------------------
def init_params(key, kernel_num, kernel_size, embed_dim, attn_in_feat):
    keys = iter(jax.random.split(key, 64))

    def cinit(shape, scale=0.05):
        k1, k2 = jax.random.split(next(keys))
        return (scale * jax.random.normal(k1, shape, jnp.float32),
                scale * jax.random.normal(k2, shape, jnp.float32))

    kn = kernel_num
    enc = []
    for idx in range(len(kn) - 1):
        cin, cout = kn[idx] // 2, kn[idx + 1] // 2
        wr, wi = cinit((cout, cin, kernel_size, 2))
        br, bi = cinit((cout,))
        enc.append(dict(wr=wr, wi=wi, br=br, bi=bi))

    dec = []
    for idx in range(len(kn) - 1, 0, -1):
        cin, cout = kn[idx], kn[idx - 1] // 2
        wr, wi = cinit((cin, cout, kernel_size, 2))
        br, bi = cinit((cout,))
        dec.append(dict(wr=wr, wi=wi, br=br, bi=bi))

    E = embed_dim
    attn = {}
    attn['in_wr'], attn['in_wi'] = cinit((attn_in_feat, E))
    attn['in_br'], attn['in_bi'] = cinit((E,))
    for nm in ('q', 'k', 'v', 'ao'):
        attn[nm + '_wr'], attn[nm + '_wi'] = cinit((E, E))
        attn[nm + '_br'], attn[nm + '_bi'] = cinit((E,))
    attn['out_wr'], attn['out_wi'] = cinit((E, attn_in_feat))
    attn['out_br'], attn['out_bi'] = cinit((attn_in_feat,))

    return dict(encoder=enc, decoder=dec, attn=attn)


def dcnn_forward(params, inputs, *, embed_dim, num_heads, win_len, win_inc, fft_len):
    B = inputs.shape[0]
    window = 0.5 - 0.5 * jnp.cos(
        2.0 * math.pi * jnp.arange(win_len, dtype=jnp.float32) / win_len)
    C_win, basis_r, basis_i = make_stft_basis(fft_len, win_len, window)
    F = fft_len // 2

    # STFT -> complex spectrogram rows [B*T, F] (kept row-major for masking)
    spec_rows, T = stft_rows(inputs, win_len, win_inc, C_win)
    spec_r_rows = spec_rows[:, :F]
    spec_i_rows = spec_rows[:, F:]

    def to_map(rows):   # (B*T, F) -> (B, 1, F, T)
        return rows.reshape(B, T, F).transpose(0, 2, 1)[:, None]

    xr, xi = to_map(spec_r_rows), to_map(spec_i_rows)

    # Encoder
    enc_out = []
    for lp in params['encoder']:
        xr, xi = complex_conv2d(xr, xi, lp['wr'], lp['wi'], lp['br'], lp['bi'],
                                stride=(2, 1), padding=(2, 1))
        xr, xi = naive_complex_bn(xr, xi)
        xr, xi = complex_prelu(xr, xi)
        enc_out.append((xr, xi))

    # Attention bottleneck
    xr, xi = multi_attn_block(xr, xi, params['attn'], embed_dim, num_heads)

    # Decoder with skip concatenation
    n_dec = len(params['decoder'])
    for i, lp in enumerate(params['decoder']):
        er, ei = enc_out[-1 - i]
        xr = jnp.concatenate([xr, er], axis=1)
        xi = jnp.concatenate([xi, ei], axis=1)
        xr, xi = complex_conv_transpose2d(xr, xi, lp['wr'], lp['wi'], lp['br'], lp['bi'],
                                          stride=(2, 1), padding=(2, 1),
                                          output_padding=(1, 0))
        if i != n_dec - 1:
            xr, xi = naive_complex_bn(xr, xi)
            xr, xi = complex_prelu(xr, xi)

    # Masking ('E') fused with iSTFT synthesis
    mask_r_rows = xr[:, 0].transpose(0, 2, 1).reshape(B * T, F)
    mask_i_rows = xi[:, 0].transpose(0, 2, 1).reshape(B * T, F)
    out_wav = masked_istft(mask_r_rows, mask_i_rows, spec_r_rows, spec_i_rows,
                           basis_r, basis_i, B, T, win_len, win_inc, window)
    return out_wav


# ----------------------------------------------------------------------------
# Main
# ----------------------------------------------------------------------------
if __name__ == "__main__":
    # Small-but-consistent configuration (analog of fft=512/kernel_num=[16..256]):
    FFT_LEN = 64
    WIN_LEN = 64
    WIN_INC = 16
    KERNEL_SIZE = 5
    KERNEL_NUM = [2, 8, 16, 32]       # [2] + kernel_num
    EMBED_DIM = 128                   # exercises both complex-matmul paths
    NUM_HEADS = 4
    B, L = 2, 192                     # -> 9 STFT frames, 32 freq bins

    bottleneck_ch = KERNEL_NUM[-1] // 2
    bottleneck_freq = (FFT_LEN // 2) // (2 ** (len(KERNEL_NUM) - 1))
    attn_in_feat = bottleneck_ch * bottleneck_freq

    key = jax.random.PRNGKey(0)
    k_in, k_par = jax.random.split(key)
    inputs = jax.random.normal(k_in, (B, L), jnp.float32)
    params = init_params(k_par, KERNEL_NUM, KERNEL_SIZE, EMBED_DIM, attn_in_feat)

    fwd = jax.jit(functools.partial(dcnn_forward,
                                    embed_dim=EMBED_DIM, num_heads=NUM_HEADS,
                                    win_len=WIN_LEN, win_inc=WIN_INC,
                                    fft_len=FFT_LEN))
    out_wav = fwd(params, inputs)
    out_wav = jax.block_until_ready(out_wav)
    assert out_wav.shape == (B, L) and out_wav.dtype == jnp.float32
    assert bool(jnp.all(jnp.isfinite(out_wav)))
    print("KERNEL_OK")
</pallas_src>

<mosaic_0001>
module attributes {stable_mosaic.version = 11 : i64} {
  func.func @_rmm_kernel(%arg0: i32, %arg1: i32, %arg2: i32, %arg3: memref<24x64xf32, #tpu.memory_space<vmem>>, %arg4: memref<64x64xbf16, #tpu.memory_space<vmem>>, %arg5: memref<24x64xf32, #tpu.memory_space<vmem>>, %arg6: memref<24x64xf32, #tpu.memory_space<vmem>>) attributes {dimension_semantics = [#tpu.dimension_semantics<parallel>, #tpu.dimension_semantics<parallel>, #tpu.dimension_semantics<arbitrary>], iteration_bounds = array<i64: 1, 1, 1>, scalar_prefetch = 0 : i64, scratch_operands = 1 : i64, tpu.core_type = #tpu.core_type<tc>, window_params = [{transform_indices = @transform_0, window_bounds = array<i64: 24, 64>}, {transform_indices = @transform_1, window_bounds = array<i64: 64, 64>}, {transform_indices = @transform_2, window_bounds = array<i64: 24, 64>}]} {
    %c0_i32 = arith.constant 0 : i32
    %0 = arith.cmpi eq, %arg2, %c0_i32 : i32
    %1 = arith.extui %0 : i1 to i32
    %c0_i32_0 = arith.constant 0 : i32
    %2 = arith.cmpi ne, %1, %c0_i32_0 : i32
    scf.if %2 {
      %cst_10 = arith.constant 0.000000e+00 : f32
      %13 = vector.broadcast %cst_10 : f32 to vector<24x64xf32>
      %c0_11 = arith.constant 0 : index
      %c0_12 = arith.constant 0 : index
      %14 = vector.load %arg6[%c0_11, %c0_12] : memref<24x64xf32, #tpu.memory_space<vmem>>, vector<24x64xf32>
      tpu.vector_store %arg6[%c0_11, %c0_12], %13 {strides = array<i32>} : memref<24x64xf32, #tpu.memory_space<vmem>>, vector<24x64xf32>,
    } else {
    }
    %c0 = arith.constant 0 : index
    %c0_1 = arith.constant 0 : index
    %3 = vector.load %arg6[%c0, %c0_1] : memref<24x64xf32, #tpu.memory_space<vmem>>, vector<24x64xf32>
    %c0_2 = arith.constant 0 : index
    %c0_3 = arith.constant 0 : index
    %4 = vector.load %arg3[%c0_2, %c0_3] : memref<24x64xf32, #tpu.memory_space<vmem>>, vector<24x64xf32>
    %5 = arith.truncf %4 : vector<24x64xf32> to vector<24x64xbf16>
    %c0_4 = arith.constant 0 : index
    %c0_5 = arith.constant 0 : index
    %6 = vector.load %arg4[%c0_4, %c0_5] : memref<64x64xbf16, #tpu.memory_space<vmem>>, vector<64x64xbf16>
    %cst = arith.constant dense<0.000000e+00> : vector<24x64xf32>
    %7 = tpu.matmul %5, %6, %cst {dimension_numbers = #tpu.dot_dimension_numbers<[1], [0], [0], [1], [0, 0, 1, 1], [], []>} : vector<24x64xbf16>, vector<64x64xbf16>, vector<24x64xf32> -> vector<24x64xf32>
    %8 = arith.addf %3, %7 : vector<24x64xf32>
    %c0_6 = arith.constant 0 : index
    %c0_7 = arith.constant 0 : index
    %9 = vector.load %arg6[%c0_6, %c0_7] : memref<24x64xf32, #tpu.memory_space<vmem>>, vector<24x64xf32>
    tpu.vector_store %arg6[%c0_6, %c0_7], %8 {strides = array<i32>} : memref<24x64xf32, #tpu.memory_space<vmem>>, vector<24x64xf32>,
    %c0_i32_8 = arith.constant 0 : i32
    %10 = arith.cmpi eq, %arg2, %c0_i32_8 : i32
    %11 = arith.extui %10 : i1 to i32
    %c0_i32_9 = arith.constant 0 : i32
    %12 = arith.cmpi ne, %11, %c0_i32_9 : i32
    scf.if %12 {
      %c0_10 = arith.constant 0 : index
      %c0_11 = arith.constant 0 : index
      %13 = vector.load %arg6[%c0_10, %c0_11] : memref<24x64xf32, #tpu.memory_space<vmem>>, vector<24x64xf32>
      %c0_12 = arith.constant 0 : index
      %c0_13 = arith.constant 0 : index
      %14 = vector.load %arg5[%c0_12, %c0_13] : memref<24x64xf32, #tpu.memory_space<vmem>>, vector<24x64xf32>
      tpu.vector_store %arg5[%c0_12, %c0_13], %13 {strides = array<i32>} : memref<24x64xf32, #tpu.memory_space<vmem>>, vector<24x64xf32>,
    } else {
    }
    return
  }
  func.func @transform_0(%arg0: i32, %arg1: i32, %arg2: i32) -> (i32, i32) {
    %c0_i32 = arith.constant 0 : i32
    return %arg0, %arg2 : i32, i32
  }
  func.func @transform_1(%arg0: i32, %arg1: i32, %arg2: i32) -> (i32, i32) {
    %c0_i32 = arith.constant 0 : i32
    return %arg2, %arg1 : i32, i32
  }
  func.func @transform_2(%arg0: i32, %arg1: i32, %arg2: i32) -> (i32, i32) {
    %c0_i32 = arith.constant 0 : i32
    return %arg0, %arg1 : i32, i32
  }
}

module attributes {stable_mosaic.version = 11 : i64} {
  func.func @_cmm_wide_kernel(%arg0: i32, %arg1: i32, %arg2: memref<160x10xf32, #tpu.memory_space<vmem>>, %arg3: memref<160x10xf32, #tpu.memory_space<vmem>>, %arg4: memref<10x8xbf16, #tpu.memory_space<vmem>>, %arg5: memref<10x8xbf16, #tpu.memory_space<vmem>>, %arg6: memref<1x8xf32, #tpu.memory_space<vmem>>, %arg7: memref<160x8xf32, #tpu.memory_space<vmem>>, %arg8: memref<160x8xf32, #tpu.memory_space<vmem>>) attributes {dimension_semantics = [#tpu.dimension_semantics<parallel>, #tpu.dimension_semantics<arbitrary>], iteration_bounds = array<i64: 2, 1>, scalar_prefetch = 0 : i64, scratch_operands = 1 : i64, tpu.core_type = #tpu.core_type<tc>, window_params = [{transform_indices = @transform_0, window_bounds = array<i64: 160, 10>}, {transform_indices = @transform_1, window_bounds = array<i64: 160, 10>}, {transform_indices = @transform_2, window_bounds = array<i64: 10, 8>}, {transform_indices = @transform_3, window_bounds = array<i64: 10, 8>}, {pipeline_mode = #tpu.pipeline_mode<synchronous>, transform_indices = @transform_4, window_bounds = array<i64: 1, 8>}, {transform_indices = @transform_5, window_bounds = array<i64: 160, 8>}]} {
    %c0_i32 = arith.constant 0 : i32
    %0 = arith.cmpi eq, %arg1, %c0_i32 : i32
    %1 = arith.extui %0 : i1 to i32
    %c0_i32_0 = arith.constant 0 : i32
    %2 = arith.cmpi ne, %1, %c0_i32_0 : i32
    scf.if %2 {
      %cst_15 = arith.constant 0.000000e+00 : f32
      %18 = vector.broadcast %cst_15 : f32 to vector<160x8xf32>
      %c0_16 = arith.constant 0 : index
      %c0_17 = arith.constant 0 : index
      %19 = vector.load %arg8[%c0_16, %c0_17] : memref<160x8xf32, #tpu.memory_space<vmem>>, vector<160x8xf32>
      tpu.vector_store %arg8[%c0_16, %c0_17], %18 {strides = array<i32>} : memref<160x8xf32, #tpu.memory_space<vmem>>, vector<160x8xf32>,
    } else {
    }
    %c0 = arith.constant 0 : index
    %c0_1 = arith.constant 0 : index
    %3 = vector.load %arg2[%c0, %c0_1] : memref<160x10xf32, #tpu.memory_space<vmem>>, vector<160x10xf32>
    %4 = arith.truncf %3 : vector<160x10xf32> to vector<160x10xbf16>
    %c0_2 = arith.constant 0 : index
    %c0_3 = arith.constant 0 : index
    %5 = vector.load %arg3[%c0_2, %c0_3] : memref<160x10xf32, #tpu.memory_space<vmem>>, vector<160x10xf32>
    %6 = arith.truncf %5 : vector<160x10xf32> to vector<160x10xbf16>
    %c0_4 = arith.constant 0 : index
    %c0_5 = arith.constant 0 : index
    %7 = vector.load %arg8[%c0_4, %c0_5] : memref<160x8xf32, #tpu.memory_space<vmem>>, vector<160x8xf32>
    %c0_6 = arith.constant 0 : index
    %c0_7 = arith.constant 0 : index
    %8 = vector.load %arg4[%c0_6, %c0_7] : memref<10x8xbf16, #tpu.memory_space<vmem>>, vector<10x8xbf16>
    %cst = arith.constant dense<0.000000e+00> : vector<160x8xf32>
    %9 = tpu.matmul %4, %8, %cst {dimension_numbers = #tpu.dot_dimension_numbers<[1], [0], [0], [1], [0, 0, 1, 1], [], []>} : vector<160x10xbf16>, vector<10x8xbf16>, vector<160x8xf32> -> vector<160x8xf32>
    %c0_8 = arith.constant 0 : index
    %c0_9 = arith.constant 0 : index
    %10 = vector.load %arg5[%c0_8, %c0_9] : memref<10x8xbf16, #tpu.memory_space<vmem>>, vector<10x8xbf16>
    %cst_10 = arith.constant dense<0.000000e+00> : vector<160x8xf32>
    %11 = tpu.matmul %6, %10, %cst_10 {dimension_numbers = #tpu.dot_dimension_numbers<[1], [0], [0], [1], [0, 0, 1, 1], [], []>} : vector<160x10xbf16>, vector<10x8xbf16>, vector<160x8xf32> -> vector<160x8xf32>
    %12 = arith.addf %9, %11 : vector<160x8xf32>
    %13 = arith.addf %7, %12 : vector<160x8xf32>
    %c0_11 = arith.constant 0 : index
    %c0_12 = arith.constant 0 : index
    %14 = vector.load %arg8[%c0_11, %c0_12] : memref<160x8xf32, #tpu.memory_space<vmem>>, vector<160x8xf32>
    tpu.vector_store %arg8[%c0_11, %c0_12], %13 {strides = array<i32>} : memref<160x8xf32, #tpu.memory_space<vmem>>, vector<160x8xf32>,
    %c0_i32_13 = arith.constant 0 : i32
    %15 = arith.cmpi eq, %arg1, %c0_i32_13 : i32
    %16 = arith.extui %15 : i1 to i32
    %c0_i32_14 = arith.constant 0 : i32
    %17 = arith.cmpi ne, %16, %c0_i32_14 : i32
    scf.if %17 {
      %c0_15 = arith.constant 0 : index
      %c0_16 = arith.constant 0 : index
      %18 = vector.load %arg8[%c0_15, %c0_16] : memref<160x8xf32, #tpu.memory_space<vmem>>, vector<160x8xf32>
      %c0_17 = arith.constant 0 : index
      %c0_18 = arith.constant 0 : index
      %19 = vector.load %arg6[%c0_17, %c0_18] : memref<1x8xf32, #tpu.memory_space<vmem>>, vector<1x8xf32>
      %20 = vector.broadcast %19 : vector<1x8xf32> to vector<160x8xf32>
      %21 = arith.addf %18, %20 : vector<160x8xf32>
      %c0_19 = arith.constant 0 : index
      %c0_20 = arith.constant 0 : index
      %22 = vector.load %arg7[%c0_19, %c0_20] : memref<160x8xf32, #tpu.memory_space<vmem>>, vector<160x8xf32>
      tpu.vector_store %arg7[%c0_19, %c0_20], %21 {strides = array<i32>} : memref<160x8xf32, #tpu.memory_space<vmem>>, vector<160x8xf32>,
    } else {
    }
    return
  }
  func.func @transform_0(%arg0: i32, %arg1: i32) -> (i32, i32) {
    %c0_i32 = arith.constant 0 : i32
    return %arg0, %arg1 : i32, i32
  }
  func.func @transform_1(%arg0: i32, %arg1: i32) -> (i32, i32) {
    %c0_i32 = arith.constant 0 : i32
    return %arg0, %arg1 : i32, i32
  }
  func.func @transform_2(%arg0: i32, %arg1: i32) -> (i32, i32) {
    %c0_i32 = arith.constant 0 : i32
    %c0_i32_0 = arith.constant 0 : i32
    return %arg1, %c0_i32 : i32, i32
  }
  func.func @transform_3(%arg0: i32, %arg1: i32) -> (i32, i32) {
    %c0_i32 = arith.constant 0 : i32
    %c0_i32_0 = arith.constant 0 : i32
    return %arg1, %c0_i32 : i32, i32
  }
  func.func @transform_4(%arg0: i32, %arg1: i32) -> (i32, i32) {
    %c0_i32 = arith.constant 0 : i32
    %c0_i32_0 = arith.constant 0 : i32
    %c0_i32_1 = arith.constant 0 : i32
    return %c0_i32, %c0_i32_0 : i32, i32
  }
  func.func @transform_5(%arg0: i32, %arg1: i32) -> (i32, i32) {
    %c0_i32 = arith.constant 0 : i32
    %c0_i32_0 = arith.constant 0 : i32
    return %arg0, %c0_i32 : i32, i32
  }
}

module attributes {stable_mosaic.version = 11 : i64} {
  func.func @_cmm_wide_kernel(%arg0: i32, %arg1: i32, %arg2: memref<88x40xf32, #tpu.memory_space<vmem>>, %arg3: memref<88x40xf32, #tpu.memory_space<vmem>>, %arg4: memref<40x16xbf16, #tpu.memory_space<vmem>>, %arg5: memref<40x16xbf16, #tpu.memory_space<vmem>>, %arg6: memref<1x16xf32, #tpu.memory_space<vmem>>, %arg7: memref<88x16xf32, #tpu.memory_space<vmem>>, %arg8: memref<88x16xf32, #tpu.memory_space<vmem>>) attributes {dimension_semantics = [#tpu.dimension_semantics<parallel>, #tpu.dimension_semantics<arbitrary>], iteration_bounds = array<i64: 2, 1>, scalar_prefetch = 0 : i64, scratch_operands = 1 : i64, tpu.core_type = #tpu.core_type<tc>, window_params = [{transform_indices = @transform_0, window_bounds = array<i64: 88, 40>}, {transform_indices = @transform_1, window_bounds = array<i64: 88, 40>}, {transform_indices = @transform_2, window_bounds = array<i64: 40, 16>}, {transform_indices = @transform_3, window_bounds = array<i64: 40, 16>}, {pipeline_mode = #tpu.pipeline_mode<synchronous>, transform_indices = @transform_4, window_bounds = array<i64: 1, 16>}, {transform_indices = @transform_5, window_bounds = array<i64: 88, 16>}]} {
    %c0_i32 = arith.constant 0 : i32
    %0 = arith.cmpi eq, %arg1, %c0_i32 : i32
    %1 = arith.extui %0 : i1 to i32
    %c0_i32_0 = arith.constant 0 : i32
    %2 = arith.cmpi ne, %1, %c0_i32_0 : i32
    scf.if %2 {
      %cst_15 = arith.constant 0.000000e+00 : f32
      %18 = vector.broadcast %cst_15 : f32 to vector<88x16xf32>
      %c0_16 = arith.constant 0 : index
      %c0_17 = arith.constant 0 : index
      %19 = vector.load %arg8[%c0_16, %c0_17] : memref<88x16xf32, #tpu.memory_space<vmem>>, vector<88x16xf32>
      tpu.vector_store %arg8[%c0_16, %c0_17], %18 {strides = array<i32>} : memref<88x16xf32, #tpu.memory_space<vmem>>, vector<88x16xf32>,
    } else {
    }
    %c0 = arith.constant 0 : index
    %c0_1 = arith.constant 0 : index
    %3 = vector.load %arg2[%c0, %c0_1] : memref<88x40xf32, #tpu.memory_space<vmem>>, vector<88x40xf32>
    %4 = arith.truncf %3 : vector<88x40xf32> to vector<88x40xbf16>
    %c0_2 = arith.constant 0 : index
    %c0_3 = arith.constant 0 : index
    %5 = vector.load %arg3[%c0_2, %c0_3] : memref<88x40xf32, #tpu.memory_space<vmem>>, vector<88x40xf32>
    %6 = arith.truncf %5 : vector<88x40xf32> to vector<88x40xbf16>
    %c0_4 = arith.constant 0 : index
    %c0_5 = arith.constant 0 : index
    %7 = vector.load %arg8[%c0_4, %c0_5] : memref<88x16xf32, #tpu.memory_space<vmem>>, vector<88x16xf32>
    %c0_6 = arith.constant 0 : index
    %c0_7 = arith.constant 0 : index
    %8 = vector.load %arg4[%c0_6, %c0_7] : memref<40x16xbf16, #tpu.memory_space<vmem>>, vector<40x16xbf16>
    %cst = arith.constant dense<0.000000e+00> : vector<88x16xf32>
    %9 = tpu.matmul %4, %8, %cst {dimension_numbers = #tpu.dot_dimension_numbers<[1], [0], [0], [1], [0, 0, 1, 1], [], []>} : vector<88x40xbf16>, vector<40x16xbf16>, vector<88x16xf32> -> vector<88x16xf32>
    %c0_8 = arith.constant 0 : index
    %c0_9 = arith.constant 0 : index
    %10 = vector.load %arg5[%c0_8, %c0_9] : memref<40x16xbf16, #tpu.memory_space<vmem>>, vector<40x16xbf16>
    %cst_10 = arith.constant dense<0.000000e+00> : vector<88x16xf32>
    %11 = tpu.matmul %6, %10, %cst_10 {dimension_numbers = #tpu.dot_dimension_numbers<[1], [0], [0], [1], [0, 0, 1, 1], [], []>} : vector<88x40xbf16>, vector<40x16xbf16>, vector<88x16xf32> -> vector<88x16xf32>
    %12 = arith.addf %9, %11 : vector<88x16xf32>
    %13 = arith.addf %7, %12 : vector<88x16xf32>
    %c0_11 = arith.constant 0 : index
    %c0_12 = arith.constant 0 : index
    %14 = vector.load %arg8[%c0_11, %c0_12] : memref<88x16xf32, #tpu.memory_space<vmem>>, vector<88x16xf32>
    tpu.vector_store %arg8[%c0_11, %c0_12], %13 {strides = array<i32>} : memref<88x16xf32, #tpu.memory_space<vmem>>, vector<88x16xf32>,
    %c0_i32_13 = arith.constant 0 : i32
    %15 = arith.cmpi eq, %arg1, %c0_i32_13 : i32
    %16 = arith.extui %15 : i1 to i32
    %c0_i32_14 = arith.constant 0 : i32
    %17 = arith.cmpi ne, %16, %c0_i32_14 : i32
    scf.if %17 {
      %c0_15 = arith.constant 0 : index
      %c0_16 = arith.constant 0 : index
      %18 = vector.load %arg8[%c0_15, %c0_16] : memref<88x16xf32, #tpu.memory_space<vmem>>, vector<88x16xf32>
      %c0_17 = arith.constant 0 : index
      %c0_18 = arith.constant 0 : index
      %19 = vector.load %arg6[%c0_17, %c0_18] : memref<1x16xf32, #tpu.memory_space<vmem>>, vector<1x16xf32>
      %20 = vector.broadcast %19 : vector<1x16xf32> to vector<88x16xf32>
      %21 = arith.addf %18, %20 : vector<88x16xf32>
      %c0_19 = arith.constant 0 : index
      %c0_20 = arith.constant 0 : index
      %22 = vector.load %arg7[%c0_19, %c0_20] : memref<88x16xf32, #tpu.memory_space<vmem>>, vector<88x16xf32>
      tpu.vector_store %arg7[%c0_19, %c0_20], %21 {strides = array<i32>} : memref<88x16xf32, #tpu.memory_space<vmem>>, vector<88x16xf32>,
    } else {
    }
    return
  }
  func.func @transform_0(%arg0: i32, %arg1: i32) -> (i32, i32) {
    %c0_i32 = arith.constant 0 : i32
    return %arg0, %arg1 : i32, i32
  }
  func.func @transform_1(%arg0: i32, %arg1: i32) -> (i32, i32) {
    %c0_i32 = arith.constant 0 : i32
    return %arg0, %arg1 : i32, i32
  }
  func.func @transform_2(%arg0: i32, %arg1: i32) -> (i32, i32) {
    %c0_i32 = arith.constant 0 : i32
    %c0_i32_0 = arith.constant 0 : i32
    return %arg1, %c0_i32 : i32, i32
  }
  func.func @transform_3(%arg0: i32, %arg1: i32) -> (i32, i32) {
    %c0_i32 = arith.constant 0 : i32
    %c0_i32_0 = arith.constant 0 : i32
    return %arg1, %c0_i32 : i32, i32
  }
  func.func @transform_4(%arg0: i32, %arg1: i32) -> (i32, i32) {
    %c0_i32 = arith.constant 0 : i32
    %c0_i32_0 = arith.constant 0 : i32
    %c0_i32_1 = arith.constant 0 : i32
    return %c0_i32, %c0_i32_0 : i32, i32
  }
  func.func @transform_5(%arg0: i32, %arg1: i32) -> (i32, i32) {
    %c0_i32 = arith.constant 0 : i32
    %c0_i32_0 = arith.constant 0 : i32
    return %arg0, %c0_i32 : i32, i32
  }
}

module attributes {stable_mosaic.version = 11 : i64} {
  func.func @_cmm_wide_kernel(%arg0: i32, %arg1: i32, %arg2: memref<48x80xf32, #tpu.memory_space<vmem>>, %arg3: memref<48x80xf32, #tpu.memory_space<vmem>>, %arg4: memref<80x32xbf16, #tpu.memory_space<vmem>>, %arg5: memref<80x32xbf16, #tpu.memory_space<vmem>>, %arg6: memref<1x32xf32, #tpu.memory_space<vmem>>, %arg7: memref<48x32xf32, #tpu.memory_space<vmem>>, %arg8: memref<48x32xf32, #tpu.memory_space<vmem>>) attributes {dimension_semantics = [#tpu.dimension_semantics<parallel>, #tpu.dimension_semantics<arbitrary>], iteration_bounds = array<i64: 2, 1>, scalar_prefetch = 0 : i64, scratch_operands = 1 : i64, tpu.core_type = #tpu.core_type<tc>, window_params = [{transform_indices = @transform_0, window_bounds = array<i64: 48, 80>}, {transform_indices = @transform_1, window_bounds = array<i64: 48, 80>}, {transform_indices = @transform_2, window_bounds = array<i64: 80, 32>}, {transform_indices = @transform_3, window_bounds = array<i64: 80, 32>}, {pipeline_mode = #tpu.pipeline_mode<synchronous>, transform_indices = @transform_4, window_bounds = array<i64: 1, 32>}, {transform_indices = @transform_5, window_bounds = array<i64: 48, 32>}]} {
    %c0_i32 = arith.constant 0 : i32
    %0 = arith.cmpi eq, %arg1, %c0_i32 : i32
    %1 = arith.extui %0 : i1 to i32
    %c0_i32_0 = arith.constant 0 : i32
    %2 = arith.cmpi ne, %1, %c0_i32_0 : i32
    scf.if %2 {
      %cst_15 = arith.constant 0.000000e+00 : f32
      %18 = vector.broadcast %cst_15 : f32 to vector<48x32xf32>
      %c0_16 = arith.constant 0 : index
      %c0_17 = arith.constant 0 : index
      %19 = vector.load %arg8[%c0_16, %c0_17] : memref<48x32xf32, #tpu.memory_space<vmem>>, vector<48x32xf32>
      tpu.vector_store %arg8[%c0_16, %c0_17], %18 {strides = array<i32>} : memref<48x32xf32, #tpu.memory_space<vmem>>, vector<48x32xf32>,
    } else {
    }
    %c0 = arith.constant 0 : index
    %c0_1 = arith.constant 0 : index
    %3 = vector.load %arg2[%c0, %c0_1] : memref<48x80xf32, #tpu.memory_space<vmem>>, vector<48x80xf32>
    %4 = arith.truncf %3 : vector<48x80xf32> to vector<48x80xbf16>
    %c0_2 = arith.constant 0 : index
    %c0_3 = arith.constant 0 : index
    %5 = vector.load %arg3[%c0_2, %c0_3] : memref<48x80xf32, #tpu.memory_space<vmem>>, vector<48x80xf32>
    %6 = arith.truncf %5 : vector<48x80xf32> to vector<48x80xbf16>
    %c0_4 = arith.constant 0 : index
    %c0_5 = arith.constant 0 : index
    %7 = vector.load %arg8[%c0_4, %c0_5] : memref<48x32xf32, #tpu.memory_space<vmem>>, vector<48x32xf32>
    %c0_6 = arith.constant 0 : index
    %c0_7 = arith.constant 0 : index
    %8 = vector.load %arg4[%c0_6, %c0_7] : memref<80x32xbf16, #tpu.memory_space<vmem>>, vector<80x32xbf16>
    %cst = arith.constant dense<0.000000e+00> : vector<48x32xf32>
    %9 = tpu.matmul %4, %8, %cst {dimension_numbers = #tpu.dot_dimension_numbers<[1], [0], [0], [1], [0, 0, 1, 1], [], []>} : vector<48x80xbf16>, vector<80x32xbf16>, vector<48x32xf32> -> vector<48x32xf32>
    %c0_8 = arith.constant 0 : index
    %c0_9 = arith.constant 0 : index
    %10 = vector.load %arg5[%c0_8, %c0_9] : memref<80x32xbf16, #tpu.memory_space<vmem>>, vector<80x32xbf16>
    %cst_10 = arith.constant dense<0.000000e+00> : vector<48x32xf32>
    %11 = tpu.matmul %6, %10, %cst_10 {dimension_numbers = #tpu.dot_dimension_numbers<[1], [0], [0], [1], [0, 0, 1, 1], [], []>} : vector<48x80xbf16>, vector<80x32xbf16>, vector<48x32xf32> -> vector<48x32xf32>
    %12 = arith.addf %9, %11 : vector<48x32xf32>
    %13 = arith.addf %7, %12 : vector<48x32xf32>
    %c0_11 = arith.constant 0 : index
    %c0_12 = arith.constant 0 : index
    %14 = vector.load %arg8[%c0_11, %c0_12] : memref<48x32xf32, #tpu.memory_space<vmem>>, vector<48x32xf32>
    tpu.vector_store %arg8[%c0_11, %c0_12], %13 {strides = array<i32>} : memref<48x32xf32, #tpu.memory_space<vmem>>, vector<48x32xf32>,
    %c0_i32_13 = arith.constant 0 : i32
    %15 = arith.cmpi eq, %arg1, %c0_i32_13 : i32
    %16 = arith.extui %15 : i1 to i32
    %c0_i32_14 = arith.constant 0 : i32
    %17 = arith.cmpi ne, %16, %c0_i32_14 : i32
    scf.if %17 {
      %c0_15 = arith.constant 0 : index
      %c0_16 = arith.constant 0 : index
      %18 = vector.load %arg8[%c0_15, %c0_16] : memref<48x32xf32, #tpu.memory_space<vmem>>, vector<48x32xf32>
      %c0_17 = arith.constant 0 : index
      %c0_18 = arith.constant 0 : index
      %19 = vector.load %arg6[%c0_17, %c0_18] : memref<1x32xf32, #tpu.memory_space<vmem>>, vector<1x32xf32>
      %20 = vector.broadcast %19 : vector<1x32xf32> to vector<48x32xf32>
      %21 = arith.addf %18, %20 : vector<48x32xf32>
      %c0_19 = arith.constant 0 : index
      %c0_20 = arith.constant 0 : index
      %22 = vector.load %arg7[%c0_19, %c0_20] : memref<48x32xf32, #tpu.memory_space<vmem>>, vector<48x32xf32>
      tpu.vector_store %arg7[%c0_19, %c0_20], %21 {strides = array<i32>} : memref<48x32xf32, #tpu.memory_space<vmem>>, vector<48x32xf32>,
    } else {
    }
    return
  }
  func.func @transform_0(%arg0: i32, %arg1: i32) -> (i32, i32) {
    %c0_i32 = arith.constant 0 : i32
    return %arg0, %arg1 : i32, i32
  }
  func.func @transform_1(%arg0: i32, %arg1: i32) -> (i32, i32) {
    %c0_i32 = arith.constant 0 : i32
    return %arg0, %arg1 : i32, i32
  }
  func.func @transform_2(%arg0: i32, %arg1: i32) -> (i32, i32) {
    %c0_i32 = arith.constant 0 : i32
    %c0_i32_0 = arith.constant 0 : i32
    return %arg1, %c0_i32 : i32, i32
  }
  func.func @transform_3(%arg0: i32, %arg1: i32) -> (i32, i32) {
    %c0_i32 = arith.constant 0 : i32
    %c0_i32_0 = arith.constant 0 : i32
    return %arg1, %c0_i32 : i32, i32
  }
  func.func @transform_4(%arg0: i32, %arg1: i32) -> (i32, i32) {
    %c0_i32 = arith.constant 0 : i32
    %c0_i32_0 = arith.constant 0 : i32
    %c0_i32_1 = arith.constant 0 : i32
    return %c0_i32, %c0_i32_0 : i32, i32
  }
  func.func @transform_5(%arg0: i32, %arg1: i32) -> (i32, i32) {
    %c0_i32 = arith.constant 0 : i32
    %c0_i32_0 = arith.constant 0 : i32
    return %arg0, %c0_i32 : i32, i32
  }
}

module attributes {stable_mosaic.version = 11 : i64} {
  func.func @_cmm_gauss_kernel(%arg0: i32, %arg1: i32, %arg2: i32, %arg3: memref<24x64xf32, #tpu.memory_space<vmem>>, %arg4: memref<24x64xf32, #tpu.memory_space<vmem>>, %arg5: memref<64x128xbf16, #tpu.memory_space<vmem>>, %arg6: memref<64x128xbf16, #tpu.memory_space<vmem>>, %arg7: memref<1x128xf32, #tpu.memory_space<vmem>>, %arg8: memref<1x128xf32, #tpu.memory_space<vmem>>, %arg9: memref<24x128xbf16, #tpu.memory_space<vmem>>, %arg10: memref<24x128xbf16, #tpu.memory_space<vmem>>, %arg11: memref<24x128xf32, #tpu.memory_space<vmem>>, %arg12: memref<24x128xf32, #tpu.memory_space<vmem>>) attributes {dimension_semantics = [#tpu.dimension_semantics<parallel>, #tpu.dimension_semantics<parallel>, #tpu.dimension_semantics<arbitrary>], iteration_bounds = array<i64: 1, 1, 1>, scalar_prefetch = 0 : i64, scratch_operands = 2 : i64, tpu.core_type = #tpu.core_type<tc>, window_params = [{transform_indices = @transform_0, window_bounds = array<i64: 24, 64>}, {transform_indices = @transform_1, window_bounds = array<i64: 24, 64>}, {transform_indices = @transform_2, window_bounds = array<i64: 64, 128>}, {transform_indices = @transform_3, window_bounds = array<i64: 64, 128>}, {transform_indices = @transform_4, window_bounds = array<i64: 1, 128>}, {transform_indices = @transform_5, window_bounds = array<i64: 1, 128>}, {transform_indices = @transform_6, window_bounds = array<i64: 24, 128>}, {transform_indices = @transform_7, window_bounds = array<i64: 24, 128>}]} {
    %c0_i32 = arith.constant 0 : i32
    %0 = arith.cmpi eq, %arg2, %c0_i32 : i32
    %1 = arith.extui %0 : i1 to i32
    %c0_i32_0 = arith.constant 0 : i32
    %2 = arith.cmpi ne, %1, %c0_i32_0 : i32
    scf.if %2 {
      %cst_20 = arith.constant 0.000000e+00 : f32
      %26 = vector.broadcast %cst_20 : f32 to vector<24x128xf32>
      %c0_21 = arith.constant 0 : index
      %c0_22 = arith.constant 0 : index
      %27 = vector.load %arg11[%c0_21, %c0_22] : memref<24x128xf32, #tpu.memory_space<vmem>>, vector<24x128xf32>
      tpu.vector_store %arg11[%c0_21, %c0_22], %26 {strides = array<i32>} : memref<24x128xf32, #tpu.memory_space<vmem>>, vector<24x128xf32>,
      %cst_23 = arith.constant 0.000000e+00 : f32
      %28 = vector.broadcast %cst_23 : f32 to vector<24x128xf32>
      %c0_24 = arith.constant 0 : index
      %c0_25 = arith.constant 0 : index
      %29 = vector.load %arg12[%c0_24, %c0_25] : memref<24x128xf32, #tpu.memory_space<vmem>>, vector<24x128xf32>
      tpu.vector_store %arg12[%c0_24, %c0_25], %28 {strides = array<i32>} : memref<24x128xf32, #tpu.memory_space<vmem>>, vector<24x128xf32>,
    } else {
    }
    %c0 = arith.constant 0 : index
    %c0_1 = arith.constant 0 : index
    %3 = vector.load %arg3[%c0, %c0_1] : memref<24x64xf32, #tpu.memory_space<vmem>>, vector<24x64xf32>
    %4 = arith.truncf %3 : vector<24x64xf32> to vector<24x64xbf16>
    %c0_2 = arith.constant 0 : index
    %c0_3 = arith.constant 0 : index
    %5 = vector.load %arg4[%c0_2, %c0_3] : memref<24x64xf32, #tpu.memory_space<vmem>>, vector<24x64xf32>
    %6 = arith.truncf %5 : vector<24x64xf32> to vector<24x64xbf16>
    %c0_4 = arith.constant 0 : index
    %c0_5 = arith.constant 0 : index
    %7 = vector.load %arg5[%c0_4, %c0_5] : memref<64x128xbf16, #tpu.memory_space<vmem>>, vector<64x128xbf16>
    %c0_6 = arith.constant 0 : index
    %c0_7 = arith.constant 0 : index
    %8 = vector.load %arg6[%c0_6, %c0_7] : memref<64x128xbf16, #tpu.memory_space<vmem>>, vector<64x128xbf16>
    %cst = arith.constant dense<0.000000e+00> : vector<24x128xf32>
    %9 = tpu.matmul %4, %7, %cst {dimension_numbers = #tpu.dot_dimension_numbers<[1], [0], [0], [1], [0, 0, 1, 1], [], []>} : vector<24x64xbf16>, vector<64x128xbf16>, vector<24x128xf32> -> vector<24x128xf32>
    %cst_8 = arith.constant dense<0.000000e+00> : vector<24x128xf32>
    %10 = tpu.matmul %6, %8, %cst_8 {dimension_numbers = #tpu.dot_dimension_numbers<[1], [0], [0], [1], [0, 0, 1, 1], [], []>} : vector<24x64xbf16>, vector<64x128xbf16>, vector<24x128xf32> -> vector<24x128xf32>
    %11 = arith.addf %4, %6 : vector<24x64xbf16>
    %12 = arith.addf %7, %8 : vector<64x128xbf16>
    %cst_9 = arith.constant dense<0.000000e+00> : vector<24x128xf32>
    %13 = tpu.matmul %11, %12, %cst_9 {dimension_numbers = #tpu.dot_dimension_numbers<[1], [0], [0], [1], [0, 0, 1, 1], [], []>} : vector<24x64xbf16>, vector<64x128xbf16>, vector<24x128xf32> -> vector<24x128xf32>
    %c0_10 = arith.constant 0 : index
    %c0_11 = arith.constant 0 : index
    %14 = vector.load %arg11[%c0_10, %c0_11] : memref<24x128xf32, #tpu.memory_space<vmem>>, vector<24x128xf32>
    %15 = arith.subf %9, %10 : vector<24x128xf32>
    %16 = arith.addf %14, %15 : vector<24x128xf32>
    %c0_12 = arith.constant 0 : index
    %c0_13 = arith.constant 0 : index
    %17 = vector.load %arg11[%c0_12, %c0_13] : memref<24x128xf32, #tpu.memory_space<vmem>>, vector<24x128xf32>
    tpu.vector_store %arg11[%c0_12, %c0_13], %16 {strides = array<i32>} : memref<24x128xf32, #tpu.memory_space<vmem>>, vector<24x128xf32>,
    %c0_14 = arith.constant 0 : index
    %c0_15 = arith.constant 0 : index
    %18 = vector.load %arg12[%c0_14, %c0_15] : memref<24x128xf32, #tpu.memory_space<vmem>>, vector<24x128xf32>
    %19 = arith.subf %13, %9 : vector<24x128xf32>
    %20 = arith.subf %19, %10 : vector<24x128xf32>
    %21 = arith.addf %18, %20 : vector<24x128xf32>
    %c0_16 = arith.constant 0 : index
    %c0_17 = arith.constant 0 : index
    %22 = vector.load %arg12[%c0_16, %c0_17] : memref<24x128xf32, #tpu.memory_space<vmem>>, vector<24x128xf32>
    tpu.vector_store %arg12[%c0_16, %c0_17], %21 {strides = array<i32>} : memref<24x128xf32, #tpu.memory_space<vmem>>, vector<24x128xf32>,
    %c0_i32_18 = arith.constant 0 : i32
    %23 = arith.cmpi eq, %arg2, %c0_i32_18 : i32
    %24 = arith.extui %23 : i1 to i32
    %c0_i32_19 = arith.constant 0 : i32
    %25 = arith.cmpi ne, %24, %c0_i32_19 : i32
    scf.if %25 {
      %c0_20 = arith.constant 0 : index
      %c0_21 = arith.constant 0 : index
      %26 = vector.load %arg11[%c0_20, %c0_21] : memref<24x128xf32, #tpu.memory_space<vmem>>, vector<24x128xf32>
      %c0_22 = arith.constant 0 : index
      %c0_23 = arith.constant 0 : index
      %27 = vector.load %arg7[%c0_22, %c0_23] : memref<1x128xf32, #tpu.memory_space<vmem>>, vector<1x128xf32>
      %28 = vector.broadcast %27 : vector<1x128xf32> to vector<24x128xf32>
      %29 = arith.addf %26, %28 : vector<24x128xf32>
      %30 = arith.truncf %29 : vector<24x128xf32> to vector<24x128xbf16>
      %c0_24 = arith.constant 0 : index
      %c0_25 = arith.constant 0 : index
      %31 = vector.load %arg9[%c0_24, %c0_25] : memref<24x128xbf16, #tpu.memory_space<vmem>>, vector<24x128xbf16>
      tpu.vector_store %arg9[%c0_24, %c0_25], %30 {strides = array<i32>} : memref<24x128xbf16, #tpu.memory_space<vmem>>, vector<24x128xbf16>,
      %c0_26 = arith.constant 0 : index
      %c0_27 = arith.constant 0 : index
      %32 = vector.load %arg12[%c0_26, %c0_27] : memref<24x128xf32, #tpu.memory_space<vmem>>, vector<24x128xf32>
      %c0_28 = arith.constant 0 : index
      %c0_29 = arith.constant 0 : index
      %33 = vector.load %arg8[%c0_28, %c0_29] : memref<1x128xf32, #tpu.memory_space<vmem>>, vector<1x128xf32>
      %34 = vector.broadcast %33 : vector<1x128xf32> to vector<24x128xf32>
      %35 = arith.addf %32, %34 : vector<24x128xf32>
      %36 = arith.truncf %35 : vector<24x128xf32> to vector<24x128xbf16>
      %c0_30 = arith.constant 0 : index
      %c0_31 = arith.constant 0 : index
      %37 = vector.load %arg10[%c0_30, %c0_31] : memref<24x128xbf16, #tpu.memory_space<vmem>>, vector<24x128xbf16>
      tpu.vector_store %arg10[%c0_30, %c0_31], %36 {strides = array<i32>} : memref<24x128xbf16, #tpu.memory_space<vmem>>, vector<24x128xbf16>,
    } else {
    }
    return
  }
  func.func @transform_0(%arg0: i32, %arg1: i32, %arg2: i32) -> (i32, i32) {
    %c0_i32 = arith.constant 0 : i32
    return %arg0, %arg2 : i32, i32
  }
  func.func @transform_1(%arg0: i32, %arg1: i32, %arg2: i32) -> (i32, i32) {
    %c0_i32 = arith.constant 0 : i32
    return %arg0, %arg2 : i32, i32
  }
  func.func @transform_2(%arg0: i32, %arg1: i32, %arg2: i32) -> (i32, i32) {
    %c0_i32 = arith.constant 0 : i32
    return %arg2, %arg1 : i32, i32
  }
  func.func @transform_3(%arg0: i32, %arg1: i32, %arg2: i32) -> (i32, i32) {
    %c0_i32 = arith.constant 0 : i32
    return %arg2, %arg1 : i32, i32
  }
  func.func @transform_4(%arg0: i32, %arg1: i32, %arg2: i32) -> (i32, i32) {
    %c0_i32 = arith.constant 0 : i32
    %c0_i32_0 = arith.constant 0 : i32
    return %c0_i32, %arg1 : i32, i32
  }
  func.func @transform_5(%arg0: i32, %arg1: i32, %arg2: i32) -> (i32, i32) {
    %c0_i32 = arith.constant 0 : i32
    %c0_i32_0 = arith.constant 0 : i32
    return %c0_i32, %arg1 : i32, i32
  }
  func.func @transform_6(%arg0: i32, %arg1: i32, %arg2: i32) -> (i32, i32) {
    %c0_i32 = arith.constant 0 : i32
    return %arg0, %arg1 : i32, i32
  }
  func.func @transform_7(%arg0: i32, %arg1: i32, %arg2: i32) -> (i32, i32) {
    %c0_i32 = arith.constant 0 : i32
    return %arg0, %arg1 : i32, i32
  }
}

module attributes {stable_mosaic.version = 11 : i64} {
  func.func @_cmm_gauss_kernel(%arg0: i32, %arg1: i32, %arg2: i32, %arg3: memref<24x128xbf16, #tpu.memory_space<vmem>>, %arg4: memref<24x128xbf16, #tpu.memory_space<vmem>>, %arg5: memref<128x128xbf16, #tpu.memory_space<vmem>>, %arg6: memref<128x128xbf16, #tpu.memory_space<vmem>>, %arg7: memref<1x128xf32, #tpu.memory_space<vmem>>, %arg8: memref<1x128xf32, #tpu.memory_space<vmem>>, %arg9: memref<24x128xbf16, #tpu.memory_space<vmem>>, %arg10: memref<24x128xbf16, #tpu.memory_space<vmem>>, %arg11: memref<24x128xf32, #tpu.memory_space<vmem>>, %arg12: memref<24x128xf32, #tpu.memory_space<vmem>>) attributes {dimension_semantics = [#tpu.dimension_semantics<parallel>, #tpu.dimension_semantics<parallel>, #tpu.dimension_semantics<arbitrary>], iteration_bounds = array<i64: 1, 1, 1>, scalar_prefetch = 0 : i64, scratch_operands = 2 : i64, tpu.core_type = #tpu.core_type<tc>, window_params = [{transform_indices = @transform_0, window_bounds = array<i64: 24, 128>}, {transform_indices = @transform_1, window_bounds = array<i64: 24, 128>}, {transform_indices = @transform_2, window_bounds = array<i64: 128, 128>}, {transform_indices = @transform_3, window_bounds = array<i64: 128, 128>}, {transform_indices = @transform_4, window_bounds = array<i64: 1, 128>}, {transform_indices = @transform_5, window_bounds = array<i64: 1, 128>}, {transform_indices = @transform_6, window_bounds = array<i64: 24, 128>}, {transform_indices = @transform_7, window_bounds = array<i64: 24, 128>}]} {
    %c0_i32 = arith.constant 0 : i32
    %0 = arith.cmpi eq, %arg2, %c0_i32 : i32
    %1 = arith.extui %0 : i1 to i32
    %c0_i32_0 = arith.constant 0 : i32
    %2 = arith.cmpi ne, %1, %c0_i32_0 : i32
    scf.if %2 {
      %cst_20 = arith.constant 0.000000e+00 : f32
      %24 = vector.broadcast %cst_20 : f32 to vector<24x128xf32>
      %c0_21 = arith.constant 0 : index
      %c0_22 = arith.constant 0 : index
      %25 = vector.load %arg11[%c0_21, %c0_22] : memref<24x128xf32, #tpu.memory_space<vmem>>, vector<24x128xf32>
      tpu.vector_store %arg11[%c0_21, %c0_22], %24 {strides = array<i32>} : memref<24x128xf32, #tpu.memory_space<vmem>>, vector<24x128xf32>,
      %cst_23 = arith.constant 0.000000e+00 : f32
      %26 = vector.broadcast %cst_23 : f32 to vector<24x128xf32>
      %c0_24 = arith.constant 0 : index
      %c0_25 = arith.constant 0 : index
      %27 = vector.load %arg12[%c0_24, %c0_25] : memref<24x128xf32, #tpu.memory_space<vmem>>, vector<24x128xf32>
      tpu.vector_store %arg12[%c0_24, %c0_25], %26 {strides = array<i32>} : memref<24x128xf32, #tpu.memory_space<vmem>>, vector<24x128xf32>,
    } else {
    }
    %c0 = arith.constant 0 : index
    %c0_1 = arith.constant 0 : index
    %3 = vector.load %arg3[%c0, %c0_1] : memref<24x128xbf16, #tpu.memory_space<vmem>>, vector<24x128xbf16>
    %c0_2 = arith.constant 0 : index
    %c0_3 = arith.constant 0 : index
    %4 = vector.load %arg4[%c0_2, %c0_3] : memref<24x128xbf16, #tpu.memory_space<vmem>>, vector<24x128xbf16>
    %c0_4 = arith.constant 0 : index
    %c0_5 = arith.constant 0 : index
    %5 = vector.load %arg5[%c0_4, %c0_5] : memref<128x128xbf16, #tpu.memory_space<vmem>>, vector<128x128xbf16>
    %c0_6 = arith.constant 0 : index
    %c0_7 = arith.constant 0 : index
    %6 = vector.load %arg6[%c0_6, %c0_7] : memref<128x128xbf16, #tpu.memory_space<vmem>>, vector<128x128xbf16>
    %cst = arith.constant dense<0.000000e+00> : vector<24x128xf32>
    %7 = tpu.matmul %3, %5, %cst {dimension_numbers = #tpu.dot_dimension_numbers<[1], [0], [0], [1], [0, 0, 1, 1], [], []>} : vector<24x128xbf16>, vector<128x128xbf16>, vector<24x128xf32> -> vector<24x128xf32>
    %cst_8 = arith.constant dense<0.000000e+00> : vector<24x128xf32>
    %8 = tpu.matmul %4, %6, %cst_8 {dimension_numbers = #tpu.dot_dimension_numbers<[1], [0], [0], [1], [0, 0, 1, 1], [], []>} : vector<24x128xbf16>, vector<128x128xbf16>, vector<24x128xf32> -> vector<24x128xf32>
    %9 = arith.addf %3, %4 : vector<24x128xbf16>
    %10 = arith.addf %5, %6 : vector<128x128xbf16>
    %cst_9 = arith.constant dense<0.000000e+00> : vector<24x128xf32>
    %11 = tpu.matmul %9, %10, %cst_9 {dimension_numbers = #tpu.dot_dimension_numbers<[1], [0], [0], [1], [0, 0, 1, 1], [], []>} : vector<24x128xbf16>, vector<128x128xbf16>, vector<24x128xf32> -> vector<24x128xf32>
    %c0_10 = arith.constant 0 : index
    %c0_11 = arith.constant 0 : index
    %12 = vector.load %arg11[%c0_10, %c0_11] : memref<24x128xf32, #tpu.memory_space<vmem>>, vector<24x128xf32>
    %13 = arith.subf %7, %8 : vector<24x128xf32>
    %14 = arith.addf %12, %13 : vector<24x128xf32>
    %c0_12 = arith.constant 0 : index
    %c0_13 = arith.constant 0 : index
    %15 = vector.load %arg11[%c0_12, %c0_13] : memref<24x128xf32, #tpu.memory_space<vmem>>, vector<24x128xf32>
    tpu.vector_store %arg11[%c0_12, %c0_13], %14 {strides = array<i32>} : memref<24x128xf32, #tpu.memory_space<vmem>>, vector<24x128xf32>,
    %c0_14 = arith.constant 0 : index
    %c0_15 = arith.constant 0 : index
    %16 = vector.load %arg12[%c0_14, %c0_15] : memref<24x128xf32, #tpu.memory_space<vmem>>, vector<24x128xf32>
    %17 = arith.subf %11, %7 : vector<24x128xf32>
    %18 = arith.subf %17, %8 : vector<24x128xf32>
    %19 = arith.addf %16, %18 : vector<24x128xf32>
    %c0_16 = arith.constant 0 : index
    %c0_17 = arith.constant 0 : index
    %20 = vector.load %arg12[%c0_16, %c0_17] : memref<24x128xf32, #tpu.memory_space<vmem>>, vector<24x128xf32>
    tpu.vector_store %arg12[%c0_16, %c0_17], %19 {strides = array<i32>} : memref<24x128xf32, #tpu.memory_space<vmem>>, vector<24x128xf32>,
    %c0_i32_18 = arith.constant 0 : i32
    %21 = arith.cmpi eq, %arg2, %c0_i32_18 : i32
    %22 = arith.extui %21 : i1 to i32
    %c0_i32_19 = arith.constant 0 : i32
    %23 = arith.cmpi ne, %22, %c0_i32_19 : i32
    scf.if %23 {
      %c0_20 = arith.constant 0 : index
      %c0_21 = arith.constant 0 : index
      %24 = vector.load %arg11[%c0_20, %c0_21] : memref<24x128xf32, #tpu.memory_space<vmem>>, vector<24x128xf32>
      %c0_22 = arith.constant 0 : index
      %c0_23 = arith.constant 0 : index
      %25 = vector.load %arg7[%c0_22, %c0_23] : memref<1x128xf32, #tpu.memory_space<vmem>>, vector<1x128xf32>
      %26 = vector.broadcast %25 : vector<1x128xf32> to vector<24x128xf32>
      %27 = arith.addf %24, %26 : vector<24x128xf32>
      %28 = arith.truncf %27 : vector<24x128xf32> to vector<24x128xbf16>
      %c0_24 = arith.constant 0 : index
      %c0_25 = arith.constant 0 : index
      %29 = vector.load %arg9[%c0_24, %c0_25] : memref<24x128xbf16, #tpu.memory_space<vmem>>, vector<24x128xbf16>
      tpu.vector_store %arg9[%c0_24, %c0_25], %28 {strides = array<i32>} : memref<24x128xbf16, #tpu.memory_space<vmem>>, vector<24x128xbf16>,
      %c0_26 = arith.constant 0 : index
      %c0_27 = arith.constant 0 : index
      %30 = vector.load %arg12[%c0_26, %c0_27] : memref<24x128xf32, #tpu.memory_space<vmem>>, vector<24x128xf32>
      %c0_28 = arith.constant 0 : index
      %c0_29 = arith.constant 0 : index
      %31 = vector.load %arg8[%c0_28, %c0_29] : memref<1x128xf32, #tpu.memory_space<vmem>>, vector<1x128xf32>
      %32 = vector.broadcast %31 : vector<1x128xf32> to vector<24x128xf32>
      %33 = arith.addf %30, %32 : vector<24x128xf32>
      %34 = arith.truncf %33 : vector<24x128xf32> to vector<24x128xbf16>
      %c0_30 = arith.constant 0 : index
      %c0_31 = arith.constant 0 : index
      %35 = vector.load %arg10[%c0_30, %c0_31] : memref<24x128xbf16, #tpu.memory_space<vmem>>, vector<24x128xbf16>
      tpu.vector_store %arg10[%c0_30, %c0_31], %34 {strides = array<i32>} : memref<24x128xbf16, #tpu.memory_space<vmem>>, vector<24x128xbf16>,
    } else {
    }
    return
  }
  func.func @transform_0(%arg0: i32, %arg1: i32, %arg2: i32) -> (i32, i32) {
    %c0_i32 = arith.constant 0 : i32
    return %arg0, %arg2 : i32, i32
  }
  func.func @transform_1(%arg0: i32, %arg1: i32, %arg2: i32) -> (i32, i32) {
    %c0_i32 = arith.constant 0 : i32
    return %arg0, %arg2 : i32, i32
  }
  func.func @transform_2(%arg0: i32, %arg1: i32, %arg2: i32) -> (i32, i32) {
    %c0_i32 = arith.constant 0 : i32
    return %arg2, %arg1 : i32, i32
  }
  func.func @transform_3(%arg0: i32, %arg1: i32, %arg2: i32) -> (i32, i32) {
    %c0_i32 = arith.constant 0 : i32
    return %arg2, %arg1 : i32, i32
  }
  func.func @transform_4(%arg0: i32, %arg1: i32, %arg2: i32) -> (i32, i32) {
    %c0_i32 = arith.constant 0 : i32
    %c0_i32_0 = arith.constant 0 : i32
    return %c0_i32, %arg1 : i32, i32
  }
  func.func @transform_5(%arg0: i32, %arg1: i32, %arg2: i32) -> (i32, i32) {
    %c0_i32 = arith.constant 0 : i32
    %c0_i32_0 = arith.constant 0 : i32
    return %c0_i32, %arg1 : i32, i32
  }
  func.func @transform_6(%arg0: i32, %arg1: i32, %arg2: i32) -> (i32, i32) {
    %c0_i32 = arith.constant 0 : i32
    return %arg0, %arg1 : i32, i32
  }
  func.func @transform_7(%arg0: i32, %arg1: i32, %arg2: i32) -> (i32, i32) {
    %c0_i32 = arith.constant 0 : i32
    return %arg0, %arg1 : i32, i32
  }
}

module attributes {stable_mosaic.version = 11 : i64} {
  func.func @_cattn_kernel(%arg0: i32, %arg1: memref<1x12x128xbf16, #tpu.memory_space<vmem>>, %arg2: memref<1x12x128xbf16, #tpu.memory_space<vmem>>, %arg3: memref<1x12x128xbf16, #tpu.memory_space<vmem>>, %arg4: memref<1x12x128xbf16, #tpu.memory_space<vmem>>, %arg5: memref<1x12x128xbf16, #tpu.memory_space<vmem>>, %arg6: memref<1x12x128xbf16, #tpu.memory_space<vmem>>, %arg7: memref<1x12x128xbf16, #tpu.memory_space<vmem>>, %arg8: memref<1x12x128xbf16, #tpu.memory_space<vmem>>) attributes {dimension_semantics = [#tpu.dimension_semantics<parallel>], iteration_bounds = array<i64: 2>, scalar_prefetch = 0 : i64, scratch_operands = 0 : i64, tpu.core_type = #tpu.core_type<tc>, window_params = [{transform_indices = @transform_0, window_bounds = array<i64: 1, 12, 128>}, {transform_indices = @transform_1, window_bounds = array<i64: 1, 12, 128>}, {transform_indices = @transform_2, window_bounds = array<i64: 1, 12, 128>}, {transform_indices = @transform_3, window_bounds = array<i64: 1, 12, 128>}, {transform_indices = @transform_4, window_bounds = array<i64: 1, 12, 128>}, {transform_indices = @transform_5, window_bounds = array<i64: 1, 12, 128>}, {transform_indices = @transform_6, window_bounds = array<i64: 1, 12, 128>}, {transform_indices = @transform_7, window_bounds = array<i64: 1, 12, 128>}]} {
    %c0 = arith.constant 0 : index
    %c0_0 = arith.constant 0 : index
    %c0_1 = arith.constant 0 : index
    %0 = vector.load %arg1[%c0, %c0_0, %c0_1] : memref<1x12x128xbf16, #tpu.memory_space<vmem>>, vector<1x12x128xbf16>
    %1 = vector.shape_cast %0 : vector<1x12x128xbf16> to vector<12x128xbf16>
    %c0_2 = arith.constant 0 : index
    %c0_3 = arith.constant 0 : index
    %c0_4 = arith.constant 0 : index
    %2 = vector.load %arg2[%c0_2, %c0_3, %c0_4] : memref<1x12x128xbf16, #tpu.memory_space<vmem>>, vector<1x12x128xbf16>
    %3 = vector.shape_cast %2 : vector<1x12x128xbf16> to vector<12x128xbf16>
    %c0_5 = arith.constant 0 : index
    %c0_6 = arith.constant 0 : index
    %c0_7 = arith.constant 0 : index
    %4 = vector.load %arg3[%c0_5, %c0_6, %c0_7] : memref<1x12x128xbf16, #tpu.memory_space<vmem>>, vector<1x12x128xbf16>
    %5 = vector.shape_cast %4 : vector<1x12x128xbf16> to vector<12x128xbf16>
    %c0_8 = arith.constant 0 : index
    %c0_9 = arith.constant 0 : index
    %c0_10 = arith.constant 0 : index
    %6 = vector.load %arg4[%c0_8, %c0_9, %c0_10] : memref<1x12x128xbf16, #tpu.memory_space<vmem>>, vector<1x12x128xbf16>
    %7 = vector.shape_cast %6 : vector<1x12x128xbf16> to vector<12x128xbf16>
    %c0_11 = arith.constant 0 : index
    %c0_12 = arith.constant 0 : index
    %c0_13 = arith.constant 0 : index
    %8 = vector.load %arg5[%c0_11, %c0_12, %c0_13] : memref<1x12x128xbf16, #tpu.memory_space<vmem>>, vector<1x12x128xbf16>
    %9 = vector.shape_cast %8 : vector<1x12x128xbf16> to vector<12x128xbf16>
    %c0_14 = arith.constant 0 : index
    %c0_15 = arith.constant 0 : index
    %c0_16 = arith.constant 0 : index
    %10 = vector.load %arg6[%c0_14, %c0_15, %c0_16] : memref<1x12x128xbf16, #tpu.memory_space<vmem>>, vector<1x12x128xbf16>
    %11 = vector.shape_cast %10 : vector<1x12x128xbf16> to vector<12x128xbf16>
    %12 = vector.extract_strided_slice %1 {offsets = [0, 0], sizes = [12, 32], strides = [1, 1]} : vector<12x128xbf16> to vector<12x32xbf16>
    %13 = vector.extract_strided_slice %3 {offsets = [0, 0], sizes = [12, 32], strides = [1, 1]} : vector<12x128xbf16> to vector<12x32xbf16>
    %14 = vector.extract_strided_slice %5 {offsets = [0, 0], sizes = [12, 32], strides = [1, 1]} : vector<12x128xbf16> to vector<12x32xbf16>
    %15 = vector.extract_strided_slice %7 {offsets = [0, 0], sizes = [12, 32], strides = [1, 1]} : vector<12x128xbf16> to vector<12x32xbf16>
    %16 = vector.extract_strided_slice %9 {offsets = [0, 0], sizes = [12, 32], strides = [1, 1]} : vector<12x128xbf16> to vector<12x32xbf16>
    %17 = vector.extract_strided_slice %11 {offsets = [0, 0], sizes = [12, 32], strides = [1, 1]} : vector<12x128xbf16> to vector<12x32xbf16>
    %cst = arith.constant dense<0.000000e+00> : vector<12x12xf32>
    %18 = tpu.matmul %12, %14, %cst {dimension_numbers = #tpu.dot_dimension_numbers<[1], [1], [0], [0], [0, 0, 1, 0], [], []>} : vector<12x32xbf16>, vector<12x32xbf16>, vector<12x12xf32> -> vector<12x12xf32>
    %cst_17 = arith.constant dense<0.000000e+00> : vector<12x12xf32>
    %19 = tpu.matmul %13, %15, %cst_17 {dimension_numbers = #tpu.dot_dimension_numbers<[1], [1], [0], [0], [0, 0, 1, 0], [], []>} : vector<12x32xbf16>, vector<12x32xbf16>, vector<12x12xf32> -> vector<12x12xf32>
    %20 = arith.addf %18, %19 : vector<12x12xf32>
    %cst_18 = arith.constant 0.176776692 : f32
    %21 = vector.broadcast %cst_18 : f32 to vector<12x12xf32>
    %22 = arith.mulf %20, %21 : vector<12x12xf32>
    %cst_19 = arith.constant dense<0xFF800000> : vector<12xf32>
    %23 = vector.multi_reduction <maximumf>, %22, %cst_19 [1] : vector<12x12xf32> to vector<12xf32>
    %24 = vector.shape_cast %23 : vector<12xf32> to vector<12x1xf32>
    %25 = vector.broadcast %24 : vector<12x1xf32> to vector<12x12xf32>
    %26 = arith.subf %22, %25 : vector<12x12xf32>
    %27 = math.exp %26 : vector<12x12xf32>
    %cst_20 = arith.constant dense<0.000000e+00> : vector<12xf32>
    %28 = vector.multi_reduction <add>, %27, %cst_20 [1] : vector<12x12xf32> to vector<12xf32>
    %29 = vector.shape_cast %28 : vector<12xf32> to vector<12x1xf32>
    %30 = tpu.reciprocal %29 {approx = true} : vector<12x1xf32> -> vector<12x1xf32>
    %31 = vector.broadcast %30 : vector<12x1xf32> to vector<12x12xf32>
    %32 = arith.mulf %27, %31 : vector<12x12xf32>
    %33 = arith.truncf %32 : vector<12x12xf32> to vector<12x12xbf16>
    %cst_21 = arith.constant dense<0.000000e+00> : vector<12x32xf32>
    %34 = tpu.matmul %33, %16, %cst_21 {dimension_numbers = #tpu.dot_dimension_numbers<[1], [0], [0], [1], [0, 0, 1, 1], [], []>} : vector<12x12xbf16>, vector<12x32xbf16>, vector<12x32xf32> -> vector<12x32xf32>
    %cst_22 = arith.constant dense<0.000000e+00> : vector<12x32xf32>
    %35 = tpu.matmul %33, %17, %cst_22 {dimension_numbers = #tpu.dot_dimension_numbers<[1], [0], [0], [1], [0, 0, 1, 1], [], []>} : vector<12x12xbf16>, vector<12x32xbf16>, vector<12x32xf32> -> vector<12x32xf32>
    %36 = vector.extract_strided_slice %1 {offsets = [0, 32], sizes = [12, 32], strides = [1, 1]} : vector<12x128xbf16> to vector<12x32xbf16>
    %37 = vector.extract_strided_slice %3 {offsets = [0, 32], sizes = [12, 32], strides = [1, 1]} : vector<12x128xbf16> to vector<12x32xbf16>
    %38 = vector.extract_strided_slice %5 {offsets = [0, 32], sizes = [12, 32], strides = [1, 1]} : vector<12x128xbf16> to vector<12x32xbf16>
    %39 = vector.extract_strided_slice %7 {offsets = [0, 32], sizes = [12, 32], strides = [1, 1]} : vector<12x128xbf16> to vector<12x32xbf16>
    %40 = vector.extract_strided_slice %9 {offsets = [0, 32], sizes = [12, 32], strides = [1, 1]} : vector<12x128xbf16> to vector<12x32xbf16>
    %41 = vector.extract_strided_slice %11 {offsets = [0, 32], sizes = [12, 32], strides = [1, 1]} : vector<12x128xbf16> to vector<12x32xbf16>
    %cst_23 = arith.constant dense<0.000000e+00> : vector<12x12xf32>
    %42 = tpu.matmul %36, %38, %cst_23 {dimension_numbers = #tpu.dot_dimension_numbers<[1], [1], [0], [0], [0, 0, 1, 0], [], []>} : vector<12x32xbf16>, vector<12x32xbf16>, vector<12x12xf32> -> vector<12x12xf32>
    %cst_24 = arith.constant dense<0.000000e+00> : vector<12x12xf32>
    %43 = tpu.matmul %37, %39, %cst_24 {dimension_numbers = #tpu.dot_dimension_numbers<[1], [1], [0], [0], [0, 0, 1, 0], [], []>} : vector<12x32xbf16>, vector<12x32xbf16>, vector<12x12xf32> -> vector<12x12xf32>
    %44 = arith.addf %42, %43 : vector<12x12xf32>
    %cst_25 = arith.constant 0.176776692 : f32
    %45 = vector.broadcast %cst_25 : f32 to vector<12x12xf32>
    %46 = arith.mulf %44, %45 : vector<12x12xf32>
    %cst_26 = arith.constant dense<0xFF800000> : vector<12xf32>
    %47 = vector.multi_reduction <maximumf>, %46, %cst_26 [1] : vector<12x12xf32> to vector<12xf32>
    %48 = vector.shape_cast %47 : vector<12xf32> to vector<12x1xf32>
    %49 = vector.broadcast %48 : vector<12x1xf32> to vector<12x12xf32>
    %50 = arith.subf %46, %49 : vector<12x12xf32>
    %51 = math.exp %50 : vector<12x12xf32>
    %cst_27 = arith.constant dense<0.000000e+00> : vector<12xf32>
    %52 = vector.multi_reduction <add>, %51, %cst_27 [1] : vector<12x12xf32> to vector<12xf32>
    %53 = vector.shape_cast %52 : vector<12xf32> to vector<12x1xf32>
    %54 = tpu.reciprocal %53 {approx = true} : vector<12x1xf32> -> vector<12x1xf32>
    %55 = vector.broadcast %54 : vector<12x1xf32> to vector<12x12xf32>
    %56 = arith.mulf %51, %55 : vector<12x12xf32>
    %57 = arith.truncf %56 : vector<12x12xf32> to vector<12x12xbf16>
    %cst_28 = arith.constant dense<0.000000e+00> : vector<12x32xf32>
    %58 = tpu.matmul %57, %40, %cst_28 {dimension_numbers = #tpu.dot_dimension_numbers<[1], [0], [0], [1], [0, 0, 1, 1], [], []>} : vector<12x12xbf16>, vector<12x32xbf16>, vector<12x32xf32> -> vector<12x32xf32>
    %cst_29 = arith.constant dense<0.000000e+00> : vector<12x32xf32>
    %59 = tpu.matmul %57, %41, %cst_29 {dimension_numbers = #tpu.dot_dimension_numbers<[1], [0], [0], [1], [0, 0, 1, 1], [], []>} : vector<12x12xbf16>, vector<12x32xbf16>, vector<12x32xf32> -> vector<12x32xf32>
    %60 = vector.extract_strided_slice %1 {offsets = [0, 64], sizes = [12, 32], strides = [1, 1]} : vector<12x128xbf16> to vector<12x32xbf16>
    %61 = vector.extract_strided_slice %3 {offsets = [0, 64], sizes = [12, 32], strides = [1, 1]} : vector<12x128xbf16> to vector<12x32xbf16>
    %62 = vector.extract_strided_slice %5 {offsets = [0, 64], sizes = [12, 32], strides = [1, 1]} : vector<12x128xbf16> to vector<12x32xbf16>
    %63 = vector.extract_strided_slice %7 {offsets = [0, 64], sizes = [12, 32], strides = [1, 1]} : vector<12x128xbf16> to vector<12x32xbf16>
    %64 = vector.extract_strided_slice %9 {offsets = [0, 64], sizes = [12, 32], strides = [1, 1]} : vector<12x128xbf16> to vector<12x32xbf16>
    %65 = vector.extract_strided_slice %11 {offsets = [0, 64], sizes = [12, 32], strides = [1, 1]} : vector<12x128xbf16> to vector<12x32xbf16>
    %cst_30 = arith.constant dense<0.000000e+00> : vector<12x12xf32>
    %66 = tpu.matmul %60, %62, %cst_30 {dimension_numbers = #tpu.dot_dimension_numbers<[1], [1], [0], [0], [0, 0, 1, 0], [], []>} : vector<12x32xbf16>, vector<12x32xbf16>, vector<12x12xf32> -> vector<12x12xf32>
    %cst_31 = arith.constant dense<0.000000e+00> : vector<12x12xf32>
    %67 = tpu.matmul %61, %63, %cst_31 {dimension_numbers = #tpu.dot_dimension_numbers<[1], [1], [0], [0], [0, 0, 1, 0], [], []>} : vector<12x32xbf16>, vector<12x32xbf16>, vector<12x12xf32> -> vector<12x12xf32>
    %68 = arith.addf %66, %67 : vector<12x12xf32>
    %cst_32 = arith.constant 0.176776692 : f32
    %69 = vector.broadcast %cst_32 : f32 to vector<12x12xf32>
    %70 = arith.mulf %68, %69 : vector<12x12xf32>
    %cst_33 = arith.constant dense<0xFF800000> : vector<12xf32>
    %71 = vector.multi_reduction <maximumf>, %70, %cst_33 [1] : vector<12x12xf32> to vector<12xf32>
    %72 = vector.shape_cast %71 : vector<12xf32> to vector<12x1xf32>
    %73 = vector.broadcast %72 : vector<12x1xf32> to vector<12x12xf32>
    %74 = arith.subf %70, %73 : vector<12x12xf32>
    %75 = math.exp %74 : vector<12x12xf32>
    %cst_34 = arith.constant dense<0.000000e+00> : vector<12xf32>
    %76 = vector.multi_reduction <add>, %75, %cst_34 [1] : vector<12x12xf32> to vector<12xf32>
    %77 = vector.shape_cast %76 : vector<12xf32> to vector<12x1xf32>
    %78 = tpu.reciprocal %77 {approx = true} : vector<12x1xf32> -> vector<12x1xf32>
    %79 = vector.broadcast %78 : vector<12x1xf32> to vector<12x12xf32>
    %80 = arith.mulf %75, %79 : vector<12x12xf32>
    %81 = arith.truncf %80 : vector<12x12xf32> to vector<12x12xbf16>
    %cst_35 = arith.constant dense<0.000000e+00> : vector<12x32xf32>
    %82 = tpu.matmul %81, %64, %cst_35 {dimension_numbers = #tpu.dot_dimension_numbers<[1], [0], [0], [1], [0, 0, 1, 1], [], []>} : vector<12x12xbf16>, vector<12x32xbf16>, vector<12x32xf32> -> vector<12x32xf32>
    %cst_36 = arith.constant dense<0.000000e+00> : vector<12x32xf32>
    %83 = tpu.matmul %81, %65, %cst_36 {dimension_numbers = #tpu.dot_dimension_numbers<[1], [0], [0], [1], [0, 0, 1, 1], [], []>} : vector<12x12xbf16>, vector<12x32xbf16>, vector<12x32xf32> -> vector<12x32xf32>
    %84 = vector.extract_strided_slice %1 {offsets = [0, 96], sizes = [12, 32], strides = [1, 1]} : vector<12x128xbf16> to vector<12x32xbf16>
    %85 = vector.extract_strided_slice %3 {offsets = [0, 96], sizes = [12, 32], strides = [1, 1]} : vector<12x128xbf16> to vector<12x32xbf16>
    %86 = vector.extract_strided_slice %5 {offsets = [0, 96], sizes = [12, 32], strides = [1, 1]} : vector<12x128xbf16> to vector<12x32xbf16>
    %87 = vector.extract_strided_slice %7 {offsets = [0, 96], sizes = [12, 32], strides = [1, 1]} : vector<12x128xbf16> to vector<12x32xbf16>
    %88 = vector.extract_strided_slice %9 {offsets = [0, 96], sizes = [12, 32], strides = [1, 1]} : vector<12x128xbf16> to vector<12x32xbf16>
    %89 = vector.extract_strided_slice %11 {offsets = [0, 96], sizes = [12, 32], strides = [1, 1]} : vector<12x128xbf16> to vector<12x32xbf16>
    %cst_37 = arith.constant dense<0.000000e+00> : vector<12x12xf32>
    %90 = tpu.matmul %84, %86, %cst_37 {dimension_numbers = #tpu.dot_dimension_numbers<[1], [1], [0], [0], [0, 0, 1, 0], [], []>} : vector<12x32xbf16>, vector<12x32xbf16>, vector<12x12xf32> -> vector<12x12xf32>
    %cst_38 = arith.constant dense<0.000000e+00> : vector<12x12xf32>
    %91 = tpu.matmul %85, %87, %cst_38 {dimension_numbers = #tpu.dot_dimension_numbers<[1], [1], [0], [0], [0, 0, 1, 0], [], []>} : vector<12x32xbf16>, vector<12x32xbf16>, vector<12x12xf32> -> vector<12x12xf32>
    %92 = arith.addf %90, %91 : vector<12x12xf32>
    %cst_39 = arith.constant 0.176776692 : f32
    %93 = vector.broadcast %cst_39 : f32 to vector<12x12xf32>
    %94 = arith.mulf %92, %93 : vector<12x12xf32>
    %cst_40 = arith.constant dense<0xFF800000> : vector<12xf32>
    %95 = vector.multi_reduction <maximumf>, %94, %cst_40 [1] : vector<12x12xf32> to vector<12xf32>
    %96 = vector.shape_cast %95 : vector<12xf32> to vector<12x1xf32>
    %97 = vector.broadcast %96 : vector<12x1xf32> to vector<12x12xf32>
    %98 = arith.subf %94, %97 : vector<12x12xf32>
    %99 = math.exp %98 : vector<12x12xf32>
    %cst_41 = arith.constant dense<0.000000e+00> : vector<12xf32>
    %100 = vector.multi_reduction <add>, %99, %cst_41 [1] : vector<12x12xf32> to vector<12xf32>
    %101 = vector.shape_cast %100 : vector<12xf32> to vector<12x1xf32>
    %102 = tpu.reciprocal %101 {approx = true} : vector<12x1xf32> -> vector<12x1xf32>
    %103 = vector.broadcast %102 : vector<12x1xf32> to vector<12x12xf32>
    %104 = arith.mulf %99, %103 : vector<12x12xf32>
    %105 = arith.truncf %104 : vector<12x12xf32> to vector<12x12xbf16>
    %cst_42 = arith.constant dense<0.000000e+00> : vector<12x32xf32>
    %106 = tpu.matmul %105, %88, %cst_42 {dimension_numbers = #tpu.dot_dimension_numbers<[1], [0], [0], [1], [0, 0, 1, 1], [], []>} : vector<12x12xbf16>, vector<12x32xbf16>, vector<12x32xf32> -> vector<12x32xf32>
    %cst_43 = arith.constant dense<0.000000e+00> : vector<12x32xf32>
    %107 = tpu.matmul %105, %89, %cst_43 {dimension_numbers = #tpu.dot_dimension_numbers<[1], [0], [0], [1], [0, 0, 1, 1], [], []>} : vector<12x12xbf16>, vector<12x32xbf16>, vector<12x32xf32> -> vector<12x32xf32>
    %108 = tpu.concatenate %34, %58, %82, %106 in 1 : vector<12x32xf32>, vector<12x32xf32>, vector<12x32xf32>, vector<12x32xf32> -> vector<12x128xf32>
    %109 = arith.truncf %108 : vector<12x128xf32> to vector<12x128xbf16>
    %c0_44 = arith.constant 0 : index
    %c0_45 = arith.constant 0 : index
    %c0_46 = arith.constant 0 : index
    %110 = vector.load %arg7[%c0_44, %c0_45, %c0_46] : memref<1x12x128xbf16, #tpu.memory_space<vmem>>, vector<1x12x128xbf16>
    %111 = vector.shape_cast %110 : vector<1x12x128xbf16> to vector<12x128xbf16>
    %112 = vector.shape_cast %109 : vector<12x128xbf16> to vector<1x12x128xbf16>
    tpu.vector_store %arg7[%c0_44, %c0_45, %c0_46], %112 {strides = array<i32>} : memref<1x12x128xbf16, #tpu.memory_space<vmem>>, vector<1x12x128xbf16>,
    %113 = tpu.concatenate %35, %59, %83, %107 in 1 : vector<12x32xf32>, vector<12x32xf32>, vector<12x32xf32>, vector<12x32xf32> -> vector<12x128xf32>
    %114 = arith.truncf %113 : vector<12x128xf32> to vector<12x128xbf16>
    %c0_47 = arith.constant 0 : index
    %c0_48 = arith.constant 0 : index
    %c0_49 = arith.constant 0 : index
    %115 = vector.load %arg8[%c0_47, %c0_48, %c0_49] : memref<1x12x128xbf16, #tpu.memory_space<vmem>>, vector<1x12x128xbf16>
    %116 = vector.shape_cast %115 : vector<1x12x128xbf16> to vector<12x128xbf16>
    %117 = vector.shape_cast %114 : vector<12x128xbf16> to vector<1x12x128xbf16>
    tpu.vector_store %arg8[%c0_47, %c0_48, %c0_49], %117 {strides = array<i32>} : memref<1x12x128xbf16, #tpu.memory_space<vmem>>, vector<1x12x128xbf16>,
    return
  }
  func.func @transform_0(%arg0: i32) -> (i32, i32, i32) {
    %c0_i32 = arith.constant 0 : i32
    %c0_i32_0 = arith.constant 0 : i32
    %c0_i32_1 = arith.constant 0 : i32
    return %arg0, %c0_i32, %c0_i32_0 : i32, i32, i32
  }
  func.func @transform_1(%arg0: i32) -> (i32, i32, i32) {
    %c0_i32 = arith.constant 0 : i32
    %c0_i32_0 = arith.constant 0 : i32
    %c0_i32_1 = arith.constant 0 : i32
    return %arg0, %c0_i32, %c0_i32_0 : i32, i32, i32
  }
  func.func @transform_2(%arg0: i32) -> (i32, i32, i32) {
    %c0_i32 = arith.constant 0 : i32
    %c0_i32_0 = arith.constant 0 : i32
    %c0_i32_1 = arith.constant 0 : i32
    return %arg0, %c0_i32, %c0_i32_0 : i32, i32, i32
  }
  func.func @transform_3(%arg0: i32) -> (i32, i32, i32) {
    %c0_i32 = arith.constant 0 : i32
    %c0_i32_0 = arith.constant 0 : i32
    %c0_i32_1 = arith.constant 0 : i32
    return %arg0, %c0_i32, %c0_i32_0 : i32, i32, i32
  }
  func.func @transform_4(%arg0: i32) -> (i32, i32, i32) {
    %c0_i32 = arith.constant 0 : i32
    %c0_i32_0 = arith.constant 0 : i32
    %c0_i32_1 = arith.constant 0 : i32
    return %arg0, %c0_i32, %c0_i32_0 : i32, i32, i32
  }
  func.func @transform_5(%arg0: i32) -> (i32, i32, i32) {
    %c0_i32 = arith.constant 0 : i32
    %c0_i32_0 = arith.constant 0 : i32
    %c0_i32_1 = arith.constant 0 : i32
    return %arg0, %c0_i32, %c0_i32_0 : i32, i32, i32
  }
  func.func @transform_6(%arg0: i32) -> (i32, i32, i32) {
    %c0_i32 = arith.constant 0 : i32
    %c0_i32_0 = arith.constant 0 : i32
    %c0_i32_1 = arith.constant 0 : i32
    return %arg0, %c0_i32, %c0_i32_0 : i32, i32, i32
  }
  func.func @transform_7(%arg0: i32) -> (i32, i32, i32) {
    %c0_i32 = arith.constant 0 : i32
    %c0_i32_0 = arith.constant 0 : i32
    %c0_i32_1 = arith.constant 0 : i32
    return %arg0, %c0_i32, %c0_i32_0 : i32, i32, i32
  }
}

module attributes {stable_mosaic.version = 11 : i64} {
  func.func @_cmm_wide_kernel(%arg0: i32, %arg1: i32, %arg2: memref<24x128xbf16, #tpu.memory_space<vmem>>, %arg3: memref<24x128xbf16, #tpu.memory_space<vmem>>, %arg4: memref<128x128xbf16, #tpu.memory_space<vmem>>, %arg5: memref<128x128xbf16, #tpu.memory_space<vmem>>, %arg6: memref<1x128xf32, #tpu.memory_space<vmem>>, %arg7: memref<24x128xf32, #tpu.memory_space<vmem>>, %arg8: memref<24x128xf32, #tpu.memory_space<vmem>>) attributes {dimension_semantics = [#tpu.dimension_semantics<parallel>, #tpu.dimension_semantics<arbitrary>], iteration_bounds = array<i64: 1, 1>, scalar_prefetch = 0 : i64, scratch_operands = 1 : i64, tpu.core_type = #tpu.core_type<tc>, window_params = [{transform_indices = @transform_0, window_bounds = array<i64: 24, 128>}, {transform_indices = @transform_1, window_bounds = array<i64: 24, 128>}, {transform_indices = @transform_2, window_bounds = array<i64: 128, 128>}, {transform_indices = @transform_3, window_bounds = array<i64: 128, 128>}, {pipeline_mode = #tpu.pipeline_mode<synchronous>, transform_indices = @transform_4, window_bounds = array<i64: 1, 128>}, {transform_indices = @transform_5, window_bounds = array<i64: 24, 128>}]} {
    %c0_i32 = arith.constant 0 : i32
    %0 = arith.cmpi eq, %arg1, %c0_i32 : i32
    %1 = arith.extui %0 : i1 to i32
    %c0_i32_0 = arith.constant 0 : i32
    %2 = arith.cmpi ne, %1, %c0_i32_0 : i32
    scf.if %2 {
      %cst_15 = arith.constant 0.000000e+00 : f32
      %16 = vector.broadcast %cst_15 : f32 to vector<24x128xf32>
      %c0_16 = arith.constant 0 : index
      %c0_17 = arith.constant 0 : index
      %17 = vector.load %arg8[%c0_16, %c0_17] : memref<24x128xf32, #tpu.memory_space<vmem>>, vector<24x128xf32>
      tpu.vector_store %arg8[%c0_16, %c0_17], %16 {strides = array<i32>} : memref<24x128xf32, #tpu.memory_space<vmem>>, vector<24x128xf32>,
    } else {
    }
    %c0 = arith.constant 0 : index
    %c0_1 = arith.constant 0 : index
    %3 = vector.load %arg2[%c0, %c0_1] : memref<24x128xbf16, #tpu.memory_space<vmem>>, vector<24x128xbf16>
    %c0_2 = arith.constant 0 : index
    %c0_3 = arith.constant 0 : index
    %4 = vector.load %arg3[%c0_2, %c0_3] : memref<24x128xbf16, #tpu.memory_space<vmem>>, vector<24x128xbf16>
    %c0_4 = arith.constant 0 : index
    %c0_5 = arith.constant 0 : index
    %5 = vector.load %arg8[%c0_4, %c0_5] : memref<24x128xf32, #tpu.memory_space<vmem>>, vector<24x128xf32>
    %c0_6 = arith.constant 0 : index
    %c0_7 = arith.constant 0 : index
    %6 = vector.load %arg4[%c0_6, %c0_7] : memref<128x128xbf16, #tpu.memory_space<vmem>>, vector<128x128xbf16>
    %cst = arith.constant dense<0.000000e+00> : vector<24x128xf32>
    %7 = tpu.matmul %3, %6, %cst {dimension_numbers = #tpu.dot_dimension_numbers<[1], [0], [0], [1], [0, 0, 1, 1], [], []>} : vector<24x128xbf16>, vector<128x128xbf16>, vector<24x128xf32> -> vector<24x128xf32>
    %c0_8 = arith.constant 0 : index
    %c0_9 = arith.constant 0 : index
    %8 = vector.load %arg5[%c0_8, %c0_9] : memref<128x128xbf16, #tpu.memory_space<vmem>>, vector<128x128xbf16>
    %cst_10 = arith.constant dense<0.000000e+00> : vector<24x128xf32>
    %9 = tpu.matmul %4, %8, %cst_10 {dimension_numbers = #tpu.dot_dimension_numbers<[1], [0], [0], [1], [0, 0, 1, 1], [], []>} : vector<24x128xbf16>, vector<128x128xbf16>, vector<24x128xf32> -> vector<24x128xf32>
    %10 = arith.addf %7, %9 : vector<24x128xf32>
    %11 = arith.addf %5, %10 : vector<24x128xf32>
    %c0_11 = arith.constant 0 : index
    %c0_12 = arith.constant 0 : index
    %12 = vector.load %arg8[%c0_11, %c0_12] : memref<24x128xf32, #tpu.memory_space<vmem>>, vector<24x128xf32>
    tpu.vector_store %arg8[%c0_11, %c0_12], %11 {strides = array<i32>} : memref<24x128xf32, #tpu.memory_space<vmem>>, vector<24x128xf32>,
    %c0_i32_13 = arith.constant 0 : i32
    %13 = arith.cmpi eq, %arg1, %c0_i32_13 : i32
    %14 = arith.extui %13 : i1 to i32
    %c0_i32_14 = arith.constant 0 : i32
    %15 = arith.cmpi ne, %14, %c0_i32_14 : i32
    scf.if %15 {
      %c0_15 = arith.constant 0 : index
      %c0_16 = arith.constant 0 : index
      %16 = vector.load %arg8[%c0_15, %c0_16] : memref<24x128xf32, #tpu.memory_space<vmem>>, vector<24x128xf32>
      %c0_17 = arith.constant 0 : index
      %c0_18 = arith.constant 0 : index
      %17 = vector.load %arg6[%c0_17, %c0_18] : memref<1x128xf32, #tpu.memory_space<vmem>>, vector<1x128xf32>
      %18 = vector.broadcast %17 : vector<1x128xf32> to vector<24x128xf32>
      %19 = arith.addf %16, %18 : vector<24x128xf32>
      %c0_19 = arith.constant 0 : index
      %c0_20 = arith.constant 0 : index
      %20 = vector.load %arg7[%c0_19, %c0_20] : memref<24x128xf32, #tpu.memory_space<vmem>>, vector<24x128xf32>
      tpu.vector_store %arg7[%c0_19, %c0_20], %19 {strides = array<i32>} : memref<24x128xf32, #tpu.memory_space<vmem>>, vector<24x128xf32>,
    } else {
    }
    return
  }
  func.func @transform_0(%arg0: i32, %arg1: i32) -> (i32, i32) {
    %c0_i32 = arith.constant 0 : i32
    return %arg0, %arg1 : i32, i32
  }
  func.func @transform_1(%arg0: i32, %arg1: i32) -> (i32, i32) {
    %c0_i32 = arith.constant 0 : i32
    return %arg0, %arg1 : i32, i32
  }
  func.func @transform_2(%arg0: i32, %arg1: i32) -> (i32, i32) {
    %c0_i32 = arith.constant 0 : i32
    %c0_i32_0 = arith.constant 0 : i32
    return %arg1, %c0_i32 : i32, i32
  }
  func.func @transform_3(%arg0: i32, %arg1: i32) -> (i32, i32) {
    %c0_i32 = arith.constant 0 : i32
    %c0_i32_0 = arith.constant 0 : i32
    return %arg1, %c0_i32 : i32, i32
  }
  func.func @transform_4(%arg0: i32, %arg1: i32) -> (i32, i32) {
    %c0_i32 = arith.constant 0 : i32
    %c0_i32_0 = arith.constant 0 : i32
    %c0_i32_1 = arith.constant 0 : i32
    return %c0_i32, %c0_i32_0 : i32, i32
  }
  func.func @transform_5(%arg0: i32, %arg1: i32) -> (i32, i32) {
    %c0_i32 = arith.constant 0 : i32
    %c0_i32_0 = arith.constant 0 : i32
    return %arg0, %c0_i32 : i32, i32
  }
}

module attributes {stable_mosaic.version = 11 : i64} {
  func.func @_cmm_wide_kernel(%arg0: i32, %arg1: i32, %arg2: memref<88x320xf32, #tpu.memory_space<vmem>>, %arg3: memref<88x320xf32, #tpu.memory_space<vmem>>, %arg4: memref<320x16xbf16, #tpu.memory_space<vmem>>, %arg5: memref<320x16xbf16, #tpu.memory_space<vmem>>, %arg6: memref<1x16xf32, #tpu.memory_space<vmem>>, %arg7: memref<88x16xf32, #tpu.memory_space<vmem>>, %arg8: memref<88x16xf32, #tpu.memory_space<vmem>>) attributes {dimension_semantics = [#tpu.dimension_semantics<parallel>, #tpu.dimension_semantics<arbitrary>], iteration_bounds = array<i64: 2, 1>, scalar_prefetch = 0 : i64, scratch_operands = 1 : i64, tpu.core_type = #tpu.core_type<tc>, window_params = [{transform_indices = @transform_0, window_bounds = array<i64: 88, 320>}, {transform_indices = @transform_1, window_bounds = array<i64: 88, 320>}, {transform_indices = @transform_2, window_bounds = array<i64: 320, 16>}, {transform_indices = @transform_3, window_bounds = array<i64: 320, 16>}, {pipeline_mode = #tpu.pipeline_mode<synchronous>, transform_indices = @transform_4, window_bounds = array<i64: 1, 16>}, {transform_indices = @transform_5, window_bounds = array<i64: 88, 16>}]} {
    %c0_i32 = arith.constant 0 : i32
    %0 = arith.cmpi eq, %arg1, %c0_i32 : i32
    %1 = arith.extui %0 : i1 to i32
    %c0_i32_0 = arith.constant 0 : i32
    %2 = arith.cmpi ne, %1, %c0_i32_0 : i32
    scf.if %2 {
      %cst_15 = arith.constant 0.000000e+00 : f32
      %18 = vector.broadcast %cst_15 : f32 to vector<88x16xf32>
      %c0_16 = arith.constant 0 : index
      %c0_17 = arith.constant 0 : index
      %19 = vector.load %arg8[%c0_16, %c0_17] : memref<88x16xf32, #tpu.memory_space<vmem>>, vector<88x16xf32>
      tpu.vector_store %arg8[%c0_16, %c0_17], %18 {strides = array<i32>} : memref<88x16xf32, #tpu.memory_space<vmem>>, vector<88x16xf32>,
    } else {
    }
    %c0 = arith.constant 0 : index
    %c0_1 = arith.constant 0 : index
    %3 = vector.load %arg2[%c0, %c0_1] : memref<88x320xf32, #tpu.memory_space<vmem>>, vector<88x320xf32>
    %4 = arith.truncf %3 : vector<88x320xf32> to vector<88x320xbf16>
    %c0_2 = arith.constant 0 : index
    %c0_3 = arith.constant 0 : index
    %5 = vector.load %arg3[%c0_2, %c0_3] : memref<88x320xf32, #tpu.memory_space<vmem>>, vector<88x320xf32>
    %6 = arith.truncf %5 : vector<88x320xf32> to vector<88x320xbf16>
    %c0_4 = arith.constant 0 : index
    %c0_5 = arith.constant 0 : index
    %7 = vector.load %arg8[%c0_4, %c0_5] : memref<88x16xf32, #tpu.memory_space<vmem>>, vector<88x16xf32>
    %c0_6 = arith.constant 0 : index
    %c0_7 = arith.constant 0 : index
    %8 = vector.load %arg4[%c0_6, %c0_7] : memref<320x16xbf16, #tpu.memory_space<vmem>>, vector<320x16xbf16>
    %cst = arith.constant dense<0.000000e+00> : vector<88x16xf32>
    %9 = tpu.matmul %4, %8, %cst {dimension_numbers = #tpu.dot_dimension_numbers<[1], [0], [0], [1], [0, 0, 1, 1], [], []>} : vector<88x320xbf16>, vector<320x16xbf16>, vector<88x16xf32> -> vector<88x16xf32>
    %c0_8 = arith.constant 0 : index
    %c0_9 = arith.constant 0 : index
    %10 = vector.load %arg5[%c0_8, %c0_9] : memref<320x16xbf16, #tpu.memory_space<vmem>>, vector<320x16xbf16>
    %cst_10 = arith.constant dense<0.000000e+00> : vector<88x16xf32>
    %11 = tpu.matmul %6, %10, %cst_10 {dimension_numbers = #tpu.dot_dimension_numbers<[1], [0], [0], [1], [0, 0, 1, 1], [], []>} : vector<88x320xbf16>, vector<320x16xbf16>, vector<88x16xf32> -> vector<88x16xf32>
    %12 = arith.addf %9, %11 : vector<88x16xf32>
    %13 = arith.addf %7, %12 : vector<88x16xf32>
    %c0_11 = arith.constant 0 : index
    %c0_12 = arith.constant 0 : index
    %14 = vector.load %arg8[%c0_11, %c0_12] : memref<88x16xf32, #tpu.memory_space<vmem>>, vector<88x16xf32>
    tpu.vector_store %arg8[%c0_11, %c0_12], %13 {strides = array<i32>} : memref<88x16xf32, #tpu.memory_space<vmem>>, vector<88x16xf32>,
    %c0_i32_13 = arith.constant 0 : i32
    %15 = arith.cmpi eq, %arg1, %c0_i32_13 : i32
    %16 = arith.extui %15 : i1 to i32
    %c0_i32_14 = arith.constant 0 : i32
    %17 = arith.cmpi ne, %16, %c0_i32_14 : i32
    scf.if %17 {
      %c0_15 = arith.constant 0 : index
      %c0_16 = arith.constant 0 : index
      %18 = vector.load %arg8[%c0_15, %c0_16] : memref<88x16xf32, #tpu.memory_space<vmem>>, vector<88x16xf32>
      %c0_17 = arith.constant 0 : index
      %c0_18 = arith.constant 0 : index
      %19 = vector.load %arg6[%c0_17, %c0_18] : memref<1x16xf32, #tpu.memory_space<vmem>>, vector<1x16xf32>
      %20 = vector.broadcast %19 : vector<1x16xf32> to vector<88x16xf32>
      %21 = arith.addf %18, %20 : vector<88x16xf32>
      %c0_19 = arith.constant 0 : index
      %c0_20 = arith.constant 0 : index
      %22 = vector.load %arg7[%c0_19, %c0_20] : memref<88x16xf32, #tpu.memory_space<vmem>>, vector<88x16xf32>
      tpu.vector_store %arg7[%c0_19, %c0_20], %21 {strides = array<i32>} : memref<88x16xf32, #tpu.memory_space<vmem>>, vector<88x16xf32>,
    } else {
    }
    return
  }
  func.func @transform_0(%arg0: i32, %arg1: i32) -> (i32, i32) {
    %c0_i32 = arith.constant 0 : i32
    return %arg0, %arg1 : i32, i32
  }
  func.func @transform_1(%arg0: i32, %arg1: i32) -> (i32, i32) {
    %c0_i32 = arith.constant 0 : i32
    return %arg0, %arg1 : i32, i32
  }
  func.func @transform_2(%arg0: i32, %arg1: i32) -> (i32, i32) {
    %c0_i32 = arith.constant 0 : i32
    %c0_i32_0 = arith.constant 0 : i32
    return %arg1, %c0_i32 : i32, i32
  }
  func.func @transform_3(%arg0: i32, %arg1: i32) -> (i32, i32) {
    %c0_i32 = arith.constant 0 : i32
    %c0_i32_0 = arith.constant 0 : i32
    return %arg1, %c0_i32 : i32, i32
  }
  func.func @transform_4(%arg0: i32, %arg1: i32) -> (i32, i32) {
    %c0_i32 = arith.constant 0 : i32
    %c0_i32_0 = arith.constant 0 : i32
    %c0_i32_1 = arith.constant 0 : i32
    return %c0_i32, %c0_i32_0 : i32, i32
  }
  func.func @transform_5(%arg0: i32, %arg1: i32) -> (i32, i32) {
    %c0_i32 = arith.constant 0 : i32
    %c0_i32_0 = arith.constant 0 : i32
    return %arg0, %c0_i32 : i32, i32
  }
}

module attributes {stable_mosaic.version = 11 : i64} {
  func.func @_cmm_wide_kernel(%arg0: i32, %arg1: i32, %arg2: memref<160x160xf32, #tpu.memory_space<vmem>>, %arg3: memref<160x160xf32, #tpu.memory_space<vmem>>, %arg4: memref<160x8xbf16, #tpu.memory_space<vmem>>, %arg5: memref<160x8xbf16, #tpu.memory_space<vmem>>, %arg6: memref<1x8xf32, #tpu.memory_space<vmem>>, %arg7: memref<160x8xf32, #tpu.memory_space<vmem>>, %arg8: memref<160x8xf32, #tpu.memory_space<vmem>>) attributes {dimension_semantics = [#tpu.dimension_semantics<parallel>, #tpu.dimension_semantics<arbitrary>], iteration_bounds = array<i64: 2, 1>, scalar_prefetch = 0 : i64, scratch_operands = 1 : i64, tpu.core_type = #tpu.core_type<tc>, window_params = [{transform_indices = @transform_0, window_bounds = array<i64: 160, 160>}, {transform_indices = @transform_1, window_bounds = array<i64: 160, 160>}, {transform_indices = @transform_2, window_bounds = array<i64: 160, 8>}, {transform_indices = @transform_3, window_bounds = array<i64: 160, 8>}, {pipeline_mode = #tpu.pipeline_mode<synchronous>, transform_indices = @transform_4, window_bounds = array<i64: 1, 8>}, {transform_indices = @transform_5, window_bounds = array<i64: 160, 8>}]} {
    %c0_i32 = arith.constant 0 : i32
    %0 = arith.cmpi eq, %arg1, %c0_i32 : i32
    %1 = arith.extui %0 : i1 to i32
    %c0_i32_0 = arith.constant 0 : i32
    %2 = arith.cmpi ne, %1, %c0_i32_0 : i32
    scf.if %2 {
      %cst_15 = arith.constant 0.000000e+00 : f32
      %18 = vector.broadcast %cst_15 : f32 to vector<160x8xf32>
      %c0_16 = arith.constant 0 : index
      %c0_17 = arith.constant 0 : index
      %19 = vector.load %arg8[%c0_16, %c0_17] : memref<160x8xf32, #tpu.memory_space<vmem>>, vector<160x8xf32>
      tpu.vector_store %arg8[%c0_16, %c0_17], %18 {strides = array<i32>} : memref<160x8xf32, #tpu.memory_space<vmem>>, vector<160x8xf32>,
    } else {
    }
    %c0 = arith.constant 0 : index
    %c0_1 = arith.constant 0 : index
    %3 = vector.load %arg2[%c0, %c0_1] : memref<160x160xf32, #tpu.memory_space<vmem>>, vector<160x160xf32>
    %4 = arith.truncf %3 : vector<160x160xf32> to vector<160x160xbf16>
    %c0_2 = arith.constant 0 : index
    %c0_3 = arith.constant 0 : index
    %5 = vector.load %arg3[%c0_2, %c0_3] : memref<160x160xf32, #tpu.memory_space<vmem>>, vector<160x160xf32>
    %6 = arith.truncf %5 : vector<160x160xf32> to vector<160x160xbf16>
    %c0_4 = arith.constant 0 : index
    %c0_5 = arith.constant 0 : index
    %7 = vector.load %arg8[%c0_4, %c0_5] : memref<160x8xf32, #tpu.memory_space<vmem>>, vector<160x8xf32>
    %c0_6 = arith.constant 0 : index
    %c0_7 = arith.constant 0 : index
    %8 = vector.load %arg4[%c0_6, %c0_7] : memref<160x8xbf16, #tpu.memory_space<vmem>>, vector<160x8xbf16>
    %cst = arith.constant dense<0.000000e+00> : vector<160x8xf32>
    %9 = tpu.matmul %4, %8, %cst {dimension_numbers = #tpu.dot_dimension_numbers<[1], [0], [0], [1], [0, 0, 1, 1], [], []>} : vector<160x160xbf16>, vector<160x8xbf16>, vector<160x8xf32> -> vector<160x8xf32>
    %c0_8 = arith.constant 0 : index
    %c0_9 = arith.constant 0 : index
    %10 = vector.load %arg5[%c0_8, %c0_9] : memref<160x8xbf16, #tpu.memory_space<vmem>>, vector<160x8xbf16>
    %cst_10 = arith.constant dense<0.000000e+00> : vector<160x8xf32>
    %11 = tpu.matmul %6, %10, %cst_10 {dimension_numbers = #tpu.dot_dimension_numbers<[1], [0], [0], [1], [0, 0, 1, 1], [], []>} : vector<160x160xbf16>, vector<160x8xbf16>, vector<160x8xf32> -> vector<160x8xf32>
    %12 = arith.addf %9, %11 : vector<160x8xf32>
    %13 = arith.addf %7, %12 : vector<160x8xf32>
    %c0_11 = arith.constant 0 : index
    %c0_12 = arith.constant 0 : index
    %14 = vector.load %arg8[%c0_11, %c0_12] : memref<160x8xf32, #tpu.memory_space<vmem>>, vector<160x8xf32>
    tpu.vector_store %arg8[%c0_11, %c0_12], %13 {strides = array<i32>} : memref<160x8xf32, #tpu.memory_space<vmem>>, vector<160x8xf32>,
    %c0_i32_13 = arith.constant 0 : i32
    %15 = arith.cmpi eq, %arg1, %c0_i32_13 : i32
    %16 = arith.extui %15 : i1 to i32
    %c0_i32_14 = arith.constant 0 : i32
    %17 = arith.cmpi ne, %16, %c0_i32_14 : i32
    scf.if %17 {
      %c0_15 = arith.constant 0 : index
      %c0_16 = arith.constant 0 : index
      %18 = vector.load %arg8[%c0_15, %c0_16] : memref<160x8xf32, #tpu.memory_space<vmem>>, vector<160x8xf32>
      %c0_17 = arith.constant 0 : index
      %c0_18 = arith.constant 0 : index
      %19 = vector.load %arg6[%c0_17, %c0_18] : memref<1x8xf32, #tpu.memory_space<vmem>>, vector<1x8xf32>
      %20 = vector.broadcast %19 : vector<1x8xf32> to vector<160x8xf32>
      %21 = arith.addf %18, %20 : vector<160x8xf32>
      %c0_19 = arith.constant 0 : index
      %c0_20 = arith.constant 0 : index
      %22 = vector.load %arg7[%c0_19, %c0_20] : memref<160x8xf32, #tpu.memory_space<vmem>>, vector<160x8xf32>
      tpu.vector_store %arg7[%c0_19, %c0_20], %21 {strides = array<i32>} : memref<160x8xf32, #tpu.memory_space<vmem>>, vector<160x8xf32>,
    } else {
    }
    return
  }
  func.func @transform_0(%arg0: i32, %arg1: i32) -> (i32, i32) {
    %c0_i32 = arith.constant 0 : i32
    return %arg0, %arg1 : i32, i32
  }
  func.func @transform_1(%arg0: i32, %arg1: i32) -> (i32, i32) {
    %c0_i32 = arith.constant 0 : i32
    return %arg0, %arg1 : i32, i32
  }
  func.func @transform_2(%arg0: i32, %arg1: i32) -> (i32, i32) {
    %c0_i32 = arith.constant 0 : i32
    %c0_i32_0 = arith.constant 0 : i32
    return %arg1, %c0_i32 : i32, i32
  }
  func.func @transform_3(%arg0: i32, %arg1: i32) -> (i32, i32) {
    %c0_i32 = arith.constant 0 : i32
    %c0_i32_0 = arith.constant 0 : i32
    return %arg1, %c0_i32 : i32, i32
  }
  func.func @transform_4(%arg0: i32, %arg1: i32) -> (i32, i32) {
    %c0_i32 = arith.constant 0 : i32
    %c0_i32_0 = arith.constant 0 : i32
    %c0_i32_1 = arith.constant 0 : i32
    return %c0_i32, %c0_i32_0 : i32, i32
  }
  func.func @transform_5(%arg0: i32, %arg1: i32) -> (i32, i32) {
    %c0_i32 = arith.constant 0 : i32
    %c0_i32_0 = arith.constant 0 : i32
    return %arg0, %c0_i32 : i32, i32
  }
}

module attributes {stable_mosaic.version = 11 : i64} {
  func.func @_cmm_wide_kernel(%arg0: i32, %arg1: i32, %arg2: memref<192x80xf32, #tpu.memory_space<vmem>>, %arg3: memref<192x80xf32, #tpu.memory_space<vmem>>, %arg4: memref<80x2xbf16, #tpu.memory_space<vmem>>, %arg5: memref<80x2xbf16, #tpu.memory_space<vmem>>, %arg6: memref<1x2xf32, #tpu.memory_space<vmem>>, %arg7: memref<192x2xf32, #tpu.memory_space<vmem>>, %arg8: memref<192x2xf32, #tpu.memory_space<vmem>>) attributes {dimension_semantics = [#tpu.dimension_semantics<parallel>, #tpu.dimension_semantics<arbitrary>], iteration_bounds = array<i64: 3, 1>, scalar_prefetch = 0 : i64, scratch_operands = 1 : i64, tpu.core_type = #tpu.core_type<tc>, window_params = [{transform_indices = @transform_0, window_bounds = array<i64: 192, 80>}, {transform_indices = @transform_1, window_bounds = array<i64: 192, 80>}, {transform_indices = @transform_2, window_bounds = array<i64: 80, 2>}, {transform_indices = @transform_3, window_bounds = array<i64: 80, 2>}, {pipeline_mode = #tpu.pipeline_mode<synchronous>, transform_indices = @transform_4, window_bounds = array<i64: 1, 2>}, {transform_indices = @transform_5, window_bounds = array<i64: 192, 2>}]} {
    %c0_i32 = arith.constant 0 : i32
    %0 = arith.cmpi eq, %arg1, %c0_i32 : i32
    %1 = arith.extui %0 : i1 to i32
    %c0_i32_0 = arith.constant 0 : i32
    %2 = arith.cmpi ne, %1, %c0_i32_0 : i32
    scf.if %2 {
      %cst_15 = arith.constant 0.000000e+00 : f32
      %18 = vector.broadcast %cst_15 : f32 to vector<192x2xf32>
      %c0_16 = arith.constant 0 : index
      %c0_17 = arith.constant 0 : index
      %19 = vector.load %arg8[%c0_16, %c0_17] : memref<192x2xf32, #tpu.memory_space<vmem>>, vector<192x2xf32>
      tpu.vector_store %arg8[%c0_16, %c0_17], %18 {strides = array<i32>} : memref<192x2xf32, #tpu.memory_space<vmem>>, vector<192x2xf32>,
    } else {
    }
    %c0 = arith.constant 0 : index
    %c0_1 = arith.constant 0 : index
    %3 = vector.load %arg2[%c0, %c0_1] : memref<192x80xf32, #tpu.memory_space<vmem>>, vector<192x80xf32>
    %4 = arith.truncf %3 : vector<192x80xf32> to vector<192x80xbf16>
    %c0_2 = arith.constant 0 : index
    %c0_3 = arith.constant 0 : index
    %5 = vector.load %arg3[%c0_2, %c0_3] : memref<192x80xf32, #tpu.memory_space<vmem>>, vector<192x80xf32>
    %6 = arith.truncf %5 : vector<192x80xf32> to vector<192x80xbf16>
    %c0_4 = arith.constant 0 : index
    %c0_5 = arith.constant 0 : index
    %7 = vector.load %arg8[%c0_4, %c0_5] : memref<192x2xf32, #tpu.memory_space<vmem>>, vector<192x2xf32>
    %c0_6 = arith.constant 0 : index
    %c0_7 = arith.constant 0 : index
    %8 = vector.load %arg4[%c0_6, %c0_7] : memref<80x2xbf16, #tpu.memory_space<vmem>>, vector<80x2xbf16>
    %cst = arith.constant dense<0.000000e+00> : vector<192x2xf32>
    %9 = tpu.matmul %4, %8, %cst {dimension_numbers = #tpu.dot_dimension_numbers<[1], [0], [0], [1], [0, 0, 1, 1], [], []>} : vector<192x80xbf16>, vector<80x2xbf16>, vector<192x2xf32> -> vector<192x2xf32>
    %c0_8 = arith.constant 0 : index
    %c0_9 = arith.constant 0 : index
    %10 = vector.load %arg5[%c0_8, %c0_9] : memref<80x2xbf16, #tpu.memory_space<vmem>>, vector<80x2xbf16>
    %cst_10 = arith.constant dense<0.000000e+00> : vector<192x2xf32>
    %11 = tpu.matmul %6, %10, %cst_10 {dimension_numbers = #tpu.dot_dimension_numbers<[1], [0], [0], [1], [0, 0, 1, 1], [], []>} : vector<192x80xbf16>, vector<80x2xbf16>, vector<192x2xf32> -> vector<192x2xf32>
    %12 = arith.addf %9, %11 : vector<192x2xf32>
    %13 = arith.addf %7, %12 : vector<192x2xf32>
    %c0_11 = arith.constant 0 : index
    %c0_12 = arith.constant 0 : index
    %14 = vector.load %arg8[%c0_11, %c0_12] : memref<192x2xf32, #tpu.memory_space<vmem>>, vector<192x2xf32>
    tpu.vector_store %arg8[%c0_11, %c0_12], %13 {strides = array<i32>} : memref<192x2xf32, #tpu.memory_space<vmem>>, vector<192x2xf32>,
    %c0_i32_13 = arith.constant 0 : i32
    %15 = arith.cmpi eq, %arg1, %c0_i32_13 : i32
    %16 = arith.extui %15 : i1 to i32
    %c0_i32_14 = arith.constant 0 : i32
    %17 = arith.cmpi ne, %16, %c0_i32_14 : i32
    scf.if %17 {
      %c0_15 = arith.constant 0 : index
      %c0_16 = arith.constant 0 : index
      %18 = vector.load %arg8[%c0_15, %c0_16] : memref<192x2xf32, #tpu.memory_space<vmem>>, vector<192x2xf32>
      %c0_17 = arith.constant 0 : index
      %c0_18 = arith.constant 0 : index
      %19 = vector.load %arg6[%c0_17, %c0_18] : memref<1x2xf32, #tpu.memory_space<vmem>>, vector<1x2xf32>
      %20 = vector.broadcast %19 : vector<1x2xf32> to vector<192x2xf32>
      %21 = arith.addf %18, %20 : vector<192x2xf32>
      %c0_19 = arith.constant 0 : index
      %c0_20 = arith.constant 0 : index
      %22 = vector.load %arg7[%c0_19, %c0_20] : memref<192x2xf32, #tpu.memory_space<vmem>>, vector<192x2xf32>
      tpu.vector_store %arg7[%c0_19, %c0_20], %21 {strides = array<i32>} : memref<192x2xf32, #tpu.memory_space<vmem>>, vector<192x2xf32>,
    } else {
    }
    return
  }
  func.func @transform_0(%arg0: i32, %arg1: i32) -> (i32, i32) {
    %c0_i32 = arith.constant 0 : i32
    return %arg0, %arg1 : i32, i32
  }
  func.func @transform_1(%arg0: i32, %arg1: i32) -> (i32, i32) {
    %c0_i32 = arith.constant 0 : i32
    return %arg0, %arg1 : i32, i32
  }
  func.func @transform_2(%arg0: i32, %arg1: i32) -> (i32, i32) {
    %c0_i32 = arith.constant 0 : i32
    %c0_i32_0 = arith.constant 0 : i32
    return %arg1, %c0_i32 : i32, i32
  }
  func.func @transform_3(%arg0: i32, %arg1: i32) -> (i32, i32) {
    %c0_i32 = arith.constant 0 : i32
    %c0_i32_0 = arith.constant 0 : i32
    return %arg1, %c0_i32 : i32, i32
  }
  func.func @transform_4(%arg0: i32, %arg1: i32) -> (i32, i32) {
    %c0_i32 = arith.constant 0 : i32
    %c0_i32_0 = arith.constant 0 : i32
    %c0_i32_1 = arith.constant 0 : i32
    return %c0_i32, %c0_i32_0 : i32, i32
  }
  func.func @transform_5(%arg0: i32, %arg1: i32) -> (i32, i32) {
    %c0_i32 = arith.constant 0 : i32
    %c0_i32_0 = arith.constant 0 : i32
    return %arg0, %c0_i32 : i32, i32
  }
}

module attributes {stable_mosaic.version = 11 : i64} {
  func.func @_mask_istft_kernel(%arg0: i32, %arg1: memref<24x32xf32, #tpu.memory_space<vmem>>, %arg2: memref<24x32xf32, #tpu.memory_space<vmem>>, %arg3: memref<24x32xf32, #tpu.memory_space<vmem>>, %arg4: memref<24x32xf32, #tpu.memory_space<vmem>>, %arg5: memref<32x64xbf16, #tpu.memory_space<vmem>>, %arg6: memref<32x64xbf16, #tpu.memory_space<vmem>>, %arg7: memref<24x64xf32, #tpu.memory_space<vmem>>) attributes {dimension_semantics = [#tpu.dimension_semantics<parallel>], iteration_bounds = array<i64: 1>, scalar_prefetch = 0 : i64, scratch_operands = 0 : i64, tpu.core_type = #tpu.core_type<tc>, window_params = [{transform_indices = @transform_0, window_bounds = array<i64: 24, 32>}, {transform_indices = @transform_1, window_bounds = array<i64: 24, 32>}, {transform_indices = @transform_2, window_bounds = array<i64: 24, 32>}, {transform_indices = @transform_3, window_bounds = array<i64: 24, 32>}, {pipeline_mode = #tpu.pipeline_mode<synchronous>, transform_indices = @transform_4, window_bounds = array<i64: 32, 64>}, {pipeline_mode = #tpu.pipeline_mode<synchronous>, transform_indices = @transform_5, window_bounds = array<i64: 32, 64>}, {transform_indices = @transform_6, window_bounds = array<i64: 24, 64>}]} {
    %c0 = arith.constant 0 : index
    %c0_0 = arith.constant 0 : index
    %0 = vector.load %arg1[%c0, %c0_0] : memref<24x32xf32, #tpu.memory_space<vmem>>, vector<24x32xf32>
    %c0_1 = arith.constant 0 : index
    %c0_2 = arith.constant 0 : index
    %1 = vector.load %arg2[%c0_1, %c0_2] : memref<24x32xf32, #tpu.memory_space<vmem>>, vector<24x32xf32>
    %c0_3 = arith.constant 0 : index
    %c0_4 = arith.constant 0 : index
    %2 = vector.load %arg3[%c0_3, %c0_4] : memref<24x32xf32, #tpu.memory_space<vmem>>, vector<24x32xf32>
    %c0_5 = arith.constant 0 : index
    %c0_6 = arith.constant 0 : index
    %3 = vector.load %arg4[%c0_5, %c0_6] : memref<24x32xf32, #tpu.memory_space<vmem>>, vector<24x32xf32>
    %4 = arith.mulf %0, %0 : vector<24x32xf32>
    %5 = arith.mulf %1, %1 : vector<24x32xf32>
    %6 = arith.addf %4, %5 : vector<24x32xf32>
    %cst = arith.constant 9.99999996E-13 : f32
    %7 = vector.broadcast %cst : f32 to vector<24x32xf32>
    %8 = arith.addf %6, %7 : vector<24x32xf32>
    %9 = math.rsqrt %8 : vector<24x32xf32>
    %10 = arith.mulf %6, %9 : vector<24x32xf32>
    %11 = math.tanh %10 : vector<24x32xf32>
    %12 = arith.mulf %11, %9 : vector<24x32xf32>
    %13 = arith.mulf %2, %0 : vector<24x32xf32>
    %14 = arith.mulf %3, %1 : vector<24x32xf32>
    %15 = arith.subf %13, %14 : vector<24x32xf32>
    %16 = arith.mulf %12, %15 : vector<24x32xf32>
    %17 = arith.truncf %16 : vector<24x32xf32> to vector<24x32xbf16>
    %18 = arith.mulf %2, %1 : vector<24x32xf32>
    %19 = arith.mulf %3, %0 : vector<24x32xf32>
    %20 = arith.addf %18, %19 : vector<24x32xf32>
    %21 = arith.mulf %12, %20 : vector<24x32xf32>
    %22 = arith.truncf %21 : vector<24x32xf32> to vector<24x32xbf16>
    %c0_7 = arith.constant 0 : index
    %c0_8 = arith.constant 0 : index
    %23 = vector.load %arg5[%c0_7, %c0_8] : memref<32x64xbf16, #tpu.memory_space<vmem>>, vector<32x64xbf16>
    %cst_9 = arith.constant dense<0.000000e+00> : vector<24x64xf32>
    %24 = tpu.matmul %17, %23, %cst_9 {dimension_numbers = #tpu.dot_dimension_numbers<[1], [0], [0], [1], [0, 0, 1, 1], [], []>} : vector<24x32xbf16>, vector<32x64xbf16>, vector<24x64xf32> -> vector<24x64xf32>
    %c0_10 = arith.constant 0 : index
    %c0_11 = arith.constant 0 : index
    %25 = vector.load %arg6[%c0_10, %c0_11] : memref<32x64xbf16, #tpu.memory_space<vmem>>, vector<32x64xbf16>
    %cst_12 = arith.constant dense<0.000000e+00> : vector<24x64xf32>
    %26 = tpu.matmul %22, %25, %cst_12 {dimension_numbers = #tpu.dot_dimension_numbers<[1], [0], [0], [1], [0, 0, 1, 1], [], []>} : vector<24x32xbf16>, vector<32x64xbf16>, vector<24x64xf32> -> vector<24x64xf32>
    %27 = arith.addf %24, %26 : vector<24x64xf32>
    %c0_13 = arith.constant 0 : index
    %c0_14 = arith.constant 0 : index
    %28 = vector.load %arg7[%c0_13, %c0_14] : memref<24x64xf32, #tpu.memory_space<vmem>>, vector<24x64xf32>
    tpu.vector_store %arg7[%c0_13, %c0_14], %27 {strides = array<i32>} : memref<24x64xf32, #tpu.memory_space<vmem>>, vector<24x64xf32>,
    return
  }
  func.func @transform_0(%arg0: i32) -> (i32, i32) {
    %c0_i32 = arith.constant 0 : i32
    %c0_i32_0 = arith.constant 0 : i32
    return %arg0, %c0_i32 : i32, i32
  }
  func.func @transform_1(%arg0: i32) -> (i32, i32) {
    %c0_i32 = arith.constant 0 : i32
    %c0_i32_0 = arith.constant 0 : i32
    return %arg0, %c0_i32 : i32, i32
  }
  func.func @transform_2(%arg0: i32) -> (i32, i32) {
    %c0_i32 = arith.constant 0 : i32
    %c0_i32_0 = arith.constant 0 : i32
    return %arg0, %c0_i32 : i32, i32
  }
  func.func @transform_3(%arg0: i32) -> (i32, i32) {
    %c0_i32 = arith.constant 0 : i32
    %c0_i32_0 = arith.constant 0 : i32
    return %arg0, %c0_i32 : i32, i32
  }
  func.func @transform_4(%arg0: i32) -> (i32, i32) {
    %c0_i32 = arith.constant 0 : i32
    %c0_i32_0 = arith.constant 0 : i32
    %c0_i32_1 = arith.constant 0 : i32
    return %c0_i32, %c0_i32_0 : i32, i32
  }
  func.func @transform_5(%arg0: i32) -> (i32, i32) {
    %c0_i32 = arith.constant 0 : i32
    %c0_i32_0 = arith.constant 0 : i32
    %c0_i32_1 = arith.constant 0 : i32
    return %c0_i32, %c0_i32_0 : i32, i32
  }
  func.func @transform_6(%arg0: i32) -> (i32, i32) {
    %c0_i32 = arith.constant 0 : i32
    %c0_i32_0 = arith.constant 0 : i32
    return %arg0, %c0_i32 : i32, i32
  }
}

</mosaic_0001>

<bundles_post_ra>
// kernel: dcnn_forward.15
= control target key start
LH: loop header
LB: loop body
LE: loop exit
PB: predicated region body
PF: predicated region fallthrough
CT: control target
= control target key end

     0   :  { %vm16_vm0 = vcmask 523264   ;;  %v163_v1 = vmov 0.0   ;;  %s220_s1 = inlined_call_operand.vmem [shape: bf16[64,64], index: 1, kind: input, shape index: {}]   ;;  %s221_s0 = inlined_call_operand.vmem [shape: f32[24,64], index: 0, kind: input, shape index: {}]   ;;  %s222_s2 = inlined_call_operand.vmem [shape: f32[24,64], index: 2, kind: output, shape index: {}]  }
   0x1   :  { %v159_v0 = vld [vmem:[%s220_s1] sm:$0xff]   ;;  %19 = vst.msk [vmem:[#allocation2 + $0x10] sm:$0xff] %vm16_vm0, %v163_v1  ;;  %17 = vst.msk [vmem:[#allocation2] sm:$0xff] %vm16_vm0, %v163_v1  ;;  %v160_v2 = vld [vmem:[%s220_s1 + $0x8] sm:$0xff]  }
   0x2   :  { %18 = vst.msk [vmem:[#allocation2 + $0x8] sm:$0xff] %vm16_vm0, %v163_v1  ;;  %146 = vmatprep.subr.bf16.mxu0 %v159_v0  ;;  %v161_v3 = vld [vmem:[%s220_s1 + $0x10] sm:$0xff]   ;;  %v23_v4 = vld [vmem:[%s221_s0] sm:$0xff]  ;;  %v24_v5 = vld [vmem:[%s221_s0 + $0x8] sm:$0xff] }
   0x3   :  { %147 = vmatpush3.bf16.msra.mxu0 %v159_v0  ;;  %v26_v6 = vpack.c.bf16 %v24_v5, %v23_v4  ;;  %v162_v7 = vld [vmem:[%s220_s1 + $0x18] sm:$0xff]   ;;  %v25_v8 = vld [vmem:[%s221_s0 + $0x10] sm:$0xff] }
   0x4   :  { %148 = vmatprep.subr.bf16.mxu0 %v160_v2  ;;  %v27_v9 = vpack.c.bf16 %v25_v8, %v25_v8 }
   0x5   :  { %154 = vmatprep.mubr.msk.bf16.mxu0 %vm16_vm0, %v26_v6 }
   0x7   :  { %149 = vmatpush3.bf16.msra.mxu0 %v160_v2 }
   0x8   :  { %150 = vmatprep.subr.bf16.mxu0 %v161_v3  ;;  %v22_v10 = vld [vmem:[#allocation2 + $0x10] sm:$0xff]  ;;  %v20_v11 = vld [vmem:[#allocation2] sm:$0xff] }
   0x9   :  { %v21_v15 = vld [vmem:[#allocation2 + $0x8] sm:$0xff] }
   0xb   :  { %151 = vmatpush3.bf16.msra.mxu0 %v161_v3 }
   0xc   :  { %152 = vmatprep.subr.bf16.mxu0 %v162_v7 }
   0xf   :  { %153 = vmatpush3.bf16.msra.mxu0 %v162_v7 }
  0x12   :  { %155 = vmatmul.mubr.msk.bf16.vlgmr.msra.gmra.mrb[0].mxu0 %vm16_vm0, %v27_v9 }
  0xe5   :  { %v156_v12 = vpop.f32.mrb[0].mxu0 }
  0xe6   :  { %v117_v13 = vadd.f32 %v156_v12, %v22_v10  ;;  %v101_v14 = vpop.f32.mrb[1].mxu0 }
  0xe7   :  { %v115_v16 = vadd.f32 %v101_v14, %v20_v11  ;;  %v157_v17 = vpop.f32.mrb[2].mxu0 }
  0xe8   :  { %120 = vst.msk [vmem:[#allocation2 + $0x10] sm:$0xff] %vm16_vm0, %v117_v13  ;;  %v104_v18 = vpop.f32.mrb[3].mxu0 }
  0xe9   :  { %118 = vst.msk [vmem:[#allocation2] sm:$0xff] %vm16_vm0, %v115_v16  ;;  %v116_v19 = vadd.f32 %v104_v18, %v21_v15 }
  0xeb   :  { %119 = vst.msk [vmem:[#allocation2 + $0x8] sm:$0xff] %vm16_vm0, %v116_v19 }
  0xef   :  { %v126_v20 = vld [vmem:[#allocation2 + $0x10] sm:$0xff] }
  0xf0   :  { %129 = vst.msk [vmem:[%s222_s2 + $0x10] sm:$0xff] %vm16_vm0, %v126_v20  ;;  %v124_v21 = vld [vmem:[#allocation2] sm:$0xff] }
  0xf1   :  { %127 = vst.msk [vmem:[%s222_s2] sm:$0xff] %vm16_vm0, %v124_v21 }
  0xf2   :  { %v125_v22 = vld [vmem:[#allocation2 + $0x8] sm:$0xff] }
  0xf3   :  { %128 = vst.msk [vmem:[%s222_s2 + $0x8] sm:$0xff] %vm16_vm0, %v125_v22 }

// kernel: dcnn_forward.16
= control target key start
LH: loop header
LB: loop body
LE: loop exit
PB: predicated region body
PF: predicated region fallthrough
CT: control target
= control target key end

     0   :  { %s1171_s18 = smov 0   ;;  %s1173_s19 = smov 0   ;;  %s1389_s0 = inlined_call_operand.vmem [shape: f32[320,10], index: 0, kind: input, shape index: {}]   ;;  %s1390_s1 = inlined_call_operand.vmem [shape: f32[320,10], index: 1, kind: input, shape index: {}]   ;;  %s1391_s2 = inlined_call_operand.vmem [shape: bf16[10,8], index: 2, kind: input, shape index: {}]   ;;  %s1392_s3 = inlined_call_operand.vmem [shape: bf16[10,8], index: 3, kind: input, shape index: {}]   ;;  %s1393_s4 = inlined_call_operand.vmem [shape: f32[1,8], index: 4, kind: input, shape index: {}]   ;;  %s1394_s5 = inlined_call_operand.vmem [shape: f32[320,8], index: 5, kind: output, shape index: {}]  }
   0x1   :  { %s1175_s20 = smov 0  }
   0x2 LB: > { %s27_s21 = sadd.s32 1, %s1134_s19  ;;  %p972_p0 = scmp.ge.s32.totalorder %s1138_s20, 1  ;;  %s1138_s20 = sphi %s1175_s20, %s15_s20   ;;  %s1134_s19 = sphi %s1173_s19, %s1396_s19   ;;  %s1130_s18 = sphi %s1171_s18, %s1395_s18  }
   0x3   : > { %p29_p1 = scmp.ge.s32.totalorder %s27_s21, 2  ;;  %p243_p2 = scmp.lt.s32.totalorder %s1138_s20, 3 }
   0x5   : > { %s1398_s21 = smov (%p29_p1, %s27_s21), 0  ;;  %p244_p3 = pnand %p972_p0, %p243_p2 }
   0x6   : > { %v1114_v0 = vld [vmem:[%s1392_s3] sm:$0x1f] (!%p244_p3)   ;;  %vm474_vm0 = vcmask (!%p244_p3), 1044480   ;;  %s292_s24 = smul.u32 (!%p244_p3), 20, %s1130_s18  ;;  %vm443_vm1 = vcmask (!%p244_p3), 80896   ;;  %vm333_vm2 = vcmask (!%p244_p3), 64512  }
   0x7   : > { %247 = sbr.rel (%p244_p3) target bundleno = 284 (0x11c), region = 40  ;;  %1087 = vmatprep.subr.msk.bf16.mxu1 (!%p244_p3), %vm474_vm0, %v1114_v0  ;;  %v1115_v1 = vld [vmem:[%s1391_s2] sm:$0x1f] (!%p244_p3)   ;;  %v476_v2 = vsel (!%p244_p3), %vm474_vm0, %v1114_v0, 0  ;;  %v1140_v0 = vmov (!%p244_p3), 0.0  }
   0x8   : > { %1024 = vmatpush3.bf16.msra.mxu1 (!%p244_p3), %v476_v2  ;;  %p293_p4 = scmp.lt.s32.totalorder (!%p244_p3), %s292_s24, 39  ;;  %1088 = vmatprep.subr.msk.bf16.mxu0 (!%p244_p3), %vm474_vm0, %v1115_v1  ;;  %v627_v3 = vsel (!%p244_p3), %vm474_vm0, %v1115_v1, 0  ;;  %336 = vst.msk [vmem:[#allocation2 + $0x10] sm:$0xff] (!%p244_p3), %vm333_vm2, %v1140_v0  ;;  %334 = vst.msk [vmem:[#allocation2] sm:$0xff] (!%p244_p3), %vm333_vm2, %v1140_v0 }
   0x9   : > { %1046 = vmatpush3.bf16.msra.mxu0 (!%p244_p3), %v627_v3  ;;  %335 = vst.msk [vmem:[#allocation2 + $0x8] sm:$0xff] (!%p244_p3), %vm333_vm2, %v1140_v0  ;;  %337 = vst.msk [vmem:[#allocation2 + $0x18] sm:$0xff] (!%p244_p3), %vm333_vm2, %v1140_v0 }
   0xa   : > { %338 = vst.msk [vmem:[#allocation2 + $0x20] sm:$0xff] (!%p244_p3), %vm333_vm2, %v1140_v0  ;;  %339 = vst.msk [vmem:[#allocation2 + $0x28] sm:$0xff] (!%p244_p3), %vm333_vm2, %v1140_v0 }
   0xb   : > { %340 = vst.msk [vmem:[#allocation2 + $0x30] sm:$0xff] (!%p244_p3), %vm333_vm2, %v1140_v0  ;;  %341 = vst.msk [vmem:[#allocation2 + $0x38] sm:$0xff] (!%p244_p3), %vm333_vm2, %v1140_v0 }
   0xc   : > { %342 = vst.msk [vmem:[#allocation2 + $0x40] sm:$0xff] (!%p244_p3), %vm333_vm2, %v1140_v0  ;;  %343 = vst.msk [vmem:[#allocation2 + $0x48] sm:$0xff] (!%p244_p3), %vm333_vm2, %v1140_v0 }
   0xd   : > { %344 = vst.msk [vmem:[#allocation2 + $0x50] sm:$0xff] (!%p244_p3), %vm333_vm2, %v1140_v0  ;;  %345 = vst.msk [vmem:[#allocation2 + $0x58] sm:$0xff] (!%p244_p3), %vm333_vm2, %v1140_v0 }
   0xe   : > { %s1400_s24 = smov (!%p293_p4, %s292_s24), 39  ;;  %346 = vst.msk [vmem:[#allocation2 + $0x60] sm:$0xff] %vm333_vm2, %v1140_v0  ;;  %347 = vst.msk [vmem:[#allocation2 + $0x68] sm:$0xff] %vm333_vm2, %v1140_v0 }
   0xf   : > { %s1195_s27 = sshll.u32 %s1400_s24, 3  ;;  %348 = vst.msk [vmem:[#allocation2 + $0x70] sm:$0xff] %vm333_vm2, %v1140_v0  ;;  %349 = vst.msk [vmem:[#allocation2 + $0x78] sm:$0xff] %vm333_vm2, %v1140_v0  ;;  %v416_v2 = vld [vmem:[#allocation2 + $0x10] sm:$0xff] }
  0x10   : > { %s1201_s30 = scalar_lea.vmem %s1390_s1, %s1195_s27  ;;  %s1209_s8 = scalar_lea.vmem %s1389_s0, %s1195_s27  ;;  %350 = vst.msk [vmem:[#allocation2 + $0x80] sm:$0xff] %vm333_vm2, %v1140_v0  ;;  %351 = vst.msk [vmem:[#allocation2 + $0x88] sm:$0xff] %vm333_vm2, %v1140_v0 }
  0x11   : > { %v384_v4 = vld [vmem:[%s1201_s30] sm:$0xff]  ;;  %v385_v5 = vld [vmem:[%s1201_s30 + $0x8] sm:$0xff]  ;;  %v386_v6 = vld [vmem:[%s1201_s30 + $0x10] sm:$0xff]  ;;  %352 = vst.msk [vmem:[#allocation2 + $0x90] sm:$0xff] %vm333_vm2, %v1140_v0  ;;  %s1302_s13 = scalar_lea.vmem %s1394_s5, %s1195_s27 }
  0x12   : > { %v404_v7 = vpack.c.bf16 %v385_v5, %v384_v4  ;;  %v354_v8 = vld [vmem:[%s1209_s8] sm:$0xff]  ;;  %v355_v9 = vld [vmem:[%s1209_s8 + $0x8] sm:$0xff]  ;;  %v387_v10 = vld [vmem:[%s1201_s30 + $0x18] sm:$0xff]  ;;  %353 = vst.msk [vmem:[#allocation2 + $0x98] sm:$0xff] %vm333_vm2, %v1140_v0 }
  0x13   : > { %v374_v11 = vpack.c.bf16 %v355_v9, %v354_v8  ;;  %v405_v12 = vpack.c.bf16 %v387_v10, %v386_v6  ;;  %v356_v13 = vld [vmem:[%s1209_s8 + $0x10] sm:$0xff]  ;;  %v357_v14 = vld [vmem:[%s1209_s8 + $0x18] sm:$0xff]  ;;  %v388_v15 = vld [vmem:[%s1201_s30 + $0x20] sm:$0xff] }
  0x14   : > { %1025 = vmatprep.mubr.msk.bf16.mxu1 %vm443_vm1, %v404_v7  ;;  %v375_v16 = vpack.c.bf16 %v357_v14, %v356_v13  ;;  %v389_v17 = vld [vmem:[%s1201_s30 + $0x28] sm:$0xff]  ;;  %v358_v18 = vld [vmem:[%s1209_s8 + $0x20] sm:$0xff]  ;;  %v390_v22 = vld [vmem:[%s1201_s30 + $0x30] sm:$0xff] }
  0x15   : > { %v359_v19 = vld [vmem:[%s1209_s8 + $0x28] sm:$0xff]  ;;  %1047 = vmatprep.mubr.msk.bf16.mxu0 %vm443_vm1, %v374_v11  ;;  %1026 = vmatmul.mubr.msk.bf16.vlgmr.msra.gmra.mrb[0].mxu1 %vm443_vm1, %v405_v12  ;;  %v406_v20 = vpack.c.bf16 %v389_v17, %v388_v15  ;;  %v391_v23 = vld [vmem:[%s1201_s30 + $0x38] sm:$0xff]  ;;  %v360_v24 = vld [vmem:[%s1209_s8 + $0x30] sm:$0xff] }
  0x16   : > { %v376_v21 = vpack.c.bf16 %v359_v19, %v358_v18  ;;  %1048 = vmatmul.mubr.msk.bf16.vlgmr.msra.gmra.mrb[0].mxu0 %vm443_vm1, %v375_v16  ;;  %v361_v25 = vld [vmem:[%s1209_s8 + $0x38] sm:$0xff]  ;;  %v392_v26 = vld [vmem:[%s1201_s30 + $0x40] sm:$0xff]  ;;  %v393_v27 = vld [vmem:[%s1201_s30 + $0x48] sm:$0xff]  ;;  %v407_v30 = vpack.c.bf16 %v391_v23, %v390_v22 }
  0x17   : > { %1029 = vmatprep.mubr.msk.bf16.mxu1 %vm443_vm1, %v406_v20  ;;  %v362_v28 = vld [vmem:[%s1209_s8 + $0x40] sm:$0xff]  ;;  %v363_v29 = vld [vmem:[%s1209_s8 + $0x48] sm:$0xff]  ;;  %v377_v31 = vpack.c.bf16 %v361_v25, %v360_v24  ;;  %v408_v32 = vpack.c.bf16 %v393_v27, %v392_v26  ;;  %v394_v34 = vld [vmem:[%s1201_s30 + $0x50] sm:$0xff] }
  0x18   : > { %1051 = vmatprep.mubr.msk.bf16.mxu0 %vm443_vm1, %v376_v21  ;;  %v378_v33 = vpack.c.bf16 %v363_v29, %v362_v28  ;;  %v395_v35 = vld [vmem:[%s1201_s30 + $0x58] sm:$0xff]  ;;  %v364_v36 = vld [vmem:[%s1209_s8 + $0x50] sm:$0xff]  ;;  %v396_v38 = vld [vmem:[%s1201_s30 + $0x60] sm:$0xff] }
  0x19   : > { %v365_v37 = vld [vmem:[%s1209_s8 + $0x58] sm:$0xff]  ;;  %v397_v39 = vld [vmem:[%s1201_s30 + $0x68] sm:$0xff]  ;;  %v366_v40 = vld [vmem:[%s1209_s8 + $0x60] sm:$0xff]  ;;  %v409_v42 = vpack.c.bf16 %v395_v35, %v394_v34 }
  0x1a   : > { %v367_v41 = vld [vmem:[%s1209_s8 + $0x68] sm:$0xff]  ;;  %v379_v43 = vpack.c.bf16 %v365_v37, %v364_v36  ;;  %v410_v44 = vpack.c.bf16 %v397_v39, %v396_v38  ;;  %v398_v46 = vld [vmem:[%s1201_s30 + $0x70] sm:$0xff]  ;;  %v399_v47 = vld [vmem:[%s1201_s30 + $0x78] sm:$0xff] }
  0x1b   : > { %v380_v45 = vpack.c.bf16 %v367_v41, %v366_v40  ;;  %v368_v48 = vld [vmem:[%s1209_s8 + $0x70] sm:$0xff]  ;;  %v369_v49 = vld [vmem:[%s1209_s8 + $0x78] sm:$0xff]  ;;  %v400_v50 = vld [vmem:[%s1201_s30 + $0x80] sm:$0xff]  ;;  %v411_v54 = vpack.c.bf16 %v399_v47, %v398_v46 }
  0x1c   : > { %v401_v51 = vld [vmem:[%s1201_s30 + $0x88] sm:$0xff]  ;;  %v370_v52 = vld [vmem:[%s1209_s8 + $0x80] sm:$0xff]  ;;  %v381_v55 = vpack.c.bf16 %v369_v49, %v368_v48  ;;  %v402_v58 = vld [vmem:[%s1201_s30 + $0x90] sm:$0xff] }
  0x1d   : > { %1030 = vmatmul.mubr.msk.bf16.gmra.mrb[4].mxu1 %vm443_vm1, %v407_v30  ;;  %v371_v53 = vld [vmem:[%s1209_s8 + $0x88] sm:$0xff]  ;;  %v412_v56 = vpack.c.bf16 %v401_v51, %v400_v50  ;;  %v403_v59 = vld [vmem:[%s1201_s30 + $0x98] sm:$0xff]  ;;  %v372_v60 = vld [vmem:[%s1209_s8 + $0x90] sm:$0xff] }
  0x1e   : > { %1052 = vmatmul.mubr.msk.bf16.gmra.mrb[4].mxu0 %vm443_vm1, %v377_v31  ;;  %1033 = vmatprep.mubr.msk.bf16.mxu1 %vm443_vm1, %v408_v32  ;;  %v382_v57 = vpack.c.bf16 %v371_v53, %v370_v52  ;;  %v373_v61 = vld [vmem:[%s1209_s8 + $0x98] sm:$0xff]  ;;  %v413_v62 = vpack.c.bf16 %v403_v59, %v402_v58  ;;  %v414_v6 = vld [vmem:[#allocation2] sm:$0xff]  ;;  %v415_v15 = vld [vmem:[#allocation2 + $0x8] sm:$0xff] }
  0x1f   : > { %1055 = vmatprep.mubr.msk.bf16.mxu0 %vm443_vm1, %v378_v33  ;;  %v383_v63 = vpack.c.bf16 %v373_v61, %v372_v60  ;;  %v417_v10 = vld [vmem:[#allocation2 + $0x18] sm:$0xff]  ;;  %v420_v22 = vld [vmem:[#allocation2 + $0x30] sm:$0xff]  ;;  %v418_v26 = vld [vmem:[#allocation2 + $0x20] sm:$0xff] }
  0x20   : > { %v1296_v29 = vld [vmem:[%s1393_s4] ss:$0 sm:$0xff]  ;;  %v421_v31 = vld [vmem:[#allocation2 + $0x38] sm:$0xff]  ;;  %v419_v36 = vld [vmem:[#allocation2 + $0x28] sm:$0xff] }
  0x21   : > { %v424_v51 = vld [vmem:[#allocation2 + $0x50] sm:$0xff]  ;;  %v425_v59 = vld [vmem:[#allocation2 + $0x58] sm:$0xff]  ;;  %v423_v0 = vld [vmem:[#allocation2 + $0x48] sm:$0xff] }
  0x25   : > { %1034 = vmatmul.mubr.msk.bf16.gmra.mrb[8].mxu1 %vm443_vm1, %v409_v42 }
  0x26   : > { %1056 = vmatmul.mubr.msk.bf16.gmra.mrb[8].mxu0 %vm443_vm1, %v379_v43  ;;  %1037 = vmatprep.mubr.msk.bf16.mxu1 %vm443_vm1, %v410_v44 }
  0x27   : > { %1059 = vmatprep.mubr.msk.bf16.mxu0 %vm443_vm1, %v380_v45 }
  0x2d   : > { %1038 = vmatmul.mubr.msk.bf16.gmra.mrb[12].mxu1 %vm443_vm1, %v411_v54 }
  0x2e   : > { %1060 = vmatmul.mubr.msk.bf16.gmra.mrb[12].mxu0 %vm443_vm1, %v381_v55  ;;  %1041 = vmatprep.mubr.msk.bf16.mxu1 %vm443_vm1, %v412_v56  ;;  %v422_v55 = vld [vmem:[#allocation2 + $0x40] sm:$0xff] }
  0x2f   : > { %1063 = vmatprep.mubr.msk.bf16.mxu0 %vm443_vm1, %v382_v57 }
  0x35   : > { %1042 = vmatmul.mubr.msk.bf16.gmra.mrb[16].mxu1 %vm443_vm1, %v413_v62 }
  0x36   : > { %1064 = vmatmul.mubr.msk.bf16.gmra.mrb[16].mxu0 %vm443_vm1, %v383_v63 }
  0xe8   : > { %v1027_v1 = vpop.f32.mrb[0].mxu1 }
  0xe9   : > { %v1049_v3 = vpop.f32.mrb[0].mxu0  ;;  %v512_v4 = vpop.f32.mrb[1].mxu1 }
  0xea   : > { %v672_v5 = vadd.f32 %v1049_v3, %v1027_v1  ;;  %v663_v7 = vpop.f32.mrb[1].mxu0  ;;  %v1028_v8 = vpop.f32.mrb[2].mxu1 }
  0xeb   : > { %v664_v9 = vadd.f32 %v663_v7, %v512_v4  ;;  %v1050_v11 = vpop.f32.mrb[2].mxu0  ;;  %v515_v12 = vpop.f32.mrb[3].mxu1 }
  0xec   : > { %v744_v13 = vadd.f32 %v672_v5, %v416_v2  ;;  %v675_v14 = vadd.f32 %v1050_v11, %v1028_v8  ;;  %v666_v16 = vpop.f32.mrb[3].mxu0 }
  0xed   : > { %v742_v17 = vadd.f32 %v664_v9, %v414_v6  ;;  %v667_v18 = vadd.f32 %v666_v16, %v515_v12 }
  0xee   : > { %765 = vst.msk [vmem:[#allocation2 + $0x10] sm:$0xff] %vm333_vm2, %v744_v13  ;;  %v745_v19 = vadd.f32 %v675_v14, %v417_v10 }
  0xef   : > { %763 = vst.msk [vmem:[#allocation2] sm:$0xff] %vm333_vm2, %v742_v17  ;;  %v743_v20 = vadd.f32 %v667_v18, %v415_v15  ;;  %v428_v15 = vld [vmem:[#allocation2 + $0x70] sm:$0xff] }
  0xf0   : > { %766 = vst.msk [vmem:[#allocation2 + $0x18] sm:$0xff] %vm333_vm2, %v745_v19  ;;  %v1031_v21 = vpop.f32.mrb[4].mxu1  ;;  %v426_v19 = vld [vmem:[#allocation2 + $0x60] sm:$0xff] }
  0xf1   : > { %764 = vst.msk [vmem:[#allocation2 + $0x8] sm:$0xff] %vm333_vm2, %v743_v20  ;;  %v1053_v23 = vpop.f32.mrb[4].mxu0  ;;  %v528_v24 = vpop.f32.mrb[5].mxu1 }
  0xf2   : > { %v688_v25 = vadd.f32 %v1053_v23, %v1031_v21  ;;  %v679_v27 = vpop.f32.mrb[5].mxu0  ;;  %v1032_v28 = vpop.f32.mrb[6].mxu1  ;;  %v429_v23 = vld [vmem:[#allocation2 + $0x78] sm:$0xff] }
  0xf3   : > { %v680_v30 = vadd.f32 %v679_v27, %v528_v24  ;;  %v1054_v32 = vpop.f32.mrb[6].mxu0  ;;  %v531_v33 = vpop.f32.mrb[7].mxu1 }
  0xf4   : > { %v748_v34 = vadd.f32 %v688_v25, %v420_v22  ;;  %v691_v35 = vadd.f32 %v1054_v32, %v1032_v28  ;;  %v682_v37 = vpop.f32.mrb[7].mxu0  ;;  %v427_v28 = vld [vmem:[#allocation2 + $0x68] sm:$0xff] }
  0xf5   : > { %v788_v38 = vld [vmem:[#allocation2 + $0x10] sm:$0xff]  ;;  %v746_v39 = vadd.f32 %v680_v30, %v418_v26  ;;  %v683_v40 = vadd.f32 %v682_v37, %v531_v33 }
  0xf6   : > { %v815_v41 = vadd.f32 %v1296_v29, %v788_v38  ;;  %v786_v42 = vld [vmem:[#allocation2] sm:$0xff]  ;;  %769 = vst.msk [vmem:[#allocation2 + $0x30] sm:$0xff] %vm333_vm2, %v748_v34  ;;  %v749_v43 = vadd.f32 %v691_v35, %v421_v31 }
  0xf7   : > { %v813_v44 = vadd.f32 %v1296_v29, %v786_v42  ;;  %v789_v45 = vld [vmem:[#allocation2 + $0x18] sm:$0xff]  ;;  %767 = vst.msk [vmem:[#allocation2 + $0x20] sm:$0xff] %vm333_vm2, %v746_v39  ;;  %v747_v46 = vadd.f32 %v683_v40, %v419_v36 }
  0xf8   : > { %835 = vst.msk [vmem:[%s1302_s13 + $0x10] sm:$0xff] %vm333_vm2, %v815_v41  ;;  %v816_v47 = vadd.f32 %v1296_v29, %v789_v45  ;;  %v787_v48 = vld [vmem:[#allocation2 + $0x8] sm:$0xff]  ;;  %770 = vst.msk [vmem:[#allocation2 + $0x38] sm:$0xff] %vm333_vm2, %v749_v43  ;;  %v1035_v49 = vpop.f32.mrb[8].mxu1 }
  0xf9   : > { %833 = vst.msk [vmem:[%s1302_s13] sm:$0xff] %vm333_vm2, %v813_v44  ;;  %v814_v50 = vadd.f32 %v1296_v29, %v787_v48  ;;  %768 = vst.msk [vmem:[#allocation2 + $0x28] sm:$0xff] %vm333_vm2, %v747_v46  ;;  %v1057_v52 = vpop.f32.mrb[8].mxu0  ;;  %v544_v53 = vpop.f32.mrb[9].mxu1  ;;  %v432_v44 = vld [vmem:[#allocation2 + $0x90] sm:$0xff]  ;;  %v430_v48 = vld [vmem:[#allocation2 + $0x80] sm:$0xff] }
  0xfa   : > { %836 = vst.msk [vmem:[%s1302_s13 + $0x18] sm:$0xff] %vm333_vm2, %v816_v47  ;;  %v704_v54 = vadd.f32 %v1057_v52, %v1035_v49  ;;  %v695_v56 = vpop.f32.mrb[9].mxu0  ;;  %v1036_v57 = vpop.f32.mrb[10].mxu1  ;;  %v433_v52 = vld [vmem:[#allocation2 + $0x98] sm:$0xff] }
  0xfb   : > { %834 = vst.msk [vmem:[%s1302_s13 + $0x8] sm:$0xff] %vm333_vm2, %v814_v50  ;;  %v696_v58 = vadd.f32 %v695_v56, %v544_v53  ;;  %v1058_v60 = vpop.f32.mrb[10].mxu0  ;;  %v547_v61 = vpop.f32.mrb[11].mxu1 }
  0xfc   : > { %v752_v62 = vadd.f32 %v704_v54, %v424_v51  ;;  %v707_v63 = vadd.f32 %v1058_v60, %v1036_v57  ;;  %v698_v1 = vpop.f32.mrb[11].mxu0  ;;  %v431_v57 = vld [vmem:[#allocation2 + $0x88] sm:$0xff] }
  0xfd   : > { %v792_v2 = vld [vmem:[#allocation2 + $0x30] sm:$0xff]  ;;  %v750_v3 = vadd.f32 %v696_v58, %v422_v55  ;;  %v699_v4 = vadd.f32 %v698_v1, %v547_v61 }
  0xfe   : > { %v819_v5 = vadd.f32 %v1296_v29, %v792_v2  ;;  %v790_v6 = vld [vmem:[#allocation2 + $0x20] sm:$0xff]  ;;  %773 = vst.msk [vmem:[#allocation2 + $0x50] sm:$0xff] %vm333_vm2, %v752_v62  ;;  %v753_v7 = vadd.f32 %v707_v63, %v425_v59 }
  0xff   : > { %v817_v8 = vadd.f32 %v1296_v29, %v790_v6  ;;  %v793_v9 = vld [vmem:[#allocation2 + $0x38] sm:$0xff]  ;;  %771 = vst.msk [vmem:[#allocation2 + $0x40] sm:$0xff] %vm333_vm2, %v750_v3  ;;  %v751_v10 = vadd.f32 %v699_v4, %v423_v0 }
 0x100   : > { %839 = vst.msk [vmem:[%s1302_s13 + $0x30] sm:$0xff] %vm333_vm2, %v819_v5  ;;  %v820_v11 = vadd.f32 %v1296_v29, %v793_v9  ;;  %v791_v12 = vld [vmem:[#allocation2 + $0x28] sm:$0xff]  ;;  %774 = vst.msk [vmem:[#allocation2 + $0x58] sm:$0xff] %vm333_vm2, %v753_v7  ;;  %v1039_v13 = vpop.f32.mrb[12].mxu1 }
 0x101   : > { %837 = vst.msk [vmem:[%s1302_s13 + $0x20] sm:$0xff] %vm333_vm2, %v817_v8  ;;  %v818_v14 = vadd.f32 %v1296_v29, %v791_v12  ;;  %772 = vst.msk [vmem:[#allocation2 + $0x48] sm:$0xff] %vm333_vm2, %v751_v10  ;;  %v1061_v16 = vpop.f32.mrb[12].mxu0  ;;  %v560_v17 = vpop.f32.mrb[13].mxu1 }
 0x102   : > { %840 = vst.msk [vmem:[%s1302_s13 + $0x38] sm:$0xff] %vm333_vm2, %v820_v11  ;;  %v720_v18 = vadd.f32 %v1061_v16, %v1039_v13  ;;  %v711_v20 = vpop.f32.mrb[13].mxu0  ;;  %v1040_v21 = vpop.f32.mrb[14].mxu1 }
 0x103   : > { %838 = vst.msk [vmem:[%s1302_s13 + $0x28] sm:$0xff] %vm333_vm2, %v818_v14  ;;  %v712_v22 = vadd.f32 %v711_v20, %v560_v17  ;;  %v1062_v24 = vpop.f32.mrb[14].mxu0  ;;  %v563_v25 = vpop.f32.mrb[15].mxu1 }
 0x104   : > { %v756_v26 = vadd.f32 %v720_v18, %v428_v15  ;;  %v723_v27 = vadd.f32 %v1062_v24, %v1040_v21  ;;  %v714_v30 = vpop.f32.mrb[15].mxu0 }
 0x105   : > { %v796_v31 = vld [vmem:[#allocation2 + $0x50] sm:$0xff]  ;;  %v754_v32 = vadd.f32 %v712_v22, %v426_v19  ;;  %v715_v33 = vadd.f32 %v714_v30, %v563_v25 }
 0x106   : > { %v823_v34 = vadd.f32 %v1296_v29, %v796_v31  ;;  %v794_v35 = vld [vmem:[#allocation2 + $0x40] sm:$0xff]  ;;  %777 = vst.msk [vmem:[#allocation2 + $0x70] sm:$0xff] %vm333_vm2, %v756_v26  ;;  %v757_v36 = vadd.f32 %v723_v27, %v429_v23 }
 0x107   : > { %v821_v37 = vadd.f32 %v1296_v29, %v794_v35  ;;  %v797_v38 = vld [vmem:[#allocation2 + $0x58] sm:$0xff]  ;;  %775 = vst.msk [vmem:[#allocation2 + $0x60] sm:$0xff] %vm333_vm2, %v754_v32  ;;  %v755_v39 = vadd.f32 %v715_v33, %v427_v28 }
 0x108   : > { %843 = vst.msk [vmem:[%s1302_s13 + $0x50] sm:$0xff] %vm333_vm2, %v823_v34  ;;  %v824_v40 = vadd.f32 %v1296_v29, %v797_v38  ;;  %v795_v41 = vld [vmem:[#allocation2 + $0x48] sm:$0xff]  ;;  %778 = vst.msk [vmem:[#allocation2 + $0x78] sm:$0xff] %vm333_vm2, %v757_v36  ;;  %v1043_v42 = vpop.f32.mrb[16].mxu1 }
 0x109   : > { %841 = vst.msk [vmem:[%s1302_s13 + $0x40] sm:$0xff] %vm333_vm2, %v821_v37  ;;  %v822_v43 = vadd.f32 %v1296_v29, %v795_v41  ;;  %776 = vst.msk [vmem:[#allocation2 + $0x68] sm:$0xff] %vm333_vm2, %v755_v39  ;;  %v1065_v45 = vpop.f32.mrb[16].mxu0  ;;  %v576_v46 = vpop.f32.mrb[17].mxu1 }
 0x10a   : > { %844 = vst.msk [vmem:[%s1302_s13 + $0x58] sm:$0xff] %vm333_vm2, %v824_v40  ;;  %v736_v47 = vadd.f32 %v1065_v45, %v1043_v42  ;;  %v727_v49 = vpop.f32.mrb[17].mxu0  ;;  %v1044_v50 = vpop.f32.mrb[18].mxu1 }
 0x10b   : > { %842 = vst.msk [vmem:[%s1302_s13 + $0x48] sm:$0xff] %vm333_vm2, %v822_v43  ;;  %v728_v51 = vadd.f32 %v727_v49, %v576_v46  ;;  %v1066_v53 = vpop.f32.mrb[18].mxu0  ;;  %v579_v54 = vpop.f32.mrb[19].mxu1 }
 0x10c   : > { %v760_v55 = vadd.f32 %v736_v47, %v432_v44  ;;  %v739_v56 = vadd.f32 %v1066_v53, %v1044_v50  ;;  %v730_v58 = vpop.f32.mrb[19].mxu0 }
 0x10d   : > { %v800_v59 = vld [vmem:[#allocation2 + $0x70] sm:$0xff]  ;;  %v758_v60 = vadd.f32 %v728_v51, %v430_v48  ;;  %v731_v61 = vadd.f32 %v730_v58, %v579_v54 }
 0x10e   : > { %v827_v62 = vadd.f32 %v1296_v29, %v800_v59  ;;  %v798_v63 = vld [vmem:[#allocation2 + $0x60] sm:$0xff]  ;;  %781 = vst.msk [vmem:[#allocation2 + $0x90] sm:$0xff] %vm333_vm2, %v760_v55  ;;  %v761_v0 = vadd.f32 %v739_v56, %v433_v52 }
 0x10f   : > { %v825_v1 = vadd.f32 %v1296_v29, %v798_v63  ;;  %v801_v2 = vld [vmem:[#allocation2 + $0x78] sm:$0xff]  ;;  %779 = vst.msk [vmem:[#allocation2 + $0x80] sm:$0xff] %vm333_vm2, %v758_v60  ;;  %v759_v3 = vadd.f32 %v731_v61, %v431_v57 }
 0x110   : > { %847 = vst.msk [vmem:[%s1302_s13 + $0x70] sm:$0xff] %vm333_vm2, %v827_v62  ;;  %v828_v4 = vadd.f32 %v1296_v29, %v801_v2  ;;  %v799_v5 = vld [vmem:[#allocation2 + $0x68] sm:$0xff]  ;;  %782 = vst.msk [vmem:[#allocation2 + $0x98] sm:$0xff] %vm333_vm2, %v761_v0 }
 0x111   : > { %845 = vst.msk [vmem:[%s1302_s13 + $0x60] sm:$0xff] %vm333_vm2, %v825_v1  ;;  %v826_v6 = vadd.f32 %v1296_v29, %v799_v5  ;;  %780 = vst.msk [vmem:[#allocation2 + $0x88] sm:$0xff] %vm333_vm2, %v759_v3 }
 0x112   : > { %848 = vst.msk [vmem:[%s1302_s13 + $0x78] sm:$0xff] %vm333_vm2, %v828_v4 }
 0x113   : > { %846 = vst.msk [vmem:[%s1302_s13 + $0x68] sm:$0xff] %vm333_vm2, %v826_v6 }
 0x115   : > { %v804_v7 = vld [vmem:[#allocation2 + $0x90] sm:$0xff] }
 0x116   : > { %v831_v8 = vadd.f32 %v1296_v29, %v804_v7  ;;  %v802_v9 = vld [vmem:[#allocation2 + $0x80] sm:$0xff] }
 0x117   : > { %v829_v10 = vadd.f32 %v1296_v29, %v802_v9  ;;  %v805_v11 = vld [vmem:[#allocation2 + $0x98] sm:$0xff] }
 0x118   : > { %851 = vst.msk [vmem:[%s1302_s13 + $0x90] sm:$0xff] %vm333_vm2, %v831_v8  ;;  %v832_v12 = vadd.f32 %v1296_v29, %v805_v11  ;;  %v803_v13 = vld [vmem:[#allocation2 + $0x88] sm:$0xff] }
 0x119   : > { %849 = vst.msk [vmem:[%s1302_s13 + $0x80] sm:$0xff] %vm333_vm2, %v829_v10  ;;  %v830_v14 = vadd.f32 %v1296_v29, %v803_v13 }
 0x11a   : > { %852 = vst.msk [vmem:[%s1302_s13 + $0x98] sm:$0xff] %vm333_vm2, %v832_v12 }
 0x11b   : > { %850 = vst.msk [vmem:[%s1302_s13 + $0x88] sm:$0xff] %vm333_vm2, %v830_v14 }
 0x11c PF: > { %s15_s20 = sadd.s32 1, %s1138_s20   ;;  %s1395_s18 = smov %s1134_s19 }
 0x11d   : > { %p12_p5 = scmp.ge.s32.totalorder %s15_s20, 4   ;;  %s1396_s19 = smov %s1398_s21 }
 0x11f   :  { %14 = sbr.rel (!%p12_p5) target bundleno = 2 (0x2), region = 87 }

// kernel: dcnn_forward.17
= control target key start
LH: loop header
LB: loop body
LE: loop exit
PB: predicated region body
PF: predicated region fallthrough
CT: control target
= control target key end

     0   :  { %s994_s18 = smov 0   ;;  %s996_s19 = smov 0   ;;  %s1153_s0 = inlined_call_operand.vmem [shape: f32[176,40], index: 0, kind: input, shape index: {}]   ;;  %s1154_s1 = inlined_call_operand.vmem [shape: f32[176,40], index: 1, kind: input, shape index: {}]   ;;  %s1155_s2 = inlined_call_operand.vmem [shape: bf16[40,16], index: 2, kind: input, shape index: {}]   ;;  %s1156_s3 = inlined_call_operand.vmem [shape: bf16[40,16], index: 3, kind: input, shape index: {}]   ;;  %s1157_s4 = inlined_call_operand.vmem [shape: f32[1,16], index: 4, kind: input, shape index: {}]   ;;  %s1158_s5 = inlined_call_operand.vmem [shape: f32[176,16], index: 5, kind: output, shape index: {}]  }
   0x1   :  { %s998_s20 = smov 0  }
   0x2 LB: > { %s27_s21 = sadd.s32 1, %s957_s19  ;;  %p819_p0 = scmp.ge.s32.totalorder %s961_s20, 1  ;;  %s961_s20 = sphi %s998_s20, %s15_s20   ;;  %s957_s19 = sphi %s996_s19, %s1160_s19   ;;  %s953_s18 = sphi %s994_s18, %s1159_s18  }
   0x3   : > { %p29_p1 = scmp.ge.s32.totalorder %s27_s21, 2  ;;  %p243_p2 = scmp.lt.s32.totalorder %s961_s20, 3 }
   0x5   : > { %s1162_s21 = smov (%p29_p1, %s27_s21), 0  ;;  %p244_p3 = pnand %p819_p0, %p243_p2 }
   0x6   : > { %v933_v0 = vld [vmem:[%s1156_s3] sm:$0xff] (!%p244_p3)   ;;  %s292_s26 = smul.u32 (!%p244_p3), 11, %s953_s18  ;;  %v935_v2 = vld [vmem:[%s1156_s3 + $0x8] sm:$0xff] (!%p244_p3)   ;;  %v937_v4 = vld [vmem:[%s1156_s3 + $0x10] ss:$0 sps:$4 sm:$0xff] (!%p244_p3)   ;;  %vm434_vm0 = vcmask (!%p244_p3), 1043456  }
   0x7   : > { %247 = sbr.rel (%p244_p3) target bundleno = 268 (0x10c), region = 40  ;;  %v934_v1 = vld [vmem:[%s1155_s2] sm:$0xff] (!%p244_p3)   ;;  %862 = vmatprep.subr.bf16.mxu1 (!%p244_p3), %v933_v0  ;;  %v936_v3 = vld [vmem:[%s1155_s2 + $0x8] sm:$0xff] (!%p244_p3)   ;;  %v938_v5 = vld [vmem:[%s1155_s2 + $0x10] ss:$0 sps:$4 sm:$0xff] (!%p244_p3)   ;;  %v436_v6 = vsel (!%p244_p3), %vm434_vm0, %v937_v4, 0 }
   0x8   : > { %880 = vmatprep.subr.bf16.mxu0 (!%p244_p3), %v934_v1  ;;  %863 = vmatpush3.bf16.msra.mxu1 (!%p244_p3), %v933_v0  ;;  %p293_p4 = scmp.lt.s32.totalorder (!%p244_p3), %s292_s26, 21  ;;  %v552_v7 = vsel (!%p244_p3), %vm434_vm0, %v938_v5, 0  ;;  %vm415_vm1 = vcmask (!%p244_p3), 326656   ;;  %vm333_vm2 = vcmask (!%p244_p3), 130048   ;;  %v963_v42 = vmov (!%p244_p3), 0.0  }
   0x9   : > { %881 = vmatpush3.bf16.msra.mxu0 (!%p244_p3), %v934_v1  ;;  %864 = vmatprep.subr.bf16.mxu1 (!%p244_p3), %v935_v2  ;;  %336 = vst.msk [vmem:[#allocation2 + $0x10] sm:$0xff] (!%p244_p3), %vm333_vm2, %v963_v42  ;;  %334 = vst.msk [vmem:[#allocation2] sm:$0xff] (!%p244_p3), %vm333_vm2, %v963_v42 }
   0xa   : > { %882 = vmatprep.subr.bf16.mxu0 (!%p244_p3), %v936_v3  ;;  %335 = vst.msk [vmem:[#allocation2 + $0x8] sm:$0xff] (!%p244_p3), %vm333_vm2, %v963_v42  ;;  %337 = vst.msk [vmem:[#allocation2 + $0x18] sm:$0xff] (!%p244_p3), %vm333_vm2, %v963_v42 }
   0xb   : > { %338 = vst.msk [vmem:[#allocation2 + $0x20] sm:$0xff] (!%p244_p3), %vm333_vm2, %v963_v42  ;;  %339 = vst.msk [vmem:[#allocation2 + $0x28] sm:$0xff] (!%p244_p3), %vm333_vm2, %v963_v42 }
   0xc   : > { %865 = vmatpush3.bf16.msra.mxu1 (!%p244_p3), %v935_v2  ;;  %340 = vst.msk [vmem:[#allocation2 + $0x30] sm:$0xff] (!%p244_p3), %vm333_vm2, %v963_v42  ;;  %341 = vst.msk [vmem:[#allocation2 + $0x38] sm:$0xff] (!%p244_p3), %vm333_vm2, %v963_v42 }
   0xd   : > { %883 = vmatpush3.bf16.msra.mxu0 (!%p244_p3), %v936_v3  ;;  %906 = vmatprep.subr.msk.bf16.mxu1 (!%p244_p3), %vm434_vm0, %v937_v4  ;;  %342 = vst.msk [vmem:[#allocation2 + $0x40] sm:$0xff] (!%p244_p3), %vm333_vm2, %v963_v42  ;;  %343 = vst.msk [vmem:[#allocation2 + $0x48] sm:$0xff] (!%p244_p3), %vm333_vm2, %v963_v42 }
   0xe   : > { %s1164_s26 = smov (!%p293_p4, %s292_s26), 21  ;;  %907 = vmatprep.subr.msk.bf16.mxu0 %vm434_vm0, %v938_v5  ;;  %344 = vst.msk [vmem:[#allocation2 + $0x50] sm:$0xff] %vm333_vm2, %v963_v42 }
   0xf   : > { %s1030_s10 = sshll.u32 %s1164_s26, 3 }
  0x10   : > { %s1036_s13 = scalar_lea.vmem %s1154_s1, %s1030_s10  ;;  %s1044_s16 = scalar_lea.vmem %s1153_s0, %s1030_s10  ;;  %867 = vmatpush3.bf16.msra.mxu1 %v436_v6  ;;  %v381_v44 = vld [vmem:[#allocation2 + $0x10] sm:$0xff]  ;;  %v379_v48 = vld [vmem:[#allocation2] sm:$0xff] }
  0x11   : > { %v362_v8 = vld [vmem:[%s1036_s13] sm:$0xff]  ;;  %v363_v9 = vld [vmem:[%s1036_s13 + $0x8] sm:$0xff]  ;;  %v364_v10 = vld [vmem:[%s1036_s13 + $0x10] sm:$0xff]  ;;  %885 = vmatpush3.bf16.msra.mxu0 %v552_v7  ;;  %s1102_s24 = scalar_lea.vmem %s1158_s5, %s1030_s10 }
  0x12   : > { %v373_v11 = vpack.c.bf16 %v363_v9, %v362_v8  ;;  %v345_v12 = vld [vmem:[%s1044_s16] sm:$0xff]  ;;  %v346_v13 = vld [vmem:[%s1044_s16 + $0x8] sm:$0xff]  ;;  %v365_v14 = vld [vmem:[%s1036_s13 + $0x18] sm:$0xff] }
  0x13   : > { %v356_v15 = vpack.c.bf16 %v346_v13, %v345_v12  ;;  %v374_v16 = vpack.c.bf16 %v365_v14, %v364_v10  ;;  %v347_v17 = vld [vmem:[%s1044_s16 + $0x10] sm:$0xff]  ;;  %v348_v18 = vld [vmem:[%s1044_s16 + $0x18] sm:$0xff]  ;;  %v366_v19 = vld [vmem:[%s1036_s13 + $0x20] sm:$0xff] }
  0x14   : > { %868 = vmatprep.mubr.msk.bf16.mxu1 %vm415_vm1, %v373_v11  ;;  %v357_v20 = vpack.c.bf16 %v348_v18, %v347_v17  ;;  %v367_v21 = vld [vmem:[%s1036_s13 + $0x28] sm:$0xff]  ;;  %v349_v22 = vld [vmem:[%s1044_s16 + $0x20] sm:$0xff]  ;;  %v368_v26 = vld [vmem:[%s1036_s13 + $0x30] sm:$0xff] }
  0x15   : > { %v350_v23 = vld [vmem:[%s1044_s16 + $0x28] sm:$0xff]  ;;  %886 = vmatprep.mubr.msk.bf16.mxu0 %vm415_vm1, %v356_v15  ;;  %v375_v24 = vpack.c.bf16 %v367_v21, %v366_v19  ;;  %869 = vmatmul.mubr.msk.bf16.vlgmr.msra.gmra.mrb[0].mxu1 %vm415_vm1, %v374_v16  ;;  %v369_v27 = vld [vmem:[%s1036_s13 + $0x38] sm:$0xff]  ;;  %v351_v28 = vld [vmem:[%s1044_s16 + $0x30] sm:$0xff] }
  0x16   : > { %v358_v25 = vpack.c.bf16 %v350_v23, %v349_v22  ;;  %887 = vmatmul.mubr.msk.bf16.vlgmr.msra.gmra.mrb[0].mxu0 %vm415_vm1, %v357_v20  ;;  %v352_v29 = vld [vmem:[%s1044_s16 + $0x38] sm:$0xff]  ;;  %v370_v30 = vld [vmem:[%s1036_s13 + $0x40] sm:$0xff]  ;;  %v371_v31 = vld [vmem:[%s1036_s13 + $0x48] sm:$0xff]  ;;  %v376_v34 = vpack.c.bf16 %v369_v27, %v368_v26 }
  0x17   : > { %872 = vmatprep.mubr.msk.bf16.mxu1 %vm415_vm1, %v375_v24  ;;  %v353_v32 = vld [vmem:[%s1044_s16 + $0x40] sm:$0xff]  ;;  %v354_v33 = vld [vmem:[%s1044_s16 + $0x48] sm:$0xff]  ;;  %v359_v35 = vpack.c.bf16 %v352_v29, %v351_v28  ;;  %v377_v36 = vpack.c.bf16 %v371_v31, %v370_v30  ;;  %v372_v38 = vld [vmem:[%s1036_s13 + $0x50] sm:$0xff] }
  0x18   : > { %890 = vmatprep.mubr.msk.bf16.mxu0 %vm415_vm1, %v358_v25  ;;  %v360_v37 = vpack.c.bf16 %v354_v33, %v353_v32  ;;  %v355_v39 = vld [vmem:[%s1044_s16 + $0x50] sm:$0xff]  ;;  %v378_v40 = vpack.c.bf16 %v372_v38, %v372_v38  ;;  %v382_v52 = vld [vmem:[#allocation2 + $0x18] sm:$0xff]  ;;  %v380_v57 = vld [vmem:[#allocation2 + $0x8] sm:$0xff] }
  0x19   : > { %v361_v41 = vpack.c.bf16 %v355_v39, %v355_v39  ;;  %v385_v0 = vld [vmem:[#allocation2 + $0x30] sm:$0xff]  ;;  %v383_v4 = vld [vmem:[#allocation2 + $0x20] sm:$0xff]  ;;  %v386_v9 = vld [vmem:[#allocation2 + $0x38] sm:$0xff] }
  0x1a   : > { %v1096_v7 = vld [vmem:[%s1157_s4] ss:$0 sm:$0xff]  ;;  %v384_v14 = vld [vmem:[#allocation2 + $0x28] sm:$0xff]  ;;  %v389_v29 = vld [vmem:[#allocation2 + $0x50] sm:$0xff] }
  0x1b   : > { %v387_v33 = vld [vmem:[#allocation2 + $0x40] sm:$0xff] }
  0x1d   : > { %873 = vmatmul.mubr.msk.bf16.gmra.mrb[4].mxu1 %vm415_vm1, %v376_v34 }
  0x1e   : > { %891 = vmatmul.mubr.msk.bf16.gmra.mrb[4].mxu0 %vm415_vm1, %v359_v35  ;;  %876 = vmatprep.mubr.msk.bf16.mxu1 %vm415_vm1, %v377_v36 }
  0x1f   : > { %894 = vmatprep.mubr.msk.bf16.mxu0 %vm415_vm1, %v360_v37 }
  0x25   : > { %877 = vmatmul.mubr.msk.bf16.gmra.mrb[8].mxu1 %vm415_vm1, %v378_v40  ;;  %v388_v40 = vld [vmem:[#allocation2 + $0x48] sm:$0xff] }
  0x26   : > { %895 = vmatmul.mubr.msk.bf16.gmra.mrb[8].mxu0 %vm415_vm1, %v361_v41 }
  0xe8   : > { %v870_v43 = vpop.f32.mrb[0].mxu1 }
  0xe9   : > { %v888_v45 = vpop.f32.mrb[0].mxu0  ;;  %v472_v46 = vpop.f32.mrb[1].mxu1 }
  0xea   : > { %v597_v47 = vadd.f32 %v888_v45, %v870_v43  ;;  %v588_v49 = vpop.f32.mrb[1].mxu0  ;;  %v871_v50 = vpop.f32.mrb[2].mxu1 }
  0xeb   : > { %v589_v51 = vadd.f32 %v588_v49, %v472_v46  ;;  %v889_v53 = vpop.f32.mrb[2].mxu0  ;;  %v475_v54 = vpop.f32.mrb[3].mxu1 }
  0xec   : > { %v636_v55 = vadd.f32 %v597_v47, %v381_v44  ;;  %v600_v56 = vadd.f32 %v889_v53, %v871_v50  ;;  %v591_v58 = vpop.f32.mrb[3].mxu0 }
  0xed   : > { %v634_v59 = vadd.f32 %v589_v51, %v379_v48  ;;  %v592_v60 = vadd.f32 %v591_v58, %v475_v54 }
  0xee   : > { %648 = vst.msk [vmem:[#allocation2 + $0x10] sm:$0xff] %vm333_vm2, %v636_v55  ;;  %v637_v61 = vadd.f32 %v600_v56, %v382_v52 }
  0xef   : > { %646 = vst.msk [vmem:[#allocation2] sm:$0xff] %vm333_vm2, %v634_v59  ;;  %v635_v62 = vadd.f32 %v592_v60, %v380_v57 }
  0xf0   : > { %649 = vst.msk [vmem:[#allocation2 + $0x18] sm:$0xff] %vm333_vm2, %v637_v61  ;;  %v874_v63 = vpop.f32.mrb[4].mxu1 }
  0xf1   : > { %647 = vst.msk [vmem:[#allocation2 + $0x8] sm:$0xff] %vm333_vm2, %v635_v62  ;;  %v892_v1 = vpop.f32.mrb[4].mxu0  ;;  %v488_v2 = vpop.f32.mrb[5].mxu1 }
  0xf2   : > { %v613_v3 = vadd.f32 %v892_v1, %v874_v63  ;;  %v604_v5 = vpop.f32.mrb[5].mxu0  ;;  %v875_v6 = vpop.f32.mrb[6].mxu1 }
  0xf3   : > { %v605_v8 = vadd.f32 %v604_v5, %v488_v2  ;;  %v893_v10 = vpop.f32.mrb[6].mxu0  ;;  %v491_v11 = vpop.f32.mrb[7].mxu1 }
  0xf4   : > { %v640_v12 = vadd.f32 %v613_v3, %v385_v0  ;;  %v616_v13 = vadd.f32 %v893_v10, %v875_v6  ;;  %v607_v15 = vpop.f32.mrb[7].mxu0 }
  0xf5   : > { %v662_v16 = vld [vmem:[#allocation2 + $0x10] sm:$0xff]  ;;  %v638_v17 = vadd.f32 %v605_v8, %v383_v4  ;;  %v608_v18 = vadd.f32 %v607_v15, %v491_v11 }
  0xf6   : > { %v680_v19 = vadd.f32 %v1096_v7, %v662_v16  ;;  %v660_v20 = vld [vmem:[#allocation2] sm:$0xff]  ;;  %652 = vst.msk [vmem:[#allocation2 + $0x30] sm:$0xff] %vm333_vm2, %v640_v12  ;;  %v641_v21 = vadd.f32 %v616_v13, %v386_v9 }
  0xf7   : > { %v678_v22 = vadd.f32 %v1096_v7, %v660_v20  ;;  %v663_v23 = vld [vmem:[#allocation2 + $0x18] sm:$0xff]  ;;  %650 = vst.msk [vmem:[#allocation2 + $0x20] sm:$0xff] %vm333_vm2, %v638_v17  ;;  %v639_v24 = vadd.f32 %v608_v18, %v384_v14 }
  0xf8   : > { %691 = vst.msk [vmem:[%s1102_s24 + $0x10] sm:$0xff] %vm333_vm2, %v680_v19  ;;  %v681_v25 = vadd.f32 %v1096_v7, %v663_v23  ;;  %v661_v26 = vld [vmem:[#allocation2 + $0x8] sm:$0xff]  ;;  %653 = vst.msk [vmem:[#allocation2 + $0x38] sm:$0xff] %vm333_vm2, %v641_v21  ;;  %v878_v27 = vpop.f32.mrb[8].mxu1 }
  0xf9   : > { %689 = vst.msk [vmem:[%s1102_s24] sm:$0xff] %vm333_vm2, %v678_v22  ;;  %v679_v28 = vadd.f32 %v1096_v7, %v661_v26  ;;  %651 = vst.msk [vmem:[#allocation2 + $0x28] sm:$0xff] %vm333_vm2, %v639_v24  ;;  %v896_v30 = vpop.f32.mrb[8].mxu0  ;;  %v504_v31 = vpop.f32.mrb[9].mxu1 }
  0xfa   : > { %692 = vst.msk [vmem:[%s1102_s24 + $0x18] sm:$0xff] %vm333_vm2, %v681_v25  ;;  %v629_v32 = vadd.f32 %v896_v30, %v878_v27  ;;  %v620_v34 = vpop.f32.mrb[9].mxu0  ;;  %v879_v35 = vpop.f32.mrb[10].mxu1 }
  0xfb   : > { %690 = vst.msk [vmem:[%s1102_s24 + $0x8] sm:$0xff] %vm333_vm2, %v679_v28  ;;  %v621_v36 = vadd.f32 %v620_v34, %v504_v31  ;;  %v897_v37 = vpop.f32.mrb[10].mxu0  ;;  %v507_v38 = vpop.f32.mrb[11].mxu1 }
  0xfc   : > { %v644_v39 = vadd.f32 %v629_v32, %v389_v29  ;;  %v623_v41 = vpop.f32.mrb[11].mxu0 }
  0xfd   : > { %v666_v42 = vld [vmem:[#allocation2 + $0x30] sm:$0xff]  ;;  %v642_v43 = vadd.f32 %v621_v36, %v387_v33  ;;  %v624_v44 = vadd.f32 %v623_v41, %v507_v38 }
  0xfe   : > { %v684_v45 = vadd.f32 %v1096_v7, %v666_v42  ;;  %v664_v46 = vld [vmem:[#allocation2 + $0x20] sm:$0xff]  ;;  %656 = vst.msk [vmem:[#allocation2 + $0x50] sm:$0xff] %vm333_vm2, %v644_v39 }
  0xff   : > { %v682_v47 = vadd.f32 %v1096_v7, %v664_v46  ;;  %v667_v48 = vld [vmem:[#allocation2 + $0x38] sm:$0xff]  ;;  %654 = vst.msk [vmem:[#allocation2 + $0x40] sm:$0xff] %vm333_vm2, %v642_v43  ;;  %v643_v49 = vadd.f32 %v624_v44, %v388_v40 }
 0x100   : > { %695 = vst.msk [vmem:[%s1102_s24 + $0x30] sm:$0xff] %vm333_vm2, %v684_v45  ;;  %v685_v50 = vadd.f32 %v1096_v7, %v667_v48  ;;  %v665_v51 = vld [vmem:[#allocation2 + $0x28] sm:$0xff] }
 0x101   : > { %693 = vst.msk [vmem:[%s1102_s24 + $0x20] sm:$0xff] %vm333_vm2, %v682_v47  ;;  %v683_v52 = vadd.f32 %v1096_v7, %v665_v51  ;;  %655 = vst.msk [vmem:[#allocation2 + $0x48] sm:$0xff] %vm333_vm2, %v643_v49 }
 0x102   : > { %696 = vst.msk [vmem:[%s1102_s24 + $0x38] sm:$0xff] %vm333_vm2, %v685_v50 }
 0x103   : > { %694 = vst.msk [vmem:[%s1102_s24 + $0x28] sm:$0xff] %vm333_vm2, %v683_v52 }
 0x105   : > { %v670_v53 = vld [vmem:[#allocation2 + $0x50] sm:$0xff] }
 0x106   : > { %v688_v54 = vadd.f32 %v1096_v7, %v670_v53  ;;  %v668_v55 = vld [vmem:[#allocation2 + $0x40] sm:$0xff] }
 0x107   : > { %v686_v56 = vadd.f32 %v1096_v7, %v668_v55 }
 0x108   : > { %699 = vst.msk [vmem:[%s1102_s24 + $0x50] sm:$0xff] %vm333_vm2, %v688_v54  ;;  %v669_v57 = vld [vmem:[#allocation2 + $0x48] sm:$0xff] }
 0x109   : > { %697 = vst.msk [vmem:[%s1102_s24 + $0x40] sm:$0xff] %vm333_vm2, %v686_v56  ;;  %v687_v58 = vadd.f32 %v1096_v7, %v669_v57 }
 0x10b   : > { %698 = vst.msk [vmem:[%s1102_s24 + $0x48] sm:$0xff] %vm333_vm2, %v687_v58 }
 0x10c PF: > { %s15_s20 = sadd.s32 1, %s961_s20   ;;  %s1159_s18 = smov %s957_s19 }
 0x10d   : > { %p12_p5 = scmp.ge.s32.totalorder %s15_s20, 4   ;;  %s1160_s19 = smov %s1162_s21 }
 0x10f   :  { %14 = sbr.rel (!%p12_p5) target bundleno = 2 (0x2), region = 87 }

// kernel: dcnn_forward.18
= control target key start
LH: loop header
LB: loop body
LE: loop exit
PB: predicated region body
PF: predicated region fallthrough
CT: control target
= control target key end

     0   :  { %s912_s18 = smov 0   ;;  %s914_s19 = smov 0   ;;  %s1062_s0 = inlined_call_operand.vmem [shape: f32[96,80], index: 0, kind: input, shape index: {}]   ;;  %s1063_s1 = inlined_call_operand.vmem [shape: f32[96,80], index: 1, kind: input, shape index: {}]   ;;  %s1064_s2 = inlined_call_operand.vmem [shape: bf16[80,32], index: 2, kind: input, shape index: {}]   ;;  %s1065_s3 = inlined_call_operand.vmem [shape: bf16[80,32], index: 3, kind: input, shape index: {}]   ;;  %s1066_s4 = inlined_call_operand.vmem [shape: f32[1,32], index: 4, kind: input, shape index: {}]   ;;  %s1067_s5 = inlined_call_operand.vmem [shape: f32[96,32], index: 5, kind: output, shape index: {}]  }
   0x1   :  { %s916_s20 = smov 0  }
   0x2 LB: > { %s27_s21 = sadd.s32 1, %s874_s19  ;;  %p737_p0 = scmp.ge.s32.totalorder %s878_s20, 1  ;;  %s878_s20 = sphi %s916_s20, %s15_s20   ;;  %s874_s19 = sphi %s914_s19, %s1069_s19   ;;  %s870_s18 = sphi %s912_s18, %s1068_s18  }
   0x3   : > { %p29_p1 = scmp.ge.s32.totalorder %s27_s21, 2  ;;  %p243_p2 = scmp.lt.s32.totalorder %s878_s20, 3 }
   0x5   : > { %s1071_s21 = smov (%p29_p1, %s27_s21), 0  ;;  %p244_p3 = pnand %p737_p0, %p243_p2 }
   0x6   : > { %v846_v0 = vld [vmem:[%s1065_s3] sm:$0xff] (!%p244_p3)   ;;  %v880_v1 = vmov (!%p244_p3), 0.0   ;;  %v848_v3 = vld [vmem:[%s1065_s3 + $0x8] sm:$0xff] (!%p244_p3)   ;;  %vm881_vm0 = vmmov (!%p244_p3), 0   ;;  %s292_s28 = smul.u32 (!%p244_p3), 6, %s870_s18  ;;  %v850_v5 = vld [vmem:[%s1065_s3 + $0x10] sm:$0xff] (!%p244_p3)  }
   0x7   : > { %247 = sbr.rel (%p244_p3) target bundleno = 273 (0x111), region = 40  ;;  %776 = vmatprep.subr.bf16.mxu0 (!%p244_p3), %v880_v1  ;;  %798 = vmatprep.subr.bf16.mxu1 (!%p244_p3), %v880_v1  ;;  %v847_v2 = vld [vmem:[%s1064_s2] sm:$0xff] (!%p244_p3)   ;;  %v849_v4 = vld [vmem:[%s1064_s2 + $0x8] sm:$0xff] (!%p244_p3)   ;;  %v851_v6 = vld [vmem:[%s1064_s2 + $0x10] sm:$0xff] (!%p244_p3)   ;;  %vm414_vm1 = vcmask (!%p244_p3), 654336   ;;  %vm333_vm2 = vcmask (!%p244_p3), 261120  }
   0x8   : > { %777 = vmatpush3.bf16.msra.mxu0 (!%p244_p3), %v846_v0  ;;  %786 = vmatprep.mubr.msk.bf16.mxu0 (!%p244_p3), %vm881_vm0, %v880_v1  ;;  %p293_p4 = scmp.lt.s32.totalorder (!%p244_p3), %s292_s28, 11  ;;  %v852_v7 = vld [vmem:[%s1065_s3 + $0x18] sm:$0xff] (!%p244_p3)   ;;  %v854_v9 = vld [vmem:[%s1065_s3 + $0x20] sm:$0xff] (!%p244_p3)   ;;  %334 = vst.msk [vmem:[#allocation2] sm:$0xff] (!%p244_p3), %vm333_vm2, %v880_v1  ;;  %335 = vst.msk [vmem:[#allocation2 + $0x8] sm:$0xff] (!%p244_p3), %vm333_vm2, %v880_v1 }
   0x9   : > { %799 = vmatpush3.bf16.msra.mxu1 (!%p244_p3), %v847_v2  ;;  %778 = vmatprep.subr.bf16.mxu0 (!%p244_p3), %v880_v1  ;;  %v853_v8 = vld [vmem:[%s1064_s2 + $0x18] sm:$0xff] (!%p244_p3)   ;;  %v855_v12 = vld [vmem:[%s1064_s2 + $0x20] sm:$0xff] (!%p244_p3)   ;;  %336 = vst.msk [vmem:[#allocation2 + $0x10] sm:$0xff] (!%p244_p3), %vm333_vm2, %v880_v1  ;;  %337 = vst.msk [vmem:[#allocation2 + $0x18] sm:$0xff] (!%p244_p3), %vm333_vm2, %v880_v1 }
   0xa   : > { %800 = vmatprep.subr.bf16.mxu1 (!%p244_p3), %v880_v1  ;;  %808 = vmatprep.mubr.msk.bf16.mxu1 (!%p244_p3), %vm881_vm0, %v880_v1  ;;  %338 = vst.msk [vmem:[#allocation2 + $0x20] sm:$0xff] (!%p244_p3), %vm333_vm2, %v880_v1  ;;  %339 = vst.msk [vmem:[#allocation2 + $0x28] sm:$0xff] (!%p244_p3), %vm333_vm2, %v880_v1  ;;  %v757_v50 = vld [vmem:[%s1066_s4] ss:$0 sm:$0xff] (!%p244_p3) }
   0xc   : > { %779 = vmatpush3.bf16.msra.mxu0 (!%p244_p3), %v848_v3 }
   0xd   : > { %801 = vmatpush3.bf16.msra.mxu1 (!%p244_p3), %v849_v4  ;;  %780 = vmatprep.subr.bf16.mxu0 (!%p244_p3), %v880_v1 }
   0xe   : > { %s1073_s28 = smov (!%p293_p4, %s292_s28), 11  ;;  %802 = vmatprep.subr.bf16.mxu1 %v880_v1 }
   0xf   : > { %s958_s10 = sshll.u32 %s1073_s28, 3  ;;  %v358_v30 = vld [vmem:[#allocation2] sm:$0xff]  ;;  %v359_v36 = vld [vmem:[#allocation2 + $0x8] sm:$0xff] }
  0x10   : > { %781 = vmatpush3.bf16.msra.mxu0 %v850_v5  ;;  %s971_s17 = scalar_lea.vmem %s1063_s1, %s958_s10  ;;  %s978_s23 = scalar_lea.vmem %s1062_s0, %s958_s10  ;;  %v360_v44 = vld [vmem:[#allocation2 + $0x10] sm:$0xff]  ;;  %v361_v51 = vld [vmem:[#allocation2 + $0x18] sm:$0xff] }
  0x11   : > { %803 = vmatpush3.bf16.msra.mxu1 %v851_v6  ;;  %782 = vmatprep.subr.bf16.mxu0 %v880_v1  ;;  %v349_v10 = vld [vmem:[%s971_s17] sm:$0xff]  ;;  %v350_v11 = vld [vmem:[%s971_s17 + $0x8] sm:$0xff]  ;;  %v351_v17 = vld [vmem:[%s971_s17 + $0x10] sm:$0xff]  ;;  %s1035_s7 = scalar_lea.vmem %s1067_s5, %s958_s10 }
  0x12   : > { %804 = vmatprep.subr.bf16.mxu1 %v880_v1  ;;  %v340_v13 = vld [vmem:[%s978_s23] sm:$0xff]  ;;  %v341_v14 = vld [vmem:[%s978_s23 + $0x8] sm:$0xff]  ;;  %v355_v15 = vpack.c.bf16 %v350_v11, %v349_v10  ;;  %v352_v18 = vld [vmem:[%s971_s17 + $0x18] sm:$0xff] }
  0x13   : > { %v346_v16 = vpack.c.bf16 %v341_v14, %v340_v13  ;;  %v342_v19 = vld [vmem:[%s978_s23 + $0x10] sm:$0xff]  ;;  %v343_v20 = vld [vmem:[%s978_s23 + $0x18] sm:$0xff]  ;;  %v356_v21 = vpack.c.bf16 %v352_v18, %v351_v17  ;;  %v353_v23 = vld [vmem:[%s971_s17 + $0x20] sm:$0xff] }
  0x14   : > { %783 = vmatpush3.bf16.msra.mxu0 %v852_v7  ;;  %v347_v22 = vpack.c.bf16 %v343_v20, %v342_v19  ;;  %v354_v24 = vld [vmem:[%s971_s17 + $0x28] sm:$0xff]  ;;  %v344_v25 = vld [vmem:[%s978_s23 + $0x20] sm:$0xff] }
  0x15   : > { %805 = vmatpush3.bf16.msra.mxu1 %v853_v8  ;;  %784 = vmatprep.subr.bf16.mxu0 %v880_v1  ;;  %v345_v26 = vld [vmem:[%s978_s23 + $0x28] sm:$0xff]  ;;  %v357_v27 = vpack.c.bf16 %v354_v24, %v353_v23  ;;  %v362_v63 = vld [vmem:[#allocation2 + $0x20] sm:$0xff] }
  0x16   : > { %806 = vmatprep.subr.bf16.mxu1 %v880_v1  ;;  %v348_v28 = vpack.c.bf16 %v345_v26, %v344_v25  ;;  %v363_v5 = vld [vmem:[#allocation2 + $0x28] sm:$0xff] }
  0x18   : > { %785 = vmatpush3.bf16.msra.mxu0 %v854_v9 }
  0x19   : > { %807 = vmatpush3.bf16.msra.mxu1 %v855_v12 }
  0x1b   : > { %787 = vmatmul.mubr.msk.bf16.vlgmr.msra.gmra.mrb[0].mxu0 %vm414_vm1, %v355_v15 }
  0x1c   : > { %809 = vmatmul.mubr.msk.bf16.vlgmr.msra.gmra.mrb[0].mxu1 %vm414_vm1, %v346_v16  ;;  %790 = vmatprep.mubr.msk.bf16.mxu0 %vm881_vm0, %v880_v1 }
  0x1d   : > { %812 = vmatprep.mubr.msk.bf16.mxu1 %vm881_vm0, %v880_v1 }
  0x23   : > { %791 = vmatmul.mubr.msk.bf16.gmra.mrb[4].mxu0 %vm414_vm1, %v356_v21 }
  0x24   : > { %813 = vmatmul.mubr.msk.bf16.gmra.mrb[4].mxu1 %vm414_vm1, %v347_v22  ;;  %794 = vmatprep.mubr.msk.bf16.mxu0 %vm881_vm0, %v880_v1 }
  0x25   : > { %816 = vmatprep.mubr.msk.bf16.mxu1 %vm881_vm0, %v880_v1 }
  0x2b   : > { %795 = vmatmul.mubr.msk.bf16.gmra.mrb[8].mxu0 %vm414_vm1, %v357_v27 }
  0x2c   : > { %817 = vmatmul.mubr.msk.bf16.gmra.mrb[8].mxu1 %vm414_vm1, %v348_v28 }
  0xee   : > { %v458_v29 = vpop.f32.mrb[0].mxu0 }
  0xef   : > { %v554_v31 = vpop.f32.mrb[0].mxu1  ;;  %v788_v32 = vpop.f32.mrb[1].mxu0 }
  0xf0   : > { %v555_v33 = vadd.f32 %v554_v31, %v458_v29  ;;  %v810_v34 = vpop.f32.mrb[1].mxu1  ;;  %v461_v35 = vpop.f32.mrb[2].mxu0 }
  0xf1   : > { %v557_v37 = vpop.f32.mrb[2].mxu1  ;;  %v789_v38 = vpop.f32.mrb[3].mxu0 }
  0xf2   : > { %v577_v39 = vadd.f32 %v555_v33, %v358_v30  ;;  %v558_v40 = vadd.f32 %v557_v37, %v461_v35  ;;  %v811_v41 = vpop.f32.mrb[3].mxu1 }
  0xf4   : > { %584 = vst.msk [vmem:[#allocation2] sm:$0xff] %vm333_vm2, %v577_v39  ;;  %v578_v42 = vadd.f32 %v558_v40, %v359_v36 }
  0xf6   : > { %585 = vst.msk [vmem:[#allocation2 + $0x8] sm:$0xff] %vm333_vm2, %v578_v42  ;;  %v466_v43 = vpop.f32.mrb[4].mxu0 }
  0xf7   : > { %v562_v45 = vpop.f32.mrb[4].mxu1  ;;  %v792_v46 = vpop.f32.mrb[5].mxu0 }
  0xf8   : > { %v563_v47 = vadd.f32 %v562_v45, %v466_v43  ;;  %v814_v48 = vpop.f32.mrb[5].mxu1  ;;  %v469_v49 = vpop.f32.mrb[6].mxu0 }
  0xf9   : > { %v565_v52 = vpop.f32.mrb[6].mxu1  ;;  %v793_v53 = vpop.f32.mrb[7].mxu0 }
  0xfa   : > { %v579_v54 = vadd.f32 %v563_v47, %v360_v44  ;;  %v566_v55 = vadd.f32 %v565_v52, %v469_v49  ;;  %v815_v56 = vpop.f32.mrb[7].mxu1 }
  0xfb   : > { %v593_v57 = vld [vmem:[#allocation2] sm:$0xff] }
  0xfc   : > { %v606_v58 = vadd.f32 %v757_v50, %v593_v57  ;;  %586 = vst.msk [vmem:[#allocation2 + $0x10] sm:$0xff] %vm333_vm2, %v579_v54  ;;  %v580_v59 = vadd.f32 %v566_v55, %v361_v51 }
  0xfd   : > { %v594_v60 = vld [vmem:[#allocation2 + $0x8] sm:$0xff] }
  0xfe   : > { %612 = vst.msk [vmem:[%s1035_s7] sm:$0xff] %vm333_vm2, %v606_v58  ;;  %v607_v61 = vadd.f32 %v757_v50, %v594_v60  ;;  %587 = vst.msk [vmem:[#allocation2 + $0x18] sm:$0xff] %vm333_vm2, %v580_v59  ;;  %v474_v62 = vpop.f32.mrb[8].mxu0 }
  0xff   : > { %v570_v0 = vpop.f32.mrb[8].mxu1  ;;  %v796_v1 = vpop.f32.mrb[9].mxu0 }
 0x100   : > { %613 = vst.msk [vmem:[%s1035_s7 + $0x8] sm:$0xff] %vm333_vm2, %v607_v61  ;;  %v571_v2 = vadd.f32 %v570_v0, %v474_v62  ;;  %v818_v3 = vpop.f32.mrb[9].mxu1  ;;  %v477_v4 = vpop.f32.mrb[10].mxu0 }
 0x101   : > { %v573_v6 = vpop.f32.mrb[10].mxu1  ;;  %v797_v7 = vpop.f32.mrb[11].mxu0 }
 0x102   : > { %v581_v8 = vadd.f32 %v571_v2, %v362_v63  ;;  %v574_v9 = vadd.f32 %v573_v6, %v477_v4  ;;  %v819_v10 = vpop.f32.mrb[11].mxu1 }
 0x103   : > { %v595_v11 = vld [vmem:[#allocation2 + $0x10] sm:$0xff] }
 0x104   : > { %v608_v12 = vadd.f32 %v757_v50, %v595_v11  ;;  %588 = vst.msk [vmem:[#allocation2 + $0x20] sm:$0xff] %vm333_vm2, %v581_v8  ;;  %v582_v13 = vadd.f32 %v574_v9, %v363_v5 }
 0x105   : > { %v596_v14 = vld [vmem:[#allocation2 + $0x18] sm:$0xff] }
 0x106   : > { %614 = vst.msk [vmem:[%s1035_s7 + $0x10] sm:$0xff] %vm333_vm2, %v608_v12  ;;  %v609_v15 = vadd.f32 %v757_v50, %v596_v14  ;;  %589 = vst.msk [vmem:[#allocation2 + $0x28] sm:$0xff] %vm333_vm2, %v582_v13 }
 0x108   : > { %615 = vst.msk [vmem:[%s1035_s7 + $0x18] sm:$0xff] %vm333_vm2, %v609_v15 }
 0x10b   : > { %v597_v16 = vld [vmem:[#allocation2 + $0x20] sm:$0xff] }
 0x10c   : > { %v610_v17 = vadd.f32 %v757_v50, %v597_v16 }
 0x10d   : > { %v598_v18 = vld [vmem:[#allocation2 + $0x28] sm:$0xff] }
 0x10e   : > { %616 = vst.msk [vmem:[%s1035_s7 + $0x20] sm:$0xff] %vm333_vm2, %v610_v17  ;;  %v611_v19 = vadd.f32 %v757_v50, %v598_v18 }
 0x110   : > { %617 = vst.msk [vmem:[%s1035_s7 + $0x28] sm:$0xff] %vm333_vm2, %v611_v19 }
 0x111 PF: > { %s15_s20 = sadd.s32 1, %s878_s20   ;;  %s1068_s18 = smov %s874_s19 }
 0x112   : > { %p12_p5 = scmp.ge.s32.totalorder %s15_s20, 4   ;;  %s1069_s19 = smov %s1071_s21 }
 0x114   :  { %14 = sbr.rel (!%p12_p5) target bundleno = 2 (0x2), region = 87 }

// kernel: dcnn_forward.19
= control target key start
LH: loop header
LB: loop body
LE: loop exit
PB: predicated region body
PF: predicated region fallthrough
CT: control target
= control target key end

     0   :  { %vm86_vm0 = vcmask 523264   ;;  %s637_s2 = inlined_call_operand.vmem [shape: bf16[64,128], index: 2, kind: input, shape index: {}]   ;;  %s638_s3 = inlined_call_operand.vmem [shape: bf16[64,128], index: 3, kind: input, shape index: {}]   ;;  %s639_s0 = inlined_call_operand.vmem [shape: f32[24,64], index: 0, kind: input, shape index: {}]   ;;  %s640_s1 = inlined_call_operand.vmem [shape: f32[24,64], index: 1, kind: input, shape index: {}]   ;;  %s641_s4 = inlined_call_operand.vmem [shape: f32[1,128], index: 4, kind: input, shape index: {}]   ;;  %s642_s6 = inlined_call_operand.vmem [shape: bf16[24,128], index: 6, kind: output, shape index: {0}]   ;;  %s643_s5 = inlined_call_operand.vmem [shape: f32[1,128], index: 5, kind: input, shape index: {}]   ;;  %s644_s7 = inlined_call_operand.vmem [shape: bf16[24,128], index: 7, kind: output, shape index: {1}]  }
   0x1   :  { %v46_v0 = vld [vmem:[%s637_s2] sm:$0xf]  ;;  %v47_v1 = vld [vmem:[%s637_s2 + $0x4] sm:$0xf]  ;;  %v48_v5 = vld [vmem:[%s637_s2 + $0x8] sm:$0xf] }
   0x2   :  { %v54_v2 = vld [vmem:[%s638_s3] sm:$0xf]  ;;  %v403_v3 = vcombine.low %v46_v0, %v47_v1  ;;  %v55_v4 = vld [vmem:[%s638_s3 + $0x4] sm:$0xf]  ;;  %v49_v6 = vld [vmem:[%s637_s2 + $0xc] sm:$0xf] }
   0x3   :  { %v409_v7 = vcombine.low %v54_v2, %v55_v4  ;;  %v404_v8 = vcombine.low %v48_v5, %v49_v6  ;;  %v56_v9 = vld [vmem:[%s638_s3 + $0x8] sm:$0xf]  ;;  %v57_v10 = vld [vmem:[%s638_s3 + $0xc] sm:$0xf]  ;;  %v50_v11 = vld [vmem:[%s637_s2 + $0x10] sm:$0xf]  ;;  %v221_v28 = vadd.bf16 %v54_v2, %v46_v0  ;;  %v222_v29 = vadd.bf16 %v55_v4, %v47_v1 }
   0x4   :  { %463 = vmatprep.subr.bf16.mxu0 %v403_v3  ;;  %v410_v12 = vcombine.low %v56_v9, %v57_v10  ;;  %v51_v13 = vld [vmem:[%s637_s2 + $0x14] sm:$0xf]  ;;  %v58_v14 = vld [vmem:[%s638_s3 + $0x10] sm:$0xf]  ;;  %v52_v17 = vld [vmem:[%s637_s2 + $0x18] sm:$0xf]  ;;  %v223_v33 = vadd.bf16 %v56_v9, %v48_v5  ;;  %v224_v34 = vadd.bf16 %v57_v10, %v49_v6 }
   0x5   :  { %v59_v15 = vld [vmem:[%s638_s3 + $0x14] sm:$0xf]  ;;  %475 = vmatprep.subr.bf16.mxu1 %v409_v7  ;;  %464 = vmatpush3.bf16.msra.mxu0 %v403_v3  ;;  %v405_v16 = vcombine.low %v50_v11, %v51_v13  ;;  %v36_v18 = vld [vmem:[%s639_s0] sm:$0xff]  ;;  %v37_v19 = vld [vmem:[%s639_s0 + $0x8] sm:$0xff]  ;;  %v415_v36 = vcombine.low %v221_v28, %v222_v29  ;;  %v225_v41 = vadd.bf16 %v58_v14, %v50_v11 }
   0x6   :  { %476 = vmatpush3.bf16.msra.mxu1 %v409_v7  ;;  %465 = vmatprep.subr.bf16.mxu0 %v404_v8  ;;  %v411_v20 = vcombine.low %v58_v14, %v59_v15  ;;  %v53_v21 = vld [vmem:[%s637_s2 + $0x1c] sm:$0xf]  ;;  %v39_v22 = vpack.c.bf16 %v37_v19, %v36_v18  ;;  %v41_v23 = vld [vmem:[%s640_s1] sm:$0xff]  ;;  %v42_v24 = vld [vmem:[%s640_s1 + $0x8] sm:$0xff]  ;;  %v416_v39 = vcombine.low %v223_v33, %v224_v34 }
   0x7   :  { %477 = vmatprep.subr.bf16.mxu1 %v410_v12  ;;  %v60_v25 = vld [vmem:[%s638_s3 + $0x18] sm:$0xf]  ;;  %v61_v26 = vld [vmem:[%s638_s3 + $0x1c] sm:$0xf]  ;;  %v44_v27 = vpack.c.bf16 %v42_v24, %v41_v23  ;;  %v406_v30 = vcombine.low %v52_v17, %v53_v21  ;;  %v38_v32 = vld [vmem:[%s639_s0 + $0x10] sm:$0xff]  ;;  %v226_v42 = vadd.bf16 %v59_v15, %v51_v13 }
   0x8   :  { %471 = vmatprep.mubr.msk.bf16.mxu0 %vm86_vm0, %v39_v22  ;;  %v412_v31 = vcombine.low %v60_v25, %v61_v26  ;;  %v43_v35 = vld [vmem:[%s640_s1 + $0x10] sm:$0xff]  ;;  %v40_v37 = vpack.c.bf16 %v38_v32, %v38_v32  ;;  %v227_v44 = vadd.bf16 %v60_v25, %v52_v17  ;;  %v228_v45 = vadd.bf16 %v61_v26, %v53_v21  ;;  %v421_v50 = vld [vmem:[%s641_s4] ss:$0 sm:$0xff] }
   0x9   :  { %466 = vmatpush3.bf16.msra.mxu0 %v404_v8  ;;  %483 = vmatprep.mubr.msk.bf16.mxu1 %vm86_vm0, %v44_v27  ;;  %v45_v38 = vpack.c.bf16 %v43_v35, %v43_v35  ;;  %v219_v40 = vadd.bf16 %v44_v27, %v39_v22  ;;  %v417_v43 = vcombine.low %v225_v41, %v226_v42  ;;  %v425_v4 = vld [vmem:[%s643_s5] ss:$0 sm:$0xff] }
   0xa   :  { %478 = vmatpush3.bf16.msra.mxu1 %v410_v12  ;;  %467 = vmatprep.subr.bf16.mxu0 %v405_v16  ;;  %v418_v46 = vcombine.low %v227_v44, %v228_v45 }
   0xb   :  { %479 = vmatprep.subr.bf16.mxu1 %v411_v20  ;;  %v220_v47 = vadd.bf16 %v45_v38, %v40_v37 }
   0xd   :  { %468 = vmatpush3.bf16.msra.mxu0 %v405_v16 }
   0xe   :  { %480 = vmatpush3.bf16.msra.mxu1 %v411_v20  ;;  %469 = vmatprep.subr.bf16.mxu0 %v406_v30 }
   0xf   :  { %481 = vmatprep.subr.bf16.mxu1 %v412_v31 }
  0x11   :  { %470 = vmatpush3.bf16.msra.mxu0 %v406_v30 }
  0x12   :  { %482 = vmatpush3.bf16.msra.mxu1 %v412_v31  ;;  %487 = vmatprep.subr.bf16.mxu0 %v415_v36 }
  0x14   :  { %472 = vmatmul.mubr.msk.bf16.vlgmr.msra.gmra.mrb[0].mxu0 %vm86_vm0, %v40_v37 }
  0x15   :  { %484 = vmatmul.mubr.msk.bf16.vlgmr.msra.gmra.mrb[0].mxu1 %vm86_vm0, %v45_v38  ;;  %488 = vmatpush3.bf16.msra.mxu0 %v415_v36 }
  0x16   :  { %489 = vmatprep.subr.bf16.mxu0 %v416_v39  ;;  %495 = vmatprep.mubr.msk.bf16.mxu0 %vm86_vm0, %v219_v40 }
  0x19   :  { %490 = vmatpush3.bf16.msra.mxu0 %v416_v39 }
  0x1a   :  { %491 = vmatprep.subr.bf16.mxu0 %v417_v43 }
  0x1d   :  { %492 = vmatpush3.bf16.msra.mxu0 %v417_v43 }
  0x1e   :  { %493 = vmatprep.subr.bf16.mxu0 %v418_v46 }
  0x21   :  { %494 = vmatpush3.bf16.msra.mxu0 %v418_v46 }
  0x24   :  { %496 = vmatmul.mubr.msk.bf16.vlgmr.msra.gmra.mrb[4].mxu0 %vm86_vm0, %v220_v47 }
  0xe7   :  { %v473_v48 = vpop.f32.mrb[0].mxu0 }
  0xe8   :  { %v485_v49 = vpop.f32.mrb[0].mxu1  ;;  %v127_v51 = vpop.f32.mrb[1].mxu0 }
  0xe9   :  { %v312_v52 = vsub.f32 %v473_v48, %v485_v49  ;;  %v205_v53 = vpop.f32.mrb[1].mxu1  ;;  %v474_v54 = vpop.f32.mrb[2].mxu0 }
  0xea   :  { %v310_v55 = vsub.f32 %v127_v51, %v205_v53  ;;  %v486_v56 = vpop.f32.mrb[2].mxu1  ;;  %v130_v57 = vpop.f32.mrb[3].mxu0 }
  0xeb   :  { %v349_v58 = vadd.f32 %v421_v50, %v312_v52  ;;  %v208_v59 = vpop.f32.mrb[3].mxu1 }
  0xec   :  { %v311_v60 = vsub.f32 %v130_v57, %v208_v59  ;;  %v347_v62 = vadd.f32 %v421_v50, %v310_v55 }
  0xed   :  { %v431_v61 = vpack.c.bf16 %v349_v58, %v349_v58 }
  0xee   :  { %v348_v63 = vadd.f32 %v421_v50, %v311_v60 }
  0xef   :  { %365 = vst [vmem:[%s642_s6 + $0x8] sm:$0xf] %v431_v61 }
  0xf0   :  { %v438_v0 = vpack.c.bf16 %v348_v63, %v347_v62 }
  0xf2   :  { %439 = vst [vmem:[%s642_s6] sm:$0xff] %v438_v0  }
  0xf7   :  { %v497_v1 = vpop.f32.mrb[4].mxu0 }
  0xf8   :  { %v324_v2 = vsub.f32 %v497_v1, %v473_v48  ;;  %v293_v3 = vpop.f32.mrb[5].mxu0 }
  0xf9   :  { %v322_v5 = vsub.f32 %v293_v3, %v127_v51  ;;  %v498_v6 = vpop.f32.mrb[6].mxu0 }
  0xfa   :  { %v327_v7 = vsub.f32 %v324_v2, %v485_v49  ;;  %v296_v8 = vpop.f32.mrb[7].mxu0 }
  0xfb   :  { %v325_v9 = vsub.f32 %v322_v5, %v205_v53  ;;  %v323_v10 = vsub.f32 %v296_v8, %v130_v57 }
  0xfc   :  { %v378_v11 = vadd.f32 %v425_v4, %v327_v7 }
  0xfd   :  { %v326_v12 = vsub.f32 %v323_v10, %v208_v59  ;;  %v376_v14 = vadd.f32 %v425_v4, %v325_v9 }
  0xfe   :  { %v434_v13 = vpack.c.bf16 %v378_v11, %v378_v11 }
  0xff   :  { %v377_v15 = vadd.f32 %v425_v4, %v326_v12 }
 0x100   :  { %394 = vst [vmem:[%s644_s7 + $0x8] sm:$0xf] %v434_v13 }
 0x101   :  { %v443_v16 = vpack.c.bf16 %v377_v15, %v376_v14 }
 0x103   :  { %444 = vst [vmem:[%s644_s7] sm:$0xff] %v443_v16  }

// kernel: dcnn_forward.22
= control target key start
LH: loop header
LB: loop body
LE: loop exit
PB: predicated region body
PF: predicated region fallthrough
CT: control target
= control target key end

     0   :  { %s975_s2 = inlined_call_operand.vmem [shape: bf16[128,128], index: 2, kind: input, shape index: {}]   ;;  %s976_s3 = inlined_call_operand.vmem [shape: bf16[128,128], index: 3, kind: input, shape index: {}]   ;;  %s977_s0 = inlined_call_operand.vmem [shape: bf16[24,128], index: 0, kind: input, shape index: {}]   ;;  %s978_s1 = inlined_call_operand.vmem [shape: bf16[24,128], index: 1, kind: input, shape index: {}]   ;;  %s979_s4 = inlined_call_operand.vmem [shape: f32[1,128], index: 4, kind: input, shape index: {}]   ;;  %s980_s6 = inlined_call_operand.vmem [shape: bf16[24,128], index: 6, kind: output, shape index: {0}]   ;;  %s981_s5 = inlined_call_operand.vmem [shape: f32[1,128], index: 5, kind: input, shape index: {}]   ;;  %s982_s7 = inlined_call_operand.vmem [shape: bf16[24,128], index: 7, kind: output, shape index: {1}]  }
   0x1   :  { %v714_v0 = vld [vmem:[%s975_s2] sm:$0xf]  ;;  %v719_v1 = vld [vmem:[%s975_s2 + $0x4] sm:$0xf]  ;;  %v736_v5 = vld [vmem:[%s975_s2 + $0x8] sm:$0xf] }
   0x2   :  { %v724_v2 = vld [vmem:[%s976_s3] sm:$0xf]  ;;  %v509_v3 = vcombine.low %v714_v0, %v719_v1  ;;  %v731_v4 = vld [vmem:[%s976_s3 + $0x4] sm:$0xf]  ;;  %v741_v6 = vld [vmem:[%s975_s2 + $0xc] sm:$0xf] }
   0x3   :  { %v519_v7 = vcombine.low %v724_v2, %v731_v4  ;;  %v510_v8 = vcombine.low %v736_v5, %v741_v6  ;;  %v750_v9 = vld [vmem:[%s976_s3 + $0x8] sm:$0xf]  ;;  %v755_v10 = vld [vmem:[%s976_s3 + $0xc] sm:$0xf]  ;;  %v760_v11 = vld [vmem:[%s975_s2 + $0x10] sm:$0xf]  ;;  %v289_v52 = vadd.bf16 %v724_v2, %v714_v0  ;;  %v290_v53 = vadd.bf16 %v731_v4, %v719_v1 }
   0x4   :  { %591 = vmatprep.subr.bf16.mxu0 %v509_v3  ;;  %v520_v12 = vcombine.low %v750_v9, %v755_v10  ;;  %v767_v13 = vld [vmem:[%s975_s2 + $0x14] sm:$0xf]  ;;  %v772_v14 = vld [vmem:[%s976_s3 + $0x10] sm:$0xf]  ;;  %v786_v18 = vld [vmem:[%s975_s2 + $0x18] sm:$0xf]  ;;  %v291_v57 = vadd.bf16 %v750_v9, %v736_v5  ;;  %v292_v58 = vadd.bf16 %v755_v10, %v741_v6 }
   0x5   :  { %v777_v15 = vld [vmem:[%s976_s3 + $0x14] sm:$0xf]  ;;  %611 = vmatprep.subr.bf16.mxu1 %v519_v7  ;;  %592 = vmatpush3.bf16.msra.mxu0 %v509_v3  ;;  %v511_v16 = vcombine.low %v760_v11, %v767_v13  ;;  %v791_v19 = vld [vmem:[%s975_s2 + $0x1c] sm:$0xf]  ;;  %v796_v20 = vld [vmem:[%s976_s3 + $0x18] sm:$0xf]  ;;  %v529_v62 = vcombine.low %v289_v52, %v290_v53  ;;  %v293_v2 = vadd.bf16 %v772_v14, %v760_v11 }
   0x6   :  { %612 = vmatpush3.bf16.msra.mxu1 %v519_v7  ;;  %593 = vmatprep.subr.bf16.mxu0 %v510_v8  ;;  %v521_v17 = vcombine.low %v772_v14, %v777_v15  ;;  %v801_v21 = vld [vmem:[%s976_s3 + $0x1c] sm:$0xf]  ;;  %v512_v22 = vcombine.low %v786_v18, %v791_v19  ;;  %v808_v23 = vld [vmem:[%s975_s2 + $0x20] sm:$0xf]  ;;  %v813_v24 = vld [vmem:[%s975_s2 + $0x24] sm:$0xf]  ;;  %v530_v1 = vcombine.low %v291_v57, %v292_v58 }
   0x7   :  { %613 = vmatprep.subr.bf16.mxu1 %v520_v12  ;;  %v522_v25 = vcombine.low %v796_v20, %v801_v21  ;;  %v820_v26 = vld [vmem:[%s976_s3 + $0x20] sm:$0xf]  ;;  %v825_v27 = vld [vmem:[%s976_s3 + $0x24] sm:$0xf]  ;;  %v513_v34 = vcombine.low %v808_v23, %v813_v24  ;;  %v858_v36 = vld [vmem:[%s975_s2 + $0x28] sm:$0xf]  ;;  %v294_v3 = vadd.bf16 %v777_v15, %v767_v13  ;;  %v295_v6 = vadd.bf16 %v796_v20, %v786_v18 }
   0x8   :  { %v830_v28 = vld [vmem:[%s977_s0] sm:$0xf]  ;;  %v835_v29 = vld [vmem:[%s977_s0 + $0x4] sm:$0xf]  ;;  %v523_v35 = vcombine.low %v820_v26, %v825_v27  ;;  %v863_v37 = vld [vmem:[%s975_s2 + $0x2c] sm:$0xf]  ;;  %v296_v7 = vadd.bf16 %v801_v21, %v791_v19  ;;  %v297_v9 = vadd.bf16 %v820_v26, %v808_v23  ;;  %v298_v10 = vadd.bf16 %v825_v27, %v813_v24 }
   0x9   :  { %594 = vmatpush3.bf16.msra.mxu0 %v510_v8  ;;  %v840_v30 = vld [vmem:[%s978_s1] sm:$0xf]  ;;  %v845_v31 = vld [vmem:[%s978_s1 + $0x4] sm:$0xf]  ;;  %v507_v32 = vcombine.low %v830_v28, %v835_v29  ;;  %v868_v38 = vld [vmem:[%s976_s3 + $0x28] sm:$0xf]  ;;  %v514_v40 = vcombine.low %v858_v36, %v863_v37  ;;  %v531_v5 = vcombine.low %v293_v2, %v294_v3 }
   0xa   :  { %614 = vmatpush3.bf16.msra.mxu1 %v520_v12  ;;  %595 = vmatprep.subr.bf16.mxu0 %v511_v16  ;;  %v517_v33 = vcombine.low %v840_v30, %v845_v31  ;;  %v873_v39 = vld [vmem:[%s976_s3 + $0x2c] sm:$0xf]  ;;  %v882_v42 = vld [vmem:[%s975_s2 + $0x30] sm:$0xf]  ;;  %v887_v43 = vld [vmem:[%s975_s2 + $0x34] sm:$0xf]  ;;  %v286_v59 = vadd.bf16 %v840_v30, %v830_v28  ;;  %v287_v60 = vadd.bf16 %v845_v31, %v835_v29 }
   0xb   :  { %615 = vmatprep.subr.bf16.mxu1 %v521_v17  ;;  %607 = vmatprep.mubr.bf16.mxu0 %v507_v32  ;;  %v524_v41 = vcombine.low %v868_v38, %v873_v39  ;;  %v892_v44 = vld [vmem:[%s976_s3 + $0x30] sm:$0xf]  ;;  %v897_v45 = vld [vmem:[%s976_s3 + $0x34] sm:$0xf]  ;;  %v515_v46 = vcombine.low %v882_v42, %v887_v43  ;;  %v906_v48 = vld [vmem:[%s975_s2 + $0x38] sm:$0xf]  ;;  %v532_v8 = vcombine.low %v295_v6, %v296_v7 }
   0xc   :  { %627 = vmatprep.mubr.bf16.mxu1 %v517_v33  ;;  %v525_v47 = vcombine.low %v892_v44, %v897_v45  ;;  %v57_v49 = vld [vmem:[%s975_s2 + $0x3c] sm:$0xf]  ;;  %v72_v50 = vld [vmem:[%s976_s3 + $0x38] sm:$0xf]  ;;  %v38_v56 = vld [vmem:[%s977_s0 + $0x8] sm:$0xf]  ;;  %v527_v4 = vcombine.low %v286_v59, %v287_v60  ;;  %v533_v11 = vcombine.low %v297_v9, %v298_v10  ;;  %v299_v12 = vadd.bf16 %v868_v38, %v858_v36 }
   0xd   :  { %596 = vmatpush3.bf16.msra.mxu0 %v511_v16  ;;  %v73_v51 = vld [vmem:[%s976_s3 + $0x3c] sm:$0xf]  ;;  %v516_v54 = vcombine.low %v906_v48, %v57_v49  ;;  %v41_v61 = vld [vmem:[%s978_s1 + $0x8] sm:$0xf]  ;;  %v508_v63 = vcombine.low %v38_v56, %v38_v56  ;;  %v300_v13 = vadd.bf16 %v873_v39, %v863_v37  ;;  %v301_v15 = vadd.bf16 %v892_v44, %v882_v42 }
   0xe   :  { %616 = vmatpush3.bf16.msra.mxu1 %v521_v17  ;;  %597 = vmatprep.subr.bf16.mxu0 %v512_v22  ;;  %v526_v55 = vcombine.low %v72_v50, %v73_v51  ;;  %v518_v0 = vcombine.low %v41_v61, %v41_v61  ;;  %v302_v16 = vadd.bf16 %v897_v45, %v887_v43  ;;  %v541_v43 = vld [vmem:[%s981_s5] ss:$0 sm:$0xff] }
   0xf   :  { %617 = vmatprep.subr.bf16.mxu1 %v522_v25  ;;  %v534_v14 = vcombine.low %v299_v12, %v300_v13  ;;  %v303_v18 = vadd.bf16 %v72_v50, %v906_v48  ;;  %v304_v19 = vadd.bf16 %v73_v51, %v57_v49  ;;  %v288_v21 = vadd.bf16 %v41_v61, %v38_v56 }
  0x10   :  { %v535_v17 = vcombine.low %v301_v15, %v302_v16 }
  0x11   :  { %598 = vmatpush3.bf16.msra.mxu0 %v512_v22  ;;  %v536_v20 = vcombine.low %v303_v18, %v304_v19  ;;  %v528_v22 = vcombine.low %v288_v21, %v288_v21 }
  0x12   :  { %618 = vmatpush3.bf16.msra.mxu1 %v522_v25  ;;  %599 = vmatprep.subr.bf16.mxu0 %v513_v34  ;;  %v537_v25 = vld [vmem:[%s979_s4] ss:$0 sm:$0xff] }
  0x13   :  { %619 = vmatprep.subr.bf16.mxu1 %v523_v35 }
  0x15   :  { %600 = vmatpush3.bf16.msra.mxu0 %v513_v34 }
  0x16   :  { %620 = vmatpush3.bf16.msra.mxu1 %v523_v35  ;;  %601 = vmatprep.subr.bf16.mxu0 %v514_v40 }
  0x17   :  { %621 = vmatprep.subr.bf16.mxu1 %v524_v41 }
  0x19   :  { %602 = vmatpush3.bf16.msra.mxu0 %v514_v40 }
  0x1a   :  { %622 = vmatpush3.bf16.msra.mxu1 %v524_v41  ;;  %603 = vmatprep.subr.bf16.mxu0 %v515_v46 }
  0x1b   :  { %623 = vmatprep.subr.bf16.mxu1 %v525_v47 }
  0x1d   :  { %604 = vmatpush3.bf16.msra.mxu0 %v515_v46 }
  0x1e   :  { %624 = vmatpush3.bf16.msra.mxu1 %v525_v47  ;;  %605 = vmatprep.subr.bf16.mxu0 %v516_v54 }
  0x1f   :  { %625 = vmatprep.subr.bf16.mxu1 %v526_v55 }
  0x21   :  { %606 = vmatpush3.bf16.msra.mxu0 %v516_v54 }
  0x22   :  { %626 = vmatpush3.bf16.msra.mxu1 %v526_v55  ;;  %631 = vmatprep.subr.bf16.mxu0 %v529_v62 }
  0x24   :  { %608 = vmatmul.mubr.bf16.vlgmr.msra.gmra.mrb[0].mxu0 %v508_v63 }
  0x25   :  { %628 = vmatmul.mubr.bf16.vlgmr.msra.gmra.mrb[0].mxu1 %v518_v0  ;;  %632 = vmatpush3.bf16.msra.mxu0 %v529_v62 }
  0x26   :  { %633 = vmatprep.subr.bf16.mxu0 %v530_v1  ;;  %647 = vmatprep.mubr.bf16.mxu0 %v527_v4 }
  0x29   :  { %634 = vmatpush3.bf16.msra.mxu0 %v530_v1 }
  0x2a   :  { %635 = vmatprep.subr.bf16.mxu0 %v531_v5 }
  0x2d   :  { %636 = vmatpush3.bf16.msra.mxu0 %v531_v5 }
  0x2e   :  { %637 = vmatprep.subr.bf16.mxu0 %v532_v8 }
  0x31   :  { %638 = vmatpush3.bf16.msra.mxu0 %v532_v8 }
  0x32   :  { %639 = vmatprep.subr.bf16.mxu0 %v533_v11 }
  0x35   :  { %640 = vmatpush3.bf16.msra.mxu0 %v533_v11 }
  0x36   :  { %641 = vmatprep.subr.bf16.mxu0 %v534_v14 }
  0x39   :  { %642 = vmatpush3.bf16.msra.mxu0 %v534_v14 }
  0x3a   :  { %643 = vmatprep.subr.bf16.mxu0 %v535_v17 }
  0x3d   :  { %644 = vmatpush3.bf16.msra.mxu0 %v535_v17 }
  0x3e   :  { %645 = vmatprep.subr.bf16.mxu0 %v536_v20 }
  0x41   :  { %646 = vmatpush3.bf16.msra.mxu0 %v536_v20 }
  0x44   :  { %648 = vmatmul.mubr.bf16.vlgmr.msra.gmra.mrb[4].mxu0 %v528_v22 }
  0xf7   :  { %v609_v23 = vpop.f32.mrb[0].mxu0 }
  0xf8   :  { %v629_v24 = vpop.f32.mrb[0].mxu1  ;;  %v166_v26 = vpop.f32.mrb[1].mxu0 }
  0xf9   :  { %v416_v27 = vsub.f32 %v609_v23, %v629_v24  ;;  %v272_v28 = vpop.f32.mrb[1].mxu1  ;;  %v610_v29 = vpop.f32.mrb[2].mxu0 }
  0xfa   :  { %v414_v30 = vsub.f32 %v166_v26, %v272_v28  ;;  %v630_v31 = vpop.f32.mrb[2].mxu1  ;;  %v169_v32 = vpop.f32.mrb[3].mxu0 }
  0xfb   :  { %v453_v33 = vadd.f32 %v537_v25, %v416_v27  ;;  %v275_v34 = vpop.f32.mrb[3].mxu1 }
  0xfc   :  { %v415_v35 = vsub.f32 %v169_v32, %v275_v34  ;;  %v451_v37 = vadd.f32 %v537_v25, %v414_v30 }
  0xfd   :  { %v547_v36 = vpack.c.bf16 %v453_v33, %v453_v33 }
  0xfe   :  { %v452_v38 = vadd.f32 %v537_v25, %v415_v35 }
  0xff   :  { %469 = vst [vmem:[%s980_s6 + $0x8] sm:$0xf] %v547_v36 }
 0x100   :  { %v554_v39 = vpack.c.bf16 %v452_v38, %v451_v37 }
 0x102   :  { %555 = vst [vmem:[%s980_s6] sm:$0xff] %v554_v39  }
 0x117   :  { %v649_v40 = vpop.f32.mrb[4].mxu0 }
 0x118   :  { %v428_v41 = vsub.f32 %v649_v40, %v609_v23  ;;  %v397_v42 = vpop.f32.mrb[5].mxu0 }
 0x119   :  { %v426_v44 = vsub.f32 %v397_v42, %v166_v26  ;;  %v650_v45 = vpop.f32.mrb[6].mxu0 }
 0x11a   :  { %v431_v46 = vsub.f32 %v428_v41, %v629_v24  ;;  %v400_v47 = vpop.f32.mrb[7].mxu0 }
 0x11b   :  { %v429_v48 = vsub.f32 %v426_v44, %v272_v28  ;;  %v427_v49 = vsub.f32 %v400_v47, %v169_v32 }
 0x11c   :  { %v482_v50 = vadd.f32 %v541_v43, %v431_v46 }
 0x11d   :  { %v430_v51 = vsub.f32 %v427_v49, %v275_v34  ;;  %v480_v53 = vadd.f32 %v541_v43, %v429_v48 }
 0x11e   :  { %v550_v52 = vpack.c.bf16 %v482_v50, %v482_v50 }
 0x11f   :  { %v481_v54 = vadd.f32 %v541_v43, %v430_v51 }
 0x120   :  { %498 = vst [vmem:[%s982_s7 + $0x8] sm:$0xf] %v550_v52 }
 0x121   :  { %v559_v55 = vpack.c.bf16 %v481_v54, %v480_v53 }
 0x123   :  { %560 = vst [vmem:[%s982_s7] sm:$0xff] %v559_v55  }

// kernel: neg.14
= control target key start
LH: loop header
LB: loop body
LE: loop exit
PB: predicated region body
PF: predicated region fallthrough
CT: control target
= control target key end

     0   :  { %s155_s0 = inlined_call_operand.vmem [shape: f32[128,64], index: 0, kind: input, shape index: {}]   ;;  %s156_s1 = inlined_call_operand.vmem [shape: bf16[128,64], index: 1, kind: output, shape index: {}]  }
   0x1   :  { %v2_v0 = vld [vmem:[%s155_s0] sm:$0xff]  ;;  %v72_v1 = vld [vmem:[%s155_s0 + $0x8] sm:$0xff]  ;;  %v74_v2 = vld [vmem:[%s155_s0 + $0x10] sm:$0xff] }
   0x2   :  { %v5_v3 = vxor.u32 2147483648, %v2_v0  ;;  %v13_v4 = vxor.u32 2147483648, %v72_v1  ;;  %v22_v5 = vxor.u32 2147483648, %v74_v2  ;;  %v76_v6 = vld [vmem:[%s155_s0 + $0x18] sm:$0xff]  ;;  %v78_v7 = vld [vmem:[%s155_s0 + $0x20] sm:$0xff]  ;;  %v80_v8 = vld [vmem:[%s155_s0 + $0x28] sm:$0xff] }
   0x3   :  { %v31_v9 = vxor.u32 2147483648, %v76_v6  ;;  %v40_v10 = vxor.u32 2147483648, %v78_v7  ;;  %v49_v11 = vxor.u32 2147483648, %v80_v8  ;;  %v82_v12 = vld [vmem:[%s155_s0 + $0x30] sm:$0xff]  ;;  %v84_v13 = vld [vmem:[%s155_s0 + $0x38] sm:$0xff] }
   0x4   :  { %v89_v14 = vpack.c.bf16 %v13_v4, %v5_v3  ;;  %v58_v15 = vxor.u32 2147483648, %v82_v12  ;;  %v67_v16 = vxor.u32 2147483648, %v84_v13 }
   0x5   :  { %v94_v17 = vpack.c.bf16 %v31_v9, %v22_v5  ;;  %v99_v18 = vpack.c.bf16 %v49_v11, %v40_v10 }
   0x6   :  { %90 = vst [vmem:[%s156_s1] sm:$0xff] %v89_v14   ;;  %v104_v19 = vpack.c.bf16 %v67_v16, %v58_v15 }
   0x7   :  { %106 = vst [vmem:[%s156_s1 + $0x8] sm:$0xff] %v94_v17   ;;  %107 = vst [vmem:[%s156_s1 + $0x10] sm:$0xff] %v99_v18  }
   0x8   :  { %108 = vst [vmem:[%s156_s1 + $0x18] sm:$0xff] %v104_v19  }

// kernel: dcnn_forward.23
= control target key start
LH: loop header
LB: loop body
LE: loop exit
PB: predicated region body
PF: predicated region fallthrough
CT: control target
= control target key end

     0   :  { %s1884_s24 = smov 0   ;;  %s2085_s0 = inlined_call_operand.vmem [shape: bf16[2,12,128], index: 0, kind: input, shape index: {}]   ;;  %s2086_s1 = inlined_call_operand.vmem [shape: bf16[2,12,128], index: 1, kind: input, shape index: {}]   ;;  %s2087_s2 = inlined_call_operand.vmem [shape: bf16[2,12,128], index: 2, kind: input, shape index: {}]   ;;  %s2088_s3 = inlined_call_operand.vmem [shape: bf16[2,12,128], index: 3, kind: input, shape index: {}]   ;;  %s2089_s4 = inlined_call_operand.vmem [shape: bf16[2,12,128], index: 4, kind: input, shape index: {}]   ;;  %s2090_s5 = inlined_call_operand.vmem [shape: bf16[2,12,128], index: 5, kind: input, shape index: {}]   ;;  %s2091_s6 = inlined_call_operand.vmem [shape: bf16[2,12,128], index: 6, kind: output, shape index: {0}]   ;;  %s2092_s7 = inlined_call_operand.vmem [shape: bf16[2,12,128], index: 7, kind: output, shape index: {1}]  }
   0x1 LB: > { %s1545_s25 = sadd.s32 4294967295, %s1837_s24   ;;  %p1549_p0 = scmp.ge.s32.totalorder %s1837_s24, 1  ;;  %s1837_s24 = sphi %s1884_s24, %s18_s24  }
   0x2   : > { %p290_p1 = scmp.lt.s32.totalorder %s1837_s24, 3 }
   0x4   : > { %p291_p2 = pnand %p1549_p0, %p290_p1 }
   0x5   : > { %p352_p3 = scmp.lt.s32.totalorder (!%p291_p2), %s1545_s25, 1  ;;  %v1839_v0 = vmov (!%p291_p2), 0.0   ;;  %vm1840_vm0 = vmmov (!%p291_p2), 0   ;;  %vm415_vm1 = vcmask (!%p291_p2), 261120   ;;  %vm522_vm2 = vcmask (!%p291_p2), 97280   ;;  %s1841_s16 = smov (!%p291_p2), 96  }
   0x6   : > { %294 = sbr.rel (%p291_p2) target bundleno = 1556 (0x614), region = 44  ;;  %1638 = vmatprep.subr.bf16.mxu0 (!%p291_p2), %v1839_v0  ;;  %1640 = vmatprep.mubr.msk.bf16.mxu0 (!%p291_p2), %vm1840_vm0, %v1839_v0  ;;  %vm526_vm3 = vcmask (!%p291_p2), 93184   ;;  %s1842_s17 = smov (!%p291_p2), 64   ;;  %vm555_vm4 = vcmask (!%p291_p2), 1045504   ;;  %vm1341_vm5 = vcmask (!%p291_p2), 523264   ;;  %vm1344_vm6 = vcmask (!%p291_p2), 785408  }
   0x7   : > { %1650 = vmatprep.subr.bf16.mxu1 (!%p291_p2), %v1839_v0  ;;  %1652 = vmatprep.mubr.msk.bf16.mxu1 (!%p291_p2), %vm1840_vm0, %v1839_v0  ;;  %s1843_s18 = smov (!%p291_p2), 32  }
   0xd   : > { %s2094_s25 = smov (!%p352_p3, %s1545_s25), 1 }
   0xe   : > { %s1898_s26 = sshll.u32 %s2094_s25, 3 }
   0xf   : > { %s371_s29 = scalar_lea.vmem %s2088_s3, %s1898_s26  ;;  %s361_s9 = scalar_lea.vmem %s2086_s1, %s1898_s26 }
  0x10   : > { %v1793_v1 = vld [vmem:[%s371_s29] sm:$0x3f]   ;;  %s366_s12 = scalar_lea.vmem %s2087_s2, %s1898_s26  ;;  %s356_s15 = scalar_lea.vmem %s2085_s0, %s1898_s26 }
  0x11   : > { %v420_v2 = vsel %vm415_vm1, %v1793_v1, 0  ;;  %v1795_v3 = vld [vmem:[%s366_s12] sm:$0x3f]   ;;  %s376_s21 = scalar_lea.vmem %s2089_s4, %s1898_s26  ;;  %s381_s25 = scalar_lea.vmem %s2090_s5, %s1898_s26 }
  0x12   : > { %1639 = vmatpush3.bf16.xpose.msra.mxu0 %v420_v2  ;;  %v1794_v4 = vld [vmem:[%s361_s9] sm:$0x3f]   ;;  %v477_v5 = vsel %vm415_vm1, %v1795_v3, 0  ;;  %s386_s29 = scalar_lea.vmem %s2091_s6, %s1898_s26  ;;  %s391_s9 = scalar_lea.vmem %s2092_s7, %s1898_s26 }
  0x13   : > { %1644 = vmatprep.subr.bf16.mxu0 %v1839_v0  ;;  %v1796_v6 = vld [vmem:[%s356_s15] sm:$0x3f]  }
  0x14   : > { %v1939_v25 = vld [vmem:[%s376_s21] sm:$0x3f]  }
  0x15   : > { %v557_v26 = vsel %vm555_vm4, %v1939_v25, 0  ;;  %v1955_v30 = vld [vmem:[%s381_s25] sm:$0x3f]  }
  0x16   : > { %1651 = vmatpush3.bf16.msra.mxu1 %v557_v26  ;;  %v606_v35 = vsel %vm555_vm4, %v1955_v30, 0 }
  0x17   : > { %1656 = vmatprep.subr.bf16.mxu1 %v1839_v0 }
  0x19   : > { %1641 = vmatmul.mubr.msk.bf16.vlgmr.msra.gmra.mrb[0].mxu0 %vm415_vm1, %v1794_v4 }
  0x1a   : > { %1645 = vmatpush3.bf16.xpose.msra.mxu0 %v477_v5  ;;  %1646 = vmatprep.mubr.msk.bf16.mxu0 %vm1840_vm0, %v1839_v0 }
  0x1b   : > { %1674 = vmatprep.subr.bf16.mxu0 %v1839_v0 }
  0x25   : > { %1647 = vmatmul.mubr.msk.bf16.vlgmr.msra.gmra.mrb[0].mxu0 %vm415_vm1, %v1796_v6 }
  0x26   : > { %1676 = vmatprep.mubr.msk.bf16.mxu0 %vm1840_vm0, %v1839_v0 }
  0xf8   : > { %v513_v7 = vpop.f32.mrb[0].mxu0 }
  0xf9   : > { %v520_v8 = vmul.f32 0.17677669, %v513_v7  ;;  %v1648_v9 = vpop.f32.mrb[1].mxu0 }
  0xfa   : > { %v516_v10 = vpop.f32.mrb[2].mxu0 }
  0xfb   : > { %v521_v11 = vmul.f32 0.17677669, %v516_v10  ;;  %v1649_v12 = vpop.f32.mrb[3].mxu0  ;;  %v523_v13 = vsel %vm522_vm2, %v520_v8, -inf }
  0xfc   : > { %524 = vmax.xlane.f32.xlu0 %v523_v13 }
  0xfd   : > { %v527_v14 = vsel %vm526_vm3, %v521_v11, -inf }
 0x100   : > { %528 = vmax.xlane.f32.xlu0 %v527_v14 }
 0x116   : > { %651 = vrot.lane.b32.xlu0 %v1793_v1, %s1841_s16 }
 0x11a   : > { %873 = vrot.lane.b32.xlu0 %v1793_v1, %s1842_s17 }
 0x11e   : > { %924 = vrot.lane.b32.xlu0 %v1795_v3, %s1842_s17 }
 0x122   : > { %1095 = vrot.lane.b32.xlu0 %v1793_v1, %s1843_s18 }
 0x126   : > { %1146 = vrot.lane.b32.xlu0 %v1795_v3, %s1843_s18 }
 0x189   : > { %v525_v15 = vpop.xlane.xlu0 %524 }
 0x18a   : > { %v530_v16 = vsub.f32 %v520_v8, %v525_v15 }
 0x18c   : > { %v532_v17 = vmul.f32 1.442695, %v530_v16 }
 0x18d   : > { %v529_v18 = vpop.xlane.xlu0 %528 }
 0x18e   : > { %1799 = vpow2.f32 %v532_v17  ;;  %v531_v19 = vsub.f32 %v521_v11, %v529_v18 }
 0x190   : > { %v534_v20 = vmul.f32 1.442695, %v531_v19 }
 0x191   : > { %v652_v36 = vpop.permute.xlu0 %651 }
 0x192   : > { %1801 = vpow2.f32 %v534_v20  ;;  %v657_v38 = vsel %vm415_vm1, %v652_v36, 0 }
 0x195   : > { %v874_v41 = vpop.permute.xlu0 %873 }
 0x196   : > { %v879_v43 = vsel %vm415_vm1, %v874_v41, 0 }
 0x198   : > { %v1800_v21 = vpop.eup %1799 }
 0x199   : > { %v536_v22 = vsel %vm522_vm2, %v1800_v21, 0.0  ;;  %v925_v44 = vpop.permute.xlu0 %924 }
 0x19a   : > { %537 = vadd.xlane.f32.xlu1 %v536_v22  ;;  %v930_v46 = vsel %vm415_vm1, %v925_v44, 0 }
 0x19c   : > { %v1802_v23 = vpop.eup %1801 }
 0x19d   : > { %v539_v24 = vsel %vm526_vm3, %v1802_v23, 0.0  ;;  %v1096_v47 = vpop.permute.xlu0 %1095 }
 0x19e   : > { %540 = vadd.xlane.f32.xlu1 %v539_v24  ;;  %v1101_v49 = vsel %vm415_vm1, %v1096_v47, 0 }
 0x1a1   : > { %v1147_v50 = vpop.permute.xlu0 %1146 }
 0x1a2   : > { %v1152_v52 = vsel %vm415_vm1, %v1147_v50, 0 }
 0x1af   : > { %649 = vrot.lane.b32.xlu1 %v1794_v4, %s1841_s16 }
 0x1b3   : > { %702 = vrot.lane.b32.xlu1 %v1795_v3, %s1841_s16 }
 0x1b7   : > { %700 = vrot.lane.b32.xlu1 %v1796_v6, %s1841_s16 }
 0x1bb   : > { %871 = vrot.lane.b32.xlu1 %v1794_v4, %s1842_s17 }
 0x1bf   : > { %922 = vrot.lane.b32.xlu1 %v1796_v6, %s1842_s17 }
 0x1c3   : > { %1093 = vrot.lane.b32.xlu1 %v1794_v4, %s1843_s18 }
 0x1c7   : > { %1144 = vrot.lane.b32.xlu1 %v1796_v6, %s1843_s18 }
 0x227   : > { %v538_v27 = vpop.xlane.xlu1 %537 }
 0x228   : > { %1803 = vrcp.f32 %v538_v27 }
 0x22b   : > { %v541_v28 = vpop.xlane.xlu1 %540 }
 0x22c   : > { %1805 = vrcp.f32 %v541_v28 }
 0x22f   : > { %v650_v37 = vpop.permute.xlu1 %649 }
 0x232   : > { %v1804_v29 = vpop.eup %1803 }
 0x233   : > { %v544_v32 = vmul.f32 %v1804_v29, %v1800_v21  ;;  %v703_v39 = vpop.permute.xlu1 %702 }
 0x234   : > { %v708_v40 = vsel %vm415_vm1, %v703_v39, 0 }
 0x236   : > { %v1806_v31 = vpop.eup %1805 }
 0x237   : > { %v545_v33 = vmul.f32 %v1806_v31, %v1802_v23  ;;  %v701_v42 = vpop.permute.xlu1 %700 }
 0x239   : > { %v546_v34 = vpack.c.bf16 %v545_v33, %v544_v32 }
 0x23b   : > { %1653 = vmatmul.mubr.msk.bf16.vlgmr.msra.gmra.mrb[0].mxu1 %vm522_vm2, %v546_v34  ;;  %v872_v45 = vpop.permute.xlu1 %871 }
 0x23c   : > { %1657 = vmatpush3.bf16.msra.mxu1 %v606_v35  ;;  %1658 = vmatprep.mubr.msk.bf16.mxu1 %vm1840_vm0, %v1839_v0 }
 0x23d   : > { %1662 = vmatprep.subr.bf16.mxu1 %v1839_v0 }
 0x23f   : > { %v923_v48 = vpop.permute.xlu1 %922 }
 0x243   : > { %1659 = vmatmul.mubr.msk.bf16.vlgmr.msra.gmra.mrb[4].mxu1 %vm522_vm2, %v546_v34  ;;  %v1094_v51 = vpop.permute.xlu1 %1093 }
 0x244   : > { %1664 = vmatprep.mubr.msk.bf16.mxu1 %vm1840_vm0, %v1839_v0 }
 0x245   : > { %1663 = vmatpush3.bf16.xpose.msra.mxu1 %v657_v38 }
 0x246   : > { %1668 = vmatprep.subr.bf16.mxu1 %v1839_v0 }
 0x247   : > { %v1145_v53 = vpop.permute.xlu1 %1144 }
 0x24c   : > { %1665 = vmatmul.mubr.msk.bf16.vlgmr.msra.gmra.mrb[8].mxu1 %vm415_vm1, %v650_v37 }
 0x24d   : > { %1669 = vmatpush3.bf16.xpose.msra.mxu1 %v708_v40  ;;  %1670 = vmatprep.mubr.msk.bf16.mxu1 %vm1840_vm0, %v1839_v0 }
 0x24e   : > { %1686 = vmatprep.subr.bf16.mxu1 %v1839_v0 }
 0x258   : > { %1671 = vmatmul.mubr.msk.bf16.vlgmr.msra.gmra.mrb[8].mxu1 %vm415_vm1, %v701_v42 }
 0x259   : > { %1687 = vmatpush3.bf16.xpose.msra.mxu1 %v879_v43  ;;  %1688 = vmatprep.mubr.msk.bf16.mxu1 %vm1840_vm0, %v1839_v0 }
 0x25a   : > { %1692 = vmatprep.subr.bf16.mxu1 %v1839_v0 }
 0x260   : > { %1689 = vmatmul.mubr.msk.bf16.vlgmr.msra.gmra.mrb[12].mxu1 %vm415_vm1, %v872_v45 }
 0x261   : > { %1693 = vmatpush3.bf16.xpose.msra.mxu1 %v930_v46  ;;  %1694 = vmatprep.mubr.msk.bf16.mxu1 %vm1840_vm0, %v1839_v0 }
 0x262   : > { %1710 = vmatprep.subr.bf16.mxu1 %v1839_v0 }
 0x26c   : > { %1695 = vmatmul.mubr.msk.bf16.vlgmr.msra.gmra.mrb[12].mxu1 %vm415_vm1, %v923_v48 }
 0x26d   : > { %1711 = vmatpush3.bf16.xpose.msra.mxu1 %v1101_v49  ;;  %1712 = vmatprep.mubr.msk.bf16.mxu1 %vm1840_vm0, %v1839_v0 }
 0x26e   : > { %1716 = vmatprep.subr.bf16.mxu1 %v1839_v0 }
 0x274   : > { %1713 = vmatmul.mubr.msk.bf16.vlgmr.msra.gmra.mrb[16].mxu1 %vm415_vm1, %v1094_v51 }
 0x275   : > { %1717 = vmatpush3.bf16.xpose.msra.mxu1 %v1152_v52  ;;  %1718 = vmatprep.mubr.msk.bf16.mxu1 %vm1840_vm0, %v1839_v0 }
 0x280   : > { %1719 = vmatmul.mubr.msk.bf16.vlgmr.msra.gmra.mrb[16].mxu1 %vm415_vm1, %v1145_v53 }
 0x30e   : > { %v1993_v54 = vpop.f32.mrb[0].mxu1 }
 0x30f   : > { %v1654_v55 = vpop.f32.mrb[1].mxu1 }
 0x310   : > { %v1995_v56 = vpop.f32.mrb[2].mxu1 }
 0x311   : > { %v1655_v57 = vpop.f32.mrb[3].mxu1 }
 0x316   : > { %v1997_v58 = vpop.f32.mrb[4].mxu1 }
 0x317   : > { %v1660_v59 = vpop.f32.mrb[5].mxu1 }
 0x318   : > { %v1999_v60 = vpop.f32.mrb[6].mxu1 }
 0x319   : > { %v1661_v61 = vpop.f32.mrb[7].mxu1 }
 0x32b   : > { %v744_v62 = vpop.f32.mrb[8].mxu1 }
 0x32c   : > { %v751_v63 = vmul.f32 0.17677669, %v744_v62  ;;  %v1672_v1 = vpop.f32.mrb[9].mxu1 }
 0x32d   : > { %v747_v2 = vpop.f32.mrb[10].mxu1 }
 0x32e   : > { %v752_v3 = vmul.f32 0.17677669, %v747_v2  ;;  %v1673_v4 = vpop.f32.mrb[11].mxu1  ;;  %v753_v5 = vsel %vm522_vm2, %v751_v63, -inf }
 0x32f   : > { %754 = vmax.xlane.f32.xlu0 %v753_v5 }
 0x330   : > { %v756_v6 = vsel %vm526_vm3, %v752_v3, -inf }
 0x331   : > { %757 = vmax.xlane.f32.xlu1 %v756_v6 }
 0x33f   : > { %v966_v7 = vpop.f32.mrb[12].mxu1 }
 0x340   : > { %v973_v8 = vmul.f32 0.17677669, %v966_v7  ;;  %v1696_v9 = vpop.f32.mrb[13].mxu1 }
 0x341   : > { %v969_v10 = vpop.f32.mrb[14].mxu1 }
 0x342   : > { %v974_v11 = vmul.f32 0.17677669, %v969_v10  ;;  %v1697_v12 = vpop.f32.mrb[15].mxu1  ;;  %v975_v13 = vsel %vm522_vm2, %v973_v8, -inf }
 0x343   : > { %976 = vmax.xlane.f32.xlu0 %v975_v13 }
 0x344   : > { %v978_v14 = vsel %vm526_vm3, %v974_v11, -inf }
 0x347   : > { %979 = vmax.xlane.f32.xlu0 %v978_v14 }
 0x353   : > { %v1188_v15 = vpop.f32.mrb[16].mxu1 }
 0x354   : > { %v1195_v16 = vmul.f32 0.17677669, %v1188_v15  ;;  %v1720_v17 = vpop.f32.mrb[17].mxu1 }
 0x355   : > { %v1191_v18 = vpop.f32.mrb[18].mxu1 }
 0x356   : > { %v1196_v19 = vmul.f32 0.17677669, %v1191_v18  ;;  %v1197_v20 = vsel %vm522_vm2, %v1195_v16, -inf  ;;  %v1721_v21 = vpop.f32.mrb[19].mxu1 }
 0x357   : > { %1198 = vmax.xlane.f32.xlu0 %v1197_v20 }
 0x358   : > { %v1200_v22 = vsel %vm526_vm3, %v1196_v19, -inf }
 0x359   : > { %1201 = vmax.xlane.f32.xlu1 %v1200_v22 }
 0x36a   : > { %825 = vrot.lane.b32.xlu1 %v1955_v30, %s1841_s16 }
 0x3bc   : > { %v755_v23 = vpop.xlane.xlu0 %754 }
 0x3bd   : > { %v759_v24 = vsub.f32 %v751_v63, %v755_v23 }
 0x3be   : > { %v758_v26 = vpop.xlane.xlu1 %757 }
 0x3bf   : > { %v761_v27 = vmul.f32 1.442695, %v759_v24  ;;  %v760_v28 = vsub.f32 %v752_v3, %v758_v26 }
 0x3c1   : > { %1807 = vpow2.f32 %v761_v27  ;;  %v763_v29 = vmul.f32 1.442695, %v760_v28 }
 0x3c3   : > { %1809 = vpow2.f32 %v763_v29 }
 0x3cb   : > { %v1808_v31 = vpop.eup %1807 }
 0x3cc   : > { %v765_v32 = vsel %vm522_vm2, %v1808_v31, 0.0 }
 0x3cd   : > { %v1810_v33 = vpop.eup %1809  ;;  %766 = vadd.xlane.f32.xlu0 %v765_v32 }
 0x3ce   : > { %v768_v34 = vsel %vm526_vm3, %v1810_v33, 0.0 }
 0x3cf   : > { %769 = vadd.xlane.f32.xlu1 %v768_v34 }
 0x3d0   : > { %v977_v35 = vpop.xlane.xlu0 %976 }
 0x3d1   : > { %v981_v41 = vsub.f32 %v973_v8, %v977_v35 }
 0x3d3   : > { %v983_v42 = vmul.f32 1.442695, %v981_v41 }
 0x3d4   : > { %v980_v36 = vpop.xlane.xlu0 %979 }
 0x3d5   : > { %v982_v37 = vsub.f32 %v974_v11, %v980_v36 }
 0x3d7   : > { %v985_v38 = vmul.f32 1.442695, %v982_v37 }
 0x3d9   : > { %1811 = vpow2.f32 %v985_v38 }
 0x3da   : > { %1813 = vpow2.f32 %v983_v42 }
 0x3e3   : > { %v1812_v39 = vpop.eup %1811  ;;  %776 = vrot.lane.b32.xlu0 %v1939_v25, %s1841_s16 }
 0x3e4   : > { %v990_v40 = vsel %vm526_vm3, %v1812_v39, 0.0  ;;  %v1814_v43 = vpop.eup %1813  ;;  %v1199_v44 = vpop.xlane.xlu0 %1198 }
 0x3e5   : > { %991 = vadd.xlane.f32.xlu1 %v990_v40  ;;  %v987_v45 = vsel %vm522_vm2, %v1814_v43, 0.0  ;;  %v1203_v46 = vsub.f32 %v1195_v16, %v1199_v44 }
 0x3e6   : > { %v1202_v47 = vpop.xlane.xlu1 %1201 }
 0x3e7   : > { %v1205_v48 = vmul.f32 1.442695, %v1203_v46  ;;  %v1204_v49 = vsub.f32 %v1196_v19, %v1202_v47 }
 0x3e9   : > { %1815 = vpow2.f32 %v1205_v48  ;;  %v1207_v50 = vmul.f32 1.442695, %v1204_v49 }
 0x3ea   : > { %v826_v57 = vpop.permute.xlu1 %825 }
 0x3eb   : > { %1817 = vpow2.f32 %v1207_v50  ;;  %v828_v5 = vsel %vm555_vm4, %v826_v57, 0 }
 0x3f3   : > { %v1816_v51 = vpop.eup %1815 }
 0x3f4   : > { %v1209_v52 = vsel %vm522_vm2, %v1816_v51, 0.0 }
 0x3f5   : > { %v1818_v53 = vpop.eup %1817 }
 0x3f6   : > { %1047 = vrot.lane.b32.xlu1 %v1955_v30, %s1842_s17  ;;  %v1212_v55 = vsel %vm526_vm3, %v1818_v53, 0.0 }
 0x402   : > { %988 = vadd.xlane.f32.xlu0 %v987_v45 }
 0x418   : > { %998 = vrot.lane.b32.xlu0 %v1939_v25, %s1842_s17 }
 0x41a   : > { %1210 = vadd.xlane.f32.xlu1 %v1209_v52 }
 0x41c   : > { %1220 = vrot.lane.b32.xlu0 %v1939_v25, %s1843_s18 }
 0x41e   : > { %1213 = vadd.xlane.f32.xlu1 %v1212_v55 }
 0x42f   : > { %1269 = vrot.lane.b32.xlu1 %v1955_v30, %s1843_s18 }
 0x45a   : > { %v767_v59 = vpop.xlane.xlu0 %766 }
 0x45b   : > { %1819 = vrcp.f32 %v767_v59 }
 0x45c   : > { %v770_v61 = vpop.xlane.xlu1 %769 }
 0x45d   : > { %1821 = vrcp.f32 %v770_v61 }
 0x45e   : > { %v777_v62 = vpop.permute.xlu0 %776 }
 0x45f   : > { %v782_v63 = vsel %vm555_vm4, %v777_v62, 0 }
 0x460   : > { %1675 = vmatpush3.bf16.msra.mxu0 %v782_v63 }
 0x461   : > { %1680 = vmatprep.subr.bf16.mxu0 %v1839_v0 }
 0x465   : > { %v1820_v1 = vpop.eup %1819 }
 0x466   : > { %v773_v25 = vmul.f32 %v1820_v1, %v1808_v31 }
 0x467   : > { %v1822_v2 = vpop.eup %1821 }
 0x468   : > { %v774_v3 = vmul.f32 %v1822_v2, %v1810_v33 }
 0x46a   : > { %v775_v4 = vpack.c.bf16 %v774_v3, %v773_v25 }
 0x46c   : > { %1677 = vmatmul.mubr.msk.bf16.vlgmr.msra.gmra.mrb[4].mxu0 %vm522_vm2, %v775_v4 }
 0x46d   : > { %1681 = vmatpush3.bf16.msra.mxu0 %v828_v5  ;;  %1682 = vmatprep.mubr.msk.bf16.mxu0 %vm1840_vm0, %v1839_v0 }
 0x46e   : > { %1698 = vmatprep.subr.bf16.mxu0 %v1839_v0 }
 0x472   : > { %v992_v30 = vpop.xlane.xlu1 %991 }
 0x473   : > { %1823 = vrcp.f32 %v992_v30 }
 0x474   : > { %1683 = vmatmul.mubr.msk.bf16.vlgmr.msra.gmra.mrb[8].mxu0 %vm522_vm2, %v775_v4 }
 0x475   : > { %1700 = vmatprep.mubr.msk.bf16.mxu0 %vm1840_vm0, %v1839_v0 }
 0x476   : > { %v1048_v13 = vpop.permute.xlu1 %1047 }
 0x477   : > { %v1050_v15 = vsel %vm555_vm4, %v1048_v13, 0 }
 0x47d   : > { %v1824_v9 = vpop.eup %1823 }
 0x47e   : > { %v996_v11 = vmul.f32 %v1824_v9, %v1812_v39 }
 0x48f   : > { %v989_v6 = vpop.xlane.xlu0 %988 }
 0x490   : > { %1825 = vrcp.f32 %v989_v6 }
 0x493   : > { %v999_v7 = vpop.permute.xlu0 %998 }
 0x494   : > { %v1004_v8 = vsel %vm555_vm4, %v999_v7, 0 }
 0x495   : > { %1699 = vmatpush3.bf16.msra.mxu0 %v1004_v8 }
 0x496   : > { %1704 = vmatprep.subr.bf16.mxu0 %v1839_v0 }
 0x497   : > { %v1221_v16 = vpop.permute.xlu0 %1220 }
 0x498   : > { %v1226_v17 = vsel %vm555_vm4, %v1221_v16, 0 }
 0x49a   : > { %v1826_v10 = vpop.eup %1825 }
 0x49b   : > { %v995_v12 = vmul.f32 %v1826_v10, %v1814_v43 }
 0x49d   : > { %v997_v14 = vpack.c.bf16 %v996_v11, %v995_v12 }
 0x49f   : > { %1701 = vmatmul.mubr.msk.bf16.vlgmr.msra.gmra.mrb[12].mxu0 %vm522_vm2, %v997_v14 }
 0x4a0   : > { %1705 = vmatpush3.bf16.msra.mxu0 %v1050_v15  ;;  %1706 = vmatprep.mubr.msk.bf16.mxu0 %vm1840_vm0, %v1839_v0 }
 0x4a1   : > { %1722 = vmatprep.subr.bf16.mxu0 %v1839_v0 }
 0x4a7   : > { %v1211_v18 = vpop.xlane.xlu1 %1210  ;;  %1707 = vmatmul.mubr.msk.bf16.vlgmr.msra.gmra.mrb[16].mxu0 %vm522_vm2, %v997_v14 }
 0x4a8   : > { %1723 = vmatpush3.bf16.msra.mxu0 %v1226_v17  ;;  %1724 = vmatprep.mubr.msk.bf16.mxu0 %vm1840_vm0, %v1839_v0  ;;  %1827 = vrcp.f32 %v1211_v18 }
 0x4a9   : > { %1728 = vmatprep.subr.bf16.mxu0 %v1839_v0 }
 0x4ab   : > { %v1214_v19 = vpop.xlane.xlu1 %1213 }
 0x4ac   : > { %1829 = vrcp.f32 %v1214_v19 }
 0x4af   : > { %v1270_v22 = vpop.permute.xlu1 %1269 }
 0x4b0   : > { %v1272_v26 = vsel %vm555_vm4, %v1270_v22, 0 }
 0x4b2   : > { %v1828_v20 = vpop.eup %1827 }
 0x4b3   : > { %v1217_v23 = vmul.f32 %v1828_v20, %v1816_v51 }
 0x4b6   : > { %v1830_v21 = vpop.eup %1829 }
 0x4b7   : > { %v1218_v24 = vmul.f32 %v1830_v21, %v1818_v53 }
 0x4b9   : > { %v1219_v27 = vpack.c.bf16 %v1218_v24, %v1217_v23 }
 0x4bb   : > { %1725 = vmatmul.mubr.msk.bf16.vlgmr.msra.gmra.mrb[20].mxu0 %vm522_vm2, %v1219_v27 }
 0x4bc   : > { %1729 = vmatpush3.bf16.msra.mxu0 %v1272_v26  ;;  %1730 = vmatprep.mubr.msk.bf16.mxu0 %vm1840_vm0, %v1839_v0 }
 0x4c3   : > { %1731 = vmatmul.mubr.msk.bf16.vlgmr.msra.gmra.mrb[24].mxu0 %vm522_vm2, %v1219_v27 }
 0x53f   : > { %v818_v28 = vpop.f32.mrb[4].mxu0 }
 0x540   : > { %v1678_v29 = vpop.f32.mrb[5].mxu0 }
 0x541   : > { %v821_v31 = vpop.f32.mrb[6].mxu0 }
 0x542   : > { %v1763_v32 = vpack.i.bf16 %v821_v31, %v818_v28  ;;  %v1679_v33 = vpop.f32.mrb[7].mxu0 }
 0x544   : > { %1764 = vrot.lane.b32.xlu0 %v1763_v32, %s1843_s18 }
 0x547   : > { %v864_v34 = vpop.f32.mrb[8].mxu0 }
 0x548   : > { %v1684_v35 = vpop.f32.mrb[9].mxu0 }
 0x549   : > { %v867_v36 = vpop.f32.mrb[10].mxu0 }
 0x54a   : > { %v1768_v37 = vpack.i.bf16 %v867_v36, %v864_v34  ;;  %v1685_v38 = vpop.f32.mrb[11].mxu0 }
 0x54c   : > { %1769 = vrot.lane.b32.xlu1 %v1768_v37, %s1843_s18 }
 0x572   : > { %v1040_v39 = vpop.f32.mrb[12].mxu0 }
 0x573   : > { %v1702_v40 = vpop.f32.mrb[13].mxu0 }
 0x574   : > { %v1043_v41 = vpop.f32.mrb[14].mxu0 }
 0x575   : > { %v1773_v0 = vpack.i.bf16 %v1043_v41, %v1040_v39  ;;  %v1703_v42 = vpop.f32.mrb[15].mxu0 }
 0x577   : > { %1774 = vrot.lane.b32.xlu0 %v1773_v0, %s1842_s17 }
 0x57a   : > { %v1086_v43 = vpop.f32.mrb[16].mxu0 }
 0x57b   : > { %v1708_v44 = vpop.f32.mrb[17].mxu0 }
 0x57c   : > { %v1089_v45 = vpop.f32.mrb[18].mxu0 }
 0x57d   : > { %v1778_v46 = vpack.i.bf16 %v1089_v45, %v1086_v43  ;;  %v1709_v47 = vpop.f32.mrb[19].mxu0 }
 0x57f   : > { %1779 = vrot.lane.b32.xlu1 %v1778_v46, %s1842_s17 }
 0x58e   : > { %v1262_v48 = vpop.f32.mrb[20].mxu0 }
 0x58f   : > { %v1726_v49 = vpop.f32.mrb[21].mxu0 }
 0x590   : > { %v1265_v50 = vpop.f32.mrb[22].mxu0 }
 0x591   : > { %v1783_v51 = vpack.i.bf16 %v1265_v50, %v1262_v48  ;;  %v1727_v52 = vpop.f32.mrb[23].mxu0 }
 0x593   : > { %1784 = vrot.lane.b32.xlu0 %v1783_v51, %s1841_s16 }
 0x596   : > { %v1308_v53 = vpop.f32.mrb[24].mxu0 }
 0x597   : > { %v1732_v55 = vpop.f32.mrb[25].mxu0 }
 0x598   : > { %v1311_v57 = vpop.f32.mrb[26].mxu0 }
 0x599   : > { %v1788_v59 = vpack.i.bf16 %v1311_v57, %v1308_v53  ;;  %v1733_v61 = vpop.f32.mrb[27].mxu0 }
 0x59b   : > { %1789 = vrot.lane.b32.xlu1 %v1788_v59, %s1841_s16 }
 0x5b6   : > { %v1765_v62 = vpop.permute.xlu0 %1764 }
 0x5b7   : > { %v1767_v1 = vunpack.i.h.bf16 %v1765_v62  ;;  %v1766_v2 = vunpack.i.l.bf16 %v1765_v62 }
 0x5b9   : > { %v1340_v30 = vsel %vm415_vm1, %v1995_v56, %v1767_v1  ;;  %v1339_v6 = vsel %vm415_vm1, %v1993_v54, %v1766_v2 }
 0x5be   : > { %v1770_v4 = vpop.permute.xlu1 %1769 }
 0x5bf   : > { %v1772_v15 = vunpack.i.h.bf16 %v1770_v4  ;;  %v1771_v54 = vunpack.i.l.bf16 %v1770_v4 }
 0x5c1   : > { %v1382_v19 = vsel %vm415_vm1, %v1999_v60, %v1772_v15  ;;  %v1381_v20 = vsel %vm415_vm1, %v1997_v58, %v1771_v54 }
 0x5e9   : > { %v1775_v63 = vpop.permute.xlu0 %1774 }
 0x5ea   : > { %v1777_v25 = vunpack.i.h.bf16 %v1775_v63  ;;  %v1776_v3 = vunpack.i.l.bf16 %v1775_v63 }
 0x5ec   : > { %v1343_v9 = vsel %vm1341_vm5, %v1340_v30, %v1777_v25  ;;  %v1342_v10 = vsel %vm1341_vm5, %v1339_v6, %v1776_v3 }
 0x5f1   : > { %v1780_v11 = vpop.permute.xlu1 %1779 }
 0x5f2   : > { %v1782_v16 = vunpack.i.h.bf16 %v1780_v11  ;;  %v1781_v17 = vunpack.i.l.bf16 %v1780_v11 }
 0x5f4   : > { %v1384_v23 = vsel %vm1341_vm5, %v1382_v19, %v1782_v16  ;;  %v1383_v24 = vsel %vm1341_vm5, %v1381_v20, %v1781_v17 }
 0x605   : > { %v1785_v5 = vpop.permute.xlu0 %1784 }
 0x606   : > { %v1787_v7 = vunpack.i.h.bf16 %v1785_v5  ;;  %v1786_v8 = vunpack.i.l.bf16 %v1785_v5 }
 0x608   : > { %v1346_v12 = vsel %vm1344_vm6, %v1343_v9, %v1787_v7  ;;  %v1345_v13 = vsel %vm1344_vm6, %v1342_v10, %v1786_v8 }
 0x609   : > { %v1603_v56 = vpack.c.bf16 %v1346_v12, %v1346_v12  ;;  %v1602_v14 = vpack.c.bf16 %v1345_v13, %v1345_v13 }
 0x60b   : > { %1356 = vst [vmem:[%s386_s29 + $0x4] sm:$0x3] %v1603_v56  ;;  %1355 = vst [vmem:[%s386_s29] sm:$0xf] %v1602_v14 }
 0x60d   : > { %v1790_v18 = vpop.permute.xlu1 %1789 }
 0x60e   : > { %v1792_v21 = vunpack.i.h.bf16 %v1790_v18  ;;  %v1791_v22 = vunpack.i.l.bf16 %v1790_v18 }
 0x610   : > { %v1386_v26 = vsel %vm1344_vm6, %v1384_v23, %v1792_v21  ;;  %v1385_v27 = vsel %vm1344_vm6, %v1383_v24, %v1791_v22 }
 0x611   : > { %v1605_v28 = vpack.c.bf16 %v1386_v26, %v1386_v26  ;;  %v1604_v29 = vpack.c.bf16 %v1385_v27, %v1385_v27 }
 0x613   : > { %1396 = vst [vmem:[%s391_s9 + $0x4] sm:$0x3] %v1605_v28  ;;  %1395 = vst [vmem:[%s391_s9] sm:$0xf] %v1604_v29 }
 0x614 PF: > { %s18_s24 = sadd.s32 1, %s1837_s24  }
 0x615   : > { %p15_p4 = scmp.ge.s32.totalorder %s18_s24, 4  }
 0x617   :  { %17 = sbr.rel (!%p15_p4) target bundleno = 1 (0x1), region = 101 }

// kernel: dcnn_forward.25
= control target key start
LH: loop header
LB: loop body
LE: loop exit
PB: predicated region body
PF: predicated region fallthrough
CT: control target
= control target key end

     0   :  { %s513_s3 = inlined_call_operand.vmem [shape: bf16[128,128], index: 3, kind: input, shape index: {}]   ;;  %s514_s2 = inlined_call_operand.vmem [shape: bf16[128,128], index: 2, kind: input, shape index: {}]   ;;  %s515_s1 = inlined_call_operand.vmem [shape: bf16[24,128], index: 1, kind: input, shape index: {}]   ;;  %s516_s0 = inlined_call_operand.vmem [shape: bf16[24,128], index: 0, kind: input, shape index: {}]   ;;  %s517_s4 = inlined_call_operand.vmem [shape: f32[1,128], index: 4, kind: input, shape index: {}]   ;;  %s518_s5 = inlined_call_operand.vmem [shape: f32[24,128], index: 5, kind: output, shape index: {}]  }
   0x1   :  { %v391_v0 = vld [vmem:[%s513_s3] sm:$0xff]   ;;  %v393_v2 = vld [vmem:[%s513_s3 + $0x8] sm:$0xff]   ;;  %v395_v4 = vld [vmem:[%s513_s3 + $0x10] sm:$0xff]  }
   0x2   :  { %v392_v1 = vld [vmem:[%s514_s2] sm:$0xff]   ;;  %351 = vmatprep.subr.bf16.mxu0 %v391_v0  ;;  %v394_v3 = vld [vmem:[%s514_s2 + $0x8] sm:$0xff]   ;;  %v396_v5 = vld [vmem:[%s514_s2 + $0x10] sm:$0xff]  }
   0x3   :  { %371 = vmatprep.subr.bf16.mxu1 %v392_v1  ;;  %352 = vmatpush3.bf16.msra.mxu0 %v391_v0  ;;  %v397_v6 = vld [vmem:[%s513_s3 + $0x18] sm:$0xff]   ;;  %v399_v8 = vld [vmem:[%s513_s3 + $0x20] sm:$0xff]   ;;  %v401_v10 = vld [vmem:[%s513_s3 + $0x28] sm:$0xff]  }
   0x4   :  { %372 = vmatpush3.bf16.msra.mxu1 %v392_v1  ;;  %353 = vmatprep.subr.bf16.mxu0 %v393_v2  ;;  %v398_v7 = vld [vmem:[%s514_s2 + $0x18] sm:$0xff]   ;;  %v400_v9 = vld [vmem:[%s514_s2 + $0x20] sm:$0xff]   ;;  %v402_v11 = vld [vmem:[%s514_s2 + $0x28] sm:$0xff]  }
   0x5   :  { %373 = vmatprep.subr.bf16.mxu1 %v394_v3  ;;  %v407_v12 = vld [vmem:[%s515_s1] sm:$0xff]   ;;  %v403_v14 = vld [vmem:[%s513_s3 + $0x30] sm:$0xff]   ;;  %v405_v16 = vld [vmem:[%s513_s3 + $0x38] sm:$0xff]  }
   0x6   :  { %v408_v13 = vld [vmem:[%s516_s0] sm:$0xff]   ;;  %367 = vmatprep.mubr.bf16.mxu0 %v407_v12  ;;  %v404_v15 = vld [vmem:[%s514_s2 + $0x30] sm:$0xff]   ;;  %v406_v17 = vld [vmem:[%s514_s2 + $0x38] sm:$0xff]  }
   0x7   :  { %354 = vmatpush3.bf16.msra.mxu0 %v393_v2  ;;  %387 = vmatprep.mubr.bf16.mxu1 %v408_v13  ;;  %v409_v18 = vld [vmem:[%s515_s1 + $0x8] ss:$0 sps:$4 sm:$0xff]   ;;  %v330_v22 = vld [vmem:[%s517_s4] ss:$0 sm:$0xff] }
   0x8   :  { %374 = vmatpush3.bf16.msra.mxu1 %v394_v3  ;;  %355 = vmatprep.subr.bf16.mxu0 %v395_v4  ;;  %v410_v19 = vld [vmem:[%s516_s0 + $0x8] ss:$0 sps:$4 sm:$0xff]  }
   0x9   :  { %375 = vmatprep.subr.bf16.mxu1 %v396_v5 }
   0xb   :  { %356 = vmatpush3.bf16.msra.mxu0 %v395_v4 }
   0xc   :  { %376 = vmatpush3.bf16.msra.mxu1 %v396_v5  ;;  %357 = vmatprep.subr.bf16.mxu0 %v397_v6 }
   0xd   :  { %377 = vmatprep.subr.bf16.mxu1 %v398_v7 }
   0xf   :  { %358 = vmatpush3.bf16.msra.mxu0 %v397_v6 }
  0x10   :  { %378 = vmatpush3.bf16.msra.mxu1 %v398_v7  ;;  %359 = vmatprep.subr.bf16.mxu0 %v399_v8 }
  0x11   :  { %379 = vmatprep.subr.bf16.mxu1 %v400_v9 }
  0x13   :  { %360 = vmatpush3.bf16.msra.mxu0 %v399_v8 }
  0x14   :  { %380 = vmatpush3.bf16.msra.mxu1 %v400_v9  ;;  %361 = vmatprep.subr.bf16.mxu0 %v401_v10 }
  0x15   :  { %381 = vmatprep.subr.bf16.mxu1 %v402_v11 }
  0x17   :  { %362 = vmatpush3.bf16.msra.mxu0 %v401_v10 }
  0x18   :  { %382 = vmatpush3.bf16.msra.mxu1 %v402_v11  ;;  %363 = vmatprep.subr.bf16.mxu0 %v403_v14 }
  0x19   :  { %383 = vmatprep.subr.bf16.mxu1 %v404_v15 }
  0x1b   :  { %364 = vmatpush3.bf16.msra.mxu0 %v403_v14 }
  0x1c   :  { %384 = vmatpush3.bf16.msra.mxu1 %v404_v15  ;;  %365 = vmatprep.subr.bf16.mxu0 %v405_v16 }
  0x1d   :  { %385 = vmatprep.subr.bf16.mxu1 %v406_v17 }
  0x1f   :  { %366 = vmatpush3.bf16.msra.mxu0 %v405_v16 }
  0x20   :  { %386 = vmatpush3.bf16.msra.mxu1 %v406_v17 }
  0x22   :  { %368 = vmatmul.mubr.bf16.vlgmr.msra.gmra.mrb[0].mxu0 %v409_v18 }
  0x23   :  { %388 = vmatmul.mubr.bf16.vlgmr.msra.gmra.mrb[0].mxu1 %v410_v19 }
  0xf5   :  { %v369_v20 = vpop.f32.mrb[0].mxu0 }
  0xf6   :  { %v389_v21 = vpop.f32.mrb[0].mxu1  ;;  %v161_v23 = vpop.f32.mrb[1].mxu0 }
  0xf7   :  { %v276_v24 = vadd.f32 %v389_v21, %v369_v20  ;;  %v267_v25 = vpop.f32.mrb[1].mxu1  ;;  %v370_v26 = vpop.f32.mrb[2].mxu0 }
  0xf8   :  { %v268_v27 = vadd.f32 %v267_v25, %v161_v23  ;;  %v390_v28 = vpop.f32.mrb[2].mxu1  ;;  %v164_v29 = vpop.f32.mrb[3].mxu0 }
  0xf9   :  { %v302_v30 = vadd.f32 %v330_v22, %v276_v24  ;;  %v270_v31 = vpop.f32.mrb[3].mxu1 }
  0xfa   :  { %v300_v32 = vadd.f32 %v330_v22, %v268_v27  ;;  %v271_v33 = vadd.f32 %v270_v31, %v164_v29 }
  0xfb   :  { %305 = vst [vmem:[%s518_s5 + $0x10] sm:$0xff] %v302_v30 }
  0xfc   :  { %303 = vst [vmem:[%s518_s5] sm:$0xff] %v300_v32  ;;  %v301_v34 = vadd.f32 %v330_v22, %v271_v33 }
  0xfe   :  { %304 = vst [vmem:[%s518_s5 + $0x8] sm:$0xff] %v301_v34 }

// kernel: dcnn_forward.26
= control target key start
LH: loop header
LB: loop body
LE: loop exit
PB: predicated region body
PF: predicated region fallthrough
CT: control target
= control target key end

     0   :  { %s1710_s18 = smov 0   ;;  %s1712_s19 = smov 0   ;;  %s2071_s0 = inlined_call_operand.vmem [shape: f32[176,320], index: 0, kind: input, shape index: {}]   ;;  %s2072_s1 = inlined_call_operand.vmem [shape: f32[176,320], index: 1, kind: input, shape index: {}]   ;;  %s2073_s2 = inlined_call_operand.vmem [shape: bf16[320,16], index: 2, kind: input, shape index: {}]   ;;  %s2074_s3 = inlined_call_operand.vmem [shape: bf16[320,16], index: 3, kind: input, shape index: {}]   ;;  %s2075_s4 = inlined_call_operand.vmem [shape: f32[1,16], index: 4, kind: input, shape index: {}]   ;;  %s2076_s5 = inlined_call_operand.vmem [shape: f32[176,16], index: 5, kind: output, shape index: {}]  }
   0x1   :  { %s1714_s20 = smov 0  }
   0x2 LB: > { %s27_s21 = sadd.s32 1, %s1673_s19  ;;  %p1342_p0 = scmp.ge.s32.totalorder %s1677_s20, 1  ;;  %s1677_s20 = sphi %s1714_s20, %s15_s20   ;;  %s1673_s19 = sphi %s1712_s19, %s2078_s19   ;;  %s1669_s18 = sphi %s1710_s18, %s2077_s18  }
   0x3   : > { %p29_p1 = scmp.ge.s32.totalorder %s27_s21, 2  ;;  %p249_p2 = scmp.lt.s32.totalorder %s1677_s20, 3 }
   0x5   : > { %s2080_s21 = smov (%p29_p1, %s27_s21), 0  ;;  %p250_p3 = pnand %p1342_p0, %p249_p2 }
   0x6   : > { %v1615_v0 = vld [vmem:[%s2074_s3 + $0x40] sm:$0xff] (!%p250_p3)   ;;  %v1619_v4 = vld [vmem:[%s2074_s3 + $0x48] sm:$0xff] (!%p250_p3)   ;;  %v1623_v8 = vld [vmem:[%s2074_s3 + $0x50] sm:$0xff] (!%p250_p3)   ;;  %s302_s27 = smul.u32 (!%p250_p3), 11, %s1669_s18  ;;  %vm674_vm0 = vcmask (!%p250_p3), 523264   ;;  %vm349_vm1 = vcmask (!%p250_p3), 130048  }
   0x7   : > { %253 = sbr.rel (%p250_p3) target bundleno = 337 (0x151), region = 40  ;;  %v1616_v1 = vld [vmem:[%s2074_s3] sm:$0xff] (!%p250_p3)   ;;  %1401 = vmatprep.subr.bf16.mxu0 (!%p250_p3), %v1615_v0  ;;  %v1620_v5 = vld [vmem:[%s2074_s3 + $0x8] sm:$0xff] (!%p250_p3)   ;;  %v1624_v9 = vld [vmem:[%s2074_s3 + $0x10] sm:$0xff] (!%p250_p3)  }
   0x8   : > { %v1617_v2 = vld [vmem:[%s2073_s2 + $0x40] sm:$0xff] (!%p250_p3)   ;;  %1402 = vmatpush3.bf16.msra.mxu0 (!%p250_p3), %v1616_v1  ;;  %v1621_v6 = vld [vmem:[%s2073_s2 + $0x48] sm:$0xff] (!%p250_p3)   ;;  %v1625_v10 = vld [vmem:[%s2073_s2 + $0x50] sm:$0xff] (!%p250_p3)   ;;  %p304_p4 = scmp.lt.s32.totalorder (!%p250_p3), %s302_s27, 21 }
   0x9   : > { %v1618_v3 = vld [vmem:[%s2073_s2] sm:$0xff] (!%p250_p3)   ;;  %1463 = vmatprep.subr.bf16.mxu1 (!%p250_p3), %v1617_v2  ;;  %1403 = vmatprep.subr.bf16.mxu0 (!%p250_p3), %v1619_v4  ;;  %v1622_v7 = vld [vmem:[%s2073_s2 + $0x8] sm:$0xff] (!%p250_p3)   ;;  %v1626_v11 = vld [vmem:[%s2073_s2 + $0x10] sm:$0xff] (!%p250_p3)  }
   0xa   : > { %1464 = vmatpush3.bf16.msra.mxu1 (!%p250_p3), %v1618_v3  ;;  %v1627_v12 = vld [vmem:[%s2074_s3 + $0x58] sm:$0xff] (!%p250_p3)   ;;  %v1631_v16 = vld [vmem:[%s2074_s3 + $0x60] sm:$0xff] (!%p250_p3)   ;;  %v1635_v20 = vld [vmem:[%s2074_s3 + $0x68] sm:$0xff] (!%p250_p3)  }
   0xb   : > { %1465 = vmatprep.subr.bf16.mxu1 (!%p250_p3), %v1621_v6  ;;  %v1628_v13 = vld [vmem:[%s2074_s3 + $0x18] sm:$0xff] (!%p250_p3)   ;;  %v1632_v17 = vld [vmem:[%s2074_s3 + $0x20] sm:$0xff] (!%p250_p3)   ;;  %v1636_v21 = vld [vmem:[%s2074_s3 + $0x28] sm:$0xff] (!%p250_p3)  }
   0xc   : > { %1404 = vmatpush3.bf16.msra.mxu0 (!%p250_p3), %v1620_v5  ;;  %v1629_v14 = vld [vmem:[%s2073_s2 + $0x58] sm:$0xff] (!%p250_p3)   ;;  %v1633_v18 = vld [vmem:[%s2073_s2 + $0x60] sm:$0xff] (!%p250_p3)   ;;  %v1637_v22 = vld [vmem:[%s2073_s2 + $0x68] sm:$0xff] (!%p250_p3)  }
   0xd   : > { %1405 = vmatprep.subr.bf16.mxu0 (!%p250_p3), %v1623_v8  ;;  %v1630_v15 = vld [vmem:[%s2073_s2 + $0x18] sm:$0xff] (!%p250_p3)   ;;  %v1634_v19 = vld [vmem:[%s2073_s2 + $0x20] sm:$0xff] (!%p250_p3)   ;;  %v1638_v23 = vld [vmem:[%s2073_s2 + $0x28] sm:$0xff] (!%p250_p3)  }
   0xe   : > { %1466 = vmatpush3.bf16.msra.mxu1 %v1622_v7  ;;  %s2082_s27 = smov (!%p304_p4, %s302_s27), 21  ;;  %v1639_v24 = vld [vmem:[%s2074_s3 + $0x70] sm:$0xff]   ;;  %v1643_v28 = vld [vmem:[%s2074_s3 + $0x78] sm:$0xff]   ;;  %v1647_v38 = vld [vmem:[%s2074_s3 + $0x80] sm:$0xff]  }
   0xf   : > { %1467 = vmatprep.subr.bf16.mxu1 %v1625_v10  ;;  %s1589_s6 = smul.u32 24, %s2082_s27  ;;  %v1640_v25 = vld [vmem:[%s2074_s3 + $0x30] sm:$0xff]   ;;  %v1644_v29 = vld [vmem:[%s2074_s3 + $0x38] sm:$0xff]   ;;  %v1648_v45 = vld [vmem:[%s2073_s2 + $0x80] sm:$0xff]  }
  0x10   : > { %1406 = vmatpush3.bf16.msra.mxu0 %v1624_v9  ;;  %v1641_v26 = vld [vmem:[%s2073_s2 + $0x70] sm:$0xff]   ;;  %v1645_v30 = vld [vmem:[%s2073_s2 + $0x78] sm:$0xff]   ;;  %v1649_v57 = vld [vmem:[%s2074_s3 + $0x88] sm:$0xff]  }
  0x11   : > { %1407 = vmatprep.subr.bf16.mxu0 %v1627_v12  ;;  %v1642_v27 = vld [vmem:[%s2073_s2 + $0x30] sm:$0xff]   ;;  %s1824_s16 = scalar_lea.vmem %s2072_s1, %s1589_s6  ;;  %s1837_s28 = scalar_lea.vmem %s2071_s0, %s1589_s6  ;;  %v1646_v34 = vld [vmem:[%s2073_s2 + $0x38] sm:$0xff]   ;;  %v1650_v62 = vld [vmem:[%s2073_s2 + $0x88] sm:$0xff]  }
  0x12   : > { %1468 = vmatpush3.bf16.msra.mxu1 %v1626_v11  ;;  %v413_v31 = vld [vmem:[%s1824_s16 + $0x8] sm:$0xff]  ;;  %v416_v32 = vld [vmem:[%s1824_s16 + $0x20] sm:$0xff]  ;;  %v415_v36 = vld [vmem:[%s1824_s16 + $0x18] sm:$0xff] }
  0x13   : > { %1469 = vmatprep.subr.bf16.mxu1 %v1629_v14  ;;  %v446_v33 = vpack.c.bf16 %v416_v32, %v413_v31  ;;  %v412_v35 = vld [vmem:[%s1824_s16] sm:$0xff]  ;;  %v362_v39 = vld [vmem:[%s1837_s28 + $0x8] sm:$0xff]  ;;  %v364_v43 = vld [vmem:[%s1837_s28 + $0x18] sm:$0xff] }
  0x14   : > { %1408 = vmatpush3.bf16.msra.mxu0 %v1628_v13  ;;  %v445_v37 = vpack.c.bf16 %v415_v36, %v412_v35  ;;  %v365_v40 = vld [vmem:[%s1837_s28 + $0x20] sm:$0xff]  ;;  %v419_v46 = vld [vmem:[%s1824_s16 + $0x38] sm:$0xff]  ;;  %v422_v47 = vld [vmem:[%s1824_s16 + $0x50] sm:$0xff] }
  0x15   : > { %1409 = vmatprep.subr.bf16.mxu0 %v1631_v16  ;;  %725 = vmatprep.mubr.bf16.mxu0 %v446_v33  ;;  %v395_v41 = vpack.c.bf16 %v365_v40, %v362_v39  ;;  %v361_v42 = vld [vmem:[%s1837_s28] sm:$0xff]  ;;  %v418_v48 = vld [vmem:[%s1824_s16 + $0x30] sm:$0xff]  ;;  %v421_v49 = vld [vmem:[%s1824_s16 + $0x48] sm:$0xff]  ;;  %v449_v50 = vpack.c.bf16 %v422_v47, %v419_v46 }
  0x16   : > { %1470 = vmatpush3.bf16.msra.mxu1 %v1630_v15  ;;  %v394_v44 = vpack.c.bf16 %v364_v43, %v361_v42  ;;  %v368_v51 = vld [vmem:[%s1837_s28 + $0x38] sm:$0xff]  ;;  %v371_v52 = vld [vmem:[%s1837_s28 + $0x50] sm:$0xff]  ;;  %v370_v55 = vld [vmem:[%s1837_s28 + $0x48] sm:$0xff]  ;;  %v448_v56 = vpack.c.bf16 %v421_v49, %v418_v48 }
  0x17   : > { %1471 = vmatprep.subr.bf16.mxu1 %v1633_v18  ;;  %1023 = vmatprep.mubr.bf16.mxu1 %v395_v41  ;;  %v367_v53 = vld [vmem:[%s1837_s28 + $0x30] sm:$0xff]  ;;  %v398_v54 = vpack.c.bf16 %v371_v52, %v368_v51  ;;  %v425_v58 = vld [vmem:[%s1824_s16 + $0x68] sm:$0xff]  ;;  %v428_v59 = vld [vmem:[%s1824_s16 + $0x80] sm:$0xff] }
  0x18   : > { %1410 = vmatpush3.bf16.msra.mxu0 %v1632_v17  ;;  %v452_v60 = vpack.c.bf16 %v428_v59, %v425_v58  ;;  %v397_v61 = vpack.c.bf16 %v370_v55, %v367_v53  ;;  %v374_v63 = vld [vmem:[%s1837_s28 + $0x68] sm:$0xff]  ;;  %v377_v0 = vld [vmem:[%s1837_s28 + $0x80] sm:$0xff]  ;;  %v427_v2 = vld [vmem:[%s1824_s16 + $0x78] sm:$0xff] }
  0x19   : > { %1411 = vmatprep.subr.bf16.mxu0 %v1635_v20  ;;  %v424_v1 = vld [vmem:[%s1824_s16 + $0x60] sm:$0xff]  ;;  %v401_v3 = vpack.c.bf16 %v377_v0, %v374_v63  ;;  %v431_v5 = vld [vmem:[%s1824_s16 + $0x98] sm:$0xff]  ;;  %v434_v6 = vld [vmem:[%s1824_s16 + $0xb0] sm:$0xff] }
  0x1a   : > { %1472 = vmatpush3.bf16.msra.mxu1 %v1634_v19  ;;  %v373_v4 = vld [vmem:[%s1837_s28 + $0x60] sm:$0xff]  ;;  %v1651_v7 = vld [vmem:[%s2074_s3 + $0x90] sm:$0xff]   ;;  %v376_v8 = vld [vmem:[%s1837_s28 + $0x78] sm:$0xff]  ;;  %v451_v10 = vpack.c.bf16 %v427_v2, %v424_v1  ;;  %v455_v13 = vpack.c.bf16 %v434_v6, %v431_v5 }
  0x1b   : > { %1473 = vmatprep.subr.bf16.mxu1 %v1637_v22  ;;  %v380_v9 = vld [vmem:[%s1837_s28 + $0x98] sm:$0xff]  ;;  %v383_v11 = vld [vmem:[%s1837_s28 + $0xb0] sm:$0xff]  ;;  %v400_v14 = vpack.c.bf16 %v376_v8, %v373_v4  ;;  %v433_v17 = vld [vmem:[%s1824_s16 + $0xa8] sm:$0xff] }
  0x1c   : > { %1412 = vmatpush3.bf16.msra.mxu0 %v1636_v21  ;;  %v1652_v12 = vld [vmem:[%s2073_s2 + $0x90] sm:$0xff]   ;;  %v404_v15 = vpack.c.bf16 %v383_v11, %v380_v9  ;;  %v1653_v18 = vld [vmem:[%s2074_s3 + $0x98] sm:$0xff]   ;;  %v437_v20 = vld [vmem:[%s1824_s16 + $0xc8] sm:$0xff] }
  0x1d   : > { %1413 = vmatprep.subr.bf16.mxu0 %v1639_v24  ;;  %v430_v16 = vld [vmem:[%s1824_s16 + $0x90] sm:$0xff]  ;;  %v1654_v19 = vld [vmem:[%s2073_s2 + $0x98] sm:$0xff]   ;;  %v440_v21 = vld [vmem:[%s1824_s16 + $0xe0] sm:$0xff] }
  0x1e   : > { %1474 = vmatpush3.bf16.msra.mxu1 %v1638_v23  ;;  %v379_v22 = vld [vmem:[%s1837_s28 + $0x90] sm:$0xff]  ;;  %v382_v23 = vld [vmem:[%s1837_s28 + $0xa8] sm:$0xff]  ;;  %v454_v24 = vpack.c.bf16 %v433_v17, %v430_v16  ;;  %v439_v31 = vld [vmem:[%s1824_s16 + $0xd8] sm:$0xff] }
  0x1f   : > { %1475 = vmatprep.subr.bf16.mxu1 %v1641_v26  ;;  %v389_v26 = vld [vmem:[%s1837_s28 + $0xe0] sm:$0xff]  ;;  %v443_v32 = vld [vmem:[%s1824_s16 + $0xf8] sm:$0xff]  ;;  %v442_v40 = vld [vmem:[%s1824_s16 + $0xf0] sm:$0xff] }
  0x20   : > { %1414 = vmatpush3.bf16.msra.mxu0 %v1640_v25  ;;  %v386_v25 = vld [vmem:[%s1837_s28 + $0xc8] sm:$0xff]  ;;  %v385_v33 = vld [vmem:[%s1837_s28 + $0xc0] sm:$0xff]  ;;  %v392_v36 = vld [vmem:[%s1837_s28 + $0xf8] sm:$0xff] }
  0x21   : > { %1415 = vmatprep.subr.bf16.mxu0 %v1643_v28  ;;  %v403_v28 = vpack.c.bf16 %v382_v23, %v379_v22  ;;  %v410_v39 = vpack.c.bf16 %v392_v36, %v392_v36  ;;  %v414_v41 = vld [vmem:[%s1824_s16 + $0x10] sm:$0xff]  ;;  %v417_v42 = vld [vmem:[%s1824_s16 + $0x28] sm:$0xff]  ;;  %v423_v51 = vld [vmem:[%s1824_s16 + $0x58] sm:$0xff] }
  0x22   : > { %1476 = vmatpush3.bf16.msra.mxu1 %v1642_v27  ;;  %v458_v27 = vpack.c.bf16 %v440_v21, %v437_v20  ;;  %v391_v43 = vld [vmem:[%s1837_s28 + $0xf0] sm:$0xff]  ;;  %v366_v46 = vld [vmem:[%s1837_s28 + $0x28] sm:$0xff]  ;;  %v447_v47 = vpack.c.bf16 %v417_v42, %v414_v41  ;;  %v372_v55 = vld [vmem:[%s1837_s28 + $0x58] sm:$0xff] }
  0x23   : > { %1477 = vmatprep.subr.bf16.mxu1 %v1645_v30  ;;  %v436_v30 = vld [vmem:[%s1824_s16 + $0xc0] sm:$0xff]  ;;  %v409_v48 = vpack.c.bf16 %v391_v43, %v391_v43  ;;  %v426_v52 = vld [vmem:[%s1824_s16 + $0x70] sm:$0xff]  ;;  %v429_v53 = vld [vmem:[%s1824_s16 + $0x88] sm:$0xff] }
  0x24   : > { %1416 = vmatpush3.bf16.msra.mxu0 %v1644_v29  ;;  %v407_v29 = vpack.c.bf16 %v389_v26, %v386_v25  ;;  %v457_v35 = vpack.c.bf16 %v439_v31, %v436_v30  ;;  %v378_v58 = vld [vmem:[%s1837_s28 + $0x88] sm:$0xff]  ;;  %v453_v59 = vpack.c.bf16 %v429_v53, %v426_v52  ;;  %v435_v63 = vld [vmem:[%s1824_s16 + $0xb8] sm:$0xff]  ;;  %v438_v0 = vld [vmem:[%s1824_s16 + $0xd0] sm:$0xff] }
  0x25   : > { %1525 = vmatprep.subr.bf16.mxu0 %v1647_v38  ;;  %v441_v1 = vld [vmem:[%s1824_s16 + $0xe8] sm:$0xff]  ;;  %v381_v2 = vld [vmem:[%s1837_s28 + $0xa0] sm:$0xff]  ;;  %v387_v5 = vld [vmem:[%s1837_s28 + $0xd0] sm:$0xff] }
  0x26   : > { %1478 = vmatpush3.bf16.msra.mxu1 %v1646_v34  ;;  %v388_v34 = vld [vmem:[%s1837_s28 + $0xd8] sm:$0xff]  ;;  %v390_v6 = vld [vmem:[%s1837_s28 + $0xe8] sm:$0xff]  ;;  %v393_v11 = vld [vmem:[%s1837_s28 + $0x100] sm:$0xff] }
  0x27   : > { %726 = vmatmul.mubr.bf16.vlgmr.msra.gmra.mrb[0].mxu0 %v445_v37  ;;  %1545 = vmatprep.subr.bf16.mxu1 %v1648_v45  ;;  %v461_v37 = vpack.c.bf16 %v443_v32, %v443_v32  ;;  %v408_v9 = vpack.c.bf16 %v390_v6, %v387_v5 }
  0x28   : > { %1526 = vmatpush3.bf16.msra.mxu0 %v1647_v38  ;;  %733 = vmatprep.mubr.bf16.mxu0 %v449_v50  ;;  %v406_v38 = vpack.c.bf16 %v388_v34, %v385_v33  ;;  %v420_v50 = vld [vmem:[%s1824_s16 + $0x40] sm:$0xff] }
  0x29   : > { %1024 = vmatmul.mubr.bf16.vlgmr.msra.gmra.mrb[0].mxu1 %v394_v44  ;;  %1527 = vmatprep.subr.bf16.mxu0 %v1649_v57  ;;  %v460_v44 = vpack.c.bf16 %v442_v40, %v442_v40 }
  0x2a   : > { %1546 = vmatpush3.bf16.msra.mxu1 %v1648_v45  ;;  %1031 = vmatprep.mubr.bf16.mxu1 %v398_v54  ;;  %v363_v45 = vld [vmem:[%s1837_s28 + $0x10] sm:$0xff]  ;;  %v369_v54 = vld [vmem:[%s1837_s28 + $0x40] sm:$0xff] }
  0x2b   : > { %1547 = vmatprep.subr.bf16.mxu1 %v1650_v62  ;;  %v396_v49 = vpack.c.bf16 %v366_v46, %v363_v45 }
  0x2c   : > { %1528 = vmatpush3.bf16.msra.mxu0 %v1649_v57  ;;  %v375_v57 = vld [vmem:[%s1837_s28 + $0x70] sm:$0xff] }
  0x2d   : > { %1529 = vmatprep.subr.bf16.mxu0 %v1651_v7 }
  0x2e   : > { %1548 = vmatpush3.bf16.msra.mxu1 %v1650_v62  ;;  %v432_v62 = vld [vmem:[%s1824_s16 + $0xa0] sm:$0xff] }
  0x2f   : > { %734 = vmatmul.mubr.bf16.gmra.mrb[4].mxu0 %v448_v56  ;;  %1549 = vmatprep.subr.bf16.mxu1 %v1652_v12  ;;  %v450_v56 = vpack.c.bf16 %v423_v51, %v420_v50  ;;  %v456_v4 = vpack.c.bf16 %v435_v63, %v432_v62 }
  0x30   : > { %741 = vmatprep.mubr.bf16.mxu0 %v452_v60  ;;  %1530 = vmatpush3.bf16.msra.mxu0 %v1651_v7  ;;  %v399_v60 = vpack.c.bf16 %v372_v55, %v369_v54  ;;  %v459_v7 = vpack.c.bf16 %v441_v1, %v438_v0 }
  0x31   : > { %1032 = vmatmul.mubr.bf16.gmra.mrb[4].mxu1 %v397_v61  ;;  %1531 = vmatprep.subr.bf16.mxu0 %v1653_v18  ;;  %v402_v61 = vpack.c.bf16 %v378_v58, %v375_v57 }
  0x32   : > { %1039 = vmatprep.mubr.bf16.mxu1 %v401_v3  ;;  %1550 = vmatpush3.bf16.msra.mxu1 %v1652_v12  ;;  %v384_v3 = vld [vmem:[%s1837_s28 + $0xb8] sm:$0xff] }
  0x33   : > { %1551 = vmatprep.subr.bf16.mxu1 %v1654_v19  ;;  %v405_v8 = vpack.c.bf16 %v384_v3, %v381_v2 }
  0x34   : > { %1532 = vmatpush3.bf16.msra.mxu0 %v1653_v18 }
  0x36   : > { %1552 = vmatpush3.bf16.msra.mxu1 %v1654_v19 }
  0x37   : > { %742 = vmatmul.mubr.bf16.gmra.mrb[8].mxu0 %v451_v10  ;;  %v444_v10 = vld [vmem:[%s1824_s16 + $0x100] sm:$0xff]  ;;  %s1345_s16 = sshll.u32 %s2082_s27, 3 }
  0x38   : > { %749 = vmatprep.mubr.bf16.mxu0 %v455_v13  ;;  %v462_v12 = vpack.c.bf16 %v444_v10, %v444_v10  ;;  %v411_v13 = vpack.c.bf16 %v393_v11, %v393_v11  ;;  %s2014_s27 = scalar_lea.vmem %s2076_s5, %s1345_s16 }
  0x39   : > { %1040 = vmatmul.mubr.bf16.gmra.mrb[8].mxu1 %v400_v14  ;;  %v1679_v14 = vmov 0.0  }
  0x3a   : > { %1047 = vmatprep.mubr.bf16.mxu1 %v404_v15  ;;  %352 = vst.msk [vmem:[#allocation2 + $0x10] sm:$0xff] %vm349_vm1, %v1679_v14  ;;  %350 = vst.msk [vmem:[#allocation2] sm:$0xff] %vm349_vm1, %v1679_v14 }
  0x3b   : > { %351 = vst.msk [vmem:[#allocation2 + $0x8] sm:$0xff] %vm349_vm1, %v1679_v14  ;;  %353 = vst.msk [vmem:[#allocation2 + $0x18] sm:$0xff] %vm349_vm1, %v1679_v14 }
  0x3c   : > { %354 = vst.msk [vmem:[#allocation2 + $0x20] sm:$0xff] %vm349_vm1, %v1679_v14  ;;  %355 = vst.msk [vmem:[#allocation2 + $0x28] sm:$0xff] %vm349_vm1, %v1679_v14 }
  0x3d   : > { %356 = vst.msk [vmem:[#allocation2 + $0x30] sm:$0xff] %vm349_vm1, %v1679_v14  ;;  %357 = vst.msk [vmem:[#allocation2 + $0x38] sm:$0xff] %vm349_vm1, %v1679_v14 }
  0x3e   : > { %358 = vst.msk [vmem:[#allocation2 + $0x40] sm:$0xff] %vm349_vm1, %v1679_v14  ;;  %359 = vst.msk [vmem:[#allocation2 + $0x48] sm:$0xff] %vm349_vm1, %v1679_v14 }
  0x3f   : > { %750 = vmatmul.mubr.bf16.gmra.mrb[12].mxu0 %v454_v24  ;;  %360 = vst.msk [vmem:[#allocation2 + $0x50] sm:$0xff] %vm349_vm1, %v1679_v14 }
  0x40   : > { %757 = vmatprep.mubr.bf16.mxu0 %v458_v27 }
  0x41   : > { %1048 = vmatmul.mubr.bf16.gmra.mrb[12].mxu1 %v403_v28 }
  0x42   : > { %1055 = vmatprep.mubr.bf16.mxu1 %v407_v29 }
  0x47   : > { %758 = vmatmul.mubr.bf16.gmra.mrb[16].mxu0 %v457_v35 }
  0x48   : > { %765 = vmatprep.mubr.bf16.mxu0 %v461_v37 }
  0x49   : > { %1056 = vmatmul.mubr.bf16.gmra.mrb[16].mxu1 %v406_v38 }
  0x4a   : > { %1063 = vmatprep.mubr.bf16.mxu1 %v410_v39 }
  0x4f   : > { %766 = vmatmul.mubr.bf16.gmra.mrb[20].mxu0 %v460_v44 }
  0x50   : > { %1533 = vmatprep.mubr.msk.bf16.mxu0 %vm674_vm0, %v447_v47 }
  0x51   : > { %1064 = vmatmul.mubr.bf16.gmra.mrb[20].mxu1 %v409_v48 }
  0x52   : > { %1553 = vmatprep.mubr.msk.bf16.mxu1 %vm674_vm0, %v396_v49 }
  0x57   : > { %1534 = vmatmul.mubr.msk.bf16.vlgmr.msra.gmra.mrb[24].mxu0 %vm674_vm0, %v450_v56 }
  0x58   : > { %1537 = vmatprep.mubr.msk.bf16.mxu0 %vm674_vm0, %v453_v59 }
  0x59   : > { %1554 = vmatmul.mubr.msk.bf16.vlgmr.msra.gmra.mrb[24].mxu1 %vm674_vm0, %v399_v60 }
  0x5a   : > { %1557 = vmatprep.mubr.msk.bf16.mxu1 %vm674_vm0, %v402_v61 }
  0x5f   : > { %1538 = vmatmul.mubr.msk.bf16.gmra.mrb[28].mxu0 %vm674_vm0, %v456_v4 }
  0x60   : > { %1541 = vmatprep.mubr.msk.bf16.mxu0 %vm674_vm0, %v459_v7 }
  0x61   : > { %1558 = vmatmul.mubr.msk.bf16.gmra.mrb[28].mxu1 %vm674_vm0, %v405_v8 }
  0x62   : > { %1561 = vmatprep.mubr.msk.bf16.mxu1 %vm674_vm0, %v408_v9 }
  0x67   : > { %1542 = vmatmul.mubr.msk.bf16.gmra.mrb[32].mxu0 %vm674_vm0, %v462_v12 }
  0x69   : > { %1562 = vmatmul.mubr.msk.bf16.gmra.mrb[32].mxu1 %vm674_vm0, %v411_v13 }
  0xfa   : > { %v1417_v15 = vpop.f32.mrb[0].mxu0 }
  0xfb   : > { %v1418_v16 = vpop.f32.mrb[1].mxu0 }
  0xfc   : > { %v1953_v17 = vadd.f32 %v1418_v16, %v1417_v15  ;;  %v1420_v18 = vpop.f32.mrb[2].mxu0  ;;  %v1479_v19 = vpop.f32.mrb[0].mxu1 }
  0xfd   : > { %v1421_v20 = vpop.f32.mrb[3].mxu0  ;;  %v1480_v21 = vpop.f32.mrb[1].mxu1 }
  0xfe   : > { %v1955_v22 = vadd.f32 %v1421_v20, %v1420_v18  ;;  %v1957_v23 = vadd.f32 %v1480_v21, %v1479_v19  ;;  %v1482_v24 = vpop.f32.mrb[2].mxu1 }
  0xff   : > { %v1483_v25 = vpop.f32.mrb[3].mxu1 }
 0x100   : > { %v1959_v26 = vadd.f32 %v1483_v25, %v1482_v24 }
 0x102   : > { %v1423_v27 = vpop.f32.mrb[4].mxu0 }
 0x103   : > { %v1424_v28 = vpop.f32.mrb[5].mxu0 }
 0x104   : > { %v1425_v29 = vadd.f32 %v1424_v28, %v1423_v27  ;;  %v1426_v30 = vpop.f32.mrb[6].mxu0  ;;  %v1485_v31 = vpop.f32.mrb[4].mxu1 }
 0x105   : > { %v1427_v32 = vpop.f32.mrb[7].mxu0  ;;  %v1486_v33 = vpop.f32.mrb[5].mxu1 }
 0x106   : > { %v1428_v34 = vadd.f32 %v1427_v32, %v1426_v30  ;;  %v1487_v35 = vadd.f32 %v1486_v33, %v1485_v31  ;;  %v1488_v36 = vpop.f32.mrb[6].mxu1 }
 0x107   : > { %v1489_v37 = vpop.f32.mrb[7].mxu1 }
 0x108   : > { %v1961_v38 = vadd.f32 %v1489_v37, %v1488_v36 }
 0x10a   : > { %v1429_v39 = vpop.f32.mrb[8].mxu0 }
 0x10b   : > { %v1430_v40 = vpop.f32.mrb[9].mxu0 }
 0x10c   : > { %v1963_v41 = vadd.f32 %v1430_v40, %v1429_v39  ;;  %v1432_v42 = vpop.f32.mrb[10].mxu0  ;;  %v1491_v43 = vpop.f32.mrb[8].mxu1  ;;  %v465_v39 = vld [vmem:[#allocation2 + $0x10] sm:$0xff] }
 0x10d   : > { %v1433_v44 = vpop.f32.mrb[11].mxu0  ;;  %v1492_v45 = vpop.f32.mrb[9].mxu1 }
 0x10e   : > { %v1965_v46 = vadd.f32 %v1433_v44, %v1432_v42  ;;  %v1967_v47 = vadd.f32 %v1492_v45, %v1491_v43  ;;  %v1494_v48 = vpop.f32.mrb[10].mxu1  ;;  %v463_v45 = vld [vmem:[#allocation2] sm:$0xff] }
 0x10f   : > { %v1495_v49 = vpop.f32.mrb[11].mxu1 }
 0x110   : > { %v1969_v50 = vadd.f32 %v1495_v49, %v1494_v48 }
 0x112   : > { %v1435_v51 = vpop.f32.mrb[12].mxu0 }
 0x113   : > { %v1436_v52 = vpop.f32.mrb[13].mxu0 }
 0x114   : > { %v1437_v53 = vadd.f32 %v1436_v52, %v1435_v51  ;;  %v1438_v54 = vpop.f32.mrb[14].mxu0  ;;  %v1497_v55 = vpop.f32.mrb[12].mxu1  ;;  %v466_v51 = vld [vmem:[#allocation2 + $0x18] sm:$0xff] }
 0x115   : > { %v1439_v56 = vpop.f32.mrb[15].mxu0  ;;  %v1498_v57 = vpop.f32.mrb[13].mxu1 }
 0x116   : > { %v1971_v58 = vadd.f32 %v1439_v56, %v1438_v54  ;;  %v1973_v59 = vadd.f32 %v1498_v57, %v1497_v55  ;;  %v1500_v60 = vpop.f32.mrb[14].mxu1 }
 0x117   : > { %v1501_v61 = vpop.f32.mrb[15].mxu1 }
 0x118   : > { %v1975_v62 = vadd.f32 %v1501_v61, %v1500_v60 }
 0x11a   : > { %v1441_v63 = vpop.f32.mrb[16].mxu0 }
 0x11b   : > { %v1442_v0 = vpop.f32.mrb[17].mxu0 }
 0x11c   : > { %v1977_v1 = vadd.f32 %v1442_v0, %v1441_v63  ;;  %v1444_v2 = vpop.f32.mrb[18].mxu0  ;;  %v1503_v3 = vpop.f32.mrb[16].mxu1 }
 0x11d   : > { %v1445_v4 = vpop.f32.mrb[19].mxu0  ;;  %v1504_v5 = vpop.f32.mrb[17].mxu1 }
 0x11e   : > { %v1979_v6 = vadd.f32 %v1445_v4, %v1444_v2  ;;  %v1981_v7 = vadd.f32 %v1504_v5, %v1503_v3  ;;  %v1506_v8 = vpop.f32.mrb[18].mxu1 }
 0x11f   : > { %v1507_v9 = vpop.f32.mrb[19].mxu1 }
 0x120   : > { %v1983_v10 = vadd.f32 %v1507_v9, %v1506_v8  ;;  %v467_v9 = vld [vmem:[#allocation2 + $0x20] sm:$0xff] }
 0x122   : > { %v1447_v11 = vpop.f32.mrb[20].mxu0 }
 0x123   : > { %v1448_v12 = vpop.f32.mrb[21].mxu0 }
 0x124   : > { %v1985_v13 = vadd.f32 %v1448_v12, %v1447_v11  ;;  %v1450_v14 = vpop.f32.mrb[22].mxu0  ;;  %v1509_v15 = vpop.f32.mrb[20].mxu1 }
 0x125   : > { %v1451_v16 = vpop.f32.mrb[23].mxu0  ;;  %v1510_v18 = vpop.f32.mrb[21].mxu1  ;;  %v470_v14 = vld [vmem:[#allocation2 + $0x38] sm:$0xff] }
 0x126   : > { %v1987_v19 = vadd.f32 %v1510_v18, %v1509_v15  ;;  %v1512_v20 = vpop.f32.mrb[22].mxu1  ;;  %v468_v18 = vld [vmem:[#allocation2 + $0x28] sm:$0xff] }
 0x127   : > { %v1513_v21 = vpop.f32.mrb[23].mxu1 }
 0x12a   : > { %v1535_v24 = vpop.f32.mrb[24].mxu0 }
 0x12b   : > { %v816_v25 = vadd.f32 %v1535_v24, %v1425_v29  ;;  %v807_v27 = vpop.f32.mrb[25].mxu0 }
 0x12c   : > { %v808_v28 = vadd.f32 %v1953_v17, %v807_v27  ;;  %v1536_v30 = vpop.f32.mrb[26].mxu0  ;;  %v1555_v31 = vpop.f32.mrb[24].mxu1 }
 0x12d   : > { %v819_v32 = vadd.f32 %v1536_v30, %v1428_v34  ;;  %v1034_v33 = vadd.f32 %v1487_v35, %v816_v25  ;;  %v810_v36 = vpop.f32.mrb[27].mxu0  ;;  %v1105_v37 = vpop.f32.mrb[25].mxu1  ;;  %v464_v35 = vld [vmem:[#allocation2 + $0x8] sm:$0xff] }
 0x12e   : > { %v811_v40 = vadd.f32 %v1955_v22, %v810_v36  ;;  %v1026_v42 = vadd.f32 %v1957_v23, %v808_v28  ;;  %v1556_v43 = vpop.f32.mrb[26].mxu1 }
 0x12f   : > { %v1114_v44 = vadd.f32 %v1555_v31, %v1034_v33  ;;  %v1037_v48 = vadd.f32 %v1961_v38, %v819_v32  ;;  %v1108_v29 = vpop.f32.mrb[27].mxu1 }
 0x130   : > { %v1106_v49 = vadd.f32 %v1105_v37, %v1026_v42  ;;  %v1029_v17 = vadd.f32 %v1959_v26, %v811_v40 }
 0x131   : > { %v1153_v52 = vadd.f32 %v1114_v44, %v465_v39  ;;  %v1117_v34 = vadd.f32 %v1556_v43, %v1037_v48 }
 0x132   : > { %v1151_v54 = vadd.f32 %v1106_v49, %v463_v45  ;;  %v1109_v55 = vadd.f32 %v1108_v29, %v1029_v17  ;;  %v1539_v56 = vpop.f32.mrb[28].mxu0 }
 0x133   : > { %1165 = vst.msk [vmem:[#allocation2 + $0x10] sm:$0xff] %vm349_vm1, %v1153_v52  ;;  %v1154_v22 = vadd.f32 %v1117_v34, %v466_v51  ;;  %v832_v23 = vadd.f32 %v1539_v56, %v1437_v53  ;;  %v823_v57 = vpop.f32.mrb[29].mxu0  ;;  %v469_v53 = vld [vmem:[#allocation2 + $0x30] sm:$0xff]  ;;  %v471_v51 = vld [vmem:[#allocation2 + $0x40] sm:$0xff] }
 0x134   : > { %1163 = vst.msk [vmem:[#allocation2] sm:$0xff] %vm349_vm1, %v1151_v54  ;;  %v1152_v38 = vadd.f32 %v1109_v55, %v464_v35  ;;  %v824_v60 = vadd.f32 %v1963_v41, %v823_v57  ;;  %v1540_v61 = vpop.f32.mrb[30].mxu0  ;;  %v1559_v63 = vpop.f32.mrb[28].mxu1  ;;  %v472_v35 = vld [vmem:[#allocation2 + $0x48] sm:$0xff] }
 0x135   : > { %1166 = vst.msk [vmem:[#allocation2 + $0x18] sm:$0xff] %vm349_vm1, %v1154_v22  ;;  %v835_v26 = vadd.f32 %v1540_v61, %v1971_v58  ;;  %v1050_v0 = vadd.f32 %v1973_v59, %v832_v23  ;;  %v826_v2 = vpop.f32.mrb[31].mxu0  ;;  %v1121_v3 = vpop.f32.mrb[29].mxu1  ;;  %v2008_v58 = vld [vmem:[%s2075_s4] ss:$0 sm:$0xff] }
 0x136   : > { %1164 = vst.msk [vmem:[#allocation2 + $0x8] sm:$0xff] %vm349_vm1, %v1152_v38  ;;  %v827_v4 = vadd.f32 %v1965_v46, %v826_v2  ;;  %v1042_v5 = vadd.f32 %v1967_v47, %v824_v60  ;;  %v1560_v8 = vpop.f32.mrb[30].mxu1 }
 0x137   : > { %v1130_v41 = vadd.f32 %v1559_v63, %v1050_v0  ;;  %v1053_v11 = vadd.f32 %v1975_v62, %v835_v26  ;;  %v1124_v12 = vpop.f32.mrb[31].mxu1 }
 0x138   : > { %v1122_v59 = vadd.f32 %v1121_v3, %v1042_v5  ;;  %v1045_v15 = vadd.f32 %v1969_v50, %v827_v4 }
 0x139   : > { %v1157_v16 = vadd.f32 %v1130_v41, %v469_v53  ;;  %v1133_v46 = vadd.f32 %v1560_v8, %v1053_v11 }
 0x13a   : > { %v1179_v47 = vld [vmem:[#allocation2 + $0x10] sm:$0xff]  ;;  %v1155_v62 = vadd.f32 %v1122_v59, %v467_v9  ;;  %v1125_v20 = vadd.f32 %v1124_v12, %v1045_v15  ;;  %v1543_v21 = vpop.f32.mrb[32].mxu0 }
 0x13b   : > { %v1197_v24 = vadd.f32 %v2008_v58, %v1179_v47  ;;  %v1177_v25 = vld [vmem:[#allocation2] sm:$0xff]  ;;  %1169 = vst.msk [vmem:[#allocation2 + $0x30] sm:$0xff] %vm349_vm1, %v1157_v16  ;;  %v1158_v27 = vadd.f32 %v1133_v46, %v470_v14  ;;  %v848_v50 = vadd.f32 %v1543_v21, %v1985_v13  ;;  %v839_v28 = vpop.f32.mrb[33].mxu0 }
 0x13c   : > { %v1195_v30 = vadd.f32 %v2008_v58, %v1177_v25  ;;  %v1180_v31 = vld [vmem:[#allocation2 + $0x18] sm:$0xff]  ;;  %1167 = vst.msk [vmem:[#allocation2 + $0x20] sm:$0xff] %vm349_vm1, %v1155_v62  ;;  %v1156_v32 = vadd.f32 %v1125_v20, %v468_v18  ;;  %v840_v33 = vadd.f32 %v1977_v1, %v839_v28  ;;  %v1544_v36 = vpop.f32.mrb[34].mxu0  ;;  %v1563_v37 = vpop.f32.mrb[32].mxu1  ;;  %v473_v1 = vld [vmem:[#allocation2 + $0x50] sm:$0xff] }
 0x13d   : > { %1208 = vst.msk [vmem:[%s2014_s27 + $0x10] sm:$0xff] %vm349_vm1, %v1197_v24  ;;  %v1198_v39 = vadd.f32 %v2008_v58, %v1180_v31  ;;  %v1178_v40 = vld [vmem:[#allocation2 + $0x8] sm:$0xff]  ;;  %1170 = vst.msk [vmem:[#allocation2 + $0x38] sm:$0xff] %vm349_vm1, %v1158_v27  ;;  %v1066_v13 = vadd.f32 %v1987_v19, %v848_v50  ;;  %v842_v42 = vpop.f32.mrb[35].mxu0  ;;  %v1137_v43 = vpop.f32.mrb[33].mxu1 }
 0x13e   : > { %1206 = vst.msk [vmem:[%s2014_s27] sm:$0xff] %vm349_vm1, %v1195_v30  ;;  %v1196_v44 = vadd.f32 %v2008_v58, %v1178_v40  ;;  %1168 = vst.msk [vmem:[#allocation2 + $0x28] sm:$0xff] %vm349_vm1, %v1156_v32  ;;  %v843_v45 = vadd.f32 %v1979_v6, %v842_v42  ;;  %v1058_v48 = vadd.f32 %v1981_v7, %v840_v33  ;;  %v1564_v29 = vpop.f32.mrb[34].mxu1 }
 0x13f   : > { %1209 = vst.msk [vmem:[%s2014_s27 + $0x18] sm:$0xff] %vm349_vm1, %v1198_v39  ;;  %v1146_v49 = vadd.f32 %v1563_v37, %v1066_v13  ;;  %v1140_v17 = vpop.f32.mrb[35].mxu1 }
 0x140   : > { %1207 = vst.msk [vmem:[%s2014_s27 + $0x8] sm:$0xff] %vm349_vm1, %v1196_v44  ;;  %v1138_v19 = vadd.f32 %v1137_v43, %v1058_v48  ;;  %v1061_v52 = vadd.f32 %v1983_v10, %v843_v45 }
 0x141   : > { %v1161_v34 = vadd.f32 %v1146_v49, %v473_v1 }
 0x142   : > { %v1183_v54 = vld [vmem:[#allocation2 + $0x30] sm:$0xff]  ;;  %v1159_v6 = vadd.f32 %v1138_v19, %v471_v51  ;;  %v1141_v7 = vadd.f32 %v1140_v17, %v1061_v52 }
 0x143   : > { %v1201_v55 = vadd.f32 %v2008_v58, %v1183_v54  ;;  %v1181_v56 = vld [vmem:[#allocation2 + $0x20] sm:$0xff]  ;;  %1173 = vst.msk [vmem:[#allocation2 + $0x50] sm:$0xff] %vm349_vm1, %v1161_v34 }
 0x144   : > { %v1199_v22 = vadd.f32 %v2008_v58, %v1181_v56  ;;  %v1184_v23 = vld [vmem:[#allocation2 + $0x38] sm:$0xff]  ;;  %1171 = vst.msk [vmem:[#allocation2 + $0x40] sm:$0xff] %vm349_vm1, %v1159_v6  ;;  %v1160_v10 = vadd.f32 %v1141_v7, %v472_v35 }
 0x145   : > { %1212 = vst.msk [vmem:[%s2014_s27 + $0x30] sm:$0xff] %vm349_vm1, %v1201_v55  ;;  %v1202_v57 = vadd.f32 %v2008_v58, %v1184_v23  ;;  %v1182_v38 = vld [vmem:[#allocation2 + $0x28] sm:$0xff] }
 0x146   : > { %1210 = vst.msk [vmem:[%s2014_s27 + $0x20] sm:$0xff] %vm349_vm1, %v1199_v22  ;;  %v1200_v60 = vadd.f32 %v2008_v58, %v1182_v38  ;;  %1172 = vst.msk [vmem:[#allocation2 + $0x48] sm:$0xff] %vm349_vm1, %v1160_v10 }
 0x147   : > { %1213 = vst.msk [vmem:[%s2014_s27 + $0x38] sm:$0xff] %vm349_vm1, %v1202_v57 }
 0x148   : > { %1211 = vst.msk [vmem:[%s2014_s27 + $0x28] sm:$0xff] %vm349_vm1, %v1200_v60 }
 0x14a   : > { %v1187_v61 = vld [vmem:[#allocation2 + $0x50] sm:$0xff] }
 0x14b   : > { %v1205_v63 = vadd.f32 %v2008_v58, %v1187_v61  ;;  %v1185_v26 = vld [vmem:[#allocation2 + $0x40] sm:$0xff] }
 0x14c   : > { %v1203_v0 = vadd.f32 %v2008_v58, %v1185_v26 }
 0x14d   : > { %1216 = vst.msk [vmem:[%s2014_s27 + $0x50] sm:$0xff] %vm349_vm1, %v1205_v63  ;;  %v1186_v2 = vld [vmem:[#allocation2 + $0x48] sm:$0xff] }
 0x14e   : > { %1214 = vst.msk [vmem:[%s2014_s27 + $0x40] sm:$0xff] %vm349_vm1, %v1203_v0  ;;  %v1204_v3 = vadd.f32 %v2008_v58, %v1186_v2 }
 0x150   : > { %1215 = vst.msk [vmem:[%s2014_s27 + $0x48] sm:$0xff] %vm349_vm1, %v1204_v3 }
 0x151 PF: > { %s15_s20 = sadd.s32 1, %s1677_s20   ;;  %s2077_s18 = smov %s1673_s19 }
 0x152   : > { %p12_p5 = scmp.ge.s32.totalorder %s15_s20, 4   ;;  %s2078_s19 = smov %s2080_s21 }
 0x154   :  { %14 = sbr.rel (!%p12_p5) target bundleno = 2 (0x2), region = 87 }

// kernel: dcnn_forward.27
= control target key start
LH: loop header
LB: loop body
LE: loop exit
PB: predicated region body
PF: predicated region fallthrough
CT: control target
= control target key end

     0   :  { %s1346_s18 = smov 0   ;;  %s1348_s19 = smov 0   ;;  %s1680_s0 = inlined_call_operand.vmem [shape: f32[320,160], index: 0, kind: input, shape index: {}]   ;;  %s1681_s1 = inlined_call_operand.vmem [shape: f32[320,160], index: 1, kind: input, shape index: {}]   ;;  %s1682_s2 = inlined_call_operand.vmem [shape: bf16[160,8], index: 2, kind: input, shape index: {}]   ;;  %s1683_s3 = inlined_call_operand.vmem [shape: bf16[160,8], index: 3, kind: input, shape index: {}]   ;;  %s1684_s4 = inlined_call_operand.vmem [shape: f32[1,8], index: 4, kind: input, shape index: {}]   ;;  %s1685_s5 = inlined_call_operand.vmem [shape: f32[320,8], index: 5, kind: output, shape index: {}]  }
   0x1   :  { %s1350_s20 = smov 0  }
   0x2 LB: > { %s27_s21 = sadd.s32 1, %s1308_s19  ;;  %p1193_p0 = scmp.ge.s32.totalorder %s1312_s20, 1  ;;  %s1312_s20 = sphi %s1350_s20, %s15_s20   ;;  %s1308_s19 = sphi %s1348_s19, %s1687_s19   ;;  %s1304_s18 = sphi %s1346_s18, %s1686_s18  }
   0x3   : > { %p29_p1 = scmp.ge.s32.totalorder %s27_s21, 2  ;;  %p249_p2 = scmp.lt.s32.totalorder %s1312_s20, 3 }
   0x5   : > { %s1689_s21 = smov (%p29_p1, %s27_s21), 0  ;;  %p250_p3 = pnand %p1193_p0, %p249_p2 }
   0x6   : > { %v1270_v0 = vld [vmem:[%s1683_s3] sm:$0xff] (!%p250_p3)   ;;  %v1314_v1 = vmov (!%p250_p3), 0   ;;  %v1272_v3 = vld [vmem:[%s1683_s3 + $0x8] sm:$0xff] (!%p250_p3)   ;;  %s302_s28 = smul.u32 (!%p250_p3), 20, %s1304_s18  ;;  %v1274_v5 = vld [vmem:[%s1683_s3 + $0x10] sm:$0xff] (!%p250_p3)   ;;  %vm610_vm0 = vcmask (!%p250_p3), 261120  }
   0x7   : > { %253 = sbr.rel (%p250_p3) target bundleno = 348 (0x15c), region = 40  ;;  %641 = vmatprep.subr.bf16.mxu0 (!%p250_p3), %v1314_v1  ;;  %844 = vmatprep.subr.bf16.mxu1 (!%p250_p3), %v1314_v1  ;;  %v1271_v2 = vld [vmem:[%s1682_s2] sm:$0xff] (!%p250_p3)   ;;  %v1273_v4 = vld [vmem:[%s1682_s2 + $0x8] sm:$0xff] (!%p250_p3)   ;;  %v1275_v6 = vld [vmem:[%s1682_s2 + $0x10] sm:$0xff] (!%p250_p3)   ;;  %vm349_vm1 = vcmask (!%p250_p3), 64512  }
   0x8   : > { %642 = vmatpush1.bf16.msra.mxu0 (!%p250_p3), %v1270_v0  ;;  %845 = vmatpush1.bf16.msra.mxu1 (!%p250_p3), %v1271_v2  ;;  %p304_p4 = scmp.lt.s32.totalorder (!%p250_p3), %s302_s28, 39  ;;  %v1276_v7 = vld [vmem:[%s1683_s3 + $0x18] sm:$0xff] (!%p250_p3)   ;;  %v1278_v9 = vld [vmem:[%s1683_s3 + $0x20] sm:$0xff] (!%p250_p3)   ;;  %v1280_v11 = vld [vmem:[%s1683_s3 + $0x28] sm:$0xff] (!%p250_p3)  }
   0x9   : > { %643 = vmatprep.subr.bf16.mxu0 (!%p250_p3), %v1314_v1  ;;  %846 = vmatprep.subr.bf16.mxu1 (!%p250_p3), %v1314_v1  ;;  %v1277_v8 = vld [vmem:[%s1682_s2 + $0x18] sm:$0xff] (!%p250_p3)   ;;  %v1279_v10 = vld [vmem:[%s1682_s2 + $0x20] sm:$0xff] (!%p250_p3)   ;;  %v1281_v12 = vld [vmem:[%s1682_s2 + $0x28] sm:$0xff] (!%p250_p3)  }
   0xa   : > { %v1282_v18 = vld [vmem:[%s1683_s3 + $0x30] sm:$0xff] (!%p250_p3)   ;;  %v1284_v21 = vld [vmem:[%s1683_s3 + $0x38] sm:$0xff] (!%p250_p3)   ;;  %v1286_v23 = vld [vmem:[%s1683_s3 + $0x40] sm:$0xff] (!%p250_p3)  }
   0xb   : > { %v1283_v20 = vld [vmem:[%s1682_s2 + $0x30] sm:$0xff] (!%p250_p3)   ;;  %v1285_v22 = vld [vmem:[%s1682_s2 + $0x38] sm:$0xff] (!%p250_p3)   ;;  %v1287_v24 = vld [vmem:[%s1682_s2 + $0x40] sm:$0xff] (!%p250_p3)  }
   0xc   : > { %644 = vmatpush1.bf16.msra.mxu0 (!%p250_p3), %v1272_v3  ;;  %847 = vmatpush1.bf16.msra.mxu1 (!%p250_p3), %v1273_v4  ;;  %v1288_v25 = vld [vmem:[%s1683_s3 + $0x48] sm:$0xff] (!%p250_p3)  }
   0xd   : > { %645 = vmatprep.subr.bf16.mxu0 (!%p250_p3), %v1314_v1  ;;  %848 = vmatprep.subr.bf16.mxu1 (!%p250_p3), %v1314_v1  ;;  %v1289_v26 = vld [vmem:[%s1682_s2 + $0x48] sm:$0xff] (!%p250_p3)  }
   0xe   : > { %s1691_s28 = smov (!%p304_p4, %s302_s28), 39 }
   0xf   : > { %s1242_s16 = sshll.u32 %s1691_s28, 4 }
  0x10   : > { %646 = vmatpush1.bf16.msra.mxu0 %v1274_v5  ;;  %849 = vmatpush1.bf16.msra.mxu1 %v1275_v6  ;;  %s1413_s24 = scalar_lea.vmem %s1681_s1, %s1242_s16  ;;  %s1418_s27 = scalar_lea.vmem %s1680_s0, %s1242_s16 }
  0x11   : > { %647 = vmatprep.subr.bf16.mxu0 %v1314_v1  ;;  %850 = vmatprep.subr.bf16.mxu1 %v1314_v1  ;;  %v431_v13 = vld [vmem:[%s1413_s24 + $0x8] sm:$0xff]  ;;  %v433_v14 = vld [vmem:[%s1413_s24 + $0x18] sm:$0xff]  ;;  %v430_v27 = vld [vmem:[%s1413_s24] sm:$0xff] }
  0x12   : > { %v371_v15 = vld [vmem:[%s1418_s27 + $0x8] sm:$0xff]  ;;  %v471_v16 = vpack.c.bf16 %v433_v14, %v431_v13  ;;  %v373_v17 = vld [vmem:[%s1418_s27 + $0x18] sm:$0xff]  ;;  %v432_v28 = vld [vmem:[%s1413_s24 + $0x10] sm:$0xff] }
  0x13   : > { %v411_v19 = vpack.c.bf16 %v373_v17, %v371_v15  ;;  %v370_v29 = vld [vmem:[%s1418_s27] sm:$0xff]  ;;  %v372_v30 = vld [vmem:[%s1418_s27 + $0x10] sm:$0xff]  ;;  %v435_v31 = vld [vmem:[%s1413_s24 + $0x28] sm:$0xff]  ;;  %v470_v35 = vpack.c.bf16 %v432_v28, %v430_v27 }
  0x14   : > { %648 = vmatpush1.bf16.msra.mxu0 %v1276_v7  ;;  %851 = vmatpush1.bf16.msra.mxu1 %v1277_v8  ;;  %v437_v32 = vld [vmem:[%s1413_s24 + $0x38] sm:$0xff]  ;;  %v375_v33 = vld [vmem:[%s1418_s27 + $0x28] sm:$0xff]  ;;  %v410_v36 = vpack.c.bf16 %v372_v30, %v370_v29  ;;  %v434_v39 = vld [vmem:[%s1413_s24 + $0x20] sm:$0xff] }
  0x15   : > { %649 = vmatprep.subr.bf16.mxu0 %v1314_v1  ;;  %852 = vmatprep.subr.bf16.mxu1 %v1314_v1  ;;  %v377_v34 = vld [vmem:[%s1418_s27 + $0x38] sm:$0xff]  ;;  %v473_v37 = vpack.c.bf16 %v437_v32, %v435_v31  ;;  %v436_v40 = vld [vmem:[%s1413_s24 + $0x30] sm:$0xff]  ;;  %v374_v41 = vld [vmem:[%s1418_s27 + $0x20] sm:$0xff] }
  0x16   : > { %1209 = vmatprep.mubr.msk.bf16.mxu0 %vm610_vm0, %v471_v16  ;;  %1229 = vmatprep.mubr.msk.bf16.mxu1 %vm610_vm0, %v411_v19  ;;  %v413_v38 = vpack.c.bf16 %v377_v34, %v375_v33  ;;  %v376_v42 = vld [vmem:[%s1418_s27 + $0x30] sm:$0xff]  ;;  %v439_v43 = vld [vmem:[%s1413_s24 + $0x48] sm:$0xff]  ;;  %v441_v44 = vld [vmem:[%s1413_s24 + $0x58] sm:$0xff]  ;;  %v472_v47 = vpack.c.bf16 %v436_v40, %v434_v39 }
  0x17   : > { %v379_v45 = vld [vmem:[%s1418_s27 + $0x48] sm:$0xff]  ;;  %v381_v46 = vld [vmem:[%s1418_s27 + $0x58] sm:$0xff]  ;;  %v412_v48 = vpack.c.bf16 %v376_v42, %v374_v41  ;;  %v475_v49 = vpack.c.bf16 %v441_v44, %v439_v43  ;;  %v438_v51 = vld [vmem:[%s1413_s24 + $0x40] sm:$0xff] }
  0x18   : > { %650 = vmatpush1.bf16.msra.mxu0 %v1278_v9  ;;  %853 = vmatpush1.bf16.msra.mxu1 %v1279_v10  ;;  %v415_v50 = vpack.c.bf16 %v381_v46, %v379_v45  ;;  %v440_v52 = vld [vmem:[%s1413_s24 + $0x50] sm:$0xff]  ;;  %v378_v53 = vld [vmem:[%s1418_s27 + $0x40] sm:$0xff]  ;;  %v443_v55 = vld [vmem:[%s1413_s24 + $0x68] sm:$0xff] }
  0x19   : > { %651 = vmatprep.subr.bf16.mxu0 %v1314_v1  ;;  %854 = vmatprep.subr.bf16.mxu1 %v1314_v1  ;;  %v380_v54 = vld [vmem:[%s1418_s27 + $0x50] sm:$0xff]  ;;  %v445_v56 = vld [vmem:[%s1413_s24 + $0x78] sm:$0xff]  ;;  %v383_v57 = vld [vmem:[%s1418_s27 + $0x68] sm:$0xff]  ;;  %v474_v59 = vpack.c.bf16 %v440_v52, %v438_v51 }
  0x1a   : > { %v385_v58 = vld [vmem:[%s1418_s27 + $0x78] sm:$0xff]  ;;  %v414_v60 = vpack.c.bf16 %v380_v54, %v378_v53  ;;  %v477_v61 = vpack.c.bf16 %v445_v56, %v443_v55  ;;  %v442_v63 = vld [vmem:[%s1413_s24 + $0x60] sm:$0xff]  ;;  %v444_v0 = vld [vmem:[%s1413_s24 + $0x70] sm:$0xff] }
  0x1b   : > { %v417_v62 = vpack.c.bf16 %v385_v58, %v383_v57  ;;  %v384_v2 = vld [vmem:[%s1418_s27 + $0x70] sm:$0xff]  ;;  %v447_v3 = vld [vmem:[%s1413_s24 + $0x88] sm:$0xff]  ;;  %v449_v4 = vld [vmem:[%s1413_s24 + $0x98] sm:$0xff]  ;;  %v476_v7 = vpack.c.bf16 %v444_v0, %v442_v63 }
  0x1c   : > { %652 = vmatpush1.bf16.msra.mxu0 %v1280_v11  ;;  %855 = vmatpush1.bf16.msra.mxu1 %v1281_v12  ;;  %v387_v5 = vld [vmem:[%s1418_s27 + $0x88] sm:$0xff]  ;;  %v389_v6 = vld [vmem:[%s1418_s27 + $0x98] sm:$0xff]  ;;  %v479_v9 = vpack.c.bf16 %v449_v4, %v447_v3  ;;  %v446_v11 = vld [vmem:[%s1413_s24 + $0x80] sm:$0xff] }
  0x1d   : > { %653 = vmatprep.subr.bf16.mxu0 %v1314_v1  ;;  %856 = vmatprep.subr.bf16.mxu1 %v1314_v1  ;;  %v419_v10 = vpack.c.bf16 %v389_v6, %v387_v5  ;;  %v448_v12 = vld [vmem:[%s1413_s24 + $0x90] sm:$0xff]  ;;  %v386_v13 = vld [vmem:[%s1418_s27 + $0x80] sm:$0xff]  ;;  %v451_v15 = vld [vmem:[%s1413_s24 + $0xa8] sm:$0xff] }
  0x1e   : > { %v388_v14 = vld [vmem:[%s1418_s27 + $0x90] sm:$0xff]  ;;  %v453_v16 = vld [vmem:[%s1413_s24 + $0xb8] sm:$0xff]  ;;  %v391_v17 = vld [vmem:[%s1418_s27 + $0xa8] sm:$0xff]  ;;  %v478_v19 = vpack.c.bf16 %v448_v12, %v446_v11 }
  0x1f   : > { %v455_v27 = vld [vmem:[%s1413_s24 + $0xc8] sm:$0xff]  ;;  %v457_v28 = vld [vmem:[%s1413_s24 + $0xd8] sm:$0xff] }
  0x20   : > { %654 = vmatpush1.bf16.msra.mxu0 %v1282_v18  ;;  %857 = vmatpush1.bf16.msra.mxu1 %v1283_v20  ;;  %v393_v18 = vld [vmem:[%s1418_s27 + $0xb8] sm:$0xff]  ;;  %v418_v20 = vpack.c.bf16 %v388_v14, %v386_v13  ;;  %v395_v29 = vld [vmem:[%s1418_s27 + $0xc8] sm:$0xff]  ;;  %v483_v33 = vpack.c.bf16 %v457_v28, %v455_v27  ;;  %v1315_v13 = vmov 0.0  }
  0x21   : > { %655 = vmatprep.subr.bf16.mxu0 %v1314_v1  ;;  %858 = vmatprep.subr.bf16.mxu1 %v1314_v1  ;;  %v397_v30 = vld [vmem:[%s1418_s27 + $0xd8] sm:$0xff]  ;;  %v459_v39 = vld [vmem:[%s1413_s24 + $0xe8] sm:$0xff]  ;;  %350 = vst.msk [vmem:[#allocation2] sm:$0xff] %vm349_vm1, %v1315_v13  ;;  %351 = vst.msk [vmem:[#allocation2 + $0x8] sm:$0xff] %vm349_vm1, %v1315_v13 }
  0x22   : > { %v423_v34 = vpack.c.bf16 %v397_v30, %v395_v29  ;;  %v461_v40 = vld [vmem:[%s1413_s24 + $0xf8] sm:$0xff]  ;;  %v399_v41 = vld [vmem:[%s1418_s27 + $0xe8] sm:$0xff]  ;;  %352 = vst.msk [vmem:[#allocation2 + $0x10] sm:$0xff] %vm349_vm1, %v1315_v13  ;;  %353 = vst.msk [vmem:[#allocation2 + $0x18] sm:$0xff] %vm349_vm1, %v1315_v13 }
  0x23   : > { %v401_v42 = vld [vmem:[%s1418_s27 + $0xf8] sm:$0xff]  ;;  %v485_v45 = vpack.c.bf16 %v461_v40, %v459_v39  ;;  %v463_v51 = vld [vmem:[%s1413_s24 + $0x108] sm:$0xff]  ;;  %354 = vst.msk [vmem:[#allocation2 + $0x20] sm:$0xff] %vm349_vm1, %v1315_v13  ;;  %355 = vst.msk [vmem:[#allocation2 + $0x28] sm:$0xff] %vm349_vm1, %v1315_v13 }
  0x24   : > { %656 = vmatpush1.bf16.msra.mxu0 %v1284_v21  ;;  %859 = vmatpush1.bf16.msra.mxu1 %v1285_v22  ;;  %v481_v21 = vpack.c.bf16 %v453_v16, %v451_v15  ;;  %v421_v22 = vpack.c.bf16 %v393_v18, %v391_v17  ;;  %v425_v46 = vpack.c.bf16 %v401_v42, %v399_v41  ;;  %v465_v52 = vld [vmem:[%s1413_s24 + $0x118] sm:$0xff]  ;;  %v403_v53 = vld [vmem:[%s1418_s27 + $0x108] sm:$0xff] }
  0x25   : > { %657 = vmatprep.subr.bf16.mxu0 %v1314_v1  ;;  %860 = vmatprep.subr.bf16.mxu1 %v1314_v1  ;;  %v405_v54 = vld [vmem:[%s1418_s27 + $0x118] sm:$0xff]  ;;  %v487_v57 = vpack.c.bf16 %v465_v52, %v463_v51  ;;  %v467_v63 = vld [vmem:[%s1413_s24 + $0x128] sm:$0xff]  ;;  %356 = vst.msk [vmem:[#allocation2 + $0x30] sm:$0xff] %vm349_vm1, %v1315_v13  ;;  %357 = vst.msk [vmem:[#allocation2 + $0x38] sm:$0xff] %vm349_vm1, %v1315_v13 }
  0x26   : > { %v427_v58 = vpack.c.bf16 %v405_v54, %v403_v53  ;;  %v469_v0 = vld [vmem:[%s1413_s24 + $0x138] sm:$0xff]  ;;  %358 = vst.msk [vmem:[#allocation2 + $0x40] sm:$0xff] %vm349_vm1, %v1315_v13  ;;  %359 = vst.msk [vmem:[#allocation2 + $0x48] sm:$0xff] %vm349_vm1, %v1315_v13 }
  0x27   : > { %v489_v5 = vpack.c.bf16 %v469_v0, %v467_v63  ;;  %360 = vst.msk [vmem:[#allocation2 + $0x50] sm:$0xff] %vm349_vm1, %v1315_v13  ;;  %361 = vst.msk [vmem:[#allocation2 + $0x58] sm:$0xff] %vm349_vm1, %v1315_v13 }
  0x28   : > { %658 = vmatpush1.bf16.msra.mxu0 %v1286_v23  ;;  %861 = vmatpush1.bf16.msra.mxu1 %v1287_v24  ;;  %v450_v23 = vld [vmem:[%s1413_s24 + $0xa0] sm:$0xff]  ;;  %v452_v24 = vld [vmem:[%s1413_s24 + $0xb0] sm:$0xff]  ;;  %362 = vst.msk [vmem:[#allocation2 + $0x60] sm:$0xff] %vm349_vm1, %v1315_v13  ;;  %363 = vst.msk [vmem:[#allocation2 + $0x68] sm:$0xff] %vm349_vm1, %v1315_v13 }
  0x29   : > { %659 = vmatprep.subr.bf16.mxu0 %v1314_v1  ;;  %862 = vmatprep.subr.bf16.mxu1 %v1314_v1  ;;  %v382_v1 = vld [vmem:[%s1418_s27 + $0x60] sm:$0xff]  ;;  %v480_v31 = vpack.c.bf16 %v452_v24, %v450_v23  ;;  %364 = vst.msk [vmem:[#allocation2 + $0x70] sm:$0xff] %vm349_vm1, %v1315_v13  ;;  %365 = vst.msk [vmem:[#allocation2 + $0x78] sm:$0xff] %vm349_vm1, %v1315_v13  ;;  %v492_v29 = vld [vmem:[#allocation2 + $0x10] sm:$0xff] }
  0x2a   : > { %v416_v8 = vpack.c.bf16 %v384_v2, %v382_v1  ;;  %v407_v1 = vld [vmem:[%s1418_s27 + $0x128] sm:$0xff]  ;;  %v409_v2 = vld [vmem:[%s1418_s27 + $0x138] sm:$0xff]  ;;  %366 = vst.msk [vmem:[#allocation2 + $0x80] sm:$0xff] %vm349_vm1, %v1315_v13  ;;  %367 = vst.msk [vmem:[#allocation2 + $0x88] sm:$0xff] %vm349_vm1, %v1315_v13 }
  0x2b   : > { %v429_v6 = vpack.c.bf16 %v409_v2, %v407_v1  ;;  %368 = vst.msk [vmem:[#allocation2 + $0x90] sm:$0xff] %vm349_vm1, %v1315_v13  ;;  %369 = vst.msk [vmem:[#allocation2 + $0x98] sm:$0xff] %vm349_vm1, %v1315_v13  ;;  %v490_v15 = vld [vmem:[#allocation2] sm:$0xff]  ;;  %v495_v54 = vld [vmem:[#allocation2 + $0x28] sm:$0xff] }
  0x2c   : > { %660 = vmatpush1.bf16.msra.mxu0 %v1288_v25  ;;  %863 = vmatpush1.bf16.msra.mxu1 %v1289_v26  ;;  %v390_v25 = vld [vmem:[%s1418_s27 + $0xa0] sm:$0xff]  ;;  %v392_v26 = vld [vmem:[%s1418_s27 + $0xb0] sm:$0xff] }
  0x2d   : > { %v420_v32 = vpack.c.bf16 %v392_v26, %v390_v25  ;;  %v496_v2 = vld [vmem:[#allocation2 + $0x30] sm:$0xff] }
  0x2f   : > { %674 = vmatmul.mubr.bf16.vlgmr.msra.gmra.mrb[0].mxu0 %v470_v35  ;;  %877 = vmatmul.mubr.bf16.vlgmr.msra.gmra.mrb[0].mxu1 %v410_v36  ;;  %v454_v35 = vld [vmem:[%s1413_s24 + $0xc0] sm:$0xff]  ;;  %v456_v36 = vld [vmem:[%s1413_s24 + $0xd0] sm:$0xff] }
  0x30   : > { %1210 = vmatprep.mubr.msk.bf16.mxu0 %vm610_vm0, %v473_v37  ;;  %1230 = vmatprep.mubr.msk.bf16.mxu1 %vm610_vm0, %v413_v38  ;;  %v394_v37 = vld [vmem:[%s1418_s27 + $0xc0] sm:$0xff]  ;;  %v396_v38 = vld [vmem:[%s1418_s27 + $0xd0] sm:$0xff]  ;;  %v482_v43 = vpack.c.bf16 %v456_v36, %v454_v35  ;;  %v493_v36 = vld [vmem:[#allocation2 + $0x18] sm:$0xff] }
  0x31   : > { %v422_v44 = vpack.c.bf16 %v396_v38, %v394_v37  ;;  %v1586_v35 = vld [vmem:[%s1684_s4] ss:$0 sm:$0xff] }
  0x37   : > { %682 = vmatmul.mubr.bf16.gmra.mrb[4].mxu0 %v472_v47  ;;  %885 = vmatmul.mubr.bf16.gmra.mrb[4].mxu1 %v412_v48  ;;  %v458_v47 = vld [vmem:[%s1413_s24 + $0xe0] sm:$0xff]  ;;  %v460_v48 = vld [vmem:[%s1413_s24 + $0xf0] sm:$0xff] }
  0x38   : > { %1211 = vmatprep.mubr.msk.bf16.mxu0 %vm610_vm0, %v475_v49  ;;  %1231 = vmatprep.mubr.msk.bf16.mxu1 %vm610_vm0, %v415_v50  ;;  %v398_v49 = vld [vmem:[%s1418_s27 + $0xe0] sm:$0xff]  ;;  %v400_v50 = vld [vmem:[%s1418_s27 + $0xf0] sm:$0xff]  ;;  %v484_v55 = vpack.c.bf16 %v460_v48, %v458_v47 }
  0x39   : > { %v424_v56 = vpack.c.bf16 %v400_v50, %v398_v49  ;;  %v494_v48 = vld [vmem:[#allocation2 + $0x20] sm:$0xff] }
  0x3f   : > { %690 = vmatmul.mubr.bf16.gmra.mrb[8].mxu0 %v474_v59  ;;  %893 = vmatmul.mubr.bf16.gmra.mrb[8].mxu1 %v414_v60  ;;  %v462_v59 = vld [vmem:[%s1413_s24 + $0x100] sm:$0xff]  ;;  %v464_v60 = vld [vmem:[%s1413_s24 + $0x110] sm:$0xff] }
  0x40   : > { %1212 = vmatprep.mubr.msk.bf16.mxu0 %vm610_vm0, %v477_v61  ;;  %1232 = vmatprep.mubr.msk.bf16.mxu1 %vm610_vm0, %v417_v62  ;;  %v402_v61 = vld [vmem:[%s1418_s27 + $0x100] sm:$0xff]  ;;  %v404_v62 = vld [vmem:[%s1418_s27 + $0x110] sm:$0xff]  ;;  %v486_v3 = vpack.c.bf16 %v464_v60, %v462_v59 }
  0x41   : > { %v426_v4 = vpack.c.bf16 %v404_v62, %v402_v61 }
  0x47   : > { %698 = vmatmul.mubr.bf16.gmra.mrb[12].mxu0 %v476_v7  ;;  %901 = vmatmul.mubr.bf16.gmra.mrb[12].mxu1 %v416_v8  ;;  %v466_v7 = vld [vmem:[%s1413_s24 + $0x120] sm:$0xff]  ;;  %v468_v8 = vld [vmem:[%s1413_s24 + $0x130] sm:$0xff]  ;;  %s1198_s24 = sshll.u32 %s1691_s28, 3 }
  0x48   : > { %1213 = vmatprep.mubr.msk.bf16.mxu0 %vm610_vm0, %v479_v9  ;;  %1233 = vmatprep.mubr.msk.bf16.mxu1 %vm610_vm0, %v419_v10  ;;  %v406_v9 = vld [vmem:[%s1418_s27 + $0x120] sm:$0xff]  ;;  %v408_v10 = vld [vmem:[%s1418_s27 + $0x130] sm:$0xff]  ;;  %v488_v11 = vpack.c.bf16 %v468_v8, %v466_v7  ;;  %s1591_s8 = scalar_lea.vmem %s1685_s5, %s1198_s24  ;;  %v497_v8 = vld [vmem:[#allocation2 + $0x38] sm:$0xff] }
  0x49   : > { %v428_v12 = vpack.c.bf16 %v408_v10, %v406_v9 }
  0x4f   : > { %706 = vmatmul.mubr.bf16.gmra.mrb[16].mxu0 %v478_v19  ;;  %909 = vmatmul.mubr.bf16.gmra.mrb[16].mxu1 %v418_v20 }
  0x50   : > { %1214 = vmatprep.mubr.msk.bf16.mxu0 %vm610_vm0, %v481_v21  ;;  %1234 = vmatprep.mubr.msk.bf16.mxu1 %vm610_vm0, %v421_v22  ;;  %v491_v21 = vld [vmem:[#allocation2 + $0x8] sm:$0xff] }
  0x57   : > { %714 = vmatmul.mubr.bf16.gmra.mrb[20].mxu0 %v480_v31  ;;  %917 = vmatmul.mubr.bf16.gmra.mrb[20].mxu1 %v420_v32 }
  0x58   : > { %1215 = vmatprep.mubr.msk.bf16.mxu0 %vm610_vm0, %v483_v33  ;;  %1235 = vmatprep.mubr.msk.bf16.mxu1 %vm610_vm0, %v423_v34 }
  0x5f   : > { %722 = vmatmul.mubr.bf16.gmra.mrb[24].mxu0 %v482_v43  ;;  %925 = vmatmul.mubr.bf16.gmra.mrb[24].mxu1 %v422_v44 }
  0x60   : > { %1216 = vmatprep.mubr.msk.bf16.mxu0 %vm610_vm0, %v485_v45  ;;  %1236 = vmatprep.mubr.msk.bf16.mxu1 %vm610_vm0, %v425_v46 }
  0x67   : > { %730 = vmatmul.mubr.bf16.gmra.mrb[28].mxu0 %v484_v55  ;;  %933 = vmatmul.mubr.bf16.gmra.mrb[28].mxu1 %v424_v56 }
  0x68   : > { %1217 = vmatprep.mubr.msk.bf16.mxu0 %vm610_vm0, %v487_v57  ;;  %1237 = vmatprep.mubr.msk.bf16.mxu1 %vm610_vm0, %v427_v58 }
  0x6f   : > { %738 = vmatmul.mubr.bf16.gmra.mrb[32].mxu0 %v486_v3  ;;  %941 = vmatmul.mubr.bf16.gmra.mrb[32].mxu1 %v426_v4 }
  0x70   : > { %1218 = vmatprep.mubr.msk.bf16.mxu0 %vm610_vm0, %v489_v5  ;;  %1238 = vmatprep.mubr.msk.bf16.mxu1 %vm610_vm0, %v429_v6 }
  0x77   : > { %746 = vmatmul.mubr.bf16.gmra.mrb[36].mxu0 %v488_v11  ;;  %949 = vmatmul.mubr.bf16.gmra.mrb[36].mxu1 %v428_v12 }
 0x102   : > { %v675_v14 = vpop.f32.mrb[0].mxu0  ;;  %v878_v16 = vpop.f32.mrb[0].mxu1 }
 0x103   : > { %v677_v17 = vpop.f32.mrb[1].mxu0  ;;  %v879_v18 = vadd.f32 %v878_v16, %v675_v14  ;;  %v880_v19 = vpop.f32.mrb[1].mxu1 }
 0x104   : > { %v678_v20 = vpop.f32.mrb[2].mxu0  ;;  %v881_v22 = vpop.f32.mrb[2].mxu1 }
 0x105   : > { %v680_v23 = vpop.f32.mrb[3].mxu0  ;;  %v957_v24 = vadd.f32 %v879_v18, %v490_v15  ;;  %v882_v25 = vadd.f32 %v881_v22, %v678_v20  ;;  %v883_v26 = vpop.f32.mrb[3].mxu1  ;;  %v498_v20 = vld [vmem:[#allocation2 + $0x40] sm:$0xff] }
 0x106   : > { %v499_v26 = vld [vmem:[#allocation2 + $0x48] sm:$0xff] }
 0x107   : > { %978 = vst.msk [vmem:[#allocation2] sm:$0xff] %vm349_vm1, %v957_v24  ;;  %v958_v27 = vadd.f32 %v882_v25, %v491_v21 }
 0x109   : > { %979 = vst.msk [vmem:[#allocation2 + $0x8] sm:$0xff] %vm349_vm1, %v958_v27 }
 0x10a   : > { %v683_v28 = vpop.f32.mrb[4].mxu0  ;;  %v886_v30 = vpop.f32.mrb[4].mxu1 }
 0x10b   : > { %v685_v31 = vpop.f32.mrb[5].mxu0  ;;  %v887_v32 = vadd.f32 %v886_v30, %v683_v28  ;;  %v888_v33 = vpop.f32.mrb[5].mxu1 }
 0x10c   : > { %v686_v34 = vpop.f32.mrb[6].mxu0  ;;  %v889_v37 = vpop.f32.mrb[6].mxu1 }
 0x10d   : > { %v688_v38 = vpop.f32.mrb[7].mxu0  ;;  %v959_v39 = vadd.f32 %v887_v32, %v492_v29  ;;  %v890_v40 = vadd.f32 %v889_v37, %v686_v34  ;;  %v891_v41 = vpop.f32.mrb[7].mxu1 }
 0x10e   : > { %v1001_v42 = vld [vmem:[#allocation2] sm:$0xff] }
 0x10f   : > { %v1028_v43 = vadd.f32 %v1586_v35, %v1001_v42  ;;  %980 = vst.msk [vmem:[#allocation2 + $0x10] sm:$0xff] %vm349_vm1, %v959_v39  ;;  %v960_v44 = vadd.f32 %v890_v40, %v493_v36  ;;  %v500_v39 = vld [vmem:[#allocation2 + $0x50] sm:$0xff] }
 0x110   : > { %v1002_v45 = vld [vmem:[#allocation2 + $0x8] sm:$0xff] }
 0x111   : > { %1048 = vst.msk [vmem:[%s1591_s8] sm:$0xff] %vm349_vm1, %v1028_v43  ;;  %v1029_v46 = vadd.f32 %v1586_v35, %v1002_v45  ;;  %981 = vst.msk [vmem:[#allocation2 + $0x18] sm:$0xff] %vm349_vm1, %v960_v44  ;;  %v501_v45 = vld [vmem:[#allocation2 + $0x58] sm:$0xff] }
 0x112   : > { %v691_v47 = vpop.f32.mrb[8].mxu0  ;;  %v894_v49 = vpop.f32.mrb[8].mxu1 }
 0x113   : > { %v693_v50 = vpop.f32.mrb[9].mxu0  ;;  %1049 = vst.msk [vmem:[%s1591_s8 + $0x8] sm:$0xff] %vm349_vm1, %v1029_v46  ;;  %v895_v51 = vadd.f32 %v894_v49, %v691_v47  ;;  %v896_v52 = vpop.f32.mrb[9].mxu1 }
 0x114   : > { %v694_v53 = vpop.f32.mrb[10].mxu0  ;;  %v897_v55 = vpop.f32.mrb[10].mxu1 }
 0x115   : > { %v696_v56 = vpop.f32.mrb[11].mxu0  ;;  %v961_v57 = vadd.f32 %v895_v51, %v494_v48  ;;  %v898_v58 = vadd.f32 %v897_v55, %v694_v53  ;;  %v899_v59 = vpop.f32.mrb[11].mxu1 }
 0x116   : > { %v1003_v60 = vld [vmem:[#allocation2 + $0x10] sm:$0xff] }
 0x117   : > { %v1030_v61 = vadd.f32 %v1586_v35, %v1003_v60  ;;  %982 = vst.msk [vmem:[#allocation2 + $0x20] sm:$0xff] %vm349_vm1, %v961_v57  ;;  %v962_v62 = vadd.f32 %v898_v58, %v495_v54  ;;  %v502_v57 = vld [vmem:[#allocation2 + $0x60] sm:$0xff] }
 0x118   : > { %v1004_v63 = vld [vmem:[#allocation2 + $0x18] sm:$0xff] }
 0x119   : > { %1050 = vst.msk [vmem:[%s1591_s8 + $0x10] sm:$0xff] %vm349_vm1, %v1030_v61  ;;  %v1031_v0 = vadd.f32 %v1586_v35, %v1004_v63  ;;  %983 = vst.msk [vmem:[#allocation2 + $0x28] sm:$0xff] %vm349_vm1, %v962_v62  ;;  %v503_v63 = vld [vmem:[#allocation2 + $0x68] sm:$0xff] }
 0x11a   : > { %v699_v1 = vpop.f32.mrb[12].mxu0  ;;  %v902_v3 = vpop.f32.mrb[12].mxu1 }
 0x11b   : > { %v701_v4 = vpop.f32.mrb[13].mxu0  ;;  %1051 = vst.msk [vmem:[%s1591_s8 + $0x18] sm:$0xff] %vm349_vm1, %v1031_v0  ;;  %v903_v5 = vadd.f32 %v902_v3, %v699_v1  ;;  %v904_v6 = vpop.f32.mrb[13].mxu1 }
 0x11c   : > { %v702_v7 = vpop.f32.mrb[14].mxu0  ;;  %v905_v9 = vpop.f32.mrb[14].mxu1 }
 0x11d   : > { %v704_v10 = vpop.f32.mrb[15].mxu0  ;;  %v963_v11 = vadd.f32 %v903_v5, %v496_v2  ;;  %v906_v12 = vadd.f32 %v905_v9, %v702_v7  ;;  %v907_v13 = vpop.f32.mrb[15].mxu1 }
 0x11e   : > { %v1005_v14 = vld [vmem:[#allocation2 + $0x20] sm:$0xff] }
 0x11f   : > { %v1032_v15 = vadd.f32 %v1586_v35, %v1005_v14  ;;  %984 = vst.msk [vmem:[#allocation2 + $0x30] sm:$0xff] %vm349_vm1, %v963_v11  ;;  %v964_v16 = vadd.f32 %v906_v12, %v497_v8  ;;  %v504_v11 = vld [vmem:[#allocation2 + $0x70] sm:$0xff] }
 0x120   : > { %v1006_v17 = vld [vmem:[#allocation2 + $0x28] sm:$0xff] }
 0x121   : > { %1052 = vst.msk [vmem:[%s1591_s8 + $0x20] sm:$0xff] %vm349_vm1, %v1032_v15  ;;  %v1033_v18 = vadd.f32 %v1586_v35, %v1006_v17  ;;  %985 = vst.msk [vmem:[#allocation2 + $0x38] sm:$0xff] %vm349_vm1, %v964_v16  ;;  %v505_v17 = vld [vmem:[#allocation2 + $0x78] sm:$0xff] }
 0x122   : > { %v707_v19 = vpop.f32.mrb[16].mxu0  ;;  %v910_v21 = vpop.f32.mrb[16].mxu1 }
 0x123   : > { %v709_v22 = vpop.f32.mrb[17].mxu0  ;;  %1053 = vst.msk [vmem:[%s1591_s8 + $0x28] sm:$0xff] %vm349_vm1, %v1033_v18  ;;  %v911_v23 = vadd.f32 %v910_v21, %v707_v19  ;;  %v912_v24 = vpop.f32.mrb[17].mxu1 }
 0x124   : > { %v710_v25 = vpop.f32.mrb[18].mxu0  ;;  %v913_v27 = vpop.f32.mrb[18].mxu1 }
 0x125   : > { %v712_v28 = vpop.f32.mrb[19].mxu0  ;;  %v965_v29 = vadd.f32 %v911_v23, %v498_v20  ;;  %v914_v30 = vadd.f32 %v913_v27, %v710_v25  ;;  %v915_v31 = vpop.f32.mrb[19].mxu1 }
 0x126   : > { %v1007_v32 = vld [vmem:[#allocation2 + $0x30] sm:$0xff] }
 0x127   : > { %v1034_v33 = vadd.f32 %v1586_v35, %v1007_v32  ;;  %986 = vst.msk [vmem:[#allocation2 + $0x40] sm:$0xff] %vm349_vm1, %v965_v29  ;;  %v966_v34 = vadd.f32 %v914_v30, %v499_v26  ;;  %v506_v29 = vld [vmem:[#allocation2 + $0x80] sm:$0xff] }
 0x128   : > { %v1008_v36 = vld [vmem:[#allocation2 + $0x38] sm:$0xff] }
 0x129   : > { %1054 = vst.msk [vmem:[%s1591_s8 + $0x30] sm:$0xff] %vm349_vm1, %v1034_v33  ;;  %v1035_v37 = vadd.f32 %v1586_v35, %v1008_v36  ;;  %987 = vst.msk [vmem:[#allocation2 + $0x48] sm:$0xff] %vm349_vm1, %v966_v34  ;;  %v507_v36 = vld [vmem:[#allocation2 + $0x88] sm:$0xff] }
 0x12a   : > { %v715_v38 = vpop.f32.mrb[20].mxu0  ;;  %v918_v40 = vpop.f32.mrb[20].mxu1 }
 0x12b   : > { %v717_v41 = vpop.f32.mrb[21].mxu0  ;;  %1055 = vst.msk [vmem:[%s1591_s8 + $0x38] sm:$0xff] %vm349_vm1, %v1035_v37  ;;  %v919_v42 = vadd.f32 %v918_v40, %v715_v38  ;;  %v920_v43 = vpop.f32.mrb[21].mxu1 }
 0x12c   : > { %v718_v44 = vpop.f32.mrb[22].mxu0  ;;  %v921_v46 = vpop.f32.mrb[22].mxu1 }
 0x12d   : > { %v720_v47 = vpop.f32.mrb[23].mxu0  ;;  %v967_v48 = vadd.f32 %v919_v42, %v500_v39  ;;  %v922_v49 = vadd.f32 %v921_v46, %v718_v44  ;;  %v923_v50 = vpop.f32.mrb[23].mxu1 }
 0x12e   : > { %v1009_v51 = vld [vmem:[#allocation2 + $0x40] sm:$0xff] }
 0x12f   : > { %v1036_v52 = vadd.f32 %v1586_v35, %v1009_v51  ;;  %988 = vst.msk [vmem:[#allocation2 + $0x50] sm:$0xff] %vm349_vm1, %v967_v48  ;;  %v968_v53 = vadd.f32 %v922_v49, %v501_v45  ;;  %v508_v48 = vld [vmem:[#allocation2 + $0x90] sm:$0xff] }
 0x130   : > { %v1010_v54 = vld [vmem:[#allocation2 + $0x48] sm:$0xff] }
 0x131   : > { %1056 = vst.msk [vmem:[%s1591_s8 + $0x40] sm:$0xff] %vm349_vm1, %v1036_v52  ;;  %v1037_v55 = vadd.f32 %v1586_v35, %v1010_v54  ;;  %989 = vst.msk [vmem:[#allocation2 + $0x58] sm:$0xff] %vm349_vm1, %v968_v53  ;;  %v509_v54 = vld [vmem:[#allocation2 + $0x98] sm:$0xff] }
 0x132   : > { %v723_v56 = vpop.f32.mrb[24].mxu0  ;;  %v926_v58 = vpop.f32.mrb[24].mxu1 }
 0x133   : > { %v725_v59 = vpop.f32.mrb[25].mxu0  ;;  %1057 = vst.msk [vmem:[%s1591_s8 + $0x48] sm:$0xff] %vm349_vm1, %v1037_v55  ;;  %v927_v60 = vadd.f32 %v926_v58, %v723_v56  ;;  %v928_v61 = vpop.f32.mrb[25].mxu1 }
 0x134   : > { %v726_v62 = vpop.f32.mrb[26].mxu0  ;;  %v929_v0 = vpop.f32.mrb[26].mxu1 }
 0x135   : > { %v728_v1 = vpop.f32.mrb[27].mxu0  ;;  %v969_v2 = vadd.f32 %v927_v60, %v502_v57  ;;  %v930_v3 = vadd.f32 %v929_v0, %v726_v62  ;;  %v931_v4 = vpop.f32.mrb[27].mxu1 }
 0x136   : > { %v1011_v5 = vld [vmem:[#allocation2 + $0x50] sm:$0xff] }
 0x137   : > { %v1038_v6 = vadd.f32 %v1586_v35, %v1011_v5  ;;  %990 = vst.msk [vmem:[#allocation2 + $0x60] sm:$0xff] %vm349_vm1, %v969_v2  ;;  %v970_v7 = vadd.f32 %v930_v3, %v503_v63 }
 0x138   : > { %v1012_v8 = vld [vmem:[#allocation2 + $0x58] sm:$0xff] }
 0x139   : > { %1058 = vst.msk [vmem:[%s1591_s8 + $0x50] sm:$0xff] %vm349_vm1, %v1038_v6  ;;  %v1039_v9 = vadd.f32 %v1586_v35, %v1012_v8  ;;  %991 = vst.msk [vmem:[#allocation2 + $0x68] sm:$0xff] %vm349_vm1, %v970_v7 }
 0x13a   : > { %v731_v10 = vpop.f32.mrb[28].mxu0  ;;  %v934_v12 = vpop.f32.mrb[28].mxu1 }
 0x13b   : > { %v733_v13 = vpop.f32.mrb[29].mxu0  ;;  %1059 = vst.msk [vmem:[%s1591_s8 + $0x58] sm:$0xff] %vm349_vm1, %v1039_v9  ;;  %v935_v14 = vadd.f32 %v934_v12, %v731_v10  ;;  %v936_v15 = vpop.f32.mrb[29].mxu1 }
 0x13c   : > { %v734_v16 = vpop.f32.mrb[30].mxu0  ;;  %v937_v18 = vpop.f32.mrb[30].mxu1 }
 0x13d   : > { %v736_v19 = vpop.f32.mrb[31].mxu0  ;;  %v971_v20 = vadd.f32 %v935_v14, %v504_v11  ;;  %v938_v21 = vadd.f32 %v937_v18, %v734_v16  ;;  %v939_v22 = vpop.f32.mrb[31].mxu1 }
 0x13e   : > { %v1013_v23 = vld [vmem:[#allocation2 + $0x60] sm:$0xff] }
 0x13f   : > { %v1040_v24 = vadd.f32 %v1586_v35, %v1013_v23  ;;  %992 = vst.msk [vmem:[#allocation2 + $0x70] sm:$0xff] %vm349_vm1, %v971_v20  ;;  %v972_v25 = vadd.f32 %v938_v21, %v505_v17 }
 0x140   : > { %v1014_v26 = vld [vmem:[#allocation2 + $0x68] sm:$0xff] }
 0x141   : > { %1060 = vst.msk [vmem:[%s1591_s8 + $0x60] sm:$0xff] %vm349_vm1, %v1040_v24  ;;  %v1041_v27 = vadd.f32 %v1586_v35, %v1014_v26  ;;  %993 = vst.msk [vmem:[#allocation2 + $0x78] sm:$0xff] %vm349_vm1, %v972_v25 }
 0x142   : > { %v739_v28 = vpop.f32.mrb[32].mxu0  ;;  %v942_v30 = vpop.f32.mrb[32].mxu1 }
 0x143   : > { %v741_v31 = vpop.f32.mrb[33].mxu0  ;;  %1061 = vst.msk [vmem:[%s1591_s8 + $0x68] sm:$0xff] %vm349_vm1, %v1041_v27  ;;  %v943_v32 = vadd.f32 %v942_v30, %v739_v28  ;;  %v944_v33 = vpop.f32.mrb[33].mxu1 }
 0x144   : > { %v742_v34 = vpop.f32.mrb[34].mxu0  ;;  %v945_v37 = vpop.f32.mrb[34].mxu1 }
 0x145   : > { %v744_v38 = vpop.f32.mrb[35].mxu0  ;;  %v973_v39 = vadd.f32 %v943_v32, %v506_v29  ;;  %v946_v40 = vadd.f32 %v945_v37, %v742_v34  ;;  %v947_v41 = vpop.f32.mrb[35].mxu1 }
 0x146   : > { %v1015_v42 = vld [vmem:[#allocation2 + $0x70] sm:$0xff] }
 0x147   : > { %v1042_v43 = vadd.f32 %v1586_v35, %v1015_v42  ;;  %994 = vst.msk [vmem:[#allocation2 + $0x80] sm:$0xff] %vm349_vm1, %v973_v39  ;;  %v974_v44 = vadd.f32 %v946_v40, %v507_v36 }
 0x148   : > { %v1016_v45 = vld [vmem:[#allocation2 + $0x78] sm:$0xff] }
 0x149   : > { %1062 = vst.msk [vmem:[%s1591_s8 + $0x70] sm:$0xff] %vm349_vm1, %v1042_v43  ;;  %v1043_v46 = vadd.f32 %v1586_v35, %v1016_v45  ;;  %995 = vst.msk [vmem:[#allocation2 + $0x88] sm:$0xff] %vm349_vm1, %v974_v44 }
 0x14a   : > { %v747_v47 = vpop.f32.mrb[36].mxu0  ;;  %v950_v49 = vpop.f32.mrb[36].mxu1 }
 0x14b   : > { %v749_v50 = vpop.f32.mrb[37].mxu0  ;;  %1063 = vst.msk [vmem:[%s1591_s8 + $0x78] sm:$0xff] %vm349_vm1, %v1043_v46  ;;  %v951_v51 = vadd.f32 %v950_v49, %v747_v47  ;;  %v952_v52 = vpop.f32.mrb[37].mxu1 }
 0x14c   : > { %v750_v53 = vpop.f32.mrb[38].mxu0  ;;  %v953_v55 = vpop.f32.mrb[38].mxu1 }
 0x14d   : > { %v752_v56 = vpop.f32.mrb[39].mxu0  ;;  %v975_v57 = vadd.f32 %v951_v51, %v508_v48  ;;  %v954_v58 = vadd.f32 %v953_v55, %v750_v53  ;;  %v955_v59 = vpop.f32.mrb[39].mxu1 }
 0x14e   : > { %v1017_v60 = vld [vmem:[#allocation2 + $0x80] sm:$0xff] }
 0x14f   : > { %v1044_v61 = vadd.f32 %v1586_v35, %v1017_v60  ;;  %996 = vst.msk [vmem:[#allocation2 + $0x90] sm:$0xff] %vm349_vm1, %v975_v57  ;;  %v976_v62 = vadd.f32 %v954_v58, %v509_v54 }
 0x150   : > { %v1018_v63 = vld [vmem:[#allocation2 + $0x88] sm:$0xff] }
 0x151   : > { %1064 = vst.msk [vmem:[%s1591_s8 + $0x80] sm:$0xff] %vm349_vm1, %v1044_v61  ;;  %v1045_v0 = vadd.f32 %v1586_v35, %v1018_v63  ;;  %997 = vst.msk [vmem:[#allocation2 + $0x98] sm:$0xff] %vm349_vm1, %v976_v62 }
 0x153   : > { %1065 = vst.msk [vmem:[%s1591_s8 + $0x88] sm:$0xff] %vm349_vm1, %v1045_v0 }
 0x156   : > { %v1019_v1 = vld [vmem:[#allocation2 + $0x90] sm:$0xff] }
 0x157   : > { %v1046_v2 = vadd.f32 %v1586_v35, %v1019_v1 }
 0x158   : > { %v1020_v3 = vld [vmem:[#allocation2 + $0x98] sm:$0xff] }
 0x159   : > { %1066 = vst.msk [vmem:[%s1591_s8 + $0x90] sm:$0xff] %vm349_vm1, %v1046_v2  ;;  %v1047_v4 = vadd.f32 %v1586_v35, %v1020_v3 }
 0x15b   : > { %1067 = vst.msk [vmem:[%s1591_s8 + $0x98] sm:$0xff] %vm349_vm1, %v1047_v4 }
 0x15c PF: > { %s15_s20 = sadd.s32 1, %s1312_s20   ;;  %s1686_s18 = smov %s1308_s19 }
 0x15d   : > { %p12_p5 = scmp.ge.s32.totalorder %s15_s20, 4   ;;  %s1687_s19 = smov %s1689_s21 }
 0x15f   :  { %14 = sbr.rel (!%p12_p5) target bundleno = 2 (0x2), region = 87 }

// kernel: dcnn_forward.28
= control target key start
LH: loop header
LB: loop body
LE: loop exit
PB: predicated region body
PF: predicated region fallthrough
CT: control target
= control target key end

     0   :  { %s1372_s18 = smov 0   ;;  %s1374_s19 = smov 0   ;;  %s1646_s0 = inlined_call_operand.vmem [shape: f32[576,80], index: 0, kind: input, shape index: {}]   ;;  %s1647_s1 = inlined_call_operand.vmem [shape: f32[576,80], index: 1, kind: input, shape index: {}]   ;;  %s1648_s2 = inlined_call_operand.vmem [shape: bf16[80,2], index: 2, kind: input, shape index: {}]   ;;  %s1649_s3 = inlined_call_operand.vmem [shape: bf16[80,2], index: 3, kind: input, shape index: {}]   ;;  %s1650_s4 = inlined_call_operand.vmem [shape: f32[1,2], index: 4, kind: input, shape index: {}]   ;;  %s1651_s5 = inlined_call_operand.vmem [shape: f32[576,2], index: 5, kind: output, shape index: {}]  }
   0x1   :  { %s1376_s20 = smov 0  }
   0x2 LB: > { %s27_s21 = sadd.s32 1, %s1335_s19  ;;  %p1115_p0 = scmp.ge.s32.totalorder %s1339_s20, 1  ;;  %s1339_s20 = sphi %s1376_s20, %s15_s20   ;;  %s1335_s19 = sphi %s1374_s19, %s1653_s19   ;;  %s1331_s18 = sphi %s1372_s18, %s1652_s18  }
   0x3   : > { %p29_p1 = scmp.ge.s32.totalorder %s27_s21, 3  ;;  %p243_p2 = scmp.lt.s32.totalorder %s1339_s20, 4 }
   0x5   : > { %s1655_s21 = smov (%p29_p1, %s27_s21), 0  ;;  %p244_p3 = pnand %p1115_p0, %p243_p2 }
   0x6   : > { %v1307_v0 = vld [vmem:[%s1649_s3] sm:$0xff] (!%p244_p3)   ;;  %s292_s24 = smul.u32 (!%p244_p3), 24, %s1331_s18  ;;  %v1309_v2 = vld [vmem:[%s1649_s3 + $0x8] sm:$0xff] (!%p244_p3)   ;;  %v1311_v4 = vld [vmem:[%s1649_s3 + $0x10] sm:$0xff] (!%p244_p3)   ;;  %vm504_vm0 = vcmask (!%p244_p3), 654336   ;;  %vm333_vm1 = vcmask (!%p244_p3), 15360  }
   0x7   : > { %247 = sbr.rel (%p244_p3) target bundleno = 298 (0x12a), region = 40  ;;  %v1308_v1 = vld [vmem:[%s1648_s2] sm:$0xff] (!%p244_p3)   ;;  %1190 = vmatprep.subr.bf16.mxu1 (!%p244_p3), %v1307_v0  ;;  %v1310_v3 = vld [vmem:[%s1648_s2 + $0x8] sm:$0xff] (!%p244_p3)   ;;  %v1312_v5 = vld [vmem:[%s1648_s2 + $0x10] sm:$0xff] (!%p244_p3)  }
   0x8   : > { %p293_p4 = scmp.lt.s32.totalorder (!%p244_p3), %s292_s24, 71  ;;  %1224 = vmatprep.subr.bf16.mxu0 (!%p244_p3), %v1308_v1  ;;  %1191 = vmatpush3.bf16.msra.mxu1 (!%p244_p3), %v1307_v0  ;;  %v1313_v6 = vld [vmem:[%s1649_s3 + $0x18] sm:$0xff] (!%p244_p3)   ;;  %v1315_v13 = vld [vmem:[%s1649_s3 + $0x20] sm:$0xff] (!%p244_p3)  }
   0x9   : > { %1225 = vmatpush3.bf16.msra.mxu0 (!%p244_p3), %v1308_v1  ;;  %1192 = vmatprep.subr.bf16.mxu1 (!%p244_p3), %v1309_v2  ;;  %v1314_v7 = vld [vmem:[%s1648_s2 + $0x18] sm:$0xff] (!%p244_p3)   ;;  %v1316_v15 = vld [vmem:[%s1648_s2 + $0x20] sm:$0xff] (!%p244_p3)  }
   0xa   : > { %1226 = vmatprep.subr.bf16.mxu0 (!%p244_p3), %v1310_v3 }
   0xc   : > { %1193 = vmatpush3.bf16.msra.mxu1 (!%p244_p3), %v1309_v2 }
   0xd   : > { %1227 = vmatpush3.bf16.msra.mxu0 (!%p244_p3), %v1310_v3  ;;  %1194 = vmatprep.subr.bf16.mxu1 (!%p244_p3), %v1311_v4 }
   0xe   : > { %s1657_s24 = smov (!%p293_p4, %s292_s24), 71  ;;  %1228 = vmatprep.subr.bf16.mxu0 %v1312_v5 }
   0xf   : > { %s1408_s10 = sshll.u32 %s1657_s24, 3 }
  0x10   : > { %s1414_s13 = scalar_lea.vmem %s1647_s1, %s1408_s10  ;;  %s1423_s18 = scalar_lea.vmem %s1646_s0, %s1408_s10  ;;  %1195 = vmatpush3.bf16.msra.mxu1 %v1311_v4 }
  0x11   : > { %v394_v8 = vld [vmem:[%s1414_s13] sm:$0xff]  ;;  %v395_v9 = vld [vmem:[%s1414_s13 + $0x8] sm:$0xff]  ;;  %1229 = vmatpush3.bf16.msra.mxu0 %v1312_v5  ;;  %1196 = vmatprep.subr.bf16.mxu1 %v1313_v6  ;;  %v396_v16 = vld [vmem:[%s1414_s13 + $0x10] sm:$0xff]  ;;  %s1543_s7 = scalar_lea.vmem %s1651_s5, %s1408_s10 }
  0x12   : > { %v358_v10 = vld [vmem:[%s1423_s18] sm:$0xff]  ;;  %v418_v11 = vpack.c.bf16 %v395_v9, %v394_v8  ;;  %v359_v12 = vld [vmem:[%s1423_s18 + $0x8] sm:$0xff]  ;;  %1230 = vmatprep.subr.bf16.mxu0 %v1314_v7  ;;  %v397_v17 = vld [vmem:[%s1414_s13 + $0x18] sm:$0xff] }
  0x13   : > { %v382_v14 = vpack.c.bf16 %v359_v12, %v358_v10  ;;  %v360_v18 = vld [vmem:[%s1423_s18 + $0x10] sm:$0xff]  ;;  %v361_v19 = vld [vmem:[%s1423_s18 + $0x18] sm:$0xff]  ;;  %v398_v20 = vld [vmem:[%s1414_s13 + $0x20] sm:$0xff]  ;;  %v419_v24 = vpack.c.bf16 %v397_v17, %v396_v16 }
  0x14   : > { %1200 = vmatprep.mubr.msk.bf16.mxu1 %vm504_vm0, %v418_v11  ;;  %1197 = vmatpush3.bf16.msra.mxu1 %v1313_v6  ;;  %v399_v21 = vld [vmem:[%s1414_s13 + $0x28] sm:$0xff]  ;;  %v362_v22 = vld [vmem:[%s1423_s18 + $0x20] sm:$0xff]  ;;  %v383_v25 = vpack.c.bf16 %v361_v19, %v360_v18  ;;  %v400_v28 = vld [vmem:[%s1414_s13 + $0x30] sm:$0xff]  ;;  %v1341_v18 = vmov 0.0  }
  0x15   : > { %1234 = vmatprep.mubr.msk.bf16.mxu0 %vm504_vm0, %v382_v14  ;;  %1231 = vmatpush3.bf16.msra.mxu0 %v1314_v7  ;;  %v363_v23 = vld [vmem:[%s1423_s18 + $0x28] sm:$0xff]  ;;  %v420_v26 = vpack.c.bf16 %v399_v21, %v398_v20  ;;  %v401_v29 = vld [vmem:[%s1414_s13 + $0x38] sm:$0xff]  ;;  %v364_v30 = vld [vmem:[%s1423_s18 + $0x30] sm:$0xff]  ;;  %336 = vst.msk [vmem:[#allocation2 + $0x10] sm:$0xff] %vm333_vm1, %v1341_v18 }
  0x16   : > { %1198 = vmatprep.subr.bf16.mxu1 %v1315_v13  ;;  %1232 = vmatprep.subr.bf16.mxu0 %v1316_v15  ;;  %v384_v27 = vpack.c.bf16 %v363_v23, %v362_v22  ;;  %v365_v31 = vld [vmem:[%s1423_s18 + $0x38] sm:$0xff]  ;;  %v402_v32 = vld [vmem:[%s1414_s13 + $0x40] sm:$0xff]  ;;  %v403_v33 = vld [vmem:[%s1414_s13 + $0x48] sm:$0xff]  ;;  %v421_v36 = vpack.c.bf16 %v401_v29, %v400_v28  ;;  %334 = vst.msk [vmem:[#allocation2] sm:$0xff] %vm333_vm1, %v1341_v18 }
  0x17   : > { %v366_v34 = vld [vmem:[%s1423_s18 + $0x40] sm:$0xff]  ;;  %v367_v35 = vld [vmem:[%s1423_s18 + $0x48] sm:$0xff]  ;;  %v385_v37 = vpack.c.bf16 %v365_v31, %v364_v30  ;;  %v422_v38 = vpack.c.bf16 %v403_v33, %v402_v32  ;;  %v404_v40 = vld [vmem:[%s1414_s13 + $0x50] sm:$0xff]  ;;  %335 = vst.msk [vmem:[#allocation2 + $0x8] sm:$0xff] %vm333_vm1, %v1341_v18 }
  0x18   : > { %1199 = vmatpush3.bf16.msra.mxu1 %v1315_v13  ;;  %v386_v39 = vpack.c.bf16 %v367_v35, %v366_v34  ;;  %v405_v41 = vld [vmem:[%s1414_s13 + $0x58] sm:$0xff]  ;;  %v368_v42 = vld [vmem:[%s1423_s18 + $0x50] sm:$0xff]  ;;  %v406_v44 = vld [vmem:[%s1414_s13 + $0x60] sm:$0xff]  ;;  %337 = vst.msk [vmem:[#allocation2 + $0x18] sm:$0xff] %vm333_vm1, %v1341_v18 }
  0x19   : > { %1233 = vmatpush3.bf16.msra.mxu0 %v1316_v15  ;;  %v369_v43 = vld [vmem:[%s1423_s18 + $0x58] sm:$0xff]  ;;  %v407_v45 = vld [vmem:[%s1414_s13 + $0x68] sm:$0xff]  ;;  %v370_v46 = vld [vmem:[%s1423_s18 + $0x60] sm:$0xff]  ;;  %v423_v48 = vpack.c.bf16 %v405_v41, %v404_v40  ;;  %338 = vst.msk [vmem:[#allocation2 + $0x20] sm:$0xff] %vm333_vm1, %v1341_v18 }
  0x1a   : > { %v371_v47 = vld [vmem:[%s1423_s18 + $0x68] sm:$0xff]  ;;  %v387_v49 = vpack.c.bf16 %v369_v43, %v368_v42  ;;  %v424_v50 = vpack.c.bf16 %v407_v45, %v406_v44  ;;  %v408_v52 = vld [vmem:[%s1414_s13 + $0x70] sm:$0xff]  ;;  %v409_v53 = vld [vmem:[%s1414_s13 + $0x78] sm:$0xff]  ;;  %339 = vst.msk [vmem:[#allocation2 + $0x28] sm:$0xff] %vm333_vm1, %v1341_v18 }
  0x1b   : > { %1201 = vmatmul.mubr.msk.bf16.vlgmr.msra.gmra.mrb[0].mxu1 %vm504_vm0, %v419_v24  ;;  %v388_v51 = vpack.c.bf16 %v371_v47, %v370_v46  ;;  %v372_v54 = vld [vmem:[%s1423_s18 + $0x70] sm:$0xff]  ;;  %v373_v55 = vld [vmem:[%s1423_s18 + $0x78] sm:$0xff]  ;;  %v410_v56 = vld [vmem:[%s1414_s13 + $0x80] sm:$0xff]  ;;  %v425_v60 = vpack.c.bf16 %v409_v53, %v408_v52  ;;  %340 = vst.msk [vmem:[#allocation2 + $0x30] sm:$0xff] %vm333_vm1, %v1341_v18 }
  0x1c   : > { %1235 = vmatmul.mubr.msk.bf16.vlgmr.msra.gmra.mrb[0].mxu0 %vm504_vm0, %v383_v25  ;;  %1204 = vmatprep.mubr.msk.bf16.mxu1 %vm504_vm0, %v420_v26  ;;  %v411_v57 = vld [vmem:[%s1414_s13 + $0x88] sm:$0xff]  ;;  %v374_v58 = vld [vmem:[%s1423_s18 + $0x80] sm:$0xff]  ;;  %v389_v61 = vpack.c.bf16 %v373_v55, %v372_v54  ;;  %v412_v0 = vld [vmem:[%s1414_s13 + $0x90] sm:$0xff]  ;;  %341 = vst.msk [vmem:[#allocation2 + $0x38] sm:$0xff] %vm333_vm1, %v1341_v18 }
  0x1d   : > { %1238 = vmatprep.mubr.msk.bf16.mxu0 %vm504_vm0, %v384_v27  ;;  %v375_v59 = vld [vmem:[%s1423_s18 + $0x88] sm:$0xff]  ;;  %v426_v62 = vpack.c.bf16 %v411_v57, %v410_v56  ;;  %v413_v1 = vld [vmem:[%s1414_s13 + $0x98] sm:$0xff]  ;;  %v376_v2 = vld [vmem:[%s1423_s18 + $0x90] sm:$0xff]  ;;  %342 = vst.msk [vmem:[#allocation2 + $0x40] sm:$0xff] %vm333_vm1, %v1341_v18 }
  0x1e   : > { %v390_v63 = vpack.c.bf16 %v375_v59, %v374_v58  ;;  %v377_v3 = vld [vmem:[%s1423_s18 + $0x98] sm:$0xff]  ;;  %v414_v4 = vld [vmem:[%s1414_s13 + $0xa0] sm:$0xff]  ;;  %v415_v5 = vld [vmem:[%s1414_s13 + $0xa8] sm:$0xff]  ;;  %v427_v8 = vpack.c.bf16 %v413_v1, %v412_v0  ;;  %343 = vst.msk [vmem:[#allocation2 + $0x48] sm:$0xff] %vm333_vm1, %v1341_v18 }
  0x1f   : > { %v378_v6 = vld [vmem:[%s1423_s18 + $0xa0] sm:$0xff]  ;;  %v379_v7 = vld [vmem:[%s1423_s18 + $0xa8] sm:$0xff]  ;;  %v391_v9 = vpack.c.bf16 %v377_v3, %v376_v2  ;;  %v428_v10 = vpack.c.bf16 %v415_v5, %v414_v4  ;;  %v416_v12 = vld [vmem:[%s1414_s13 + $0xb0] sm:$0xff]  ;;  %344 = vst.msk [vmem:[#allocation2 + $0x50] sm:$0xff] %vm333_vm1, %v1341_v18 }
  0x20   : > { %v392_v11 = vpack.c.bf16 %v379_v7, %v378_v6  ;;  %v417_v13 = vld [vmem:[%s1414_s13 + $0xb8] sm:$0xff]  ;;  %v380_v14 = vld [vmem:[%s1423_s18 + $0xb0] sm:$0xff]  ;;  %345 = vst.msk [vmem:[#allocation2 + $0x58] sm:$0xff] %vm333_vm1, %v1341_v18  ;;  %346 = vst.msk [vmem:[#allocation2 + $0x60] sm:$0xff] %vm333_vm1, %v1341_v18 }
  0x21   : > { %v381_v15 = vld [vmem:[%s1423_s18 + $0xb8] sm:$0xff]  ;;  %v429_v16 = vpack.c.bf16 %v417_v13, %v416_v12  ;;  %347 = vst.msk [vmem:[#allocation2 + $0x68] sm:$0xff] %vm333_vm1, %v1341_v18  ;;  %348 = vst.msk [vmem:[#allocation2 + $0x70] sm:$0xff] %vm333_vm1, %v1341_v18  ;;  %v432_v20 = vld [vmem:[#allocation2 + $0x10] sm:$0xff] }
  0x22   : > { %v393_v17 = vpack.c.bf16 %v381_v15, %v380_v14  ;;  %349 = vst.msk [vmem:[#allocation2 + $0x78] sm:$0xff] %vm333_vm1, %v1341_v18  ;;  %350 = vst.msk [vmem:[#allocation2 + $0x80] sm:$0xff] %vm333_vm1, %v1341_v18  ;;  %v430_v24 = vld [vmem:[#allocation2] sm:$0xff]  ;;  %v433_v28 = vld [vmem:[#allocation2 + $0x18] sm:$0xff] }
  0x23   : > { %1205 = vmatmul.mubr.msk.bf16.gmra.mrb[4].mxu1 %vm504_vm0, %v421_v36  ;;  %351 = vst.msk [vmem:[#allocation2 + $0x88] sm:$0xff] %vm333_vm1, %v1341_v18  ;;  %352 = vst.msk [vmem:[#allocation2 + $0x90] sm:$0xff] %vm333_vm1, %v1341_v18  ;;  %v431_v33 = vld [vmem:[#allocation2 + $0x8] sm:$0xff]  ;;  %v436_v40 = vld [vmem:[#allocation2 + $0x30] sm:$0xff] }
  0x24   : > { %1239 = vmatmul.mubr.msk.bf16.gmra.mrb[4].mxu0 %vm504_vm0, %v385_v37  ;;  %1208 = vmatprep.mubr.msk.bf16.mxu1 %vm504_vm0, %v422_v38  ;;  %353 = vst.msk [vmem:[#allocation2 + $0x98] sm:$0xff] %vm333_vm1, %v1341_v18  ;;  %354 = vst.msk [vmem:[#allocation2 + $0xa0] sm:$0xff] %vm333_vm1, %v1341_v18  ;;  %v434_v44 = vld [vmem:[#allocation2 + $0x20] sm:$0xff]  ;;  %v435_v54 = vld [vmem:[#allocation2 + $0x28] sm:$0xff] }
  0x25   : > { %1242 = vmatprep.mubr.msk.bf16.mxu0 %vm504_vm0, %v386_v39  ;;  %355 = vst.msk [vmem:[#allocation2 + $0xa8] sm:$0xff] %vm333_vm1, %v1341_v18  ;;  %356 = vst.msk [vmem:[#allocation2 + $0xb0] sm:$0xff] %vm333_vm1, %v1341_v18  ;;  %v1537_v47 = vld [vmem:[%s1650_s4] ss:$0 sm:$0xff] }
  0x26   : > { %357 = vst.msk [vmem:[#allocation2 + $0xb8] sm:$0xff] %vm333_vm1, %v1341_v18  ;;  %v440_v5 = vld [vmem:[#allocation2 + $0x50] sm:$0xff]  ;;  %v439_v18 = vld [vmem:[#allocation2 + $0x48] sm:$0xff] }
  0x27   : > { %v441_v13 = vld [vmem:[#allocation2 + $0x58] sm:$0xff] }
  0x2b   : > { %1209 = vmatmul.mubr.msk.bf16.gmra.mrb[8].mxu1 %vm504_vm0, %v423_v48 }
  0x2c   : > { %1243 = vmatmul.mubr.msk.bf16.gmra.mrb[8].mxu0 %vm504_vm0, %v387_v49  ;;  %1212 = vmatprep.mubr.msk.bf16.mxu1 %vm504_vm0, %v424_v50  ;;  %v437_v49 = vld [vmem:[#allocation2 + $0x38] sm:$0xff] }
  0x2d   : > { %1246 = vmatprep.mubr.msk.bf16.mxu0 %vm504_vm0, %v388_v51 }
  0x33   : > { %1213 = vmatmul.mubr.msk.bf16.gmra.mrb[12].mxu1 %vm504_vm0, %v425_v60 }
  0x34   : > { %1247 = vmatmul.mubr.msk.bf16.gmra.mrb[12].mxu0 %vm504_vm0, %v389_v61  ;;  %1216 = vmatprep.mubr.msk.bf16.mxu1 %vm504_vm0, %v426_v62 }
  0x35   : > { %1250 = vmatprep.mubr.msk.bf16.mxu0 %vm504_vm0, %v390_v63 }
  0x3b   : > { %1217 = vmatmul.mubr.msk.bf16.gmra.mrb[16].mxu1 %vm504_vm0, %v427_v8 }
  0x3c   : > { %1251 = vmatmul.mubr.msk.bf16.gmra.mrb[16].mxu0 %vm504_vm0, %v391_v9  ;;  %1220 = vmatprep.mubr.msk.bf16.mxu1 %vm504_vm0, %v428_v10  ;;  %v438_v9 = vld [vmem:[#allocation2 + $0x40] sm:$0xff] }
  0x3d   : > { %1254 = vmatprep.mubr.msk.bf16.mxu0 %vm504_vm0, %v392_v11 }
  0x43   : > { %1221 = vmatmul.mubr.msk.bf16.gmra.mrb[20].mxu1 %vm504_vm0, %v429_v16 }
  0x44   : > { %1255 = vmatmul.mubr.msk.bf16.gmra.mrb[20].mxu0 %vm504_vm0, %v393_v17 }
  0xee   : > { %v1202_v19 = vpop.f32.mrb[0].mxu1 }
  0xef   : > { %v1236_v21 = vpop.f32.mrb[0].mxu0  ;;  %v575_v22 = vpop.f32.mrb[1].mxu1 }
  0xf0   : > { %v779_v23 = vadd.f32 %v1236_v21, %v1202_v19  ;;  %v770_v25 = vpop.f32.mrb[1].mxu0  ;;  %v1203_v26 = vpop.f32.mrb[2].mxu1 }
  0xf1   : > { %v771_v27 = vadd.f32 %v770_v25, %v575_v22  ;;  %v1237_v29 = vpop.f32.mrb[2].mxu0  ;;  %v578_v30 = vpop.f32.mrb[3].mxu1 }
  0xf2   : > { %v867_v31 = vadd.f32 %v779_v23, %v432_v20  ;;  %v782_v32 = vadd.f32 %v1237_v29, %v1203_v26  ;;  %v773_v34 = vpop.f32.mrb[3].mxu0 }
  0xf3   : > { %v865_v35 = vadd.f32 %v771_v27, %v430_v24  ;;  %v774_v36 = vadd.f32 %v773_v34, %v578_v30 }
  0xf4   : > { %892 = vst.msk [vmem:[#allocation2 + $0x10] sm:$0xff] %vm333_vm1, %v867_v31  ;;  %v868_v37 = vadd.f32 %v782_v32, %v433_v28 }
  0xf5   : > { %890 = vst.msk [vmem:[#allocation2] sm:$0xff] %vm333_vm1, %v865_v35  ;;  %v866_v38 = vadd.f32 %v774_v36, %v431_v33  ;;  %v444_v33 = vld [vmem:[#allocation2 + $0x70] sm:$0xff] }
  0xf6   : > { %893 = vst.msk [vmem:[#allocation2 + $0x18] sm:$0xff] %vm333_vm1, %v868_v37  ;;  %v1206_v39 = vpop.f32.mrb[4].mxu1  ;;  %v442_v37 = vld [vmem:[#allocation2 + $0x60] sm:$0xff] }
  0xf7   : > { %891 = vst.msk [vmem:[#allocation2 + $0x8] sm:$0xff] %vm333_vm1, %v866_v38  ;;  %v1240_v41 = vpop.f32.mrb[4].mxu0  ;;  %v591_v42 = vpop.f32.mrb[5].mxu1 }
  0xf8   : > { %v795_v43 = vadd.f32 %v1240_v41, %v1206_v39  ;;  %v786_v45 = vpop.f32.mrb[5].mxu0  ;;  %v1207_v46 = vpop.f32.mrb[6].mxu1  ;;  %v445_v41 = vld [vmem:[#allocation2 + $0x78] sm:$0xff] }
  0xf9   : > { %v787_v48 = vadd.f32 %v786_v45, %v591_v42  ;;  %v1241_v50 = vpop.f32.mrb[6].mxu0  ;;  %v594_v51 = vpop.f32.mrb[7].mxu1 }
  0xfa   : > { %v871_v52 = vadd.f32 %v795_v43, %v436_v40  ;;  %v798_v53 = vadd.f32 %v1241_v50, %v1207_v46  ;;  %v789_v55 = vpop.f32.mrb[7].mxu0  ;;  %v443_v46 = vld [vmem:[#allocation2 + $0x68] sm:$0xff] }
  0xfb   : > { %v919_v56 = vld [vmem:[#allocation2 + $0x10] sm:$0xff]  ;;  %v869_v57 = vadd.f32 %v787_v48, %v434_v44  ;;  %v790_v58 = vadd.f32 %v789_v55, %v594_v51 }
  0xfc   : > { %v950_v59 = vadd.f32 %v1537_v47, %v919_v56  ;;  %v917_v60 = vld [vmem:[#allocation2] sm:$0xff]  ;;  %896 = vst.msk [vmem:[#allocation2 + $0x30] sm:$0xff] %vm333_vm1, %v871_v52  ;;  %v872_v61 = vadd.f32 %v798_v53, %v437_v49 }
  0xfd   : > { %v948_v62 = vadd.f32 %v1537_v47, %v917_v60  ;;  %v920_v63 = vld [vmem:[#allocation2 + $0x18] sm:$0xff]  ;;  %894 = vst.msk [vmem:[#allocation2 + $0x20] sm:$0xff] %vm333_vm1, %v869_v57  ;;  %v870_v0 = vadd.f32 %v790_v58, %v435_v54 }
  0xfe   : > { %974 = vst.msk [vmem:[%s1543_s7 + $0x10] sm:$0xff] %vm333_vm1, %v950_v59  ;;  %v951_v1 = vadd.f32 %v1537_v47, %v920_v63  ;;  %v918_v2 = vld [vmem:[#allocation2 + $0x8] sm:$0xff]  ;;  %897 = vst.msk [vmem:[#allocation2 + $0x38] sm:$0xff] %vm333_vm1, %v872_v61  ;;  %v1210_v3 = vpop.f32.mrb[8].mxu1 }
  0xff   : > { %972 = vst.msk [vmem:[%s1543_s7] sm:$0xff] %vm333_vm1, %v948_v62  ;;  %v949_v4 = vadd.f32 %v1537_v47, %v918_v2  ;;  %895 = vst.msk [vmem:[#allocation2 + $0x28] sm:$0xff] %vm333_vm1, %v870_v0  ;;  %v1244_v6 = vpop.f32.mrb[8].mxu0  ;;  %v607_v7 = vpop.f32.mrb[9].mxu1  ;;  %v448_v62 = vld [vmem:[#allocation2 + $0x90] sm:$0xff]  ;;  %v446_v2 = vld [vmem:[#allocation2 + $0x80] sm:$0xff] }
 0x100   : > { %975 = vst.msk [vmem:[%s1543_s7 + $0x18] sm:$0xff] %vm333_vm1, %v951_v1  ;;  %v811_v8 = vadd.f32 %v1244_v6, %v1210_v3  ;;  %v802_v10 = vpop.f32.mrb[9].mxu0  ;;  %v1211_v11 = vpop.f32.mrb[10].mxu1  ;;  %v449_v6 = vld [vmem:[#allocation2 + $0x98] sm:$0xff] }
 0x101   : > { %973 = vst.msk [vmem:[%s1543_s7 + $0x8] sm:$0xff] %vm333_vm1, %v949_v4  ;;  %v803_v12 = vadd.f32 %v802_v10, %v607_v7  ;;  %v1245_v14 = vpop.f32.mrb[10].mxu0  ;;  %v610_v15 = vpop.f32.mrb[11].mxu1 }
 0x102   : > { %v875_v16 = vadd.f32 %v811_v8, %v440_v5  ;;  %v814_v17 = vadd.f32 %v1245_v14, %v1211_v11  ;;  %v805_v19 = vpop.f32.mrb[11].mxu0  ;;  %v447_v11 = vld [vmem:[#allocation2 + $0x88] sm:$0xff] }
 0x103   : > { %v923_v20 = vld [vmem:[#allocation2 + $0x30] sm:$0xff]  ;;  %v873_v21 = vadd.f32 %v803_v12, %v438_v9  ;;  %v806_v22 = vadd.f32 %v805_v19, %v610_v15 }
 0x104   : > { %v954_v23 = vadd.f32 %v1537_v47, %v923_v20  ;;  %v921_v24 = vld [vmem:[#allocation2 + $0x20] sm:$0xff]  ;;  %900 = vst.msk [vmem:[#allocation2 + $0x50] sm:$0xff] %vm333_vm1, %v875_v16  ;;  %v876_v25 = vadd.f32 %v814_v17, %v441_v13 }
 0x105   : > { %v952_v26 = vadd.f32 %v1537_v47, %v921_v24  ;;  %v924_v27 = vld [vmem:[#allocation2 + $0x38] sm:$0xff]  ;;  %898 = vst.msk [vmem:[#allocation2 + $0x40] sm:$0xff] %vm333_vm1, %v873_v21  ;;  %v874_v28 = vadd.f32 %v806_v22, %v439_v18 }
 0x106   : > { %978 = vst.msk [vmem:[%s1543_s7 + $0x30] sm:$0xff] %vm333_vm1, %v954_v23  ;;  %v955_v29 = vadd.f32 %v1537_v47, %v924_v27  ;;  %v922_v30 = vld [vmem:[#allocation2 + $0x28] sm:$0xff]  ;;  %901 = vst.msk [vmem:[#allocation2 + $0x58] sm:$0xff] %vm333_vm1, %v876_v25  ;;  %v1214_v31 = vpop.f32.mrb[12].mxu1 }
 0x107   : > { %976 = vst.msk [vmem:[%s1543_s7 + $0x20] sm:$0xff] %vm333_vm1, %v952_v26  ;;  %v953_v32 = vadd.f32 %v1537_v47, %v922_v30  ;;  %899 = vst.msk [vmem:[#allocation2 + $0x48] sm:$0xff] %vm333_vm1, %v874_v28  ;;  %v1248_v34 = vpop.f32.mrb[12].mxu0  ;;  %v623_v35 = vpop.f32.mrb[13].mxu1  ;;  %v452_v26 = vld [vmem:[#allocation2 + $0xb0] sm:$0xff]  ;;  %v450_v30 = vld [vmem:[#allocation2 + $0xa0] sm:$0xff] }
 0x108   : > { %979 = vst.msk [vmem:[%s1543_s7 + $0x38] sm:$0xff] %vm333_vm1, %v955_v29  ;;  %v827_v36 = vadd.f32 %v1248_v34, %v1214_v31  ;;  %v818_v38 = vpop.f32.mrb[13].mxu0  ;;  %v1215_v39 = vpop.f32.mrb[14].mxu1  ;;  %v453_v34 = vld [vmem:[#allocation2 + $0xb8] sm:$0xff] }
 0x109   : > { %977 = vst.msk [vmem:[%s1543_s7 + $0x28] sm:$0xff] %vm333_vm1, %v953_v32  ;;  %v819_v40 = vadd.f32 %v818_v38, %v623_v35  ;;  %v1249_v42 = vpop.f32.mrb[14].mxu0  ;;  %v626_v43 = vpop.f32.mrb[15].mxu1 }
 0x10a   : > { %v879_v44 = vadd.f32 %v827_v36, %v444_v33  ;;  %v830_v45 = vadd.f32 %v1249_v42, %v1215_v39  ;;  %v821_v48 = vpop.f32.mrb[15].mxu0  ;;  %v451_v39 = vld [vmem:[#allocation2 + $0xa8] sm:$0xff] }
 0x10b   : > { %v927_v49 = vld [vmem:[#allocation2 + $0x50] sm:$0xff]  ;;  %v877_v50 = vadd.f32 %v819_v40, %v442_v37  ;;  %v822_v51 = vadd.f32 %v821_v48, %v626_v43 }
 0x10c   : > { %v958_v52 = vadd.f32 %v1537_v47, %v927_v49  ;;  %v925_v53 = vld [vmem:[#allocation2 + $0x40] sm:$0xff]  ;;  %904 = vst.msk [vmem:[#allocation2 + $0x70] sm:$0xff] %vm333_vm1, %v879_v44  ;;  %v880_v54 = vadd.f32 %v830_v45, %v445_v41 }
 0x10d   : > { %v956_v55 = vadd.f32 %v1537_v47, %v925_v53  ;;  %v928_v56 = vld [vmem:[#allocation2 + $0x58] sm:$0xff]  ;;  %902 = vst.msk [vmem:[#allocation2 + $0x60] sm:$0xff] %vm333_vm1, %v877_v50  ;;  %v878_v57 = vadd.f32 %v822_v51, %v443_v46 }
 0x10e   : > { %982 = vst.msk [vmem:[%s1543_s7 + $0x50] sm:$0xff] %vm333_vm1, %v958_v52  ;;  %v959_v58 = vadd.f32 %v1537_v47, %v928_v56  ;;  %v926_v59 = vld [vmem:[#allocation2 + $0x48] sm:$0xff]  ;;  %905 = vst.msk [vmem:[#allocation2 + $0x78] sm:$0xff] %vm333_vm1, %v880_v54  ;;  %v1218_v60 = vpop.f32.mrb[16].mxu1 }
 0x10f   : > { %980 = vst.msk [vmem:[%s1543_s7 + $0x40] sm:$0xff] %vm333_vm1, %v956_v55  ;;  %v957_v61 = vadd.f32 %v1537_v47, %v926_v59  ;;  %903 = vst.msk [vmem:[#allocation2 + $0x68] sm:$0xff] %vm333_vm1, %v878_v57  ;;  %v1252_v63 = vpop.f32.mrb[16].mxu0  ;;  %v639_v0 = vpop.f32.mrb[17].mxu1 }
 0x110   : > { %983 = vst.msk [vmem:[%s1543_s7 + $0x58] sm:$0xff] %vm333_vm1, %v959_v58  ;;  %v843_v1 = vadd.f32 %v1252_v63, %v1218_v60  ;;  %v834_v3 = vpop.f32.mrb[17].mxu0  ;;  %v1219_v4 = vpop.f32.mrb[18].mxu1 }
 0x111   : > { %981 = vst.msk [vmem:[%s1543_s7 + $0x48] sm:$0xff] %vm333_vm1, %v957_v61  ;;  %v835_v5 = vadd.f32 %v834_v3, %v639_v0  ;;  %v1253_v7 = vpop.f32.mrb[18].mxu0  ;;  %v642_v8 = vpop.f32.mrb[19].mxu1 }
 0x112   : > { %v883_v9 = vadd.f32 %v843_v1, %v448_v62  ;;  %v846_v10 = vadd.f32 %v1253_v7, %v1219_v4  ;;  %v837_v12 = vpop.f32.mrb[19].mxu0 }
 0x113   : > { %v931_v13 = vld [vmem:[#allocation2 + $0x70] sm:$0xff]  ;;  %v881_v14 = vadd.f32 %v835_v5, %v446_v2  ;;  %v838_v15 = vadd.f32 %v837_v12, %v642_v8 }
 0x114   : > { %v962_v16 = vadd.f32 %v1537_v47, %v931_v13  ;;  %v929_v17 = vld [vmem:[#allocation2 + $0x60] sm:$0xff]  ;;  %908 = vst.msk [vmem:[#allocation2 + $0x90] sm:$0xff] %vm333_vm1, %v883_v9  ;;  %v884_v18 = vadd.f32 %v846_v10, %v449_v6 }
 0x115   : > { %v960_v19 = vadd.f32 %v1537_v47, %v929_v17  ;;  %v932_v20 = vld [vmem:[#allocation2 + $0x78] sm:$0xff]  ;;  %906 = vst.msk [vmem:[#allocation2 + $0x80] sm:$0xff] %vm333_vm1, %v881_v14  ;;  %v882_v21 = vadd.f32 %v838_v15, %v447_v11 }
 0x116   : > { %986 = vst.msk [vmem:[%s1543_s7 + $0x70] sm:$0xff] %vm333_vm1, %v962_v16  ;;  %v963_v22 = vadd.f32 %v1537_v47, %v932_v20  ;;  %v930_v23 = vld [vmem:[#allocation2 + $0x68] sm:$0xff]  ;;  %909 = vst.msk [vmem:[#allocation2 + $0x98] sm:$0xff] %vm333_vm1, %v884_v18  ;;  %v1222_v24 = vpop.f32.mrb[20].mxu1 }
 0x117   : > { %984 = vst.msk [vmem:[%s1543_s7 + $0x60] sm:$0xff] %vm333_vm1, %v960_v19  ;;  %v961_v25 = vadd.f32 %v1537_v47, %v930_v23  ;;  %907 = vst.msk [vmem:[#allocation2 + $0x88] sm:$0xff] %vm333_vm1, %v882_v21  ;;  %v1256_v27 = vpop.f32.mrb[20].mxu0  ;;  %v655_v28 = vpop.f32.mrb[21].mxu1 }
 0x118   : > { %987 = vst.msk [vmem:[%s1543_s7 + $0x78] sm:$0xff] %vm333_vm1, %v963_v22  ;;  %v859_v29 = vadd.f32 %v1256_v27, %v1222_v24  ;;  %v850_v31 = vpop.f32.mrb[21].mxu0  ;;  %v1223_v32 = vpop.f32.mrb[22].mxu1 }
 0x119   : > { %985 = vst.msk [vmem:[%s1543_s7 + $0x68] sm:$0xff] %vm333_vm1, %v961_v25  ;;  %v851_v33 = vadd.f32 %v850_v31, %v655_v28  ;;  %v1257_v35 = vpop.f32.mrb[22].mxu0  ;;  %v658_v36 = vpop.f32.mrb[23].mxu1 }
 0x11a   : > { %v887_v37 = vadd.f32 %v859_v29, %v452_v26  ;;  %v862_v38 = vadd.f32 %v1257_v35, %v1223_v32  ;;  %v853_v40 = vpop.f32.mrb[23].mxu0 }
 0x11b   : > { %v935_v41 = vld [vmem:[#allocation2 + $0x90] sm:$0xff]  ;;  %v885_v42 = vadd.f32 %v851_v33, %v450_v30  ;;  %v854_v43 = vadd.f32 %v853_v40, %v658_v36 }
 0x11c   : > { %v966_v44 = vadd.f32 %v1537_v47, %v935_v41  ;;  %v933_v45 = vld [vmem:[#allocation2 + $0x80] sm:$0xff]  ;;  %912 = vst.msk [vmem:[#allocation2 + $0xb0] sm:$0xff] %vm333_vm1, %v887_v37  ;;  %v888_v46 = vadd.f32 %v862_v38, %v453_v34 }
 0x11d   : > { %v964_v48 = vadd.f32 %v1537_v47, %v933_v45  ;;  %v936_v49 = vld [vmem:[#allocation2 + $0x98] sm:$0xff]  ;;  %910 = vst.msk [vmem:[#allocation2 + $0xa0] sm:$0xff] %vm333_vm1, %v885_v42  ;;  %v886_v50 = vadd.f32 %v854_v43, %v451_v39 }
 0x11e   : > { %990 = vst.msk [vmem:[%s1543_s7 + $0x90] sm:$0xff] %vm333_vm1, %v966_v44  ;;  %v967_v51 = vadd.f32 %v1537_v47, %v936_v49  ;;  %v934_v52 = vld [vmem:[#allocation2 + $0x88] sm:$0xff]  ;;  %913 = vst.msk [vmem:[#allocation2 + $0xb8] sm:$0xff] %vm333_vm1, %v888_v46 }
 0x11f   : > { %988 = vst.msk [vmem:[%s1543_s7 + $0x80] sm:$0xff] %vm333_vm1, %v964_v48  ;;  %v965_v53 = vadd.f32 %v1537_v47, %v934_v52  ;;  %911 = vst.msk [vmem:[#allocation2 + $0xa8] sm:$0xff] %vm333_vm1, %v886_v50 }
 0x120   : > { %991 = vst.msk [vmem:[%s1543_s7 + $0x98] sm:$0xff] %vm333_vm1, %v967_v51 }
 0x121   : > { %989 = vst.msk [vmem:[%s1543_s7 + $0x88] sm:$0xff] %vm333_vm1, %v965_v53 }
 0x123   : > { %v939_v54 = vld [vmem:[#allocation2 + $0xb0] sm:$0xff] }
 0x124   : > { %v970_v55 = vadd.f32 %v1537_v47, %v939_v54  ;;  %v937_v56 = vld [vmem:[#allocation2 + $0xa0] sm:$0xff] }
 0x125   : > { %v968_v57 = vadd.f32 %v1537_v47, %v937_v56  ;;  %v940_v58 = vld [vmem:[#allocation2 + $0xb8] sm:$0xff] }
 0x126   : > { %994 = vst.msk [vmem:[%s1543_s7 + $0xb0] sm:$0xff] %vm333_vm1, %v970_v55  ;;  %v971_v59 = vadd.f32 %v1537_v47, %v940_v58  ;;  %v938_v60 = vld [vmem:[#allocation2 + $0xa8] sm:$0xff] }
 0x127   : > { %992 = vst.msk [vmem:[%s1543_s7 + $0xa0] sm:$0xff] %vm333_vm1, %v968_v57  ;;  %v969_v61 = vadd.f32 %v1537_v47, %v938_v60 }
 0x128   : > { %995 = vst.msk [vmem:[%s1543_s7 + $0xb8] sm:$0xff] %vm333_vm1, %v971_v59 }
 0x129   : > { %993 = vst.msk [vmem:[%s1543_s7 + $0xa8] sm:$0xff] %vm333_vm1, %v969_v61 }
 0x12a PF: > { %s15_s20 = sadd.s32 1, %s1339_s20   ;;  %s1652_s18 = smov %s1335_s19 }
 0x12b   : > { %p12_p5 = scmp.ge.s32.totalorder %s15_s20, 5   ;;  %s1653_s19 = smov %s1655_s21 }
 0x12d   :  { %14 = sbr.rel (!%p12_p5) target bundleno = 2 (0x2), region = 87 }

// kernel: dcnn_forward.29
= control target key start
LH: loop header
LB: loop body
LE: loop exit
PB: predicated region body
PF: predicated region fallthrough
CT: control target
= control target key end

     0   :  { %vm108_vm0 = vcmask 261120   ;;  %vm229_vm1 = vcmask 523264   ;;  %s380_s5 = inlined_call_operand.vmem [shape: bf16[32,64], index: 5, kind: input, shape index: {}]   ;;  %s381_s4 = inlined_call_operand.vmem [shape: bf16[32,64], index: 4, kind: input, shape index: {}]   ;;  %s382_s0 = inlined_call_operand.vmem [shape: f32[24,32], index: 0, kind: input, shape index: {}]   ;;  %s383_s1 = inlined_call_operand.vmem [shape: f32[24,32], index: 1, kind: input, shape index: {}]   ;;  %s384_s2 = inlined_call_operand.vmem [shape: f32[24,32], index: 2, kind: input, shape index: {}]   ;;  %s385_s3 = inlined_call_operand.vmem [shape: f32[24,32], index: 3, kind: input, shape index: {}]   ;;  %s386_s6 = inlined_call_operand.vmem [shape: f32[24,64], index: 6, kind: output, shape index: {}]  }
   0x1   :  { %v272_v0 = vld [vmem:[%s380_s5] sm:$0xff]   ;;  %v274_v2 = vld [vmem:[%s380_s5 + $0x8] sm:$0xff]   ;;  %v26_v12 = vld [vmem:[%s382_s0 + $0x10] sm:$0xff] }
   0x2   :  { %v273_v1 = vld [vmem:[%s381_s4] sm:$0xff]   ;;  %253 = vmatprep.subr.bf16.mxu1 %v272_v0  ;;  %v275_v3 = vld [vmem:[%s381_s4 + $0x8] sm:$0xff]   ;;  %v29_v14 = vld [vmem:[%s383_s1 + $0x10] sm:$0xff]  ;;  %v38_v16 = vmul.f32 %v26_v12, %v26_v12 }
   0x3   :  { %261 = vmatprep.subr.bf16.mxu0 %v273_v1  ;;  %254 = vmatpush3.bf16.msra.mxu1 %v272_v0  ;;  %v24_v4 = vld [vmem:[%s382_s0] sm:$0xff]  ;;  %v25_v5 = vld [vmem:[%s382_s0 + $0x8] sm:$0xff]  ;;  %v41_v18 = vmul.f32 %v29_v14, %v29_v14  ;;  %v32_v40 = vld [vmem:[%s384_s2 + $0x10] sm:$0xff] }
   0x4   :  { %262 = vmatpush3.bf16.msra.mxu0 %v273_v1  ;;  %255 = vmatprep.subr.bf16.mxu1 %v274_v2  ;;  %v27_v6 = vld [vmem:[%s383_s1] sm:$0xff]  ;;  %v28_v7 = vld [vmem:[%s383_s1 + $0x8] sm:$0xff]  ;;  %v36_v8 = vmul.f32 %v24_v4, %v24_v4  ;;  %v37_v9 = vmul.f32 %v25_v5, %v25_v5  ;;  %v35_v41 = vld [vmem:[%s385_s3 + $0x10] sm:$0xff]  ;;  %v76_v44 = vmul.f32 %v32_v40, %v29_v14 }
   0x5   :  { %263 = vmatprep.subr.bf16.mxu0 %v275_v3  ;;  %v39_v10 = vmul.f32 %v27_v6, %v27_v6  ;;  %v40_v11 = vmul.f32 %v28_v7, %v28_v7  ;;  %v44_v20 = vadd.f32 %v41_v18, %v38_v16  ;;  %v30_v26 = vld [vmem:[%s384_s2] sm:$0xff]  ;;  %v31_v30 = vld [vmem:[%s384_s2 + $0x8] sm:$0xff]  ;;  %v79_v45 = vmul.f32 %v35_v41, %v26_v12 }
   0x6   :  { %v33_v28 = vld [vmem:[%s385_s3] sm:$0xff]  ;;  %v34_v31 = vld [vmem:[%s385_s3 + $0x8] sm:$0xff]  ;;  %v74_v32 = vmul.f32 %v30_v26, %v27_v6  ;;  %v60_v34 = vmul.f32 %v30_v26, %v24_v4  ;;  %v75_v36 = vmul.f32 %v31_v30, %v28_v7  ;;  %v61_v38 = vmul.f32 %v31_v30, %v25_v5 }
   0x7   :  { %256 = vmatpush3.bf16.msra.mxu1 %v274_v2  ;;  %v42_v13 = vadd.f32 %v39_v10, %v36_v8  ;;  %v43_v15 = vadd.f32 %v40_v11, %v37_v9  ;;  %v47_v21 = vadd.f32 1e-12, %v44_v20  ;;  %v77_v33 = vmul.f32 %v33_v28, %v24_v4 }
   0x8   :  { %264 = vmatpush3.bf16.msra.mxu0 %v275_v3  ;;  %v63_v35 = vmul.f32 %v33_v28, %v27_v6  ;;  %v78_v37 = vmul.f32 %v34_v31, %v25_v5  ;;  %v64_v39 = vmul.f32 %v34_v31, %v28_v7  ;;  %v62_v46 = vmul.f32 %v32_v40, %v26_v12 }
   0x9   :  { %v45_v17 = vadd.f32 1e-12, %v42_v13  ;;  %v46_v19 = vadd.f32 1e-12, %v43_v15  ;;  %v80_v42 = vadd.f32 %v77_v33, %v74_v32  ;;  %v65_v47 = vmul.f32 %v35_v41, %v29_v14 }
   0xa   :  { %v66_v43 = vsub.f32 %v60_v34, %v63_v35  ;;  %v81_v49 = vadd.f32 %v78_v37, %v75_v36  ;;  %v67_v50 = vsub.f32 %v61_v38, %v64_v39  ;;  %v82_v56 = vadd.f32 %v79_v45, %v76_v44 }
   0xb   :  { %276 = vrsqrt.f32 %v45_v17  ;;  %v68_v57 = vsub.f32 %v62_v46, %v65_v47 }
   0xc   :  { %278 = vrsqrt.f32 %v46_v19 }
   0xd   :  { %280 = vrsqrt.f32 %v47_v21 }
  0x15   :  { %v277_v22 = vpop.eup %276 }
  0x16   :  { %v279_v23 = vpop.eup %278  ;;  %v51_v24 = vmul.f32 %v277_v22, %v42_v13 }
  0x17   :  { %v52_v25 = vmul.f32 %v279_v23, %v43_v15  ;;  %v281_v27 = vpop.eup %280 }
  0x18   :  { %282 = vtanh.f32 %v51_v24  ;;  %v53_v29 = vmul.f32 %v281_v27, %v44_v20 }
  0x19   :  { %284 = vtanh.f32 %v52_v25 }
  0x1a   :  { %286 = vtanh.f32 %v53_v29 }
  0x22   :  { %v283_v48 = vpop.eup %282 }
  0x23   :  { %v285_v51 = vpop.eup %284  ;;  %v57_v52 = vmul.f32 %v283_v48, %v277_v22 }
  0x24   :  { %v58_v53 = vmul.f32 %v285_v51, %v279_v23  ;;  %v287_v58 = vpop.eup %286 }
  0x25   :  { %v83_v54 = vmul.f32 %v80_v42, %v57_v52  ;;  %v69_v55 = vmul.f32 %v66_v43, %v57_v52  ;;  %v59_v61 = vmul.f32 %v287_v58, %v281_v27 }
  0x26   :  { %v84_v59 = vmul.f32 %v81_v49, %v58_v53  ;;  %v70_v60 = vmul.f32 %v67_v50, %v58_v53 }
  0x27   :  { %v85_v0 = vmul.f32 %v82_v56, %v59_v61  ;;  %v71_v1 = vmul.f32 %v68_v57, %v59_v61 }
  0x28   :  { %v86_v62 = vpack.c.bf16 %v84_v59, %v83_v54  ;;  %v72_v63 = vpack.c.bf16 %v70_v60, %v69_v55 }
  0x29   :  { %v87_v2 = vpack.c.bf16 %v85_v0, %v85_v0  ;;  %v73_v3 = vpack.c.bf16 %v71_v1, %v71_v1 }
  0x2a   :  { %257 = vmatprep.mubr.msk.bf16.mxu1 %vm108_vm0, %v86_v62  ;;  %265 = vmatprep.mubr.msk.bf16.mxu0 %vm108_vm0, %v72_v63 }
  0x2b   :  { %258 = vmatmul.mubr.msk.bf16.vlgmr.msra.gmra.mrb[0].mxu1 %vm108_vm0, %v87_v2  ;;  %266 = vmatmul.mubr.msk.bf16.vlgmr.msra.gmra.mrb[0].mxu0 %vm108_vm0, %v73_v3 }
  0xfe   :  { %v259_v4 = vpop.f32.mrb[0].mxu1  ;;  %v267_v5 = vpop.f32.mrb[0].mxu0 }
  0xff   :  { %v224_v6 = vadd.f32 %v267_v5, %v259_v4  ;;  %v149_v7 = vpop.f32.mrb[1].mxu1  ;;  %v215_v8 = vpop.f32.mrb[1].mxu0 }
 0x100   :  { %v216_v9 = vadd.f32 %v215_v8, %v149_v7  ;;  %v260_v10 = vpop.f32.mrb[2].mxu1  ;;  %v268_v11 = vpop.f32.mrb[2].mxu0 }
 0x101   :  { %232 = vst.msk [vmem:[%s386_s6 + $0x10] sm:$0xff] %vm229_vm1, %v224_v6  ;;  %v152_v12 = vpop.f32.mrb[3].mxu1  ;;  %v218_v13 = vpop.f32.mrb[3].mxu0 }
 0x102   :  { %230 = vst.msk [vmem:[%s386_s6] sm:$0xff] %vm229_vm1, %v216_v9  ;;  %v219_v14 = vadd.f32 %v218_v13, %v152_v12 }
 0x104   :  { %231 = vst.msk [vmem:[%s386_s6 + $0x8] sm:$0xff] %vm229_vm1, %v219_v14 }

</bundles_post_ra>
